<compile_context>
chip_gen: v6e
topology: v6e:2x2x1
jax: 0.10.0
libtpu: 0.0.40
codegen_flags: <defaults>
</compile_context>

<pallas_src>
import functools

import jax
import jax.numpy as jnp
from jax.experimental import pallas as pl
from jax.experimental.pallas import tpu as pltpu

EPS = 1e-5


def _round_up(x, m):
    return (x + m - 1) // m * m


# ---------------------------------------------------------------------------
# BN (eval, folded to scale/shift) + ReLU, tiled over a lane-dense 2D view.
# ---------------------------------------------------------------------------
def _bn_relu_kernel(x_ref, s_ref, t_ref, o_ref):
    y = jnp.maximum(x_ref[...] * s_ref[...] + t_ref[...], 0.0)
    o_ref[...] = y.astype(o_ref.dtype)


def bn_relu(x, scale, shift, out_dtype=jnp.bfloat16):
    n, d, h, w, c = x.shape
    rows, cols = n * d, h * w * c
    x2 = x.reshape(rows, cols)
    s2 = jnp.tile(scale.astype(jnp.float32), h * w).reshape(1, cols)
    t2 = jnp.tile(shift.astype(jnp.float32), h * w).reshape(1, cols)
    tr = min(512, _round_up(rows, 8))
    rows_p = _round_up(rows, tr)
    if rows_p != rows:
        x2 = jnp.pad(x2, ((0, rows_p - rows), (0, 0)))
    out = pl.pallas_call(
        _bn_relu_kernel,
        out_shape=jax.ShapeDtypeStruct((rows_p, cols), out_dtype),
        grid=(rows_p // tr,),
        in_specs=[pl.BlockSpec((tr, cols), lambda i: (i, 0)),
                  pl.BlockSpec((1, cols), lambda i: (0, 0)),
                  pl.BlockSpec((1, cols), lambda i: (0, 0))],
        out_specs=pl.BlockSpec((tr, cols), lambda i: (i, 0)),
        compiler_params=pltpu.CompilerParams(dimension_semantics=("parallel",)),
    )(x2, s2, t2)
    return out[:rows].reshape(n, d, h, w, c)


# ---------------------------------------------------------------------------
# Tiled matmul (M,K)x(K,Nout) with f32 VMEM accumulator and a fused
# per-output-channel affine (+ optional ReLU).  bf16 operands, f32 accumulate.
# Used (after im2col on the small stride-2 input) for conv1 and the shortcut.
# ---------------------------------------------------------------------------
def _matmul_affine_kernel(x_ref, w_ref, s_ref, t_ref, o_ref, acc_ref, *, relu):
    k = pl.program_id(1)

    @pl.when(k == 0)
    def _():
        acc_ref[...] = jnp.zeros_like(acc_ref)

    acc_ref[...] += jnp.dot(x_ref[...], w_ref[...],
                            preferred_element_type=jnp.float32)

    @pl.when(k == pl.num_programs(1) - 1)
    def _():
        y = acc_ref[...] * s_ref[...] + t_ref[...]
        if relu:
            y = jnp.maximum(y, 0.0)
        o_ref[...] = y.astype(o_ref.dtype)


def matmul_affine(x, w, scale, shift, *, relu=False, out_dtype=jnp.float32,
                  tm=256, tk=512):
    m, kdim = x.shape
    nout = w.shape[1]
    tm = min(tm, _round_up(m, 8))
    tk = min(tk, _round_up(kdim, 128))
    m_p = _round_up(m, tm)
    k_p = _round_up(kdim, tk)
    if m_p != m or k_p != kdim:
        x = jnp.pad(x, ((0, m_p - m), (0, k_p - kdim)))
    if k_p != kdim:
        w = jnp.pad(w, ((0, k_p - kdim), (0, 0)))
    s = scale.reshape(1, nout).astype(jnp.float32)
    t = shift.reshape(1, nout).astype(jnp.float32)
    out = pl.pallas_call(
        functools.partial(_matmul_affine_kernel, relu=relu),
        out_shape=jax.ShapeDtypeStruct((m_p, nout), out_dtype),
        grid=(m_p // tm, k_p // tk),
        in_specs=[pl.BlockSpec((tm, tk), lambda i, k: (i, k)),
                  pl.BlockSpec((tk, nout), lambda i, k: (k, 0)),
                  pl.BlockSpec((1, nout), lambda i, k: (0, 0)),
                  pl.BlockSpec((1, nout), lambda i, k: (0, 0))],
        out_specs=pl.BlockSpec((tm, nout), lambda i, k: (i, 0)),
        scratch_shapes=[pltpu.VMEM((tm, nout), jnp.float32)],
        compiler_params=pltpu.CompilerParams(
            dimension_semantics=("parallel", "arbitrary")),
    )(x, w, s, t)
    return out[:m]


def _im2col_s2(xp, k=3, stride=2):
    """xp: already padded (N, Dp, Hp, Wp, C) -> (N*OD*OH*OW, k^3*C).  Glue only."""
    n, dp, hp, wp, c = xp.shape
    od = (dp - k) // stride + 1
    oh = (hp - k) // stride + 1
    ow = (wp - k) // stride + 1
    taps = []
    for kd in range(k):
        for kh in range(k):
            for kw in range(k):
                taps.append(xp[:, kd:kd + stride * od:stride,
                               kh:kh + stride * oh:stride,
                               kw:kw + stride * ow:stride, :])
    p = jnp.stack(taps, axis=4)                       # (N, OD, OH, OW, k^3, C)
    return p.reshape(n * od * oh * ow, k * k * k * c), (n, od, oh, ow)


# ---------------------------------------------------------------------------
# Direct 3x3x3 stride-1 conv (no im2col in HBM).  Grid (N, OD, 3): innermost
# axis is the kernel-depth tap accumulating into an f32 VMEM scratch plane.
# Fuses conv bias and emits per-plane sum/max pooling for the CBAM ChannelGate.
# ---------------------------------------------------------------------------
def _conv3_s1_kernel(xp_ref, w_ref, s_ref, t_ref, o_ref, psum_ref, pmax_ref,
                     acc_ref):
    oh, ow, cout = o_ref.shape[2], o_ref.shape[3], o_ref.shape[4]
    kd = pl.program_id(2)

    @pl.when(kd == 0)
    def _():
        acc_ref[...] = jnp.zeros_like(acc_ref)

    for i in range(oh):
        row = jnp.zeros((ow, cout), jnp.float32)
        for kh in range(3):
            for kw in range(3):
                row = row + jnp.dot(xp_ref[0, 0, i + kh, kw:kw + ow, :],
                                    w_ref[0, kh, kw],
                                    preferred_element_type=jnp.float32)
        acc_ref[i] = acc_ref[i] + row

    @pl.when(kd == 2)
    def _():
        y = acc_ref[...] * s_ref[...] + t_ref[...]
        o_ref[0, 0] = y.astype(o_ref.dtype)
        colsum = jnp.sum(jnp.sum(y, axis=0), axis=0, keepdims=True)   # (1, C)
        colmax = jnp.max(jnp.max(y, axis=0), axis=0, keepdims=True)   # (1, C)
        psum_ref[...] = colsum.reshape(psum_ref.shape)
        pmax_ref[...] = colmax.reshape(pmax_ref.shape)


def conv3x3x3_s1(xp, w, scale, shift, *, out_dtype=jnp.float32):
    # xp: zero-padded (N, OD+2, OH+2, OW+2, Cin);  w: (3, 3, 3, Cin, Cout)
    n, dp, hp, wp, cin = xp.shape
    od, oh, ow = dp - 2, hp - 2, wp - 2
    cout = w.shape[-1]
    s = scale.reshape(1, cout).astype(jnp.float32)
    t = shift.reshape(1, cout).astype(jnp.float32)
    return pl.pallas_call(
        _conv3_s1_kernel,
        out_shape=(jax.ShapeDtypeStruct((n, od, oh, ow, cout), out_dtype),
                   jax.ShapeDtypeStruct((n, od, 1, cout), jnp.float32),
                   jax.ShapeDtypeStruct((n, od, 1, cout), jnp.float32)),
        grid=(n, od, 3),
        in_specs=[pl.BlockSpec((1, 1, hp, wp, cin),
                               lambda b, d, kd: (b, d + kd, 0, 0, 0)),
                  pl.BlockSpec((1, 3, 3, cin, cout),
                               lambda b, d, kd: (kd, 0, 0, 0, 0)),
                  pl.BlockSpec((1, cout), lambda b, d, kd: (0, 0)),
                  pl.BlockSpec((1, cout), lambda b, d, kd: (0, 0))],
        out_specs=(pl.BlockSpec((1, 1, oh, ow, cout),
                                lambda b, d, kd: (b, d, 0, 0, 0)),
                   pl.BlockSpec((1, 1, 1, cout), lambda b, d, kd: (b, d, 0, 0)),
                   pl.BlockSpec((1, 1, 1, cout), lambda b, d, kd: (b, d, 0, 0))),
        scratch_shapes=[pltpu.VMEM((oh, ow, cout), jnp.float32)],
        compiler_params=pltpu.CompilerParams(
            dimension_semantics=("parallel", "parallel", "arbitrary")),
    )(xp, w.astype(xp.dtype), s, t)


# ---------------------------------------------------------------------------
# ChannelGate application + ChannelPool (max/mean over channels), per plane.
# (The gated activation itself is never written to HBM - it is recomputed in
#  the final fused kernel.)
# ---------------------------------------------------------------------------
def _gate_pool_kernel(h_ref, g_ref, comp_ref):
    x = h_ref[0, 0] * g_ref[...]                          # (OH, OW, C)*(1,1,C)
    cmax = jnp.max(x, axis=-1, keepdims=True)
    cmean = jnp.mean(x, axis=-1, keepdims=True)
    comp_ref[0, 0] = jnp.concatenate([cmax, cmean], axis=-1).astype(comp_ref.dtype)


def gate_pool(h, gate):
    n, od, oh, ow, c = h.shape
    g = gate.reshape(n, 1, c).astype(h.dtype)
    return pl.pallas_call(
        _gate_pool_kernel,
        out_shape=jax.ShapeDtypeStruct((n, od, oh, ow, 2), h.dtype),
        grid=(n, od),
        in_specs=[pl.BlockSpec((1, 1, oh, ow, c), lambda b, d: (b, d, 0, 0, 0)),
                  pl.BlockSpec((1, 1, c), lambda b, d: (b, 0, 0))],
        out_specs=pl.BlockSpec((1, 1, oh, ow, 2), lambda b, d: (b, d, 0, 0, 0)),
        compiler_params=pltpu.CompilerParams(
            dimension_semantics=("parallel", "parallel")),
    )(h, g)


# ---------------------------------------------------------------------------
# Fused: SpatialGate 7x7x7 conv (VPU, 2->1 ch) + folded BN + sigmoid +
# channel-gate application + spatial-gate application + residual add.
# Grid (N, OD, 7): kernel-depth tap innermost, VMEM accumulator plane.
# ---------------------------------------------------------------------------
def _spatial_residual_kernel(cp_ref, w_ref, tsp_ref, h_ref, g_ref, sc_ref,
                             o_ref, acc_ref):
    oh, ow = o_ref.shape[2], o_ref.shape[3]
    ksp = w_ref.shape[1]
    kd = pl.program_id(2)

    @pl.when(kd == 0)
    def _():
        acc_ref[...] = jnp.zeros_like(acc_ref)

    acc = acc_ref[...]
    for kh in range(ksp):
        for kw in range(ksp):
            acc = acc + (cp_ref[0, 0, kh:kh + oh, kw:kw + ow, :]
                         * w_ref[0, kh:kh + 1, kw:kw + 1, :])
    acc_ref[...] = acc

    @pl.when(kd == ksp - 1)
    def _():
        sp = jnp.sum(acc_ref[...], axis=-1, keepdims=True) + tsp_ref[...]
        gate_sp = jax.nn.sigmoid(sp)                       # (OH, OW, 1)
        out = h_ref[0, 0] * g_ref[...] * gate_sp + sc_ref[0, 0]
        o_ref[0, 0] = out.astype(o_ref.dtype)


def spatial_residual(comp_p, wsp, tsp, h, gate, sc):
    n, od, oh, ow, c = h.shape
    ksp = wsp.shape[0]
    hp_, wp_ = oh + ksp - 1, ow + ksp - 1
    g = gate.reshape(n, 1, c).astype(jnp.float32)
    t = jnp.asarray(tsp, jnp.float32).reshape(1, 1)
    return pl.pallas_call(
        _spatial_residual_kernel,
        out_shape=jax.ShapeDtypeStruct(h.shape, h.dtype),
        grid=(n, od, ksp),
        in_specs=[pl.BlockSpec((1, 1, hp_, wp_, 2),
                               lambda b, d, kd: (b, d + kd, 0, 0, 0)),
                  pl.BlockSpec((1, ksp, ksp, 2), lambda b, d, kd: (kd, 0, 0, 0)),
                  pl.BlockSpec((1, 1), lambda b, d, kd: (0, 0)),
                  pl.BlockSpec((1, 1, oh, ow, c),
                               lambda b, d, kd: (b, d, 0, 0, 0)),
                  pl.BlockSpec((1, 1, c), lambda b, d, kd: (b, 0, 0)),
                  pl.BlockSpec((1, 1, oh, ow, c),
                               lambda b, d, kd: (b, d, 0, 0, 0))],
        out_specs=pl.BlockSpec((1, 1, oh, ow, c),
                               lambda b, d, kd: (b, d, 0, 0, 0)),
        scratch_shapes=[pltpu.VMEM((oh, ow, 2), jnp.float32)],
        compiler_params=pltpu.CompilerParams(
            dimension_semantics=("parallel", "parallel", "arbitrary")),
    )(comp_p, wsp, t, h, g, sc)


# ---------------------------------------------------------------------------
# Parameters (deterministic synthetic init) and forward pass.
# ---------------------------------------------------------------------------
def init_params(key, cin, cout, reduction=16):
    hid = max(cout // reduction, 1)
    ks = iter(jax.random.split(key, 32))

    def nrm(shape, s=0.1):
        return jax.random.normal(next(ks), shape, jnp.float32) * s

    def pos(shape):
        return jax.random.uniform(next(ks), shape, jnp.float32, 0.5, 1.5)

    p = {}
    p['bn1_g'], p['bn1_b'] = pos((cin,)), nrm((cin,))
    p['bn1_rm'], p['bn1_rv'] = nrm((cin,)), pos((cin,))
    p['w1'], p['b1'] = nrm((3, 3, 3, cin, cout)), nrm((cout,))
    p['bn2_g'], p['bn2_b'] = pos((cout,)), nrm((cout,))
    p['bn2_rm'], p['bn2_rv'] = nrm((cout,)), pos((cout,))
    p['w2'], p['b2'] = nrm((3, 3, 3, cout, cout)), nrm((cout,))
    p['fc1_w'], p['fc1_b'] = nrm((cout, hid)), nrm((hid,))
    p['fc2_w'], p['fc2_b'] = nrm((hid, cout)), nrm((cout,))
    p['wsp'], p['bsp'] = nrm((7, 7, 7, 2, 1)), nrm((1,))
    p['bnsp_g'], p['bnsp_b'] = pos((1,)), nrm((1,))
    p['bnsp_rm'], p['bnsp_rv'] = nrm((1,)), pos((1,))
    p['wsc'], p['bsc'] = nrm((3, 3, 3, cin, cout)), nrm((cout,))
    p['bnsc_g'], p['bnsc_b'] = pos((cout,)), nrm((cout,))
    p['bnsc_rm'], p['bnsc_rv'] = nrm((cout,)), pos((cout,))
    return p


def resblock_forward(params, x_ncdhw):
    p = params
    x = jnp.transpose(x_ncdhw, (0, 2, 3, 4, 1))          # NCDHW -> NDHWC
    cout = p['w1'].shape[-1]
    pad1 = ((0, 0), (1, 1), (1, 1), (1, 1), (0, 0))

    # --- main branch: BN1 + ReLU (eval-mode fold), output bf16 for the MXU ---
    s1 = p['bn1_g'] / jnp.sqrt(p['bn1_rv'] + EPS)
    t1 = p['bn1_b'] - p['bn1_rm'] * s1
    xb = bn_relu(x, s1, t1, out_dtype=jnp.bfloat16)

    # --- conv1 (3^3, stride 2) fused with BN2 + ReLU (tiled matmul) ---
    s2 = p['bn2_g'] / jnp.sqrt(p['bn2_rv'] + EPS)
    t2 = (p['b1'] - p['bn2_rm']) * s2 + p['bn2_b']
    cols1, (nb, od, oh, ow) = _im2col_s2(jnp.pad(xb, pad1))
    w1f = p['w1'].reshape(-1, cout).astype(jnp.bfloat16)
    h1 = matmul_affine(cols1, w1f, s2, t2, relu=True, out_dtype=jnp.bfloat16)
    h1 = h1.reshape(nb, od, oh, ow, cout)

    # --- shortcut: conv (3^3, stride 2) on raw x fused with its BN ---
    ssc = p['bnsc_g'] / jnp.sqrt(p['bnsc_rv'] + EPS)
    tsc = (p['bsc'] - p['bnsc_rm']) * ssc + p['bnsc_b']
    colsc, _ = _im2col_s2(jnp.pad(x.astype(jnp.bfloat16), pad1))
    wscf = p['wsc'].reshape(-1, cout).astype(jnp.bfloat16)
    sc = matmul_affine(colsc, wscf, ssc, tsc, relu=False, out_dtype=jnp.float32)
    sc = sc.reshape(nb, od, oh, ow, cout)

    # --- conv2 (3^3, stride 1) + bias, with fused per-plane sum/max pooling ---
    h1p = jnp.pad(h1, pad1)
    h, psum, pmax = conv3x3x3_s1(h1p, p['w2'],
                                 jnp.ones((cout,), jnp.float32), p['b2'])

    # --- CBAM ChannelGate MLP on the pooled (N, C) vectors (plain JAX, tiny) ---
    nvox = od * oh * ow
    avg = jnp.sum(psum, axis=(1, 2)) / nvox              # (N, C)
    mx = jnp.max(pmax, axis=(1, 2))                      # (N, C)

    def mlp(v):
        hid = jnp.maximum(v @ p['fc1_w'] + p['fc1_b'], 0.0)
        return hid @ p['fc2_w'] + p['fc2_b']

    gate = jax.nn.sigmoid(mlp(avg) + mlp(mx))            # (N, C)

    # --- ChannelPool (max/mean over C of the channel-gated activation) ---
    comp = gate_pool(h, gate)                            # (N, OD, OH, OW, 2)

    # --- SpatialGate 7^3 conv + BN + sigmoid + gate apply + residual add ---
    ssp = p['bnsp_g'] / jnp.sqrt(p['bnsp_rv'] + EPS)
    tsp = (p['bsp'] - p['bnsp_rm']) * ssp + p['bnsp_b']
    wsp = (p['wsp'][..., 0] * ssp).astype(jnp.float32)   # (7, 7, 7, 2), BN scale folded
    comp_p = jnp.pad(comp, ((0, 0), (3, 3), (3, 3), (3, 3), (0, 0)))
    out = spatial_residual(comp_p, wsp, tsp, h, gate, sc)

    return jnp.transpose(out, (0, 4, 1, 2, 3))           # NDHWC -> NCDHW


if __name__ == "__main__":
    key = jax.random.PRNGKey(0)
    kx, kp = jax.random.split(key)

    N, CIN, COUT, D = 2, 4, 16, 8          # small but CBAM-valid (COUT // 16 >= 1)
    x = jax.random.normal(kx, (N, CIN, D, D, D), jnp.float32)   # NCDHW like PyTorch
    params = init_params(kp, CIN, COUT)

    out = jax.jit(resblock_forward)(params, x)
    out = jax.block_until_ready(out)
    assert out.shape == (N, COUT, D // 2, D // 2, D // 2), out.shape
    assert bool(jnp.all(jnp.isfinite(out)))
    print("KERNEL_OK")
</pallas_src>

<mosaic_0001>
module attributes {stable_mosaic.version = 11 : i64} {
  func.func @_matmul_affine_kernel(%arg0: i32, %arg1: i32, %arg2: memref<128x128xbf16, #tpu.memory_space<vmem>>, %arg3: memref<128x16xbf16, #tpu.memory_space<vmem>>, %arg4: memref<1x16xf32, #tpu.memory_space<vmem>>, %arg5: memref<1x16xf32, #tpu.memory_space<vmem>>, %arg6: memref<128x16xf32, #tpu.memory_space<vmem>>, %arg7: memref<128x16xf32, #tpu.memory_space<vmem>>) attributes {dimension_semantics = [#tpu.dimension_semantics<parallel>, #tpu.dimension_semantics<arbitrary>], iteration_bounds = array<i64: 1, 1>, scalar_prefetch = 0 : i64, scratch_operands = 1 : i64, tpu.core_type = #tpu.core_type<tc>, window_params = [{transform_indices = @transform_0, window_bounds = array<i64: 128, 128>}, {transform_indices = @transform_1, window_bounds = array<i64: 128, 16>}, {pipeline_mode = #tpu.pipeline_mode<synchronous>, transform_indices = @transform_2, window_bounds = array<i64: 1, 16>}, {pipeline_mode = #tpu.pipeline_mode<synchronous>, transform_indices = @transform_3, window_bounds = array<i64: 1, 16>}, {transform_indices = @transform_4, window_bounds = array<i64: 128, 16>}]} {
    %c0_i32 = arith.constant 0 : i32
    %0 = arith.cmpi eq, %arg1, %c0_i32 : i32
    %1 = arith.extui %0 : i1 to i32
    %c0_i32_0 = arith.constant 0 : i32
    %2 = arith.cmpi ne, %1, %c0_i32_0 : i32
    scf.if %2 {
      %cst_10 = arith.constant 0.000000e+00 : f32
      %12 = vector.broadcast %cst_10 : f32 to vector<128x16xf32>
      %c0_11 = arith.constant 0 : index
      %c0_12 = arith.constant 0 : index
      %13 = vector.load %arg7[%c0_11, %c0_12] : memref<128x16xf32, #tpu.memory_space<vmem>>, vector<128x16xf32>
      tpu.vector_store %arg7[%c0_11, %c0_12], %12 {strides = array<i32>} : memref<128x16xf32, #tpu.memory_space<vmem>>, vector<128x16xf32>,
    } else {
    }
    %c0 = arith.constant 0 : index
    %c0_1 = arith.constant 0 : index
    %3 = vector.load %arg7[%c0, %c0_1] : memref<128x16xf32, #tpu.memory_space<vmem>>, vector<128x16xf32>
    %c0_2 = arith.constant 0 : index
    %c0_3 = arith.constant 0 : index
    %4 = vector.load %arg2[%c0_2, %c0_3] : memref<128x128xbf16, #tpu.memory_space<vmem>>, vector<128x128xbf16>
    %c0_4 = arith.constant 0 : index
    %c0_5 = arith.constant 0 : index
    %5 = vector.load %arg3[%c0_4, %c0_5] : memref<128x16xbf16, #tpu.memory_space<vmem>>, vector<128x16xbf16>
    %cst = arith.constant dense<0.000000e+00> : vector<128x16xf32>
    %6 = tpu.matmul %4, %5, %cst {dimension_numbers = #tpu.dot_dimension_numbers<[1], [0], [0], [1], [0, 0, 1, 1], [], []>} : vector<128x128xbf16>, vector<128x16xbf16>, vector<128x16xf32> -> vector<128x16xf32>
    %7 = arith.addf %3, %6 : vector<128x16xf32>
    %c0_6 = arith.constant 0 : index
    %c0_7 = arith.constant 0 : index
    %8 = vector.load %arg7[%c0_6, %c0_7] : memref<128x16xf32, #tpu.memory_space<vmem>>, vector<128x16xf32>
    tpu.vector_store %arg7[%c0_6, %c0_7], %7 {strides = array<i32>} : memref<128x16xf32, #tpu.memory_space<vmem>>, vector<128x16xf32>,
    %c0_i32_8 = arith.constant 0 : i32
    %9 = arith.cmpi eq, %arg1, %c0_i32_8 : i32
    %10 = arith.extui %9 : i1 to i32
    %c0_i32_9 = arith.constant 0 : i32
    %11 = arith.cmpi ne, %10, %c0_i32_9 : i32
    scf.if %11 {
      %c0_10 = arith.constant 0 : index
      %c0_11 = arith.constant 0 : index
      %12 = vector.load %arg7[%c0_10, %c0_11] : memref<128x16xf32, #tpu.memory_space<vmem>>, vector<128x16xf32>
      %c0_12 = arith.constant 0 : index
      %c0_13 = arith.constant 0 : index
      %13 = vector.load %arg4[%c0_12, %c0_13] : memref<1x16xf32, #tpu.memory_space<vmem>>, vector<1x16xf32>
      %14 = vector.broadcast %13 : vector<1x16xf32> to vector<128x16xf32>
      %15 = arith.mulf %12, %14 : vector<128x16xf32>
      %c0_14 = arith.constant 0 : index
      %c0_15 = arith.constant 0 : index
      %16 = vector.load %arg5[%c0_14, %c0_15] : memref<1x16xf32, #tpu.memory_space<vmem>>, vector<1x16xf32>
      %17 = vector.broadcast %16 : vector<1x16xf32> to vector<128x16xf32>
      %18 = arith.addf %15, %17 : vector<128x16xf32>
      %c0_16 = arith.constant 0 : index
      %c0_17 = arith.constant 0 : index
      %19 = vector.load %arg6[%c0_16, %c0_17] : memref<128x16xf32, #tpu.memory_space<vmem>>, vector<128x16xf32>
      tpu.vector_store %arg6[%c0_16, %c0_17], %18 {strides = array<i32>} : memref<128x16xf32, #tpu.memory_space<vmem>>, vector<128x16xf32>,
    } else {
    }
    return
  }
  func.func @transform_0(%arg0: i32, %arg1: i32) -> (i32, i32) {
    %c0_i32 = arith.constant 0 : i32
    return %arg0, %arg1 : i32, i32
  }
  func.func @transform_1(%arg0: i32, %arg1: i32) -> (i32, i32) {
    %c0_i32 = arith.constant 0 : i32
    %c0_i32_0 = arith.constant 0 : i32
    return %arg1, %c0_i32 : i32, i32
  }
  func.func @transform_2(%arg0: i32, %arg1: i32) -> (i32, i32) {
    %c0_i32 = arith.constant 0 : i32
    %c0_i32_0 = arith.constant 0 : i32
    %c0_i32_1 = arith.constant 0 : i32
    return %c0_i32, %c0_i32_0 : i32, i32
  }
  func.func @transform_3(%arg0: i32, %arg1: i32) -> (i32, i32) {
    %c0_i32 = arith.constant 0 : i32
    %c0_i32_0 = arith.constant 0 : i32
    %c0_i32_1 = arith.constant 0 : i32
    return %c0_i32, %c0_i32_0 : i32, i32
  }
  func.func @transform_4(%arg0: i32, %arg1: i32) -> (i32, i32) {
    %c0_i32 = arith.constant 0 : i32
    %c0_i32_0 = arith.constant 0 : i32
    return %arg0, %c0_i32 : i32, i32
  }
}

module attributes {stable_mosaic.version = 11 : i64} {
  func.func @_bn_relu_kernel(%arg0: i32, %arg1: memref<16x256xf32, #tpu.memory_space<vmem>>, %arg2: memref<1x256xf32, #tpu.memory_space<vmem>>, %arg3: memref<1x256xf32, #tpu.memory_space<vmem>>, %arg4: memref<16x256xbf16, #tpu.memory_space<vmem>>) attributes {dimension_semantics = [#tpu.dimension_semantics<parallel>], iteration_bounds = array<i64: 1>, scalar_prefetch = 0 : i64, scratch_operands = 0 : i64, tpu.core_type = #tpu.core_type<tc>, window_params = [{transform_indices = @transform_0, window_bounds = array<i64: 16, 256>}, {pipeline_mode = #tpu.pipeline_mode<synchronous>, transform_indices = @transform_1, window_bounds = array<i64: 1, 256>}, {pipeline_mode = #tpu.pipeline_mode<synchronous>, transform_indices = @transform_2, window_bounds = array<i64: 1, 256>}, {transform_indices = @transform_3, window_bounds = array<i64: 16, 256>}]} {
    %c0 = arith.constant 0 : index
    %c0_0 = arith.constant 0 : index
    %0 = vector.load %arg1[%c0, %c0_0] : memref<16x256xf32, #tpu.memory_space<vmem>>, vector<16x256xf32>
    %c0_1 = arith.constant 0 : index
    %c0_2 = arith.constant 0 : index
    %1 = vector.load %arg2[%c0_1, %c0_2] : memref<1x256xf32, #tpu.memory_space<vmem>>, vector<1x256xf32>
    %2 = vector.broadcast %1 : vector<1x256xf32> to vector<16x256xf32>
    %3 = arith.mulf %0, %2 : vector<16x256xf32>
    %c0_3 = arith.constant 0 : index
    %c0_4 = arith.constant 0 : index
    %4 = vector.load %arg3[%c0_3, %c0_4] : memref<1x256xf32, #tpu.memory_space<vmem>>, vector<1x256xf32>
    %5 = vector.broadcast %4 : vector<1x256xf32> to vector<16x256xf32>
    %6 = arith.addf %3, %5 : vector<16x256xf32>
    %cst = arith.constant 0.000000e+00 : f32
    %7 = vector.broadcast %cst : f32 to vector<16x256xf32>
    %8 = arith.maximumf %6, %7 : vector<16x256xf32>
    %9 = arith.truncf %8 : vector<16x256xf32> to vector<16x256xbf16>
    %c0_5 = arith.constant 0 : index
    %c0_6 = arith.constant 0 : index
    %10 = vector.load %arg4[%c0_5, %c0_6] : memref<16x256xbf16, #tpu.memory_space<vmem>>, vector<16x256xbf16>
    tpu.vector_store %arg4[%c0_5, %c0_6], %9 {strides = array<i32>} : memref<16x256xbf16, #tpu.memory_space<vmem>>, vector<16x256xbf16>,
    return
  }
  func.func @transform_0(%arg0: i32) -> (i32, i32) {
    %c0_i32 = arith.constant 0 : i32
    %c0_i32_0 = arith.constant 0 : i32
    return %arg0, %c0_i32 : i32, i32
  }
  func.func @transform_1(%arg0: i32) -> (i32, i32) {
    %c0_i32 = arith.constant 0 : i32
    %c0_i32_0 = arith.constant 0 : i32
    %c0_i32_1 = arith.constant 0 : i32
    return %c0_i32, %c0_i32_0 : i32, i32
  }
  func.func @transform_2(%arg0: i32) -> (i32, i32) {
    %c0_i32 = arith.constant 0 : i32
    %c0_i32_0 = arith.constant 0 : i32
    %c0_i32_1 = arith.constant 0 : i32
    return %c0_i32, %c0_i32_0 : i32, i32
  }
  func.func @transform_3(%arg0: i32) -> (i32, i32) {
    %c0_i32 = arith.constant 0 : i32
    %c0_i32_0 = arith.constant 0 : i32
    return %arg0, %c0_i32 : i32, i32
  }
}

module attributes {stable_mosaic.version = 11 : i64} {
  func.func @_matmul_affine_kernel(%arg0: i32, %arg1: i32, %arg2: memref<128x128xbf16, #tpu.memory_space<vmem>>, %arg3: memref<128x16xbf16, #tpu.memory_space<vmem>>, %arg4: memref<1x16xf32, #tpu.memory_space<vmem>>, %arg5: memref<1x16xf32, #tpu.memory_space<vmem>>, %arg6: memref<128x16xbf16, #tpu.memory_space<vmem>>, %arg7: memref<128x16xf32, #tpu.memory_space<vmem>>) attributes {dimension_semantics = [#tpu.dimension_semantics<parallel>, #tpu.dimension_semantics<arbitrary>], iteration_bounds = array<i64: 1, 1>, scalar_prefetch = 0 : i64, scratch_operands = 1 : i64, tpu.core_type = #tpu.core_type<tc>, window_params = [{transform_indices = @transform_0, window_bounds = array<i64: 128, 128>}, {transform_indices = @transform_1, window_bounds = array<i64: 128, 16>}, {pipeline_mode = #tpu.pipeline_mode<synchronous>, transform_indices = @transform_2, window_bounds = array<i64: 1, 16>}, {pipeline_mode = #tpu.pipeline_mode<synchronous>, transform_indices = @transform_3, window_bounds = array<i64: 1, 16>}, {transform_indices = @transform_4, window_bounds = array<i64: 128, 16>}]} {
    %c0_i32 = arith.constant 0 : i32
    %0 = arith.cmpi eq, %arg1, %c0_i32 : i32
    %1 = arith.extui %0 : i1 to i32
    %c0_i32_0 = arith.constant 0 : i32
    %2 = arith.cmpi ne, %1, %c0_i32_0 : i32
    scf.if %2 {
      %cst_10 = arith.constant 0.000000e+00 : f32
      %12 = vector.broadcast %cst_10 : f32 to vector<128x16xf32>
      %c0_11 = arith.constant 0 : index
      %c0_12 = arith.constant 0 : index
      %13 = vector.load %arg7[%c0_11, %c0_12] : memref<128x16xf32, #tpu.memory_space<vmem>>, vector<128x16xf32>
      tpu.vector_store %arg7[%c0_11, %c0_12], %12 {strides = array<i32>} : memref<128x16xf32, #tpu.memory_space<vmem>>, vector<128x16xf32>,
    } else {
    }
    %c0 = arith.constant 0 : index
    %c0_1 = arith.constant 0 : index
    %3 = vector.load %arg7[%c0, %c0_1] : memref<128x16xf32, #tpu.memory_space<vmem>>, vector<128x16xf32>
    %c0_2 = arith.constant 0 : index
    %c0_3 = arith.constant 0 : index
    %4 = vector.load %arg2[%c0_2, %c0_3] : memref<128x128xbf16, #tpu.memory_space<vmem>>, vector<128x128xbf16>
    %c0_4 = arith.constant 0 : index
    %c0_5 = arith.constant 0 : index
    %5 = vector.load %arg3[%c0_4, %c0_5] : memref<128x16xbf16, #tpu.memory_space<vmem>>, vector<128x16xbf16>
    %cst = arith.constant dense<0.000000e+00> : vector<128x16xf32>
    %6 = tpu.matmul %4, %5, %cst {dimension_numbers = #tpu.dot_dimension_numbers<[1], [0], [0], [1], [0, 0, 1, 1], [], []>} : vector<128x128xbf16>, vector<128x16xbf16>, vector<128x16xf32> -> vector<128x16xf32>
    %7 = arith.addf %3, %6 : vector<128x16xf32>
    %c0_6 = arith.constant 0 : index
    %c0_7 = arith.constant 0 : index
    %8 = vector.load %arg7[%c0_6, %c0_7] : memref<128x16xf32, #tpu.memory_space<vmem>>, vector<128x16xf32>
    tpu.vector_store %arg7[%c0_6, %c0_7], %7 {strides = array<i32>} : memref<128x16xf32, #tpu.memory_space<vmem>>, vector<128x16xf32>,
    %c0_i32_8 = arith.constant 0 : i32
    %9 = arith.cmpi eq, %arg1, %c0_i32_8 : i32
    %10 = arith.extui %9 : i1 to i32
    %c0_i32_9 = arith.constant 0 : i32
    %11 = arith.cmpi ne, %10, %c0_i32_9 : i32
    scf.if %11 {
      %c0_10 = arith.constant 0 : index
      %c0_11 = arith.constant 0 : index
      %12 = vector.load %arg7[%c0_10, %c0_11] : memref<128x16xf32, #tpu.memory_space<vmem>>, vector<128x16xf32>
      %c0_12 = arith.constant 0 : index
      %c0_13 = arith.constant 0 : index
      %13 = vector.load %arg4[%c0_12, %c0_13] : memref<1x16xf32, #tpu.memory_space<vmem>>, vector<1x16xf32>
      %14 = vector.broadcast %13 : vector<1x16xf32> to vector<128x16xf32>
      %15 = arith.mulf %12, %14 : vector<128x16xf32>
      %c0_14 = arith.constant 0 : index
      %c0_15 = arith.constant 0 : index
      %16 = vector.load %arg5[%c0_14, %c0_15] : memref<1x16xf32, #tpu.memory_space<vmem>>, vector<1x16xf32>
      %17 = vector.broadcast %16 : vector<1x16xf32> to vector<128x16xf32>
      %18 = arith.addf %15, %17 : vector<128x16xf32>
      %cst_16 = arith.constant 0.000000e+00 : f32
      %19 = vector.broadcast %cst_16 : f32 to vector<128x16xf32>
      %20 = arith.maximumf %18, %19 : vector<128x16xf32>
      %21 = arith.truncf %20 : vector<128x16xf32> to vector<128x16xbf16>
      %c0_17 = arith.constant 0 : index
      %c0_18 = arith.constant 0 : index
      %22 = vector.load %arg6[%c0_17, %c0_18] : memref<128x16xbf16, #tpu.memory_space<vmem>>, vector<128x16xbf16>
      tpu.vector_store %arg6[%c0_17, %c0_18], %21 {strides = array<i32>} : memref<128x16xbf16, #tpu.memory_space<vmem>>, vector<128x16xbf16>,
    } else {
    }
    return
  }
  func.func @transform_0(%arg0: i32, %arg1: i32) -> (i32, i32) {
    %c0_i32 = arith.constant 0 : i32
    return %arg0, %arg1 : i32, i32
  }
  func.func @transform_1(%arg0: i32, %arg1: i32) -> (i32, i32) {
    %c0_i32 = arith.constant 0 : i32
    %c0_i32_0 = arith.constant 0 : i32
    return %arg1, %c0_i32 : i32, i32
  }
  func.func @transform_2(%arg0: i32, %arg1: i32) -> (i32, i32) {
    %c0_i32 = arith.constant 0 : i32
    %c0_i32_0 = arith.constant 0 : i32
    %c0_i32_1 = arith.constant 0 : i32
    return %c0_i32, %c0_i32_0 : i32, i32
  }
  func.func @transform_3(%arg0: i32, %arg1: i32) -> (i32, i32) {
    %c0_i32 = arith.constant 0 : i32
    %c0_i32_0 = arith.constant 0 : i32
    %c0_i32_1 = arith.constant 0 : i32
    return %c0_i32, %c0_i32_0 : i32, i32
  }
  func.func @transform_4(%arg0: i32, %arg1: i32) -> (i32, i32) {
    %c0_i32 = arith.constant 0 : i32
    %c0_i32_0 = arith.constant 0 : i32
    return %arg0, %c0_i32 : i32, i32
  }
}

module attributes {stable_mosaic.version = 11 : i64} {
  func.func @_conv3_s1_kernel(%arg0: i32, %arg1: i32, %arg2: i32, %arg3: memref<1x1x6x6x16xbf16, #tpu.memory_space<vmem>>, %arg4: memref<1x3x3x16x16xbf16, #tpu.memory_space<vmem>>, %arg5: memref<1x16xf32, #tpu.memory_space<vmem>>, %arg6: memref<1x16xf32, #tpu.memory_space<vmem>>, %arg7: memref<1x1x4x4x16xf32, #tpu.memory_space<vmem>>, %arg8: memref<1x1x1x16xf32, #tpu.memory_space<vmem>>, %arg9: memref<1x1x1x16xf32, #tpu.memory_space<vmem>>, %arg10: memref<4x4x16xf32, #tpu.memory_space<vmem>>) attributes {dimension_semantics = [#tpu.dimension_semantics<parallel>, #tpu.dimension_semantics<parallel>, #tpu.dimension_semantics<arbitrary>], iteration_bounds = array<i64: 2, 4, 3>, scalar_prefetch = 0 : i64, scratch_operands = 1 : i64, tpu.core_type = #tpu.core_type<tc>, window_params = [{transform_indices = @transform_0, window_bounds = array<i64: 1, 1, 6, 6, 16>}, {transform_indices = @transform_1, window_bounds = array<i64: 1, 3, 3, 16, 16>}, {pipeline_mode = #tpu.pipeline_mode<synchronous>, transform_indices = @transform_2, window_bounds = array<i64: 1, 16>}, {pipeline_mode = #tpu.pipeline_mode<synchronous>, transform_indices = @transform_3, window_bounds = array<i64: 1, 16>}, {transform_indices = @transform_4, window_bounds = array<i64: 1, 1, 4, 4, 16>}, {transform_indices = @transform_5, window_bounds = array<i64: 1, 1, 1, 16>}, {transform_indices = @transform_6, window_bounds = array<i64: 1, 1, 1, 16>}]} {
    %c0_i32 = arith.constant 0 : i32
    %0 = arith.cmpi eq, %arg2, %c0_i32 : i32
    %1 = arith.extui %0 : i1 to i32
    %c0_i32_0 = arith.constant 0 : i32
    %2 = arith.cmpi ne, %1, %c0_i32_0 : i32
    scf.if %2 {
      %cst_419 = arith.constant 0.000000e+00 : f32
      %250 = vector.broadcast %cst_419 : f32 to vector<4x4x16xf32>
      %c0_420 = arith.constant 0 : index
      %c0_421 = arith.constant 0 : index
      %c0_422 = arith.constant 0 : index
      %251 = vector.load %arg10[%c0_420, %c0_421, %c0_422] : memref<4x4x16xf32, #tpu.memory_space<vmem>>, vector<4x4x16xf32>
      tpu.vector_store %arg10[%c0_420, %c0_421, %c0_422], %250 {strides = array<i32>} : memref<4x4x16xf32, #tpu.memory_space<vmem>>, vector<4x4x16xf32>,
    } else {
    }
    %cst = arith.constant 0.000000e+00 : f32
    %3 = vector.broadcast %cst : f32 to vector<4x16xf32>
    %c0 = arith.constant 0 : index
    %c0_1 = arith.constant 0 : index
    %c0_2 = arith.constant 0 : index
    %c0_3 = arith.constant 0 : index
    %c0_4 = arith.constant 0 : index
    %4 = vector.load %arg3[%c0, %c0_1, %c0_2, %c0_3, %c0_4] : memref<1x1x6x6x16xbf16, #tpu.memory_space<vmem>>, vector<1x1x1x4x16xbf16>
    %5 = vector.shape_cast %4 : vector<1x1x1x4x16xbf16> to vector<4x16xbf16>
    %c0_5 = arith.constant 0 : index
    %c0_6 = arith.constant 0 : index
    %c0_7 = arith.constant 0 : index
    %c0_8 = arith.constant 0 : index
    %c0_9 = arith.constant 0 : index
    %6 = vector.load %arg4[%c0_5, %c0_6, %c0_7, %c0_8, %c0_9] : memref<1x3x3x16x16xbf16, #tpu.memory_space<vmem>>, vector<1x1x1x16x16xbf16>
    %7 = vector.shape_cast %6 : vector<1x1x1x16x16xbf16> to vector<16x16xbf16>
    %cst_10 = arith.constant dense<0.000000e+00> : vector<4x16xf32>
    %8 = tpu.matmul %5, %7, %cst_10 {dimension_numbers = #tpu.dot_dimension_numbers<[1], [0], [0], [1], [0, 0, 1, 1], [], []>} : vector<4x16xbf16>, vector<16x16xbf16>, vector<4x16xf32> -> vector<4x16xf32>
    %9 = arith.addf %3, %8 : vector<4x16xf32>
    %c0_11 = arith.constant 0 : index
    %c0_12 = arith.constant 0 : index
    %c0_13 = arith.constant 0 : index
    %c1 = arith.constant 1 : index
    %c0_14 = arith.constant 0 : index
    %10 = vector.load %arg3[%c0_11, %c0_12, %c0_13, %c1, %c0_14] : memref<1x1x6x6x16xbf16, #tpu.memory_space<vmem>>, vector<1x1x1x4x16xbf16>
    %11 = vector.shape_cast %10 : vector<1x1x1x4x16xbf16> to vector<4x16xbf16>
    %c0_15 = arith.constant 0 : index
    %c0_16 = arith.constant 0 : index
    %c1_17 = arith.constant 1 : index
    %c0_18 = arith.constant 0 : index
    %c0_19 = arith.constant 0 : index
    %12 = vector.load %arg4[%c0_15, %c0_16, %c1_17, %c0_18, %c0_19] : memref<1x3x3x16x16xbf16, #tpu.memory_space<vmem>>, vector<1x1x1x16x16xbf16>
    %13 = vector.shape_cast %12 : vector<1x1x1x16x16xbf16> to vector<16x16xbf16>
    %cst_20 = arith.constant dense<0.000000e+00> : vector<4x16xf32>
    %14 = tpu.matmul %11, %13, %cst_20 {dimension_numbers = #tpu.dot_dimension_numbers<[1], [0], [0], [1], [0, 0, 1, 1], [], []>} : vector<4x16xbf16>, vector<16x16xbf16>, vector<4x16xf32> -> vector<4x16xf32>
    %15 = arith.addf %9, %14 : vector<4x16xf32>
    %c0_21 = arith.constant 0 : index
    %c0_22 = arith.constant 0 : index
    %c0_23 = arith.constant 0 : index
    %c2 = arith.constant 2 : index
    %c0_24 = arith.constant 0 : index
    %16 = vector.load %arg3[%c0_21, %c0_22, %c0_23, %c2, %c0_24] : memref<1x1x6x6x16xbf16, #tpu.memory_space<vmem>>, vector<1x1x1x4x16xbf16>
    %17 = vector.shape_cast %16 : vector<1x1x1x4x16xbf16> to vector<4x16xbf16>
    %c0_25 = arith.constant 0 : index
    %c0_26 = arith.constant 0 : index
    %c2_27 = arith.constant 2 : index
    %c0_28 = arith.constant 0 : index
    %c0_29 = arith.constant 0 : index
    %18 = vector.load %arg4[%c0_25, %c0_26, %c2_27, %c0_28, %c0_29] : memref<1x3x3x16x16xbf16, #tpu.memory_space<vmem>>, vector<1x1x1x16x16xbf16>
    %19 = vector.shape_cast %18 : vector<1x1x1x16x16xbf16> to vector<16x16xbf16>
    %cst_30 = arith.constant dense<0.000000e+00> : vector<4x16xf32>
    %20 = tpu.matmul %17, %19, %cst_30 {dimension_numbers = #tpu.dot_dimension_numbers<[1], [0], [0], [1], [0, 0, 1, 1], [], []>} : vector<4x16xbf16>, vector<16x16xbf16>, vector<4x16xf32> -> vector<4x16xf32>
    %21 = arith.addf %15, %20 : vector<4x16xf32>
    %c0_31 = arith.constant 0 : index
    %c0_32 = arith.constant 0 : index
    %c1_33 = arith.constant 1 : index
    %c0_34 = arith.constant 0 : index
    %c0_35 = arith.constant 0 : index
    %22 = vector.load %arg3[%c0_31, %c0_32, %c1_33, %c0_34, %c0_35] : memref<1x1x6x6x16xbf16, #tpu.memory_space<vmem>>, vector<1x1x1x4x16xbf16>
    %23 = vector.shape_cast %22 : vector<1x1x1x4x16xbf16> to vector<4x16xbf16>
    %c0_36 = arith.constant 0 : index
    %c1_37 = arith.constant 1 : index
    %c0_38 = arith.constant 0 : index
    %c0_39 = arith.constant 0 : index
    %c0_40 = arith.constant 0 : index
    %24 = vector.load %arg4[%c0_36, %c1_37, %c0_38, %c0_39, %c0_40] : memref<1x3x3x16x16xbf16, #tpu.memory_space<vmem>>, vector<1x1x1x16x16xbf16>
    %25 = vector.shape_cast %24 : vector<1x1x1x16x16xbf16> to vector<16x16xbf16>
    %cst_41 = arith.constant dense<0.000000e+00> : vector<4x16xf32>
    %26 = tpu.matmul %23, %25, %cst_41 {dimension_numbers = #tpu.dot_dimension_numbers<[1], [0], [0], [1], [0, 0, 1, 1], [], []>} : vector<4x16xbf16>, vector<16x16xbf16>, vector<4x16xf32> -> vector<4x16xf32>
    %27 = arith.addf %21, %26 : vector<4x16xf32>
    %c0_42 = arith.constant 0 : index
    %c0_43 = arith.constant 0 : index
    %c1_44 = arith.constant 1 : index
    %c1_45 = arith.constant 1 : index
    %c0_46 = arith.constant 0 : index
    %28 = vector.load %arg3[%c0_42, %c0_43, %c1_44, %c1_45, %c0_46] : memref<1x1x6x6x16xbf16, #tpu.memory_space<vmem>>, vector<1x1x1x4x16xbf16>
    %29 = vector.shape_cast %28 : vector<1x1x1x4x16xbf16> to vector<4x16xbf16>
    %c0_47 = arith.constant 0 : index
    %c1_48 = arith.constant 1 : index
    %c1_49 = arith.constant 1 : index
    %c0_50 = arith.constant 0 : index
    %c0_51 = arith.constant 0 : index
    %30 = vector.load %arg4[%c0_47, %c1_48, %c1_49, %c0_50, %c0_51] : memref<1x3x3x16x16xbf16, #tpu.memory_space<vmem>>, vector<1x1x1x16x16xbf16>
    %31 = vector.shape_cast %30 : vector<1x1x1x16x16xbf16> to vector<16x16xbf16>
    %cst_52 = arith.constant dense<0.000000e+00> : vector<4x16xf32>
    %32 = tpu.matmul %29, %31, %cst_52 {dimension_numbers = #tpu.dot_dimension_numbers<[1], [0], [0], [1], [0, 0, 1, 1], [], []>} : vector<4x16xbf16>, vector<16x16xbf16>, vector<4x16xf32> -> vector<4x16xf32>
    %33 = arith.addf %27, %32 : vector<4x16xf32>
    %c0_53 = arith.constant 0 : index
    %c0_54 = arith.constant 0 : index
    %c1_55 = arith.constant 1 : index
    %c2_56 = arith.constant 2 : index
    %c0_57 = arith.constant 0 : index
    %34 = vector.load %arg3[%c0_53, %c0_54, %c1_55, %c2_56, %c0_57] : memref<1x1x6x6x16xbf16, #tpu.memory_space<vmem>>, vector<1x1x1x4x16xbf16>
    %35 = vector.shape_cast %34 : vector<1x1x1x4x16xbf16> to vector<4x16xbf16>
    %c0_58 = arith.constant 0 : index
    %c1_59 = arith.constant 1 : index
    %c2_60 = arith.constant 2 : index
    %c0_61 = arith.constant 0 : index
    %c0_62 = arith.constant 0 : index
    %36 = vector.load %arg4[%c0_58, %c1_59, %c2_60, %c0_61, %c0_62] : memref<1x3x3x16x16xbf16, #tpu.memory_space<vmem>>, vector<1x1x1x16x16xbf16>
    %37 = vector.shape_cast %36 : vector<1x1x1x16x16xbf16> to vector<16x16xbf16>
    %cst_63 = arith.constant dense<0.000000e+00> : vector<4x16xf32>
    %38 = tpu.matmul %35, %37, %cst_63 {dimension_numbers = #tpu.dot_dimension_numbers<[1], [0], [0], [1], [0, 0, 1, 1], [], []>} : vector<4x16xbf16>, vector<16x16xbf16>, vector<4x16xf32> -> vector<4x16xf32>
    %39 = arith.addf %33, %38 : vector<4x16xf32>
    %c0_64 = arith.constant 0 : index
    %c0_65 = arith.constant 0 : index
    %c2_66 = arith.constant 2 : index
    %c0_67 = arith.constant 0 : index
    %c0_68 = arith.constant 0 : index
    %40 = vector.load %arg3[%c0_64, %c0_65, %c2_66, %c0_67, %c0_68] : memref<1x1x6x6x16xbf16, #tpu.memory_space<vmem>>, vector<1x1x1x4x16xbf16>
    %41 = vector.shape_cast %40 : vector<1x1x1x4x16xbf16> to vector<4x16xbf16>
    %c0_69 = arith.constant 0 : index
    %c2_70 = arith.constant 2 : index
    %c0_71 = arith.constant 0 : index
    %c0_72 = arith.constant 0 : index
    %c0_73 = arith.constant 0 : index
    %42 = vector.load %arg4[%c0_69, %c2_70, %c0_71, %c0_72, %c0_73] : memref<1x3x3x16x16xbf16, #tpu.memory_space<vmem>>, vector<1x1x1x16x16xbf16>
    %43 = vector.shape_cast %42 : vector<1x1x1x16x16xbf16> to vector<16x16xbf16>
    %cst_74 = arith.constant dense<0.000000e+00> : vector<4x16xf32>
    %44 = tpu.matmul %41, %43, %cst_74 {dimension_numbers = #tpu.dot_dimension_numbers<[1], [0], [0], [1], [0, 0, 1, 1], [], []>} : vector<4x16xbf16>, vector<16x16xbf16>, vector<4x16xf32> -> vector<4x16xf32>
    %45 = arith.addf %39, %44 : vector<4x16xf32>
    %c0_75 = arith.constant 0 : index
    %c0_76 = arith.constant 0 : index
    %c2_77 = arith.constant 2 : index
    %c1_78 = arith.constant 1 : index
    %c0_79 = arith.constant 0 : index
    %46 = vector.load %arg3[%c0_75, %c0_76, %c2_77, %c1_78, %c0_79] : memref<1x1x6x6x16xbf16, #tpu.memory_space<vmem>>, vector<1x1x1x4x16xbf16>
    %47 = vector.shape_cast %46 : vector<1x1x1x4x16xbf16> to vector<4x16xbf16>
    %c0_80 = arith.constant 0 : index
    %c2_81 = arith.constant 2 : index
    %c1_82 = arith.constant 1 : index
    %c0_83 = arith.constant 0 : index
    %c0_84 = arith.constant 0 : index
    %48 = vector.load %arg4[%c0_80, %c2_81, %c1_82, %c0_83, %c0_84] : memref<1x3x3x16x16xbf16, #tpu.memory_space<vmem>>, vector<1x1x1x16x16xbf16>
    %49 = vector.shape_cast %48 : vector<1x1x1x16x16xbf16> to vector<16x16xbf16>
    %cst_85 = arith.constant dense<0.000000e+00> : vector<4x16xf32>
    %50 = tpu.matmul %47, %49, %cst_85 {dimension_numbers = #tpu.dot_dimension_numbers<[1], [0], [0], [1], [0, 0, 1, 1], [], []>} : vector<4x16xbf16>, vector<16x16xbf16>, vector<4x16xf32> -> vector<4x16xf32>
    %51 = arith.addf %45, %50 : vector<4x16xf32>
    %c0_86 = arith.constant 0 : index
    %c0_87 = arith.constant 0 : index
    %c2_88 = arith.constant 2 : index
    %c2_89 = arith.constant 2 : index
    %c0_90 = arith.constant 0 : index
    %52 = vector.load %arg3[%c0_86, %c0_87, %c2_88, %c2_89, %c0_90] : memref<1x1x6x6x16xbf16, #tpu.memory_space<vmem>>, vector<1x1x1x4x16xbf16>
    %53 = vector.shape_cast %52 : vector<1x1x1x4x16xbf16> to vector<4x16xbf16>
    %c0_91 = arith.constant 0 : index
    %c2_92 = arith.constant 2 : index
    %c2_93 = arith.constant 2 : index
    %c0_94 = arith.constant 0 : index
    %c0_95 = arith.constant 0 : index
    %54 = vector.load %arg4[%c0_91, %c2_92, %c2_93, %c0_94, %c0_95] : memref<1x3x3x16x16xbf16, #tpu.memory_space<vmem>>, vector<1x1x1x16x16xbf16>
    %55 = vector.shape_cast %54 : vector<1x1x1x16x16xbf16> to vector<16x16xbf16>
    %cst_96 = arith.constant dense<0.000000e+00> : vector<4x16xf32>
    %56 = tpu.matmul %53, %55, %cst_96 {dimension_numbers = #tpu.dot_dimension_numbers<[1], [0], [0], [1], [0, 0, 1, 1], [], []>} : vector<4x16xbf16>, vector<16x16xbf16>, vector<4x16xf32> -> vector<4x16xf32>
    %57 = arith.addf %51, %56 : vector<4x16xf32>
    %c0_97 = arith.constant 0 : index
    %c0_98 = arith.constant 0 : index
    %c0_99 = arith.constant 0 : index
    %58 = vector.load %arg10[%c0_97, %c0_98, %c0_99] : memref<4x4x16xf32, #tpu.memory_space<vmem>>, vector<1x4x16xf32>
    %59 = vector.shape_cast %58 : vector<1x4x16xf32> to vector<4x16xf32>
    %60 = arith.addf %59, %57 : vector<4x16xf32>
    %c0_100 = arith.constant 0 : index
    %c0_101 = arith.constant 0 : index
    %c0_102 = arith.constant 0 : index
    %61 = vector.load %arg10[%c0_100, %c0_101, %c0_102] : memref<4x4x16xf32, #tpu.memory_space<vmem>>, vector<1x4x16xf32>
    %62 = vector.shape_cast %61 : vector<1x4x16xf32> to vector<4x16xf32>
    %63 = vector.shape_cast %60 : vector<4x16xf32> to vector<1x4x16xf32>
    tpu.vector_store %arg10[%c0_100, %c0_101, %c0_102], %63 {strides = array<i32>} : memref<4x4x16xf32, #tpu.memory_space<vmem>>, vector<1x4x16xf32>,
    %cst_103 = arith.constant 0.000000e+00 : f32
    %64 = vector.broadcast %cst_103 : f32 to vector<4x16xf32>
    %c0_104 = arith.constant 0 : index
    %c0_105 = arith.constant 0 : index
    %c1_106 = arith.constant 1 : index
    %c0_107 = arith.constant 0 : index
    %c0_108 = arith.constant 0 : index
    %65 = vector.load %arg3[%c0_104, %c0_105, %c1_106, %c0_107, %c0_108] : memref<1x1x6x6x16xbf16, #tpu.memory_space<vmem>>, vector<1x1x1x4x16xbf16>
    %66 = vector.shape_cast %65 : vector<1x1x1x4x16xbf16> to vector<4x16xbf16>
    %c0_109 = arith.constant 0 : index
    %c0_110 = arith.constant 0 : index
    %c0_111 = arith.constant 0 : index
    %c0_112 = arith.constant 0 : index
    %c0_113 = arith.constant 0 : index
    %67 = vector.load %arg4[%c0_109, %c0_110, %c0_111, %c0_112, %c0_113] : memref<1x3x3x16x16xbf16, #tpu.memory_space<vmem>>, vector<1x1x1x16x16xbf16>
    %68 = vector.shape_cast %67 : vector<1x1x1x16x16xbf16> to vector<16x16xbf16>
    %cst_114 = arith.constant dense<0.000000e+00> : vector<4x16xf32>
    %69 = tpu.matmul %66, %68, %cst_114 {dimension_numbers = #tpu.dot_dimension_numbers<[1], [0], [0], [1], [0, 0, 1, 1], [], []>} : vector<4x16xbf16>, vector<16x16xbf16>, vector<4x16xf32> -> vector<4x16xf32>
    %70 = arith.addf %64, %69 : vector<4x16xf32>
    %c0_115 = arith.constant 0 : index
    %c0_116 = arith.constant 0 : index
    %c1_117 = arith.constant 1 : index
    %c1_118 = arith.constant 1 : index
    %c0_119 = arith.constant 0 : index
    %71 = vector.load %arg3[%c0_115, %c0_116, %c1_117, %c1_118, %c0_119] : memref<1x1x6x6x16xbf16, #tpu.memory_space<vmem>>, vector<1x1x1x4x16xbf16>
    %72 = vector.shape_cast %71 : vector<1x1x1x4x16xbf16> to vector<4x16xbf16>
    %c0_120 = arith.constant 0 : index
    %c0_121 = arith.constant 0 : index
    %c1_122 = arith.constant 1 : index
    %c0_123 = arith.constant 0 : index
    %c0_124 = arith.constant 0 : index
    %73 = vector.load %arg4[%c0_120, %c0_121, %c1_122, %c0_123, %c0_124] : memref<1x3x3x16x16xbf16, #tpu.memory_space<vmem>>, vector<1x1x1x16x16xbf16>
    %74 = vector.shape_cast %73 : vector<1x1x1x16x16xbf16> to vector<16x16xbf16>
    %cst_125 = arith.constant dense<0.000000e+00> : vector<4x16xf32>
    %75 = tpu.matmul %72, %74, %cst_125 {dimension_numbers = #tpu.dot_dimension_numbers<[1], [0], [0], [1], [0, 0, 1, 1], [], []>} : vector<4x16xbf16>, vector<16x16xbf16>, vector<4x16xf32> -> vector<4x16xf32>
    %76 = arith.addf %70, %75 : vector<4x16xf32>
    %c0_126 = arith.constant 0 : index
    %c0_127 = arith.constant 0 : index
    %c1_128 = arith.constant 1 : index
    %c2_129 = arith.constant 2 : index
    %c0_130 = arith.constant 0 : index
    %77 = vector.load %arg3[%c0_126, %c0_127, %c1_128, %c2_129, %c0_130] : memref<1x1x6x6x16xbf16, #tpu.memory_space<vmem>>, vector<1x1x1x4x16xbf16>
    %78 = vector.shape_cast %77 : vector<1x1x1x4x16xbf16> to vector<4x16xbf16>
    %c0_131 = arith.constant 0 : index
    %c0_132 = arith.constant 0 : index
    %c2_133 = arith.constant 2 : index
    %c0_134 = arith.constant 0 : index
    %c0_135 = arith.constant 0 : index
    %79 = vector.load %arg4[%c0_131, %c0_132, %c2_133, %c0_134, %c0_135] : memref<1x3x3x16x16xbf16, #tpu.memory_space<vmem>>, vector<1x1x1x16x16xbf16>
    %80 = vector.shape_cast %79 : vector<1x1x1x16x16xbf16> to vector<16x16xbf16>
    %cst_136 = arith.constant dense<0.000000e+00> : vector<4x16xf32>
    %81 = tpu.matmul %78, %80, %cst_136 {dimension_numbers = #tpu.dot_dimension_numbers<[1], [0], [0], [1], [0, 0, 1, 1], [], []>} : vector<4x16xbf16>, vector<16x16xbf16>, vector<4x16xf32> -> vector<4x16xf32>
    %82 = arith.addf %76, %81 : vector<4x16xf32>
    %c0_137 = arith.constant 0 : index
    %c0_138 = arith.constant 0 : index
    %c2_139 = arith.constant 2 : index
    %c0_140 = arith.constant 0 : index
    %c0_141 = arith.constant 0 : index
    %83 = vector.load %arg3[%c0_137, %c0_138, %c2_139, %c0_140, %c0_141] : memref<1x1x6x6x16xbf16, #tpu.memory_space<vmem>>, vector<1x1x1x4x16xbf16>
    %84 = vector.shape_cast %83 : vector<1x1x1x4x16xbf16> to vector<4x16xbf16>
    %c0_142 = arith.constant 0 : index
    %c1_143 = arith.constant 1 : index
    %c0_144 = arith.constant 0 : index
    %c0_145 = arith.constant 0 : index
    %c0_146 = arith.constant 0 : index
    %85 = vector.load %arg4[%c0_142, %c1_143, %c0_144, %c0_145, %c0_146] : memref<1x3x3x16x16xbf16, #tpu.memory_space<vmem>>, vector<1x1x1x16x16xbf16>
    %86 = vector.shape_cast %85 : vector<1x1x1x16x16xbf16> to vector<16x16xbf16>
    %cst_147 = arith.constant dense<0.000000e+00> : vector<4x16xf32>
    %87 = tpu.matmul %84, %86, %cst_147 {dimension_numbers = #tpu.dot_dimension_numbers<[1], [0], [0], [1], [0, 0, 1, 1], [], []>} : vector<4x16xbf16>, vector<16x16xbf16>, vector<4x16xf32> -> vector<4x16xf32>
    %88 = arith.addf %82, %87 : vector<4x16xf32>
    %c0_148 = arith.constant 0 : index
    %c0_149 = arith.constant 0 : index
    %c2_150 = arith.constant 2 : index
    %c1_151 = arith.constant 1 : index
    %c0_152 = arith.constant 0 : index
    %89 = vector.load %arg3[%c0_148, %c0_149, %c2_150, %c1_151, %c0_152] : memref<1x1x6x6x16xbf16, #tpu.memory_space<vmem>>, vector<1x1x1x4x16xbf16>
    %90 = vector.shape_cast %89 : vector<1x1x1x4x16xbf16> to vector<4x16xbf16>
    %c0_153 = arith.constant 0 : index
    %c1_154 = arith.constant 1 : index
    %c1_155 = arith.constant 1 : index
    %c0_156 = arith.constant 0 : index
    %c0_157 = arith.constant 0 : index
    %91 = vector.load %arg4[%c0_153, %c1_154, %c1_155, %c0_156, %c0_157] : memref<1x3x3x16x16xbf16, #tpu.memory_space<vmem>>, vector<1x1x1x16x16xbf16>
    %92 = vector.shape_cast %91 : vector<1x1x1x16x16xbf16> to vector<16x16xbf16>
    %cst_158 = arith.constant dense<0.000000e+00> : vector<4x16xf32>
    %93 = tpu.matmul %90, %92, %cst_158 {dimension_numbers = #tpu.dot_dimension_numbers<[1], [0], [0], [1], [0, 0, 1, 1], [], []>} : vector<4x16xbf16>, vector<16x16xbf16>, vector<4x16xf32> -> vector<4x16xf32>
    %94 = arith.addf %88, %93 : vector<4x16xf32>
    %c0_159 = arith.constant 0 : index
    %c0_160 = arith.constant 0 : index
    %c2_161 = arith.constant 2 : index
    %c2_162 = arith.constant 2 : index
    %c0_163 = arith.constant 0 : index
    %95 = vector.load %arg3[%c0_159, %c0_160, %c2_161, %c2_162, %c0_163] : memref<1x1x6x6x16xbf16, #tpu.memory_space<vmem>>, vector<1x1x1x4x16xbf16>
    %96 = vector.shape_cast %95 : vector<1x1x1x4x16xbf16> to vector<4x16xbf16>
    %c0_164 = arith.constant 0 : index
    %c1_165 = arith.constant 1 : index
    %c2_166 = arith.constant 2 : index
    %c0_167 = arith.constant 0 : index
    %c0_168 = arith.constant 0 : index
    %97 = vector.load %arg4[%c0_164, %c1_165, %c2_166, %c0_167, %c0_168] : memref<1x3x3x16x16xbf16, #tpu.memory_space<vmem>>, vector<1x1x1x16x16xbf16>
    %98 = vector.shape_cast %97 : vector<1x1x1x16x16xbf16> to vector<16x16xbf16>
    %cst_169 = arith.constant dense<0.000000e+00> : vector<4x16xf32>
    %99 = tpu.matmul %96, %98, %cst_169 {dimension_numbers = #tpu.dot_dimension_numbers<[1], [0], [0], [1], [0, 0, 1, 1], [], []>} : vector<4x16xbf16>, vector<16x16xbf16>, vector<4x16xf32> -> vector<4x16xf32>
    %100 = arith.addf %94, %99 : vector<4x16xf32>
    %c0_170 = arith.constant 0 : index
    %c0_171 = arith.constant 0 : index
    %c3 = arith.constant 3 : index
    %c0_172 = arith.constant 0 : index
    %c0_173 = arith.constant 0 : index
    %101 = vector.load %arg3[%c0_170, %c0_171, %c3, %c0_172, %c0_173] : memref<1x1x6x6x16xbf16, #tpu.memory_space<vmem>>, vector<1x1x1x4x16xbf16>
    %102 = vector.shape_cast %101 : vector<1x1x1x4x16xbf16> to vector<4x16xbf16>
    %c0_174 = arith.constant 0 : index
    %c2_175 = arith.constant 2 : index
    %c0_176 = arith.constant 0 : index
    %c0_177 = arith.constant 0 : index
    %c0_178 = arith.constant 0 : index
    %103 = vector.load %arg4[%c0_174, %c2_175, %c0_176, %c0_177, %c0_178] : memref<1x3x3x16x16xbf16, #tpu.memory_space<vmem>>, vector<1x1x1x16x16xbf16>
    %104 = vector.shape_cast %103 : vector<1x1x1x16x16xbf16> to vector<16x16xbf16>
    %cst_179 = arith.constant dense<0.000000e+00> : vector<4x16xf32>
    %105 = tpu.matmul %102, %104, %cst_179 {dimension_numbers = #tpu.dot_dimension_numbers<[1], [0], [0], [1], [0, 0, 1, 1], [], []>} : vector<4x16xbf16>, vector<16x16xbf16>, vector<4x16xf32> -> vector<4x16xf32>
    %106 = arith.addf %100, %105 : vector<4x16xf32>
    %c0_180 = arith.constant 0 : index
    %c0_181 = arith.constant 0 : index
    %c3_182 = arith.constant 3 : index
    %c1_183 = arith.constant 1 : index
    %c0_184 = arith.constant 0 : index
    %107 = vector.load %arg3[%c0_180, %c0_181, %c3_182, %c1_183, %c0_184] : memref<1x1x6x6x16xbf16, #tpu.memory_space<vmem>>, vector<1x1x1x4x16xbf16>
    %108 = vector.shape_cast %107 : vector<1x1x1x4x16xbf16> to vector<4x16xbf16>
    %c0_185 = arith.constant 0 : index
    %c2_186 = arith.constant 2 : index
    %c1_187 = arith.constant 1 : index
    %c0_188 = arith.constant 0 : index
    %c0_189 = arith.constant 0 : index
    %109 = vector.load %arg4[%c0_185, %c2_186, %c1_187, %c0_188, %c0_189] : memref<1x3x3x16x16xbf16, #tpu.memory_space<vmem>>, vector<1x1x1x16x16xbf16>
    %110 = vector.shape_cast %109 : vector<1x1x1x16x16xbf16> to vector<16x16xbf16>
    %cst_190 = arith.constant dense<0.000000e+00> : vector<4x16xf32>
    %111 = tpu.matmul %108, %110, %cst_190 {dimension_numbers = #tpu.dot_dimension_numbers<[1], [0], [0], [1], [0, 0, 1, 1], [], []>} : vector<4x16xbf16>, vector<16x16xbf16>, vector<4x16xf32> -> vector<4x16xf32>
    %112 = arith.addf %106, %111 : vector<4x16xf32>
    %c0_191 = arith.constant 0 : index
    %c0_192 = arith.constant 0 : index
    %c3_193 = arith.constant 3 : index
    %c2_194 = arith.constant 2 : index
    %c0_195 = arith.constant 0 : index
    %113 = vector.load %arg3[%c0_191, %c0_192, %c3_193, %c2_194, %c0_195] : memref<1x1x6x6x16xbf16, #tpu.memory_space<vmem>>, vector<1x1x1x4x16xbf16>
    %114 = vector.shape_cast %113 : vector<1x1x1x4x16xbf16> to vector<4x16xbf16>
    %c0_196 = arith.constant 0 : index
    %c2_197 = arith.constant 2 : index
    %c2_198 = arith.constant 2 : index
    %c0_199 = arith.constant 0 : index
    %c0_200 = arith.constant 0 : index
    %115 = vector.load %arg4[%c0_196, %c2_197, %c2_198, %c0_199, %c0_200] : memref<1x3x3x16x16xbf16, #tpu.memory_space<vmem>>, vector<1x1x1x16x16xbf16>
    %116 = vector.shape_cast %115 : vector<1x1x1x16x16xbf16> to vector<16x16xbf16>
    %cst_201 = arith.constant dense<0.000000e+00> : vector<4x16xf32>
    %117 = tpu.matmul %114, %116, %cst_201 {dimension_numbers = #tpu.dot_dimension_numbers<[1], [0], [0], [1], [0, 0, 1, 1], [], []>} : vector<4x16xbf16>, vector<16x16xbf16>, vector<4x16xf32> -> vector<4x16xf32>
    %118 = arith.addf %112, %117 : vector<4x16xf32>
    %c1_202 = arith.constant 1 : index
    %c0_203 = arith.constant 0 : index
    %c0_204 = arith.constant 0 : index
    %119 = vector.load %arg10[%c1_202, %c0_203, %c0_204] : memref<4x4x16xf32, #tpu.memory_space<vmem>>, vector<1x4x16xf32>
    %120 = vector.shape_cast %119 : vector<1x4x16xf32> to vector<4x16xf32>
    %121 = arith.addf %120, %118 : vector<4x16xf32>
    %c1_205 = arith.constant 1 : index
    %c0_206 = arith.constant 0 : index
    %c0_207 = arith.constant 0 : index
    %122 = vector.load %arg10[%c1_205, %c0_206, %c0_207] : memref<4x4x16xf32, #tpu.memory_space<vmem>>, vector<1x4x16xf32>
    %123 = vector.shape_cast %122 : vector<1x4x16xf32> to vector<4x16xf32>
    %124 = vector.shape_cast %121 : vector<4x16xf32> to vector<1x4x16xf32>
    tpu.vector_store %arg10[%c1_205, %c0_206, %c0_207], %124 {strides = array<i32>} : memref<4x4x16xf32, #tpu.memory_space<vmem>>, vector<1x4x16xf32>,
    %cst_208 = arith.constant 0.000000e+00 : f32
    %125 = vector.broadcast %cst_208 : f32 to vector<4x16xf32>
    %c0_209 = arith.constant 0 : index
    %c0_210 = arith.constant 0 : index
    %c2_211 = arith.constant 2 : index
    %c0_212 = arith.constant 0 : index
    %c0_213 = arith.constant 0 : index
    %126 = vector.load %arg3[%c0_209, %c0_210, %c2_211, %c0_212, %c0_213] : memref<1x1x6x6x16xbf16, #tpu.memory_space<vmem>>, vector<1x1x1x4x16xbf16>
    %127 = vector.shape_cast %126 : vector<1x1x1x4x16xbf16> to vector<4x16xbf16>
    %c0_214 = arith.constant 0 : index
    %c0_215 = arith.constant 0 : index
    %c0_216 = arith.constant 0 : index
    %c0_217 = arith.constant 0 : index
    %c0_218 = arith.constant 0 : index
    %128 = vector.load %arg4[%c0_214, %c0_215, %c0_216, %c0_217, %c0_218] : memref<1x3x3x16x16xbf16, #tpu.memory_space<vmem>>, vector<1x1x1x16x16xbf16>
    %129 = vector.shape_cast %128 : vector<1x1x1x16x16xbf16> to vector<16x16xbf16>
    %cst_219 = arith.constant dense<0.000000e+00> : vector<4x16xf32>
    %130 = tpu.matmul %127, %129, %cst_219 {dimension_numbers = #tpu.dot_dimension_numbers<[1], [0], [0], [1], [0, 0, 1, 1], [], []>} : vector<4x16xbf16>, vector<16x16xbf16>, vector<4x16xf32> -> vector<4x16xf32>
    %131 = arith.addf %125, %130 : vector<4x16xf32>
    %c0_220 = arith.constant 0 : index
    %c0_221 = arith.constant 0 : index
    %c2_222 = arith.constant 2 : index
    %c1_223 = arith.constant 1 : index
    %c0_224 = arith.constant 0 : index
    %132 = vector.load %arg3[%c0_220, %c0_221, %c2_222, %c1_223, %c0_224] : memref<1x1x6x6x16xbf16, #tpu.memory_space<vmem>>, vector<1x1x1x4x16xbf16>
    %133 = vector.shape_cast %132 : vector<1x1x1x4x16xbf16> to vector<4x16xbf16>
    %c0_225 = arith.constant 0 : index
    %c0_226 = arith.constant 0 : index
    %c1_227 = arith.constant 1 : index
    %c0_228 = arith.constant 0 : index
    %c0_229 = arith.constant 0 : index
    %134 = vector.load %arg4[%c0_225, %c0_226, %c1_227, %c0_228, %c0_229] : memref<1x3x3x16x16xbf16, #tpu.memory_space<vmem>>, vector<1x1x1x16x16xbf16>
    %135 = vector.shape_cast %134 : vector<1x1x1x16x16xbf16> to vector<16x16xbf16>
    %cst_230 = arith.constant dense<0.000000e+00> : vector<4x16xf32>
    %136 = tpu.matmul %133, %135, %cst_230 {dimension_numbers = #tpu.dot_dimension_numbers<[1], [0], [0], [1], [0, 0, 1, 1], [], []>} : vector<4x16xbf16>, vector<16x16xbf16>, vector<4x16xf32> -> vector<4x16xf32>
    %137 = arith.addf %131, %136 : vector<4x16xf32>
    %c0_231 = arith.constant 0 : index
    %c0_232 = arith.constant 0 : index
    %c2_233 = arith.constant 2 : index
    %c2_234 = arith.constant 2 : index
    %c0_235 = arith.constant 0 : index
    %138 = vector.load %arg3[%c0_231, %c0_232, %c2_233, %c2_234, %c0_235] : memref<1x1x6x6x16xbf16, #tpu.memory_space<vmem>>, vector<1x1x1x4x16xbf16>
    %139 = vector.shape_cast %138 : vector<1x1x1x4x16xbf16> to vector<4x16xbf16>
    %c0_236 = arith.constant 0 : index
    %c0_237 = arith.constant 0 : index
    %c2_238 = arith.constant 2 : index
    %c0_239 = arith.constant 0 : index
    %c0_240 = arith.constant 0 : index
    %140 = vector.load %arg4[%c0_236, %c0_237, %c2_238, %c0_239, %c0_240] : memref<1x3x3x16x16xbf16, #tpu.memory_space<vmem>>, vector<1x1x1x16x16xbf16>
    %141 = vector.shape_cast %140 : vector<1x1x1x16x16xbf16> to vector<16x16xbf16>
    %cst_241 = arith.constant dense<0.000000e+00> : vector<4x16xf32>
    %142 = tpu.matmul %139, %141, %cst_241 {dimension_numbers = #tpu.dot_dimension_numbers<[1], [0], [0], [1], [0, 0, 1, 1], [], []>} : vector<4x16xbf16>, vector<16x16xbf16>, vector<4x16xf32> -> vector<4x16xf32>
    %143 = arith.addf %137, %142 : vector<4x16xf32>
    %c0_242 = arith.constant 0 : index
    %c0_243 = arith.constant 0 : index
    %c3_244 = arith.constant 3 : index
    %c0_245 = arith.constant 0 : index
    %c0_246 = arith.constant 0 : index
    %144 = vector.load %arg3[%c0_242, %c0_243, %c3_244, %c0_245, %c0_246] : memref<1x1x6x6x16xbf16, #tpu.memory_space<vmem>>, vector<1x1x1x4x16xbf16>
    %145 = vector.shape_cast %144 : vector<1x1x1x4x16xbf16> to vector<4x16xbf16>
    %c0_247 = arith.constant 0 : index
    %c1_248 = arith.constant 1 : index
    %c0_249 = arith.constant 0 : index
    %c0_250 = arith.constant 0 : index
    %c0_251 = arith.constant 0 : index
    %146 = vector.load %arg4[%c0_247, %c1_248, %c0_249, %c0_250, %c0_251] : memref<1x3x3x16x16xbf16, #tpu.memory_space<vmem>>, vector<1x1x1x16x16xbf16>
    %147 = vector.shape_cast %146 : vector<1x1x1x16x16xbf16> to vector<16x16xbf16>
    %cst_252 = arith.constant dense<0.000000e+00> : vector<4x16xf32>
    %148 = tpu.matmul %145, %147, %cst_252 {dimension_numbers = #tpu.dot_dimension_numbers<[1], [0], [0], [1], [0, 0, 1, 1], [], []>} : vector<4x16xbf16>, vector<16x16xbf16>, vector<4x16xf32> -> vector<4x16xf32>
    %149 = arith.addf %143, %148 : vector<4x16xf32>
    %c0_253 = arith.constant 0 : index
    %c0_254 = arith.constant 0 : index
    %c3_255 = arith.constant 3 : index
    %c1_256 = arith.constant 1 : index
    %c0_257 = arith.constant 0 : index
    %150 = vector.load %arg3[%c0_253, %c0_254, %c3_255, %c1_256, %c0_257] : memref<1x1x6x6x16xbf16, #tpu.memory_space<vmem>>, vector<1x1x1x4x16xbf16>
    %151 = vector.shape_cast %150 : vector<1x1x1x4x16xbf16> to vector<4x16xbf16>
    %c0_258 = arith.constant 0 : index
    %c1_259 = arith.constant 1 : index
    %c1_260 = arith.constant 1 : index
    %c0_261 = arith.constant 0 : index
    %c0_262 = arith.constant 0 : index
    %152 = vector.load %arg4[%c0_258, %c1_259, %c1_260, %c0_261, %c0_262] : memref<1x3x3x16x16xbf16, #tpu.memory_space<vmem>>, vector<1x1x1x16x16xbf16>
    %153 = vector.shape_cast %152 : vector<1x1x1x16x16xbf16> to vector<16x16xbf16>
    %cst_263 = arith.constant dense<0.000000e+00> : vector<4x16xf32>
    %154 = tpu.matmul %151, %153, %cst_263 {dimension_numbers = #tpu.dot_dimension_numbers<[1], [0], [0], [1], [0, 0, 1, 1], [], []>} : vector<4x16xbf16>, vector<16x16xbf16>, vector<4x16xf32> -> vector<4x16xf32>
    %155 = arith.addf %149, %154 : vector<4x16xf32>
    %c0_264 = arith.constant 0 : index
    %c0_265 = arith.constant 0 : index
    %c3_266 = arith.constant 3 : index
    %c2_267 = arith.constant 2 : index
    %c0_268 = arith.constant 0 : index
    %156 = vector.load %arg3[%c0_264, %c0_265, %c3_266, %c2_267, %c0_268] : memref<1x1x6x6x16xbf16, #tpu.memory_space<vmem>>, vector<1x1x1x4x16xbf16>
    %157 = vector.shape_cast %156 : vector<1x1x1x4x16xbf16> to vector<4x16xbf16>
    %c0_269 = arith.constant 0 : index
    %c1_270 = arith.constant 1 : index
    %c2_271 = arith.constant 2 : index
    %c0_272 = arith.constant 0 : index
    %c0_273 = arith.constant 0 : index
    %158 = vector.load %arg4[%c0_269, %c1_270, %c2_271, %c0_272, %c0_273] : memref<1x3x3x16x16xbf16, #tpu.memory_space<vmem>>, vector<1x1x1x16x16xbf16>
    %159 = vector.shape_cast %158 : vector<1x1x1x16x16xbf16> to vector<16x16xbf16>
    %cst_274 = arith.constant dense<0.000000e+00> : vector<4x16xf32>
    %160 = tpu.matmul %157, %159, %cst_274 {dimension_numbers = #tpu.dot_dimension_numbers<[1], [0], [0], [1], [0, 0, 1, 1], [], []>} : vector<4x16xbf16>, vector<16x16xbf16>, vector<4x16xf32> -> vector<4x16xf32>
    %161 = arith.addf %155, %160 : vector<4x16xf32>
    %c0_275 = arith.constant 0 : index
    %c0_276 = arith.constant 0 : index
    %c4 = arith.constant 4 : index
    %c0_277 = arith.constant 0 : index
    %c0_278 = arith.constant 0 : index
    %162 = vector.load %arg3[%c0_275, %c0_276, %c4, %c0_277, %c0_278] : memref<1x1x6x6x16xbf16, #tpu.memory_space<vmem>>, vector<1x1x1x4x16xbf16>
    %163 = vector.shape_cast %162 : vector<1x1x1x4x16xbf16> to vector<4x16xbf16>
    %c0_279 = arith.constant 0 : index
    %c2_280 = arith.constant 2 : index
    %c0_281 = arith.constant 0 : index
    %c0_282 = arith.constant 0 : index
    %c0_283 = arith.constant 0 : index
    %164 = vector.load %arg4[%c0_279, %c2_280, %c0_281, %c0_282, %c0_283] : memref<1x3x3x16x16xbf16, #tpu.memory_space<vmem>>, vector<1x1x1x16x16xbf16>
    %165 = vector.shape_cast %164 : vector<1x1x1x16x16xbf16> to vector<16x16xbf16>
    %cst_284 = arith.constant dense<0.000000e+00> : vector<4x16xf32>
    %166 = tpu.matmul %163, %165, %cst_284 {dimension_numbers = #tpu.dot_dimension_numbers<[1], [0], [0], [1], [0, 0, 1, 1], [], []>} : vector<4x16xbf16>, vector<16x16xbf16>, vector<4x16xf32> -> vector<4x16xf32>
    %167 = arith.addf %161, %166 : vector<4x16xf32>
    %c0_285 = arith.constant 0 : index
    %c0_286 = arith.constant 0 : index
    %c4_287 = arith.constant 4 : index
    %c1_288 = arith.constant 1 : index
    %c0_289 = arith.constant 0 : index
    %168 = vector.load %arg3[%c0_285, %c0_286, %c4_287, %c1_288, %c0_289] : memref<1x1x6x6x16xbf16, #tpu.memory_space<vmem>>, vector<1x1x1x4x16xbf16>
    %169 = vector.shape_cast %168 : vector<1x1x1x4x16xbf16> to vector<4x16xbf16>
    %c0_290 = arith.constant 0 : index
    %c2_291 = arith.constant 2 : index
    %c1_292 = arith.constant 1 : index
    %c0_293 = arith.constant 0 : index
    %c0_294 = arith.constant 0 : index
    %170 = vector.load %arg4[%c0_290, %c2_291, %c1_292, %c0_293, %c0_294] : memref<1x3x3x16x16xbf16, #tpu.memory_space<vmem>>, vector<1x1x1x16x16xbf16>
    %171 = vector.shape_cast %170 : vector<1x1x1x16x16xbf16> to vector<16x16xbf16>
    %cst_295 = arith.constant dense<0.000000e+00> : vector<4x16xf32>
    %172 = tpu.matmul %169, %171, %cst_295 {dimension_numbers = #tpu.dot_dimension_numbers<[1], [0], [0], [1], [0, 0, 1, 1], [], []>} : vector<4x16xbf16>, vector<16x16xbf16>, vector<4x16xf32> -> vector<4x16xf32>
    %173 = arith.addf %167, %172 : vector<4x16xf32>
    %c0_296 = arith.constant 0 : index
    %c0_297 = arith.constant 0 : index
    %c4_298 = arith.constant 4 : index
    %c2_299 = arith.constant 2 : index
    %c0_300 = arith.constant 0 : index
    %174 = vector.load %arg3[%c0_296, %c0_297, %c4_298, %c2_299, %c0_300] : memref<1x1x6x6x16xbf16, #tpu.memory_space<vmem>>, vector<1x1x1x4x16xbf16>
    %175 = vector.shape_cast %174 : vector<1x1x1x4x16xbf16> to vector<4x16xbf16>
    %c0_301 = arith.constant 0 : index
    %c2_302 = arith.constant 2 : index
    %c2_303 = arith.constant 2 : index
    %c0_304 = arith.constant 0 : index
    %c0_305 = arith.constant 0 : index
    %176 = vector.load %arg4[%c0_301, %c2_302, %c2_303, %c0_304, %c0_305] : memref<1x3x3x16x16xbf16, #tpu.memory_space<vmem>>, vector<1x1x1x16x16xbf16>
    %177 = vector.shape_cast %176 : vector<1x1x1x16x16xbf16> to vector<16x16xbf16>
    %cst_306 = arith.constant dense<0.000000e+00> : vector<4x16xf32>
    %178 = tpu.matmul %175, %177, %cst_306 {dimension_numbers = #tpu.dot_dimension_numbers<[1], [0], [0], [1], [0, 0, 1, 1], [], []>} : vector<4x16xbf16>, vector<16x16xbf16>, vector<4x16xf32> -> vector<4x16xf32>
    %179 = arith.addf %173, %178 : vector<4x16xf32>
    %c2_307 = arith.constant 2 : index
    %c0_308 = arith.constant 0 : index
    %c0_309 = arith.constant 0 : index
    %180 = vector.load %arg10[%c2_307, %c0_308, %c0_309] : memref<4x4x16xf32, #tpu.memory_space<vmem>>, vector<1x4x16xf32>
    %181 = vector.shape_cast %180 : vector<1x4x16xf32> to vector<4x16xf32>
    %182 = arith.addf %181, %179 : vector<4x16xf32>
    %c2_310 = arith.constant 2 : index
    %c0_311 = arith.constant 0 : index
    %c0_312 = arith.constant 0 : index
    %183 = vector.load %arg10[%c2_310, %c0_311, %c0_312] : memref<4x4x16xf32, #tpu.memory_space<vmem>>, vector<1x4x16xf32>
    %184 = vector.shape_cast %183 : vector<1x4x16xf32> to vector<4x16xf32>
    %185 = vector.shape_cast %182 : vector<4x16xf32> to vector<1x4x16xf32>
    tpu.vector_store %arg10[%c2_310, %c0_311, %c0_312], %185 {strides = array<i32>} : memref<4x4x16xf32, #tpu.memory_space<vmem>>, vector<1x4x16xf32>,
    %cst_313 = arith.constant 0.000000e+00 : f32
    %186 = vector.broadcast %cst_313 : f32 to vector<4x16xf32>
    %c0_314 = arith.constant 0 : index
    %c0_315 = arith.constant 0 : index
    %c3_316 = arith.constant 3 : index
    %c0_317 = arith.constant 0 : index
    %c0_318 = arith.constant 0 : index
    %187 = vector.load %arg3[%c0_314, %c0_315, %c3_316, %c0_317, %c0_318] : memref<1x1x6x6x16xbf16, #tpu.memory_space<vmem>>, vector<1x1x1x4x16xbf16>
    %188 = vector.shape_cast %187 : vector<1x1x1x4x16xbf16> to vector<4x16xbf16>
    %c0_319 = arith.constant 0 : index
    %c0_320 = arith.constant 0 : index
    %c0_321 = arith.constant 0 : index
    %c0_322 = arith.constant 0 : index
    %c0_323 = arith.constant 0 : index
    %189 = vector.load %arg4[%c0_319, %c0_320, %c0_321, %c0_322, %c0_323] : memref<1x3x3x16x16xbf16, #tpu.memory_space<vmem>>, vector<1x1x1x16x16xbf16>
    %190 = vector.shape_cast %189 : vector<1x1x1x16x16xbf16> to vector<16x16xbf16>
    %cst_324 = arith.constant dense<0.000000e+00> : vector<4x16xf32>
    %191 = tpu.matmul %188, %190, %cst_324 {dimension_numbers = #tpu.dot_dimension_numbers<[1], [0], [0], [1], [0, 0, 1, 1], [], []>} : vector<4x16xbf16>, vector<16x16xbf16>, vector<4x16xf32> -> vector<4x16xf32>
    %192 = arith.addf %186, %191 : vector<4x16xf32>
    %c0_325 = arith.constant 0 : index
    %c0_326 = arith.constant 0 : index
    %c3_327 = arith.constant 3 : index
    %c1_328 = arith.constant 1 : index
    %c0_329 = arith.constant 0 : index
    %193 = vector.load %arg3[%c0_325, %c0_326, %c3_327, %c1_328, %c0_329] : memref<1x1x6x6x16xbf16, #tpu.memory_space<vmem>>, vector<1x1x1x4x16xbf16>
    %194 = vector.shape_cast %193 : vector<1x1x1x4x16xbf16> to vector<4x16xbf16>
    %c0_330 = arith.constant 0 : index
    %c0_331 = arith.constant 0 : index
    %c1_332 = arith.constant 1 : index
    %c0_333 = arith.constant 0 : index
    %c0_334 = arith.constant 0 : index
    %195 = vector.load %arg4[%c0_330, %c0_331, %c1_332, %c0_333, %c0_334] : memref<1x3x3x16x16xbf16, #tpu.memory_space<vmem>>, vector<1x1x1x16x16xbf16>
    %196 = vector.shape_cast %195 : vector<1x1x1x16x16xbf16> to vector<16x16xbf16>
    %cst_335 = arith.constant dense<0.000000e+00> : vector<4x16xf32>
    %197 = tpu.matmul %194, %196, %cst_335 {dimension_numbers = #tpu.dot_dimension_numbers<[1], [0], [0], [1], [0, 0, 1, 1], [], []>} : vector<4x16xbf16>, vector<16x16xbf16>, vector<4x16xf32> -> vector<4x16xf32>
    %198 = arith.addf %192, %197 : vector<4x16xf32>
    %c0_336 = arith.constant 0 : index
    %c0_337 = arith.constant 0 : index
    %c3_338 = arith.constant 3 : index
    %c2_339 = arith.constant 2 : index
    %c0_340 = arith.constant 0 : index
    %199 = vector.load %arg3[%c0_336, %c0_337, %c3_338, %c2_339, %c0_340] : memref<1x1x6x6x16xbf16, #tpu.memory_space<vmem>>, vector<1x1x1x4x16xbf16>
    %200 = vector.shape_cast %199 : vector<1x1x1x4x16xbf16> to vector<4x16xbf16>
    %c0_341 = arith.constant 0 : index
    %c0_342 = arith.constant 0 : index
    %c2_343 = arith.constant 2 : index
    %c0_344 = arith.constant 0 : index
    %c0_345 = arith.constant 0 : index
    %201 = vector.load %arg4[%c0_341, %c0_342, %c2_343, %c0_344, %c0_345] : memref<1x3x3x16x16xbf16, #tpu.memory_space<vmem>>, vector<1x1x1x16x16xbf16>
    %202 = vector.shape_cast %201 : vector<1x1x1x16x16xbf16> to vector<16x16xbf16>
    %cst_346 = arith.constant dense<0.000000e+00> : vector<4x16xf32>
    %203 = tpu.matmul %200, %202, %cst_346 {dimension_numbers = #tpu.dot_dimension_numbers<[1], [0], [0], [1], [0, 0, 1, 1], [], []>} : vector<4x16xbf16>, vector<16x16xbf16>, vector<4x16xf32> -> vector<4x16xf32>
    %204 = arith.addf %198, %203 : vector<4x16xf32>
    %c0_347 = arith.constant 0 : index
    %c0_348 = arith.constant 0 : index
    %c4_349 = arith.constant 4 : index
    %c0_350 = arith.constant 0 : index
    %c0_351 = arith.constant 0 : index
    %205 = vector.load %arg3[%c0_347, %c0_348, %c4_349, %c0_350, %c0_351] : memref<1x1x6x6x16xbf16, #tpu.memory_space<vmem>>, vector<1x1x1x4x16xbf16>
    %206 = vector.shape_cast %205 : vector<1x1x1x4x16xbf16> to vector<4x16xbf16>
    %c0_352 = arith.constant 0 : index
    %c1_353 = arith.constant 1 : index
    %c0_354 = arith.constant 0 : index
    %c0_355 = arith.constant 0 : index
    %c0_356 = arith.constant 0 : index
    %207 = vector.load %arg4[%c0_352, %c1_353, %c0_354, %c0_355, %c0_356] : memref<1x3x3x16x16xbf16, #tpu.memory_space<vmem>>, vector<1x1x1x16x16xbf16>
    %208 = vector.shape_cast %207 : vector<1x1x1x16x16xbf16> to vector<16x16xbf16>
    %cst_357 = arith.constant dense<0.000000e+00> : vector<4x16xf32>
    %209 = tpu.matmul %206, %208, %cst_357 {dimension_numbers = #tpu.dot_dimension_numbers<[1], [0], [0], [1], [0, 0, 1, 1], [], []>} : vector<4x16xbf16>, vector<16x16xbf16>, vector<4x16xf32> -> vector<4x16xf32>
    %210 = arith.addf %204, %209 : vector<4x16xf32>
    %c0_358 = arith.constant 0 : index
    %c0_359 = arith.constant 0 : index
    %c4_360 = arith.constant 4 : index
    %c1_361 = arith.constant 1 : index
    %c0_362 = arith.constant 0 : index
    %211 = vector.load %arg3[%c0_358, %c0_359, %c4_360, %c1_361, %c0_362] : memref<1x1x6x6x16xbf16, #tpu.memory_space<vmem>>, vector<1x1x1x4x16xbf16>
    %212 = vector.shape_cast %211 : vector<1x1x1x4x16xbf16> to vector<4x16xbf16>
    %c0_363 = arith.constant 0 : index
    %c1_364 = arith.constant 1 : index
    %c1_365 = arith.constant 1 : index
    %c0_366 = arith.constant 0 : index
    %c0_367 = arith.constant 0 : index
    %213 = vector.load %arg4[%c0_363, %c1_364, %c1_365, %c0_366, %c0_367] : memref<1x3x3x16x16xbf16, #tpu.memory_space<vmem>>, vector<1x1x1x16x16xbf16>
    %214 = vector.shape_cast %213 : vector<1x1x1x16x16xbf16> to vector<16x16xbf16>
    %cst_368 = arith.constant dense<0.000000e+00> : vector<4x16xf32>
    %215 = tpu.matmul %212, %214, %cst_368 {dimension_numbers = #tpu.dot_dimension_numbers<[1], [0], [0], [1], [0, 0, 1, 1], [], []>} : vector<4x16xbf16>, vector<16x16xbf16>, vector<4x16xf32> -> vector<4x16xf32>
    %216 = arith.addf %210, %215 : vector<4x16xf32>
    %c0_369 = arith.constant 0 : index
    %c0_370 = arith.constant 0 : index
    %c4_371 = arith.constant 4 : index
    %c2_372 = arith.constant 2 : index
    %c0_373 = arith.constant 0 : index
    %217 = vector.load %arg3[%c0_369, %c0_370, %c4_371, %c2_372, %c0_373] : memref<1x1x6x6x16xbf16, #tpu.memory_space<vmem>>, vector<1x1x1x4x16xbf16>
    %218 = vector.shape_cast %217 : vector<1x1x1x4x16xbf16> to vector<4x16xbf16>
    %c0_374 = arith.constant 0 : index
    %c1_375 = arith.constant 1 : index
    %c2_376 = arith.constant 2 : index
    %c0_377 = arith.constant 0 : index
    %c0_378 = arith.constant 0 : index
    %219 = vector.load %arg4[%c0_374, %c1_375, %c2_376, %c0_377, %c0_378] : memref<1x3x3x16x16xbf16, #tpu.memory_space<vmem>>, vector<1x1x1x16x16xbf16>
    %220 = vector.shape_cast %219 : vector<1x1x1x16x16xbf16> to vector<16x16xbf16>
    %cst_379 = arith.constant dense<0.000000e+00> : vector<4x16xf32>
    %221 = tpu.matmul %218, %220, %cst_379 {dimension_numbers = #tpu.dot_dimension_numbers<[1], [0], [0], [1], [0, 0, 1, 1], [], []>} : vector<4x16xbf16>, vector<16x16xbf16>, vector<4x16xf32> -> vector<4x16xf32>
    %222 = arith.addf %216, %221 : vector<4x16xf32>
    %c0_380 = arith.constant 0 : index
    %c0_381 = arith.constant 0 : index
    %c5 = arith.constant 5 : index
    %c0_382 = arith.constant 0 : index
    %c0_383 = arith.constant 0 : index
    %223 = vector.load %arg3[%c0_380, %c0_381, %c5, %c0_382, %c0_383] : memref<1x1x6x6x16xbf16, #tpu.memory_space<vmem>>, vector<1x1x1x4x16xbf16>
    %224 = vector.shape_cast %223 : vector<1x1x1x4x16xbf16> to vector<4x16xbf16>
    %c0_384 = arith.constant 0 : index
    %c2_385 = arith.constant 2 : index
    %c0_386 = arith.constant 0 : index
    %c0_387 = arith.constant 0 : index
    %c0_388 = arith.constant 0 : index
    %225 = vector.load %arg4[%c0_384, %c2_385, %c0_386, %c0_387, %c0_388] : memref<1x3x3x16x16xbf16, #tpu.memory_space<vmem>>, vector<1x1x1x16x16xbf16>
    %226 = vector.shape_cast %225 : vector<1x1x1x16x16xbf16> to vector<16x16xbf16>
    %cst_389 = arith.constant dense<0.000000e+00> : vector<4x16xf32>
    %227 = tpu.matmul %224, %226, %cst_389 {dimension_numbers = #tpu.dot_dimension_numbers<[1], [0], [0], [1], [0, 0, 1, 1], [], []>} : vector<4x16xbf16>, vector<16x16xbf16>, vector<4x16xf32> -> vector<4x16xf32>
    %228 = arith.addf %222, %227 : vector<4x16xf32>
    %c0_390 = arith.constant 0 : index
    %c0_391 = arith.constant 0 : index
    %c5_392 = arith.constant 5 : index
    %c1_393 = arith.constant 1 : index
    %c0_394 = arith.constant 0 : index
    %229 = vector.load %arg3[%c0_390, %c0_391, %c5_392, %c1_393, %c0_394] : memref<1x1x6x6x16xbf16, #tpu.memory_space<vmem>>, vector<1x1x1x4x16xbf16>
    %230 = vector.shape_cast %229 : vector<1x1x1x4x16xbf16> to vector<4x16xbf16>
    %c0_395 = arith.constant 0 : index
    %c2_396 = arith.constant 2 : index
    %c1_397 = arith.constant 1 : index
    %c0_398 = arith.constant 0 : index
    %c0_399 = arith.constant 0 : index
    %231 = vector.load %arg4[%c0_395, %c2_396, %c1_397, %c0_398, %c0_399] : memref<1x3x3x16x16xbf16, #tpu.memory_space<vmem>>, vector<1x1x1x16x16xbf16>
    %232 = vector.shape_cast %231 : vector<1x1x1x16x16xbf16> to vector<16x16xbf16>
    %cst_400 = arith.constant dense<0.000000e+00> : vector<4x16xf32>
    %233 = tpu.matmul %230, %232, %cst_400 {dimension_numbers = #tpu.dot_dimension_numbers<[1], [0], [0], [1], [0, 0, 1, 1], [], []>} : vector<4x16xbf16>, vector<16x16xbf16>, vector<4x16xf32> -> vector<4x16xf32>
    %234 = arith.addf %228, %233 : vector<4x16xf32>
    %c0_401 = arith.constant 0 : index
    %c0_402 = arith.constant 0 : index
    %c5_403 = arith.constant 5 : index
    %c2_404 = arith.constant 2 : index
    %c0_405 = arith.constant 0 : index
    %235 = vector.load %arg3[%c0_401, %c0_402, %c5_403, %c2_404, %c0_405] : memref<1x1x6x6x16xbf16, #tpu.memory_space<vmem>>, vector<1x1x1x4x16xbf16>
    %236 = vector.shape_cast %235 : vector<1x1x1x4x16xbf16> to vector<4x16xbf16>
    %c0_406 = arith.constant 0 : index
    %c2_407 = arith.constant 2 : index
    %c2_408 = arith.constant 2 : index
    %c0_409 = arith.constant 0 : index
    %c0_410 = arith.constant 0 : index
    %237 = vector.load %arg4[%c0_406, %c2_407, %c2_408, %c0_409, %c0_410] : memref<1x3x3x16x16xbf16, #tpu.memory_space<vmem>>, vector<1x1x1x16x16xbf16>
    %238 = vector.shape_cast %237 : vector<1x1x1x16x16xbf16> to vector<16x16xbf16>
    %cst_411 = arith.constant dense<0.000000e+00> : vector<4x16xf32>
    %239 = tpu.matmul %236, %238, %cst_411 {dimension_numbers = #tpu.dot_dimension_numbers<[1], [0], [0], [1], [0, 0, 1, 1], [], []>} : vector<4x16xbf16>, vector<16x16xbf16>, vector<4x16xf32> -> vector<4x16xf32>
    %240 = arith.addf %234, %239 : vector<4x16xf32>
    %c3_412 = arith.constant 3 : index
    %c0_413 = arith.constant 0 : index
    %c0_414 = arith.constant 0 : index
    %241 = vector.load %arg10[%c3_412, %c0_413, %c0_414] : memref<4x4x16xf32, #tpu.memory_space<vmem>>, vector<1x4x16xf32>
    %242 = vector.shape_cast %241 : vector<1x4x16xf32> to vector<4x16xf32>
    %243 = arith.addf %242, %240 : vector<4x16xf32>
    %c3_415 = arith.constant 3 : index
    %c0_416 = arith.constant 0 : index
    %c0_417 = arith.constant 0 : index
    %244 = vector.load %arg10[%c3_415, %c0_416, %c0_417] : memref<4x4x16xf32, #tpu.memory_space<vmem>>, vector<1x4x16xf32>
    %245 = vector.shape_cast %244 : vector<1x4x16xf32> to vector<4x16xf32>
    %246 = vector.shape_cast %243 : vector<4x16xf32> to vector<1x4x16xf32>
    tpu.vector_store %arg10[%c3_415, %c0_416, %c0_417], %246 {strides = array<i32>} : memref<4x4x16xf32, #tpu.memory_space<vmem>>, vector<1x4x16xf32>,
    %c2_i32 = arith.constant 2 : i32
    %247 = arith.cmpi eq, %arg2, %c2_i32 : i32
    %248 = arith.extui %247 : i1 to i32
    %c0_i32_418 = arith.constant 0 : i32
    %249 = arith.cmpi ne, %248, %c0_i32_418 : i32
    scf.if %249 {
      %c0_419 = arith.constant 0 : index
      %c0_420 = arith.constant 0 : index
      %c0_421 = arith.constant 0 : index
      %250 = vector.load %arg10[%c0_419, %c0_420, %c0_421] : memref<4x4x16xf32, #tpu.memory_space<vmem>>, vector<4x4x16xf32>
      %c0_422 = arith.constant 0 : index
      %c0_423 = arith.constant 0 : index
      %251 = vector.load %arg5[%c0_422, %c0_423] : memref<1x16xf32, #tpu.memory_space<vmem>>, vector<1x16xf32>
      %252 = vector.shape_cast %251 : vector<1x16xf32> to vector<1x1x16xf32>
      %253 = vector.broadcast %252 : vector<1x1x16xf32> to vector<4x4x16xf32>
      %254 = arith.mulf %250, %253 : vector<4x4x16xf32>
      %c0_424 = arith.constant 0 : index
      %c0_425 = arith.constant 0 : index
      %255 = vector.load %arg6[%c0_424, %c0_425] : memref<1x16xf32, #tpu.memory_space<vmem>>, vector<1x16xf32>
      %256 = vector.shape_cast %255 : vector<1x16xf32> to vector<1x1x16xf32>
      %257 = vector.broadcast %256 : vector<1x1x16xf32> to vector<4x4x16xf32>
      %258 = arith.addf %254, %257 : vector<4x4x16xf32>
      %c0_426 = arith.constant 0 : index
      %c0_427 = arith.constant 0 : index
      %c0_428 = arith.constant 0 : index
      %c0_429 = arith.constant 0 : index
      %c0_430 = arith.constant 0 : index
      %259 = vector.load %arg7[%c0_426, %c0_427, %c0_428, %c0_429, %c0_430] : memref<1x1x4x4x16xf32, #tpu.memory_space<vmem>>, vector<1x1x4x4x16xf32>
      %260 = vector.shape_cast %259 : vector<1x1x4x4x16xf32> to vector<4x4x16xf32>
      %261 = vector.shape_cast %258 : vector<4x4x16xf32> to vector<1x1x4x4x16xf32>
      tpu.vector_store %arg7[%c0_426, %c0_427, %c0_428, %c0_429, %c0_430], %261 {strides = array<i32>} : memref<1x1x4x4x16xf32, #tpu.memory_space<vmem>>, vector<1x1x4x4x16xf32>,
      %cst_431 = arith.constant dense<0.000000e+00> : vector<4x16xf32>
      %262 = vector.multi_reduction <add>, %258, %cst_431 [0] : vector<4x4x16xf32> to vector<4x16xf32>
      %cst_432 = arith.constant dense<0.000000e+00> : vector<16xf32>
      %263 = vector.multi_reduction <add>, %262, %cst_432 [0] : vector<4x16xf32> to vector<16xf32>
      %264 = vector.shape_cast %263 : vector<16xf32> to vector<1x16xf32>
      %cst_433 = arith.constant dense<0xFF800000> : vector<4x16xf32>
      %265 = vector.multi_reduction <maximumf>, %258, %cst_433 [0] : vector<4x4x16xf32> to vector<4x16xf32>
      %cst_434 = arith.constant dense<0xFF800000> : vector<16xf32>
      %266 = vector.multi_reduction <maximumf>, %265, %cst_434 [0] : vector<4x16xf32> to vector<16xf32>
      %267 = vector.shape_cast %266 : vector<16xf32> to vector<1x16xf32>
      %268 = vector.shape_cast %264 : vector<1x16xf32> to vector<1x1x1x16xf32>
      %c0_435 = arith.constant 0 : index
      %c0_436 = arith.constant 0 : index
      %c0_437 = arith.constant 0 : index
      %c0_438 = arith.constant 0 : index
      %269 = vector.load %arg8[%c0_435, %c0_436, %c0_437, %c0_438] : memref<1x1x1x16xf32, #tpu.memory_space<vmem>>, vector<1x1x1x16xf32>
      tpu.vector_store %arg8[%c0_435, %c0_436, %c0_437, %c0_438], %268 {strides = array<i32>} : memref<1x1x1x16xf32, #tpu.memory_space<vmem>>, vector<1x1x1x16xf32>,
      %270 = vector.shape_cast %267 : vector<1x16xf32> to vector<1x1x1x16xf32>
      %c0_439 = arith.constant 0 : index
      %c0_440 = arith.constant 0 : index
      %c0_441 = arith.constant 0 : index
      %c0_442 = arith.constant 0 : index
      %271 = vector.load %arg9[%c0_439, %c0_440, %c0_441, %c0_442] : memref<1x1x1x16xf32, #tpu.memory_space<vmem>>, vector<1x1x1x16xf32>
      tpu.vector_store %arg9[%c0_439, %c0_440, %c0_441, %c0_442], %270 {strides = array<i32>} : memref<1x1x1x16xf32, #tpu.memory_space<vmem>>, vector<1x1x1x16xf32>,
    } else {
    }
    return
  }
  func.func @transform_0(%arg0: i32, %arg1: i32, %arg2: i32) -> (i32, i32, i32, i32, i32) {
    %0 = arith.addi %arg1, %arg2 : i32
    %c0_i32 = arith.constant 0 : i32
    %c0_i32_0 = arith.constant 0 : i32
    %c0_i32_1 = arith.constant 0 : i32
    %c0_i32_2 = arith.constant 0 : i32
    return %arg0, %0, %c0_i32, %c0_i32_0, %c0_i32_1 : i32, i32, i32, i32, i32
  }
  func.func @transform_1(%arg0: i32, %arg1: i32, %arg2: i32) -> (i32, i32, i32, i32, i32) {
    %c0_i32 = arith.constant 0 : i32
    %c0_i32_0 = arith.constant 0 : i32
    %c0_i32_1 = arith.constant 0 : i32
    %c0_i32_2 = arith.constant 0 : i32
    %c0_i32_3 = arith.constant 0 : i32
    return %arg2, %c0_i32, %c0_i32_0, %c0_i32_1, %c0_i32_2 : i32, i32, i32, i32, i32
  }
  func.func @transform_2(%arg0: i32, %arg1: i32, %arg2: i32) -> (i32, i32) {
    %c0_i32 = arith.constant 0 : i32
    %c0_i32_0 = arith.constant 0 : i32
    %c0_i32_1 = arith.constant 0 : i32
    return %c0_i32, %c0_i32_0 : i32, i32
  }
  func.func @transform_3(%arg0: i32, %arg1: i32, %arg2: i32) -> (i32, i32) {
    %c0_i32 = arith.constant 0 : i32
    %c0_i32_0 = arith.constant 0 : i32
    %c0_i32_1 = arith.constant 0 : i32
    return %c0_i32, %c0_i32_0 : i32, i32
  }
  func.func @transform_4(%arg0: i32, %arg1: i32, %arg2: i32) -> (i32, i32, i32, i32, i32) {
    %c0_i32 = arith.constant 0 : i32
    %c0_i32_0 = arith.constant 0 : i32
    %c0_i32_1 = arith.constant 0 : i32
    %c0_i32_2 = arith.constant 0 : i32
    return %arg0, %arg1, %c0_i32, %c0_i32_0, %c0_i32_1 : i32, i32, i32, i32, i32
  }
  func.func @transform_5(%arg0: i32, %arg1: i32, %arg2: i32) -> (i32, i32, i32, i32) {
    %c0_i32 = arith.constant 0 : i32
    %c0_i32_0 = arith.constant 0 : i32
    %c0_i32_1 = arith.constant 0 : i32
    return %arg0, %arg1, %c0_i32, %c0_i32_0 : i32, i32, i32, i32
  }
  func.func @transform_6(%arg0: i32, %arg1: i32, %arg2: i32) -> (i32, i32, i32, i32) {
    %c0_i32 = arith.constant 0 : i32
    %c0_i32_0 = arith.constant 0 : i32
    %c0_i32_1 = arith.constant 0 : i32
    return %arg0, %arg1, %c0_i32, %c0_i32_0 : i32, i32, i32, i32
  }
}

module attributes {stable_mosaic.version = 11 : i64} {
  func.func @_gate_pool_kernel(%arg0: i32, %arg1: i32, %arg2: memref<1x1x4x4x16xf32, #tpu.memory_space<vmem>>, %arg3: memref<1x1x16xf32, #tpu.memory_space<vmem>>, %arg4: memref<1x1x4x4x2xf32, #tpu.memory_space<vmem>>) attributes {dimension_semantics = [#tpu.dimension_semantics<parallel>, #tpu.dimension_semantics<parallel>], iteration_bounds = array<i64: 2, 4>, scalar_prefetch = 0 : i64, scratch_operands = 0 : i64, tpu.core_type = #tpu.core_type<tc>, window_params = [{transform_indices = @transform_0, window_bounds = array<i64: 1, 1, 4, 4, 16>}, {transform_indices = @transform_1, window_bounds = array<i64: 1, 1, 16>}, {transform_indices = @transform_2, window_bounds = array<i64: 1, 1, 4, 4, 2>}]} {
    %c0 = arith.constant 0 : index
    %c0_0 = arith.constant 0 : index
    %c0_1 = arith.constant 0 : index
    %c0_2 = arith.constant 0 : index
    %c0_3 = arith.constant 0 : index
    %0 = vector.load %arg2[%c0, %c0_0, %c0_1, %c0_2, %c0_3] : memref<1x1x4x4x16xf32, #tpu.memory_space<vmem>>, vector<1x1x4x4x16xf32>
    %1 = vector.shape_cast %0 : vector<1x1x4x4x16xf32> to vector<4x4x16xf32>
    %c0_4 = arith.constant 0 : index
    %c0_5 = arith.constant 0 : index
    %c0_6 = arith.constant 0 : index
    %2 = vector.load %arg3[%c0_4, %c0_5, %c0_6] : memref<1x1x16xf32, #tpu.memory_space<vmem>>, vector<1x1x16xf32>
    %3 = vector.broadcast %2 : vector<1x1x16xf32> to vector<4x4x16xf32>
    %4 = arith.mulf %1, %3 : vector<4x4x16xf32>
    %cst = arith.constant dense<0xFF800000> : vector<4x4xf32>
    %5 = vector.multi_reduction <maximumf>, %4, %cst [2] : vector<4x4x16xf32> to vector<4x4xf32>
    %6 = vector.shape_cast %5 : vector<4x4xf32> to vector<4x4x1xf32>
    %cst_7 = arith.constant dense<0.000000e+00> : vector<4x4xf32>
    %7 = vector.multi_reduction <add>, %4, %cst_7 [2] : vector<4x4x16xf32> to vector<4x4xf32>
    %8 = vector.shape_cast %7 : vector<4x4xf32> to vector<4x4x1xf32>
    %cst_8 = arith.constant 1.600000e+01 : f32
    %9 = vector.broadcast %cst_8 : f32 to vector<4x4x1xf32>
    %10 = arith.divf %8, %9 : vector<4x4x1xf32>
    %11 = tpu.concatenate %6, %10 in 2 : vector<4x4x1xf32>, vector<4x4x1xf32> -> vector<4x4x2xf32>
    %c0_9 = arith.constant 0 : index
    %c0_10 = arith.constant 0 : index
    %c0_11 = arith.constant 0 : index
    %c0_12 = arith.constant 0 : index
    %c0_13 = arith.constant 0 : index
    %12 = vector.load %arg4[%c0_9, %c0_10, %c0_11, %c0_12, %c0_13] : memref<1x1x4x4x2xf32, #tpu.memory_space<vmem>>, vector<1x1x4x4x2xf32>
    %13 = vector.shape_cast %12 : vector<1x1x4x4x2xf32> to vector<4x4x2xf32>
    %14 = vector.shape_cast %11 : vector<4x4x2xf32> to vector<1x1x4x4x2xf32>
    tpu.vector_store %arg4[%c0_9, %c0_10, %c0_11, %c0_12, %c0_13], %14 {strides = array<i32>} : memref<1x1x4x4x2xf32, #tpu.memory_space<vmem>>, vector<1x1x4x4x2xf32>,
    return
  }
  func.func @transform_0(%arg0: i32, %arg1: i32) -> (i32, i32, i32, i32, i32) {
    %c0_i32 = arith.constant 0 : i32
    %c0_i32_0 = arith.constant 0 : i32
    %c0_i32_1 = arith.constant 0 : i32
    %c0_i32_2 = arith.constant 0 : i32
    return %arg0, %arg1, %c0_i32, %c0_i32_0, %c0_i32_1 : i32, i32, i32, i32, i32
  }
  func.func @transform_1(%arg0: i32, %arg1: i32) -> (i32, i32, i32) {
    %c0_i32 = arith.constant 0 : i32
    %c0_i32_0 = arith.constant 0 : i32
    %c0_i32_1 = arith.constant 0 : i32
    return %arg0, %c0_i32, %c0_i32_0 : i32, i32, i32
  }
  func.func @transform_2(%arg0: i32, %arg1: i32) -> (i32, i32, i32, i32, i32) {
    %c0_i32 = arith.constant 0 : i32
    %c0_i32_0 = arith.constant 0 : i32
    %c0_i32_1 = arith.constant 0 : i32
    %c0_i32_2 = arith.constant 0 : i32
    return %arg0, %arg1, %c0_i32, %c0_i32_0, %c0_i32_1 : i32, i32, i32, i32, i32
  }
}

module attributes {stable_mosaic.version = 11 : i64} {
  func.func @_spatial_residual_kernel(%arg0: i32, %arg1: i32, %arg2: i32, %arg3: memref<1x1x10x10x2xf32, #tpu.memory_space<vmem>>, %arg4: memref<1x7x7x2xf32, #tpu.memory_space<vmem>>, %arg5: memref<1x1xf32, #tpu.memory_space<vmem>>, %arg6: memref<1x1x4x4x16xf32, #tpu.memory_space<vmem>>, %arg7: memref<1x1x16xf32, #tpu.memory_space<vmem>>, %arg8: memref<1x1x4x4x16xf32, #tpu.memory_space<vmem>>, %arg9: memref<1x1x4x4x16xf32, #tpu.memory_space<vmem>>, %arg10: memref<4x4x2xf32, #tpu.memory_space<vmem>>) attributes {dimension_semantics = [#tpu.dimension_semantics<parallel>, #tpu.dimension_semantics<parallel>, #tpu.dimension_semantics<arbitrary>], iteration_bounds = array<i64: 2, 4, 7>, scalar_prefetch = 0 : i64, scratch_operands = 1 : i64, tpu.core_type = #tpu.core_type<tc>, window_params = [{transform_indices = @transform_0, window_bounds = array<i64: 1, 1, 10, 10, 2>}, {transform_indices = @transform_1, window_bounds = array<i64: 1, 7, 7, 2>}, {pipeline_mode = #tpu.pipeline_mode<synchronous>, transform_indices = @transform_2, window_bounds = array<i64: 1, 1>}, {transform_indices = @transform_3, window_bounds = array<i64: 1, 1, 4, 4, 16>}, {transform_indices = @transform_4, window_bounds = array<i64: 1, 1, 16>}, {transform_indices = @transform_5, window_bounds = array<i64: 1, 1, 4, 4, 16>}, {transform_indices = @transform_6, window_bounds = array<i64: 1, 1, 4, 4, 16>}]} {
    %c0_i32 = arith.constant 0 : i32
    %0 = arith.cmpi eq, %arg2, %c0_i32 : i32
    %1 = arith.extui %0 : i1 to i32
    %c0_i32_0 = arith.constant 0 : i32
    %2 = arith.cmpi ne, %1, %c0_i32_0 : i32
    scf.if %2 {
      %cst = arith.constant 0.000000e+00 : f32
      %351 = vector.broadcast %cst : f32 to vector<4x4x2xf32>
      %c0_442 = arith.constant 0 : index
      %c0_443 = arith.constant 0 : index
      %c0_444 = arith.constant 0 : index
      %352 = vector.load %arg10[%c0_442, %c0_443, %c0_444] : memref<4x4x2xf32, #tpu.memory_space<vmem>>, vector<4x4x2xf32>
      tpu.vector_store %arg10[%c0_442, %c0_443, %c0_444], %351 {strides = array<i32>} : memref<4x4x2xf32, #tpu.memory_space<vmem>>, vector<4x4x2xf32>,
    } else {
    }
    %c0 = arith.constant 0 : index
    %c0_1 = arith.constant 0 : index
    %c0_2 = arith.constant 0 : index
    %3 = vector.load %arg10[%c0, %c0_1, %c0_2] : memref<4x4x2xf32, #tpu.memory_space<vmem>>, vector<4x4x2xf32>
    %c0_3 = arith.constant 0 : index
    %c0_4 = arith.constant 0 : index
    %c0_5 = arith.constant 0 : index
    %c0_6 = arith.constant 0 : index
    %c0_7 = arith.constant 0 : index
    %4 = vector.load %arg3[%c0_3, %c0_4, %c0_5, %c0_6, %c0_7] : memref<1x1x10x10x2xf32, #tpu.memory_space<vmem>>, vector<1x1x4x4x2xf32>
    %5 = vector.shape_cast %4 : vector<1x1x4x4x2xf32> to vector<4x4x2xf32>
    %c0_8 = arith.constant 0 : index
    %c0_9 = arith.constant 0 : index
    %c0_10 = arith.constant 0 : index
    %c0_11 = arith.constant 0 : index
    %6 = vector.load %arg4[%c0_8, %c0_9, %c0_10, %c0_11] : memref<1x7x7x2xf32, #tpu.memory_space<vmem>>, vector<1x1x1x2xf32>
    %7 = vector.shape_cast %6 : vector<1x1x1x2xf32> to vector<1x1x2xf32>
    %8 = vector.broadcast %7 : vector<1x1x2xf32> to vector<4x4x2xf32>
    %9 = arith.mulf %5, %8 : vector<4x4x2xf32>
    %10 = arith.addf %3, %9 : vector<4x4x2xf32>
    %c0_12 = arith.constant 0 : index
    %c0_13 = arith.constant 0 : index
    %c0_14 = arith.constant 0 : index
    %c1 = arith.constant 1 : index
    %c0_15 = arith.constant 0 : index
    %11 = vector.load %arg3[%c0_12, %c0_13, %c0_14, %c1, %c0_15] : memref<1x1x10x10x2xf32, #tpu.memory_space<vmem>>, vector<1x1x4x4x2xf32>
    %12 = vector.shape_cast %11 : vector<1x1x4x4x2xf32> to vector<4x4x2xf32>
    %c0_16 = arith.constant 0 : index
    %c0_17 = arith.constant 0 : index
    %c1_18 = arith.constant 1 : index
    %c0_19 = arith.constant 0 : index
    %13 = vector.load %arg4[%c0_16, %c0_17, %c1_18, %c0_19] : memref<1x7x7x2xf32, #tpu.memory_space<vmem>>, vector<1x1x1x2xf32>
    %14 = vector.shape_cast %13 : vector<1x1x1x2xf32> to vector<1x1x2xf32>
    %15 = vector.broadcast %14 : vector<1x1x2xf32> to vector<4x4x2xf32>
    %16 = arith.mulf %12, %15 : vector<4x4x2xf32>
    %17 = arith.addf %10, %16 : vector<4x4x2xf32>
    %c0_20 = arith.constant 0 : index
    %c0_21 = arith.constant 0 : index
    %c0_22 = arith.constant 0 : index
    %c2 = arith.constant 2 : index
    %c0_23 = arith.constant 0 : index
    %18 = vector.load %arg3[%c0_20, %c0_21, %c0_22, %c2, %c0_23] : memref<1x1x10x10x2xf32, #tpu.memory_space<vmem>>, vector<1x1x4x4x2xf32>
    %19 = vector.shape_cast %18 : vector<1x1x4x4x2xf32> to vector<4x4x2xf32>
    %c0_24 = arith.constant 0 : index
    %c0_25 = arith.constant 0 : index
    %c2_26 = arith.constant 2 : index
    %c0_27 = arith.constant 0 : index
    %20 = vector.load %arg4[%c0_24, %c0_25, %c2_26, %c0_27] : memref<1x7x7x2xf32, #tpu.memory_space<vmem>>, vector<1x1x1x2xf32>
    %21 = vector.shape_cast %20 : vector<1x1x1x2xf32> to vector<1x1x2xf32>
    %22 = vector.broadcast %21 : vector<1x1x2xf32> to vector<4x4x2xf32>
    %23 = arith.mulf %19, %22 : vector<4x4x2xf32>
    %24 = arith.addf %17, %23 : vector<4x4x2xf32>
    %c0_28 = arith.constant 0 : index
    %c0_29 = arith.constant 0 : index
    %c0_30 = arith.constant 0 : index
    %c3 = arith.constant 3 : index
    %c0_31 = arith.constant 0 : index
    %25 = vector.load %arg3[%c0_28, %c0_29, %c0_30, %c3, %c0_31] : memref<1x1x10x10x2xf32, #tpu.memory_space<vmem>>, vector<1x1x4x4x2xf32>
    %26 = vector.shape_cast %25 : vector<1x1x4x4x2xf32> to vector<4x4x2xf32>
    %c0_32 = arith.constant 0 : index
    %c0_33 = arith.constant 0 : index
    %c3_34 = arith.constant 3 : index
    %c0_35 = arith.constant 0 : index
    %27 = vector.load %arg4[%c0_32, %c0_33, %c3_34, %c0_35] : memref<1x7x7x2xf32, #tpu.memory_space<vmem>>, vector<1x1x1x2xf32>
    %28 = vector.shape_cast %27 : vector<1x1x1x2xf32> to vector<1x1x2xf32>
    %29 = vector.broadcast %28 : vector<1x1x2xf32> to vector<4x4x2xf32>
    %30 = arith.mulf %26, %29 : vector<4x4x2xf32>
    %31 = arith.addf %24, %30 : vector<4x4x2xf32>
    %c0_36 = arith.constant 0 : index
    %c0_37 = arith.constant 0 : index
    %c0_38 = arith.constant 0 : index
    %c4 = arith.constant 4 : index
    %c0_39 = arith.constant 0 : index
    %32 = vector.load %arg3[%c0_36, %c0_37, %c0_38, %c4, %c0_39] : memref<1x1x10x10x2xf32, #tpu.memory_space<vmem>>, vector<1x1x4x4x2xf32>
    %33 = vector.shape_cast %32 : vector<1x1x4x4x2xf32> to vector<4x4x2xf32>
    %c0_40 = arith.constant 0 : index
    %c0_41 = arith.constant 0 : index
    %c4_42 = arith.constant 4 : index
    %c0_43 = arith.constant 0 : index
    %34 = vector.load %arg4[%c0_40, %c0_41, %c4_42, %c0_43] : memref<1x7x7x2xf32, #tpu.memory_space<vmem>>, vector<1x1x1x2xf32>
    %35 = vector.shape_cast %34 : vector<1x1x1x2xf32> to vector<1x1x2xf32>
    %36 = vector.broadcast %35 : vector<1x1x2xf32> to vector<4x4x2xf32>
    %37 = arith.mulf %33, %36 : vector<4x4x2xf32>
    %38 = arith.addf %31, %37 : vector<4x4x2xf32>
    %c0_44 = arith.constant 0 : index
    %c0_45 = arith.constant 0 : index
    %c0_46 = arith.constant 0 : index
    %c5 = arith.constant 5 : index
    %c0_47 = arith.constant 0 : index
    %39 = vector.load %arg3[%c0_44, %c0_45, %c0_46, %c5, %c0_47] : memref<1x1x10x10x2xf32, #tpu.memory_space<vmem>>, vector<1x1x4x4x2xf32>
    %40 = vector.shape_cast %39 : vector<1x1x4x4x2xf32> to vector<4x4x2xf32>
    %c0_48 = arith.constant 0 : index
    %c0_49 = arith.constant 0 : index
    %c5_50 = arith.constant 5 : index
    %c0_51 = arith.constant 0 : index
    %41 = vector.load %arg4[%c0_48, %c0_49, %c5_50, %c0_51] : memref<1x7x7x2xf32, #tpu.memory_space<vmem>>, vector<1x1x1x2xf32>
    %42 = vector.shape_cast %41 : vector<1x1x1x2xf32> to vector<1x1x2xf32>
    %43 = vector.broadcast %42 : vector<1x1x2xf32> to vector<4x4x2xf32>
    %44 = arith.mulf %40, %43 : vector<4x4x2xf32>
    %45 = arith.addf %38, %44 : vector<4x4x2xf32>
    %c0_52 = arith.constant 0 : index
    %c0_53 = arith.constant 0 : index
    %c0_54 = arith.constant 0 : index
    %c6 = arith.constant 6 : index
    %c0_55 = arith.constant 0 : index
    %46 = vector.load %arg3[%c0_52, %c0_53, %c0_54, %c6, %c0_55] : memref<1x1x10x10x2xf32, #tpu.memory_space<vmem>>, vector<1x1x4x4x2xf32>
    %47 = vector.shape_cast %46 : vector<1x1x4x4x2xf32> to vector<4x4x2xf32>
    %c0_56 = arith.constant 0 : index
    %c0_57 = arith.constant 0 : index
    %c6_58 = arith.constant 6 : index
    %c0_59 = arith.constant 0 : index
    %48 = vector.load %arg4[%c0_56, %c0_57, %c6_58, %c0_59] : memref<1x7x7x2xf32, #tpu.memory_space<vmem>>, vector<1x1x1x2xf32>
    %49 = vector.shape_cast %48 : vector<1x1x1x2xf32> to vector<1x1x2xf32>
    %50 = vector.broadcast %49 : vector<1x1x2xf32> to vector<4x4x2xf32>
    %51 = arith.mulf %47, %50 : vector<4x4x2xf32>
    %52 = arith.addf %45, %51 : vector<4x4x2xf32>
    %c0_60 = arith.constant 0 : index
    %c0_61 = arith.constant 0 : index
    %c1_62 = arith.constant 1 : index
    %c0_63 = arith.constant 0 : index
    %c0_64 = arith.constant 0 : index
    %53 = vector.load %arg3[%c0_60, %c0_61, %c1_62, %c0_63, %c0_64] : memref<1x1x10x10x2xf32, #tpu.memory_space<vmem>>, vector<1x1x4x4x2xf32>
    %54 = vector.shape_cast %53 : vector<1x1x4x4x2xf32> to vector<4x4x2xf32>
    %c0_65 = arith.constant 0 : index
    %c1_66 = arith.constant 1 : index
    %c0_67 = arith.constant 0 : index
    %c0_68 = arith.constant 0 : index
    %55 = vector.load %arg4[%c0_65, %c1_66, %c0_67, %c0_68] : memref<1x7x7x2xf32, #tpu.memory_space<vmem>>, vector<1x1x1x2xf32>
    %56 = vector.shape_cast %55 : vector<1x1x1x2xf32> to vector<1x1x2xf32>
    %57 = vector.broadcast %56 : vector<1x1x2xf32> to vector<4x4x2xf32>
    %58 = arith.mulf %54, %57 : vector<4x4x2xf32>
    %59 = arith.addf %52, %58 : vector<4x4x2xf32>
    %c0_69 = arith.constant 0 : index
    %c0_70 = arith.constant 0 : index
    %c1_71 = arith.constant 1 : index
    %c1_72 = arith.constant 1 : index
    %c0_73 = arith.constant 0 : index
    %60 = vector.load %arg3[%c0_69, %c0_70, %c1_71, %c1_72, %c0_73] : memref<1x1x10x10x2xf32, #tpu.memory_space<vmem>>, vector<1x1x4x4x2xf32>
    %61 = vector.shape_cast %60 : vector<1x1x4x4x2xf32> to vector<4x4x2xf32>
    %c0_74 = arith.constant 0 : index
    %c1_75 = arith.constant 1 : index
    %c1_76 = arith.constant 1 : index
    %c0_77 = arith.constant 0 : index
    %62 = vector.load %arg4[%c0_74, %c1_75, %c1_76, %c0_77] : memref<1x7x7x2xf32, #tpu.memory_space<vmem>>, vector<1x1x1x2xf32>
    %63 = vector.shape_cast %62 : vector<1x1x1x2xf32> to vector<1x1x2xf32>
    %64 = vector.broadcast %63 : vector<1x1x2xf32> to vector<4x4x2xf32>
    %65 = arith.mulf %61, %64 : vector<4x4x2xf32>
    %66 = arith.addf %59, %65 : vector<4x4x2xf32>
    %c0_78 = arith.constant 0 : index
    %c0_79 = arith.constant 0 : index
    %c1_80 = arith.constant 1 : index
    %c2_81 = arith.constant 2 : index
    %c0_82 = arith.constant 0 : index
    %67 = vector.load %arg3[%c0_78, %c0_79, %c1_80, %c2_81, %c0_82] : memref<1x1x10x10x2xf32, #tpu.memory_space<vmem>>, vector<1x1x4x4x2xf32>
    %68 = vector.shape_cast %67 : vector<1x1x4x4x2xf32> to vector<4x4x2xf32>
    %c0_83 = arith.constant 0 : index
    %c1_84 = arith.constant 1 : index
    %c2_85 = arith.constant 2 : index
    %c0_86 = arith.constant 0 : index
    %69 = vector.load %arg4[%c0_83, %c1_84, %c2_85, %c0_86] : memref<1x7x7x2xf32, #tpu.memory_space<vmem>>, vector<1x1x1x2xf32>
    %70 = vector.shape_cast %69 : vector<1x1x1x2xf32> to vector<1x1x2xf32>
    %71 = vector.broadcast %70 : vector<1x1x2xf32> to vector<4x4x2xf32>
    %72 = arith.mulf %68, %71 : vector<4x4x2xf32>
    %73 = arith.addf %66, %72 : vector<4x4x2xf32>
    %c0_87 = arith.constant 0 : index
    %c0_88 = arith.constant 0 : index
    %c1_89 = arith.constant 1 : index
    %c3_90 = arith.constant 3 : index
    %c0_91 = arith.constant 0 : index
    %74 = vector.load %arg3[%c0_87, %c0_88, %c1_89, %c3_90, %c0_91] : memref<1x1x10x10x2xf32, #tpu.memory_space<vmem>>, vector<1x1x4x4x2xf32>
    %75 = vector.shape_cast %74 : vector<1x1x4x4x2xf32> to vector<4x4x2xf32>
    %c0_92 = arith.constant 0 : index
    %c1_93 = arith.constant 1 : index
    %c3_94 = arith.constant 3 : index
    %c0_95 = arith.constant 0 : index
    %76 = vector.load %arg4[%c0_92, %c1_93, %c3_94, %c0_95] : memref<1x7x7x2xf32, #tpu.memory_space<vmem>>, vector<1x1x1x2xf32>
    %77 = vector.shape_cast %76 : vector<1x1x1x2xf32> to vector<1x1x2xf32>
    %78 = vector.broadcast %77 : vector<1x1x2xf32> to vector<4x4x2xf32>
    %79 = arith.mulf %75, %78 : vector<4x4x2xf32>
    %80 = arith.addf %73, %79 : vector<4x4x2xf32>
    %c0_96 = arith.constant 0 : index
    %c0_97 = arith.constant 0 : index
    %c1_98 = arith.constant 1 : index
    %c4_99 = arith.constant 4 : index
    %c0_100 = arith.constant 0 : index
    %81 = vector.load %arg3[%c0_96, %c0_97, %c1_98, %c4_99, %c0_100] : memref<1x1x10x10x2xf32, #tpu.memory_space<vmem>>, vector<1x1x4x4x2xf32>
    %82 = vector.shape_cast %81 : vector<1x1x4x4x2xf32> to vector<4x4x2xf32>
    %c0_101 = arith.constant 0 : index
    %c1_102 = arith.constant 1 : index
    %c4_103 = arith.constant 4 : index
    %c0_104 = arith.constant 0 : index
    %83 = vector.load %arg4[%c0_101, %c1_102, %c4_103, %c0_104] : memref<1x7x7x2xf32, #tpu.memory_space<vmem>>, vector<1x1x1x2xf32>
    %84 = vector.shape_cast %83 : vector<1x1x1x2xf32> to vector<1x1x2xf32>
    %85 = vector.broadcast %84 : vector<1x1x2xf32> to vector<4x4x2xf32>
    %86 = arith.mulf %82, %85 : vector<4x4x2xf32>
    %87 = arith.addf %80, %86 : vector<4x4x2xf32>
    %c0_105 = arith.constant 0 : index
    %c0_106 = arith.constant 0 : index
    %c1_107 = arith.constant 1 : index
    %c5_108 = arith.constant 5 : index
    %c0_109 = arith.constant 0 : index
    %88 = vector.load %arg3[%c0_105, %c0_106, %c1_107, %c5_108, %c0_109] : memref<1x1x10x10x2xf32, #tpu.memory_space<vmem>>, vector<1x1x4x4x2xf32>
    %89 = vector.shape_cast %88 : vector<1x1x4x4x2xf32> to vector<4x4x2xf32>
    %c0_110 = arith.constant 0 : index
    %c1_111 = arith.constant 1 : index
    %c5_112 = arith.constant 5 : index
    %c0_113 = arith.constant 0 : index
    %90 = vector.load %arg4[%c0_110, %c1_111, %c5_112, %c0_113] : memref<1x7x7x2xf32, #tpu.memory_space<vmem>>, vector<1x1x1x2xf32>
    %91 = vector.shape_cast %90 : vector<1x1x1x2xf32> to vector<1x1x2xf32>
    %92 = vector.broadcast %91 : vector<1x1x2xf32> to vector<4x4x2xf32>
    %93 = arith.mulf %89, %92 : vector<4x4x2xf32>
    %94 = arith.addf %87, %93 : vector<4x4x2xf32>
    %c0_114 = arith.constant 0 : index
    %c0_115 = arith.constant 0 : index
    %c1_116 = arith.constant 1 : index
    %c6_117 = arith.constant 6 : index
    %c0_118 = arith.constant 0 : index
    %95 = vector.load %arg3[%c0_114, %c0_115, %c1_116, %c6_117, %c0_118] : memref<1x1x10x10x2xf32, #tpu.memory_space<vmem>>, vector<1x1x4x4x2xf32>
    %96 = vector.shape_cast %95 : vector<1x1x4x4x2xf32> to vector<4x4x2xf32>
    %c0_119 = arith.constant 0 : index
    %c1_120 = arith.constant 1 : index
    %c6_121 = arith.constant 6 : index
    %c0_122 = arith.constant 0 : index
    %97 = vector.load %arg4[%c0_119, %c1_120, %c6_121, %c0_122] : memref<1x7x7x2xf32, #tpu.memory_space<vmem>>, vector<1x1x1x2xf32>
    %98 = vector.shape_cast %97 : vector<1x1x1x2xf32> to vector<1x1x2xf32>
    %99 = vector.broadcast %98 : vector<1x1x2xf32> to vector<4x4x2xf32>
    %100 = arith.mulf %96, %99 : vector<4x4x2xf32>
    %101 = arith.addf %94, %100 : vector<4x4x2xf32>
    %c0_123 = arith.constant 0 : index
    %c0_124 = arith.constant 0 : index
    %c2_125 = arith.constant 2 : index
    %c0_126 = arith.constant 0 : index
    %c0_127 = arith.constant 0 : index
    %102 = vector.load %arg3[%c0_123, %c0_124, %c2_125, %c0_126, %c0_127] : memref<1x1x10x10x2xf32, #tpu.memory_space<vmem>>, vector<1x1x4x4x2xf32>
    %103 = vector.shape_cast %102 : vector<1x1x4x4x2xf32> to vector<4x4x2xf32>
    %c0_128 = arith.constant 0 : index
    %c2_129 = arith.constant 2 : index
    %c0_130 = arith.constant 0 : index
    %c0_131 = arith.constant 0 : index
    %104 = vector.load %arg4[%c0_128, %c2_129, %c0_130, %c0_131] : memref<1x7x7x2xf32, #tpu.memory_space<vmem>>, vector<1x1x1x2xf32>
    %105 = vector.shape_cast %104 : vector<1x1x1x2xf32> to vector<1x1x2xf32>
    %106 = vector.broadcast %105 : vector<1x1x2xf32> to vector<4x4x2xf32>
    %107 = arith.mulf %103, %106 : vector<4x4x2xf32>
    %108 = arith.addf %101, %107 : vector<4x4x2xf32>
    %c0_132 = arith.constant 0 : index
    %c0_133 = arith.constant 0 : index
    %c2_134 = arith.constant 2 : index
    %c1_135 = arith.constant 1 : index
    %c0_136 = arith.constant 0 : index
    %109 = vector.load %arg3[%c0_132, %c0_133, %c2_134, %c1_135, %c0_136] : memref<1x1x10x10x2xf32, #tpu.memory_space<vmem>>, vector<1x1x4x4x2xf32>
    %110 = vector.shape_cast %109 : vector<1x1x4x4x2xf32> to vector<4x4x2xf32>
    %c0_137 = arith.constant 0 : index
    %c2_138 = arith.constant 2 : index
    %c1_139 = arith.constant 1 : index
    %c0_140 = arith.constant 0 : index
    %111 = vector.load %arg4[%c0_137, %c2_138, %c1_139, %c0_140] : memref<1x7x7x2xf32, #tpu.memory_space<vmem>>, vector<1x1x1x2xf32>
    %112 = vector.shape_cast %111 : vector<1x1x1x2xf32> to vector<1x1x2xf32>
    %113 = vector.broadcast %112 : vector<1x1x2xf32> to vector<4x4x2xf32>
    %114 = arith.mulf %110, %113 : vector<4x4x2xf32>
    %115 = arith.addf %108, %114 : vector<4x4x2xf32>
    %c0_141 = arith.constant 0 : index
    %c0_142 = arith.constant 0 : index
    %c2_143 = arith.constant 2 : index
    %c2_144 = arith.constant 2 : index
    %c0_145 = arith.constant 0 : index
    %116 = vector.load %arg3[%c0_141, %c0_142, %c2_143, %c2_144, %c0_145] : memref<1x1x10x10x2xf32, #tpu.memory_space<vmem>>, vector<1x1x4x4x2xf32>
    %117 = vector.shape_cast %116 : vector<1x1x4x4x2xf32> to vector<4x4x2xf32>
    %c0_146 = arith.constant 0 : index
    %c2_147 = arith.constant 2 : index
    %c2_148 = arith.constant 2 : index
    %c0_149 = arith.constant 0 : index
    %118 = vector.load %arg4[%c0_146, %c2_147, %c2_148, %c0_149] : memref<1x7x7x2xf32, #tpu.memory_space<vmem>>, vector<1x1x1x2xf32>
    %119 = vector.shape_cast %118 : vector<1x1x1x2xf32> to vector<1x1x2xf32>
    %120 = vector.broadcast %119 : vector<1x1x2xf32> to vector<4x4x2xf32>
    %121 = arith.mulf %117, %120 : vector<4x4x2xf32>
    %122 = arith.addf %115, %121 : vector<4x4x2xf32>
    %c0_150 = arith.constant 0 : index
    %c0_151 = arith.constant 0 : index
    %c2_152 = arith.constant 2 : index
    %c3_153 = arith.constant 3 : index
    %c0_154 = arith.constant 0 : index
    %123 = vector.load %arg3[%c0_150, %c0_151, %c2_152, %c3_153, %c0_154] : memref<1x1x10x10x2xf32, #tpu.memory_space<vmem>>, vector<1x1x4x4x2xf32>
    %124 = vector.shape_cast %123 : vector<1x1x4x4x2xf32> to vector<4x4x2xf32>
    %c0_155 = arith.constant 0 : index
    %c2_156 = arith.constant 2 : index
    %c3_157 = arith.constant 3 : index
    %c0_158 = arith.constant 0 : index
    %125 = vector.load %arg4[%c0_155, %c2_156, %c3_157, %c0_158] : memref<1x7x7x2xf32, #tpu.memory_space<vmem>>, vector<1x1x1x2xf32>
    %126 = vector.shape_cast %125 : vector<1x1x1x2xf32> to vector<1x1x2xf32>
    %127 = vector.broadcast %126 : vector<1x1x2xf32> to vector<4x4x2xf32>
    %128 = arith.mulf %124, %127 : vector<4x4x2xf32>
    %129 = arith.addf %122, %128 : vector<4x4x2xf32>
    %c0_159 = arith.constant 0 : index
    %c0_160 = arith.constant 0 : index
    %c2_161 = arith.constant 2 : index
    %c4_162 = arith.constant 4 : index
    %c0_163 = arith.constant 0 : index
    %130 = vector.load %arg3[%c0_159, %c0_160, %c2_161, %c4_162, %c0_163] : memref<1x1x10x10x2xf32, #tpu.memory_space<vmem>>, vector<1x1x4x4x2xf32>
    %131 = vector.shape_cast %130 : vector<1x1x4x4x2xf32> to vector<4x4x2xf32>
    %c0_164 = arith.constant 0 : index
    %c2_165 = arith.constant 2 : index
    %c4_166 = arith.constant 4 : index
    %c0_167 = arith.constant 0 : index
    %132 = vector.load %arg4[%c0_164, %c2_165, %c4_166, %c0_167] : memref<1x7x7x2xf32, #tpu.memory_space<vmem>>, vector<1x1x1x2xf32>
    %133 = vector.shape_cast %132 : vector<1x1x1x2xf32> to vector<1x1x2xf32>
    %134 = vector.broadcast %133 : vector<1x1x2xf32> to vector<4x4x2xf32>
    %135 = arith.mulf %131, %134 : vector<4x4x2xf32>
    %136 = arith.addf %129, %135 : vector<4x4x2xf32>
    %c0_168 = arith.constant 0 : index
    %c0_169 = arith.constant 0 : index
    %c2_170 = arith.constant 2 : index
    %c5_171 = arith.constant 5 : index
    %c0_172 = arith.constant 0 : index
    %137 = vector.load %arg3[%c0_168, %c0_169, %c2_170, %c5_171, %c0_172] : memref<1x1x10x10x2xf32, #tpu.memory_space<vmem>>, vector<1x1x4x4x2xf32>
    %138 = vector.shape_cast %137 : vector<1x1x4x4x2xf32> to vector<4x4x2xf32>
    %c0_173 = arith.constant 0 : index
    %c2_174 = arith.constant 2 : index
    %c5_175 = arith.constant 5 : index
    %c0_176 = arith.constant 0 : index
    %139 = vector.load %arg4[%c0_173, %c2_174, %c5_175, %c0_176] : memref<1x7x7x2xf32, #tpu.memory_space<vmem>>, vector<1x1x1x2xf32>
    %140 = vector.shape_cast %139 : vector<1x1x1x2xf32> to vector<1x1x2xf32>
    %141 = vector.broadcast %140 : vector<1x1x2xf32> to vector<4x4x2xf32>
    %142 = arith.mulf %138, %141 : vector<4x4x2xf32>
    %143 = arith.addf %136, %142 : vector<4x4x2xf32>
    %c0_177 = arith.constant 0 : index
    %c0_178 = arith.constant 0 : index
    %c2_179 = arith.constant 2 : index
    %c6_180 = arith.constant 6 : index
    %c0_181 = arith.constant 0 : index
    %144 = vector.load %arg3[%c0_177, %c0_178, %c2_179, %c6_180, %c0_181] : memref<1x1x10x10x2xf32, #tpu.memory_space<vmem>>, vector<1x1x4x4x2xf32>
    %145 = vector.shape_cast %144 : vector<1x1x4x4x2xf32> to vector<4x4x2xf32>
    %c0_182 = arith.constant 0 : index
    %c2_183 = arith.constant 2 : index
    %c6_184 = arith.constant 6 : index
    %c0_185 = arith.constant 0 : index
    %146 = vector.load %arg4[%c0_182, %c2_183, %c6_184, %c0_185] : memref<1x7x7x2xf32, #tpu.memory_space<vmem>>, vector<1x1x1x2xf32>
    %147 = vector.shape_cast %146 : vector<1x1x1x2xf32> to vector<1x1x2xf32>
    %148 = vector.broadcast %147 : vector<1x1x2xf32> to vector<4x4x2xf32>
    %149 = arith.mulf %145, %148 : vector<4x4x2xf32>
    %150 = arith.addf %143, %149 : vector<4x4x2xf32>
    %c0_186 = arith.constant 0 : index
    %c0_187 = arith.constant 0 : index
    %c3_188 = arith.constant 3 : index
    %c0_189 = arith.constant 0 : index
    %c0_190 = arith.constant 0 : index
    %151 = vector.load %arg3[%c0_186, %c0_187, %c3_188, %c0_189, %c0_190] : memref<1x1x10x10x2xf32, #tpu.memory_space<vmem>>, vector<1x1x4x4x2xf32>
    %152 = vector.shape_cast %151 : vector<1x1x4x4x2xf32> to vector<4x4x2xf32>
    %c0_191 = arith.constant 0 : index
    %c3_192 = arith.constant 3 : index
    %c0_193 = arith.constant 0 : index
    %c0_194 = arith.constant 0 : index
    %153 = vector.load %arg4[%c0_191, %c3_192, %c0_193, %c0_194] : memref<1x7x7x2xf32, #tpu.memory_space<vmem>>, vector<1x1x1x2xf32>
    %154 = vector.shape_cast %153 : vector<1x1x1x2xf32> to vector<1x1x2xf32>
    %155 = vector.broadcast %154 : vector<1x1x2xf32> to vector<4x4x2xf32>
    %156 = arith.mulf %152, %155 : vector<4x4x2xf32>
    %157 = arith.addf %150, %156 : vector<4x4x2xf32>
    %c0_195 = arith.constant 0 : index
    %c0_196 = arith.constant 0 : index
    %c3_197 = arith.constant 3 : index
    %c1_198 = arith.constant 1 : index
    %c0_199 = arith.constant 0 : index
    %158 = vector.load %arg3[%c0_195, %c0_196, %c3_197, %c1_198, %c0_199] : memref<1x1x10x10x2xf32, #tpu.memory_space<vmem>>, vector<1x1x4x4x2xf32>
    %159 = vector.shape_cast %158 : vector<1x1x4x4x2xf32> to vector<4x4x2xf32>
    %c0_200 = arith.constant 0 : index
    %c3_201 = arith.constant 3 : index
    %c1_202 = arith.constant 1 : index
    %c0_203 = arith.constant 0 : index
    %160 = vector.load %arg4[%c0_200, %c3_201, %c1_202, %c0_203] : memref<1x7x7x2xf32, #tpu.memory_space<vmem>>, vector<1x1x1x2xf32>
    %161 = vector.shape_cast %160 : vector<1x1x1x2xf32> to vector<1x1x2xf32>
    %162 = vector.broadcast %161 : vector<1x1x2xf32> to vector<4x4x2xf32>
    %163 = arith.mulf %159, %162 : vector<4x4x2xf32>
    %164 = arith.addf %157, %163 : vector<4x4x2xf32>
    %c0_204 = arith.constant 0 : index
    %c0_205 = arith.constant 0 : index
    %c3_206 = arith.constant 3 : index
    %c2_207 = arith.constant 2 : index
    %c0_208 = arith.constant 0 : index
    %165 = vector.load %arg3[%c0_204, %c0_205, %c3_206, %c2_207, %c0_208] : memref<1x1x10x10x2xf32, #tpu.memory_space<vmem>>, vector<1x1x4x4x2xf32>
    %166 = vector.shape_cast %165 : vector<1x1x4x4x2xf32> to vector<4x4x2xf32>
    %c0_209 = arith.constant 0 : index
    %c3_210 = arith.constant 3 : index
    %c2_211 = arith.constant 2 : index
    %c0_212 = arith.constant 0 : index
    %167 = vector.load %arg4[%c0_209, %c3_210, %c2_211, %c0_212] : memref<1x7x7x2xf32, #tpu.memory_space<vmem>>, vector<1x1x1x2xf32>
    %168 = vector.shape_cast %167 : vector<1x1x1x2xf32> to vector<1x1x2xf32>
    %169 = vector.broadcast %168 : vector<1x1x2xf32> to vector<4x4x2xf32>
    %170 = arith.mulf %166, %169 : vector<4x4x2xf32>
    %171 = arith.addf %164, %170 : vector<4x4x2xf32>
    %c0_213 = arith.constant 0 : index
    %c0_214 = arith.constant 0 : index
    %c3_215 = arith.constant 3 : index
    %c3_216 = arith.constant 3 : index
    %c0_217 = arith.constant 0 : index
    %172 = vector.load %arg3[%c0_213, %c0_214, %c3_215, %c3_216, %c0_217] : memref<1x1x10x10x2xf32, #tpu.memory_space<vmem>>, vector<1x1x4x4x2xf32>
    %173 = vector.shape_cast %172 : vector<1x1x4x4x2xf32> to vector<4x4x2xf32>
    %c0_218 = arith.constant 0 : index
    %c3_219 = arith.constant 3 : index
    %c3_220 = arith.constant 3 : index
    %c0_221 = arith.constant 0 : index
    %174 = vector.load %arg4[%c0_218, %c3_219, %c3_220, %c0_221] : memref<1x7x7x2xf32, #tpu.memory_space<vmem>>, vector<1x1x1x2xf32>
    %175 = vector.shape_cast %174 : vector<1x1x1x2xf32> to vector<1x1x2xf32>
    %176 = vector.broadcast %175 : vector<1x1x2xf32> to vector<4x4x2xf32>
    %177 = arith.mulf %173, %176 : vector<4x4x2xf32>
    %178 = arith.addf %171, %177 : vector<4x4x2xf32>
    %c0_222 = arith.constant 0 : index
    %c0_223 = arith.constant 0 : index
    %c3_224 = arith.constant 3 : index
    %c4_225 = arith.constant 4 : index
    %c0_226 = arith.constant 0 : index
    %179 = vector.load %arg3[%c0_222, %c0_223, %c3_224, %c4_225, %c0_226] : memref<1x1x10x10x2xf32, #tpu.memory_space<vmem>>, vector<1x1x4x4x2xf32>
    %180 = vector.shape_cast %179 : vector<1x1x4x4x2xf32> to vector<4x4x2xf32>
    %c0_227 = arith.constant 0 : index
    %c3_228 = arith.constant 3 : index
    %c4_229 = arith.constant 4 : index
    %c0_230 = arith.constant 0 : index
    %181 = vector.load %arg4[%c0_227, %c3_228, %c4_229, %c0_230] : memref<1x7x7x2xf32, #tpu.memory_space<vmem>>, vector<1x1x1x2xf32>
    %182 = vector.shape_cast %181 : vector<1x1x1x2xf32> to vector<1x1x2xf32>
    %183 = vector.broadcast %182 : vector<1x1x2xf32> to vector<4x4x2xf32>
    %184 = arith.mulf %180, %183 : vector<4x4x2xf32>
    %185 = arith.addf %178, %184 : vector<4x4x2xf32>
    %c0_231 = arith.constant 0 : index
    %c0_232 = arith.constant 0 : index
    %c3_233 = arith.constant 3 : index
    %c5_234 = arith.constant 5 : index
    %c0_235 = arith.constant 0 : index
    %186 = vector.load %arg3[%c0_231, %c0_232, %c3_233, %c5_234, %c0_235] : memref<1x1x10x10x2xf32, #tpu.memory_space<vmem>>, vector<1x1x4x4x2xf32>
    %187 = vector.shape_cast %186 : vector<1x1x4x4x2xf32> to vector<4x4x2xf32>
    %c0_236 = arith.constant 0 : index
    %c3_237 = arith.constant 3 : index
    %c5_238 = arith.constant 5 : index
    %c0_239 = arith.constant 0 : index
    %188 = vector.load %arg4[%c0_236, %c3_237, %c5_238, %c0_239] : memref<1x7x7x2xf32, #tpu.memory_space<vmem>>, vector<1x1x1x2xf32>
    %189 = vector.shape_cast %188 : vector<1x1x1x2xf32> to vector<1x1x2xf32>
    %190 = vector.broadcast %189 : vector<1x1x2xf32> to vector<4x4x2xf32>
    %191 = arith.mulf %187, %190 : vector<4x4x2xf32>
    %192 = arith.addf %185, %191 : vector<4x4x2xf32>
    %c0_240 = arith.constant 0 : index
    %c0_241 = arith.constant 0 : index
    %c3_242 = arith.constant 3 : index
    %c6_243 = arith.constant 6 : index
    %c0_244 = arith.constant 0 : index
    %193 = vector.load %arg3[%c0_240, %c0_241, %c3_242, %c6_243, %c0_244] : memref<1x1x10x10x2xf32, #tpu.memory_space<vmem>>, vector<1x1x4x4x2xf32>
    %194 = vector.shape_cast %193 : vector<1x1x4x4x2xf32> to vector<4x4x2xf32>
    %c0_245 = arith.constant 0 : index
    %c3_246 = arith.constant 3 : index
    %c6_247 = arith.constant 6 : index
    %c0_248 = arith.constant 0 : index
    %195 = vector.load %arg4[%c0_245, %c3_246, %c6_247, %c0_248] : memref<1x7x7x2xf32, #tpu.memory_space<vmem>>, vector<1x1x1x2xf32>
    %196 = vector.shape_cast %195 : vector<1x1x1x2xf32> to vector<1x1x2xf32>
    %197 = vector.broadcast %196 : vector<1x1x2xf32> to vector<4x4x2xf32>
    %198 = arith.mulf %194, %197 : vector<4x4x2xf32>
    %199 = arith.addf %192, %198 : vector<4x4x2xf32>
    %c0_249 = arith.constant 0 : index
    %c0_250 = arith.constant 0 : index
    %c4_251 = arith.constant 4 : index
    %c0_252 = arith.constant 0 : index
    %c0_253 = arith.constant 0 : index
    %200 = vector.load %arg3[%c0_249, %c0_250, %c4_251, %c0_252, %c0_253] : memref<1x1x10x10x2xf32, #tpu.memory_space<vmem>>, vector<1x1x4x4x2xf32>
    %201 = vector.shape_cast %200 : vector<1x1x4x4x2xf32> to vector<4x4x2xf32>
    %c0_254 = arith.constant 0 : index
    %c4_255 = arith.constant 4 : index
    %c0_256 = arith.constant 0 : index
    %c0_257 = arith.constant 0 : index
    %202 = vector.load %arg4[%c0_254, %c4_255, %c0_256, %c0_257] : memref<1x7x7x2xf32, #tpu.memory_space<vmem>>, vector<1x1x1x2xf32>
    %203 = vector.shape_cast %202 : vector<1x1x1x2xf32> to vector<1x1x2xf32>
    %204 = vector.broadcast %203 : vector<1x1x2xf32> to vector<4x4x2xf32>
    %205 = arith.mulf %201, %204 : vector<4x4x2xf32>
    %206 = arith.addf %199, %205 : vector<4x4x2xf32>
    %c0_258 = arith.constant 0 : index
    %c0_259 = arith.constant 0 : index
    %c4_260 = arith.constant 4 : index
    %c1_261 = arith.constant 1 : index
    %c0_262 = arith.constant 0 : index
    %207 = vector.load %arg3[%c0_258, %c0_259, %c4_260, %c1_261, %c0_262] : memref<1x1x10x10x2xf32, #tpu.memory_space<vmem>>, vector<1x1x4x4x2xf32>
    %208 = vector.shape_cast %207 : vector<1x1x4x4x2xf32> to vector<4x4x2xf32>
    %c0_263 = arith.constant 0 : index
    %c4_264 = arith.constant 4 : index
    %c1_265 = arith.constant 1 : index
    %c0_266 = arith.constant 0 : index
    %209 = vector.load %arg4[%c0_263, %c4_264, %c1_265, %c0_266] : memref<1x7x7x2xf32, #tpu.memory_space<vmem>>, vector<1x1x1x2xf32>
    %210 = vector.shape_cast %209 : vector<1x1x1x2xf32> to vector<1x1x2xf32>
    %211 = vector.broadcast %210 : vector<1x1x2xf32> to vector<4x4x2xf32>
    %212 = arith.mulf %208, %211 : vector<4x4x2xf32>
    %213 = arith.addf %206, %212 : vector<4x4x2xf32>
    %c0_267 = arith.constant 0 : index
    %c0_268 = arith.constant 0 : index
    %c4_269 = arith.constant 4 : index
    %c2_270 = arith.constant 2 : index
    %c0_271 = arith.constant 0 : index
    %214 = vector.load %arg3[%c0_267, %c0_268, %c4_269, %c2_270, %c0_271] : memref<1x1x10x10x2xf32, #tpu.memory_space<vmem>>, vector<1x1x4x4x2xf32>
    %215 = vector.shape_cast %214 : vector<1x1x4x4x2xf32> to vector<4x4x2xf32>
    %c0_272 = arith.constant 0 : index
    %c4_273 = arith.constant 4 : index
    %c2_274 = arith.constant 2 : index
    %c0_275 = arith.constant 0 : index
    %216 = vector.load %arg4[%c0_272, %c4_273, %c2_274, %c0_275] : memref<1x7x7x2xf32, #tpu.memory_space<vmem>>, vector<1x1x1x2xf32>
    %217 = vector.shape_cast %216 : vector<1x1x1x2xf32> to vector<1x1x2xf32>
    %218 = vector.broadcast %217 : vector<1x1x2xf32> to vector<4x4x2xf32>
    %219 = arith.mulf %215, %218 : vector<4x4x2xf32>
    %220 = arith.addf %213, %219 : vector<4x4x2xf32>
    %c0_276 = arith.constant 0 : index
    %c0_277 = arith.constant 0 : index
    %c4_278 = arith.constant 4 : index
    %c3_279 = arith.constant 3 : index
    %c0_280 = arith.constant 0 : index
    %221 = vector.load %arg3[%c0_276, %c0_277, %c4_278, %c3_279, %c0_280] : memref<1x1x10x10x2xf32, #tpu.memory_space<vmem>>, vector<1x1x4x4x2xf32>
    %222 = vector.shape_cast %221 : vector<1x1x4x4x2xf32> to vector<4x4x2xf32>
    %c0_281 = arith.constant 0 : index
    %c4_282 = arith.constant 4 : index
    %c3_283 = arith.constant 3 : index
    %c0_284 = arith.constant 0 : index
    %223 = vector.load %arg4[%c0_281, %c4_282, %c3_283, %c0_284] : memref<1x7x7x2xf32, #tpu.memory_space<vmem>>, vector<1x1x1x2xf32>
    %224 = vector.shape_cast %223 : vector<1x1x1x2xf32> to vector<1x1x2xf32>
    %225 = vector.broadcast %224 : vector<1x1x2xf32> to vector<4x4x2xf32>
    %226 = arith.mulf %222, %225 : vector<4x4x2xf32>
    %227 = arith.addf %220, %226 : vector<4x4x2xf32>
    %c0_285 = arith.constant 0 : index
    %c0_286 = arith.constant 0 : index
    %c4_287 = arith.constant 4 : index
    %c4_288 = arith.constant 4 : index
    %c0_289 = arith.constant 0 : index
    %228 = vector.load %arg3[%c0_285, %c0_286, %c4_287, %c4_288, %c0_289] : memref<1x1x10x10x2xf32, #tpu.memory_space<vmem>>, vector<1x1x4x4x2xf32>
    %229 = vector.shape_cast %228 : vector<1x1x4x4x2xf32> to vector<4x4x2xf32>
    %c0_290 = arith.constant 0 : index
    %c4_291 = arith.constant 4 : index
    %c4_292 = arith.constant 4 : index
    %c0_293 = arith.constant 0 : index
    %230 = vector.load %arg4[%c0_290, %c4_291, %c4_292, %c0_293] : memref<1x7x7x2xf32, #tpu.memory_space<vmem>>, vector<1x1x1x2xf32>
    %231 = vector.shape_cast %230 : vector<1x1x1x2xf32> to vector<1x1x2xf32>
    %232 = vector.broadcast %231 : vector<1x1x2xf32> to vector<4x4x2xf32>
    %233 = arith.mulf %229, %232 : vector<4x4x2xf32>
    %234 = arith.addf %227, %233 : vector<4x4x2xf32>
    %c0_294 = arith.constant 0 : index
    %c0_295 = arith.constant 0 : index
    %c4_296 = arith.constant 4 : index
    %c5_297 = arith.constant 5 : index
    %c0_298 = arith.constant 0 : index
    %235 = vector.load %arg3[%c0_294, %c0_295, %c4_296, %c5_297, %c0_298] : memref<1x1x10x10x2xf32, #tpu.memory_space<vmem>>, vector<1x1x4x4x2xf32>
    %236 = vector.shape_cast %235 : vector<1x1x4x4x2xf32> to vector<4x4x2xf32>
    %c0_299 = arith.constant 0 : index
    %c4_300 = arith.constant 4 : index
    %c5_301 = arith.constant 5 : index
    %c0_302 = arith.constant 0 : index
    %237 = vector.load %arg4[%c0_299, %c4_300, %c5_301, %c0_302] : memref<1x7x7x2xf32, #tpu.memory_space<vmem>>, vector<1x1x1x2xf32>
    %238 = vector.shape_cast %237 : vector<1x1x1x2xf32> to vector<1x1x2xf32>
    %239 = vector.broadcast %238 : vector<1x1x2xf32> to vector<4x4x2xf32>
    %240 = arith.mulf %236, %239 : vector<4x4x2xf32>
    %241 = arith.addf %234, %240 : vector<4x4x2xf32>
    %c0_303 = arith.constant 0 : index
    %c0_304 = arith.constant 0 : index
    %c4_305 = arith.constant 4 : index
    %c6_306 = arith.constant 6 : index
    %c0_307 = arith.constant 0 : index
    %242 = vector.load %arg3[%c0_303, %c0_304, %c4_305, %c6_306, %c0_307] : memref<1x1x10x10x2xf32, #tpu.memory_space<vmem>>, vector<1x1x4x4x2xf32>
    %243 = vector.shape_cast %242 : vector<1x1x4x4x2xf32> to vector<4x4x2xf32>
    %c0_308 = arith.constant 0 : index
    %c4_309 = arith.constant 4 : index
    %c6_310 = arith.constant 6 : index
    %c0_311 = arith.constant 0 : index
    %244 = vector.load %arg4[%c0_308, %c4_309, %c6_310, %c0_311] : memref<1x7x7x2xf32, #tpu.memory_space<vmem>>, vector<1x1x1x2xf32>
    %245 = vector.shape_cast %244 : vector<1x1x1x2xf32> to vector<1x1x2xf32>
    %246 = vector.broadcast %245 : vector<1x1x2xf32> to vector<4x4x2xf32>
    %247 = arith.mulf %243, %246 : vector<4x4x2xf32>
    %248 = arith.addf %241, %247 : vector<4x4x2xf32>
    %c0_312 = arith.constant 0 : index
    %c0_313 = arith.constant 0 : index
    %c5_314 = arith.constant 5 : index
    %c0_315 = arith.constant 0 : index
    %c0_316 = arith.constant 0 : index
    %249 = vector.load %arg3[%c0_312, %c0_313, %c5_314, %c0_315, %c0_316] : memref<1x1x10x10x2xf32, #tpu.memory_space<vmem>>, vector<1x1x4x4x2xf32>
    %250 = vector.shape_cast %249 : vector<1x1x4x4x2xf32> to vector<4x4x2xf32>
    %c0_317 = arith.constant 0 : index
    %c5_318 = arith.constant 5 : index
    %c0_319 = arith.constant 0 : index
    %c0_320 = arith.constant 0 : index
    %251 = vector.load %arg4[%c0_317, %c5_318, %c0_319, %c0_320] : memref<1x7x7x2xf32, #tpu.memory_space<vmem>>, vector<1x1x1x2xf32>
    %252 = vector.shape_cast %251 : vector<1x1x1x2xf32> to vector<1x1x2xf32>
    %253 = vector.broadcast %252 : vector<1x1x2xf32> to vector<4x4x2xf32>
    %254 = arith.mulf %250, %253 : vector<4x4x2xf32>
    %255 = arith.addf %248, %254 : vector<4x4x2xf32>
    %c0_321 = arith.constant 0 : index
    %c0_322 = arith.constant 0 : index
    %c5_323 = arith.constant 5 : index
    %c1_324 = arith.constant 1 : index
    %c0_325 = arith.constant 0 : index
    %256 = vector.load %arg3[%c0_321, %c0_322, %c5_323, %c1_324, %c0_325] : memref<1x1x10x10x2xf32, #tpu.memory_space<vmem>>, vector<1x1x4x4x2xf32>
    %257 = vector.shape_cast %256 : vector<1x1x4x4x2xf32> to vector<4x4x2xf32>
    %c0_326 = arith.constant 0 : index
    %c5_327 = arith.constant 5 : index
    %c1_328 = arith.constant 1 : index
    %c0_329 = arith.constant 0 : index
    %258 = vector.load %arg4[%c0_326, %c5_327, %c1_328, %c0_329] : memref<1x7x7x2xf32, #tpu.memory_space<vmem>>, vector<1x1x1x2xf32>
    %259 = vector.shape_cast %258 : vector<1x1x1x2xf32> to vector<1x1x2xf32>
    %260 = vector.broadcast %259 : vector<1x1x2xf32> to vector<4x4x2xf32>
    %261 = arith.mulf %257, %260 : vector<4x4x2xf32>
    %262 = arith.addf %255, %261 : vector<4x4x2xf32>
    %c0_330 = arith.constant 0 : index
    %c0_331 = arith.constant 0 : index
    %c5_332 = arith.constant 5 : index
    %c2_333 = arith.constant 2 : index
    %c0_334 = arith.constant 0 : index
    %263 = vector.load %arg3[%c0_330, %c0_331, %c5_332, %c2_333, %c0_334] : memref<1x1x10x10x2xf32, #tpu.memory_space<vmem>>, vector<1x1x4x4x2xf32>
    %264 = vector.shape_cast %263 : vector<1x1x4x4x2xf32> to vector<4x4x2xf32>
    %c0_335 = arith.constant 0 : index
    %c5_336 = arith.constant 5 : index
    %c2_337 = arith.constant 2 : index
    %c0_338 = arith.constant 0 : index
    %265 = vector.load %arg4[%c0_335, %c5_336, %c2_337, %c0_338] : memref<1x7x7x2xf32, #tpu.memory_space<vmem>>, vector<1x1x1x2xf32>
    %266 = vector.shape_cast %265 : vector<1x1x1x2xf32> to vector<1x1x2xf32>
    %267 = vector.broadcast %266 : vector<1x1x2xf32> to vector<4x4x2xf32>
    %268 = arith.mulf %264, %267 : vector<4x4x2xf32>
    %269 = arith.addf %262, %268 : vector<4x4x2xf32>
    %c0_339 = arith.constant 0 : index
    %c0_340 = arith.constant 0 : index
    %c5_341 = arith.constant 5 : index
    %c3_342 = arith.constant 3 : index
    %c0_343 = arith.constant 0 : index
    %270 = vector.load %arg3[%c0_339, %c0_340, %c5_341, %c3_342, %c0_343] : memref<1x1x10x10x2xf32, #tpu.memory_space<vmem>>, vector<1x1x4x4x2xf32>
    %271 = vector.shape_cast %270 : vector<1x1x4x4x2xf32> to vector<4x4x2xf32>
    %c0_344 = arith.constant 0 : index
    %c5_345 = arith.constant 5 : index
    %c3_346 = arith.constant 3 : index
    %c0_347 = arith.constant 0 : index
    %272 = vector.load %arg4[%c0_344, %c5_345, %c3_346, %c0_347] : memref<1x7x7x2xf32, #tpu.memory_space<vmem>>, vector<1x1x1x2xf32>
    %273 = vector.shape_cast %272 : vector<1x1x1x2xf32> to vector<1x1x2xf32>
    %274 = vector.broadcast %273 : vector<1x1x2xf32> to vector<4x4x2xf32>
    %275 = arith.mulf %271, %274 : vector<4x4x2xf32>
    %276 = arith.addf %269, %275 : vector<4x4x2xf32>
    %c0_348 = arith.constant 0 : index
    %c0_349 = arith.constant 0 : index
    %c5_350 = arith.constant 5 : index
    %c4_351 = arith.constant 4 : index
    %c0_352 = arith.constant 0 : index
    %277 = vector.load %arg3[%c0_348, %c0_349, %c5_350, %c4_351, %c0_352] : memref<1x1x10x10x2xf32, #tpu.memory_space<vmem>>, vector<1x1x4x4x2xf32>
    %278 = vector.shape_cast %277 : vector<1x1x4x4x2xf32> to vector<4x4x2xf32>
    %c0_353 = arith.constant 0 : index
    %c5_354 = arith.constant 5 : index
    %c4_355 = arith.constant 4 : index
    %c0_356 = arith.constant 0 : index
    %279 = vector.load %arg4[%c0_353, %c5_354, %c4_355, %c0_356] : memref<1x7x7x2xf32, #tpu.memory_space<vmem>>, vector<1x1x1x2xf32>
    %280 = vector.shape_cast %279 : vector<1x1x1x2xf32> to vector<1x1x2xf32>
    %281 = vector.broadcast %280 : vector<1x1x2xf32> to vector<4x4x2xf32>
    %282 = arith.mulf %278, %281 : vector<4x4x2xf32>
    %283 = arith.addf %276, %282 : vector<4x4x2xf32>
    %c0_357 = arith.constant 0 : index
    %c0_358 = arith.constant 0 : index
    %c5_359 = arith.constant 5 : index
    %c5_360 = arith.constant 5 : index
    %c0_361 = arith.constant 0 : index
    %284 = vector.load %arg3[%c0_357, %c0_358, %c5_359, %c5_360, %c0_361] : memref<1x1x10x10x2xf32, #tpu.memory_space<vmem>>, vector<1x1x4x4x2xf32>
    %285 = vector.shape_cast %284 : vector<1x1x4x4x2xf32> to vector<4x4x2xf32>
    %c0_362 = arith.constant 0 : index
    %c5_363 = arith.constant 5 : index
    %c5_364 = arith.constant 5 : index
    %c0_365 = arith.constant 0 : index
    %286 = vector.load %arg4[%c0_362, %c5_363, %c5_364, %c0_365] : memref<1x7x7x2xf32, #tpu.memory_space<vmem>>, vector<1x1x1x2xf32>
    %287 = vector.shape_cast %286 : vector<1x1x1x2xf32> to vector<1x1x2xf32>
    %288 = vector.broadcast %287 : vector<1x1x2xf32> to vector<4x4x2xf32>
    %289 = arith.mulf %285, %288 : vector<4x4x2xf32>
    %290 = arith.addf %283, %289 : vector<4x4x2xf32>
    %c0_366 = arith.constant 0 : index
    %c0_367 = arith.constant 0 : index
    %c5_368 = arith.constant 5 : index
    %c6_369 = arith.constant 6 : index
    %c0_370 = arith.constant 0 : index
    %291 = vector.load %arg3[%c0_366, %c0_367, %c5_368, %c6_369, %c0_370] : memref<1x1x10x10x2xf32, #tpu.memory_space<vmem>>, vector<1x1x4x4x2xf32>
    %292 = vector.shape_cast %291 : vector<1x1x4x4x2xf32> to vector<4x4x2xf32>
    %c0_371 = arith.constant 0 : index
    %c5_372 = arith.constant 5 : index
    %c6_373 = arith.constant 6 : index
    %c0_374 = arith.constant 0 : index
    %293 = vector.load %arg4[%c0_371, %c5_372, %c6_373, %c0_374] : memref<1x7x7x2xf32, #tpu.memory_space<vmem>>, vector<1x1x1x2xf32>
    %294 = vector.shape_cast %293 : vector<1x1x1x2xf32> to vector<1x1x2xf32>
    %295 = vector.broadcast %294 : vector<1x1x2xf32> to vector<4x4x2xf32>
    %296 = arith.mulf %292, %295 : vector<4x4x2xf32>
    %297 = arith.addf %290, %296 : vector<4x4x2xf32>
    %c0_375 = arith.constant 0 : index
    %c0_376 = arith.constant 0 : index
    %c6_377 = arith.constant 6 : index
    %c0_378 = arith.constant 0 : index
    %c0_379 = arith.constant 0 : index
    %298 = vector.load %arg3[%c0_375, %c0_376, %c6_377, %c0_378, %c0_379] : memref<1x1x10x10x2xf32, #tpu.memory_space<vmem>>, vector<1x1x4x4x2xf32>
    %299 = vector.shape_cast %298 : vector<1x1x4x4x2xf32> to vector<4x4x2xf32>
    %c0_380 = arith.constant 0 : index
    %c6_381 = arith.constant 6 : index
    %c0_382 = arith.constant 0 : index
    %c0_383 = arith.constant 0 : index
    %300 = vector.load %arg4[%c0_380, %c6_381, %c0_382, %c0_383] : memref<1x7x7x2xf32, #tpu.memory_space<vmem>>, vector<1x1x1x2xf32>
    %301 = vector.shape_cast %300 : vector<1x1x1x2xf32> to vector<1x1x2xf32>
    %302 = vector.broadcast %301 : vector<1x1x2xf32> to vector<4x4x2xf32>
    %303 = arith.mulf %299, %302 : vector<4x4x2xf32>
    %304 = arith.addf %297, %303 : vector<4x4x2xf32>
    %c0_384 = arith.constant 0 : index
    %c0_385 = arith.constant 0 : index
    %c6_386 = arith.constant 6 : index
    %c1_387 = arith.constant 1 : index
    %c0_388 = arith.constant 0 : index
    %305 = vector.load %arg3[%c0_384, %c0_385, %c6_386, %c1_387, %c0_388] : memref<1x1x10x10x2xf32, #tpu.memory_space<vmem>>, vector<1x1x4x4x2xf32>
    %306 = vector.shape_cast %305 : vector<1x1x4x4x2xf32> to vector<4x4x2xf32>
    %c0_389 = arith.constant 0 : index
    %c6_390 = arith.constant 6 : index
    %c1_391 = arith.constant 1 : index
    %c0_392 = arith.constant 0 : index
    %307 = vector.load %arg4[%c0_389, %c6_390, %c1_391, %c0_392] : memref<1x7x7x2xf32, #tpu.memory_space<vmem>>, vector<1x1x1x2xf32>
    %308 = vector.shape_cast %307 : vector<1x1x1x2xf32> to vector<1x1x2xf32>
    %309 = vector.broadcast %308 : vector<1x1x2xf32> to vector<4x4x2xf32>
    %310 = arith.mulf %306, %309 : vector<4x4x2xf32>
    %311 = arith.addf %304, %310 : vector<4x4x2xf32>
    %c0_393 = arith.constant 0 : index
    %c0_394 = arith.constant 0 : index
    %c6_395 = arith.constant 6 : index
    %c2_396 = arith.constant 2 : index
    %c0_397 = arith.constant 0 : index
    %312 = vector.load %arg3[%c0_393, %c0_394, %c6_395, %c2_396, %c0_397] : memref<1x1x10x10x2xf32, #tpu.memory_space<vmem>>, vector<1x1x4x4x2xf32>
    %313 = vector.shape_cast %312 : vector<1x1x4x4x2xf32> to vector<4x4x2xf32>
    %c0_398 = arith.constant 0 : index
    %c6_399 = arith.constant 6 : index
    %c2_400 = arith.constant 2 : index
    %c0_401 = arith.constant 0 : index
    %314 = vector.load %arg4[%c0_398, %c6_399, %c2_400, %c0_401] : memref<1x7x7x2xf32, #tpu.memory_space<vmem>>, vector<1x1x1x2xf32>
    %315 = vector.shape_cast %314 : vector<1x1x1x2xf32> to vector<1x1x2xf32>
    %316 = vector.broadcast %315 : vector<1x1x2xf32> to vector<4x4x2xf32>
    %317 = arith.mulf %313, %316 : vector<4x4x2xf32>
    %318 = arith.addf %311, %317 : vector<4x4x2xf32>
    %c0_402 = arith.constant 0 : index
    %c0_403 = arith.constant 0 : index
    %c6_404 = arith.constant 6 : index
    %c3_405 = arith.constant 3 : index
    %c0_406 = arith.constant 0 : index
    %319 = vector.load %arg3[%c0_402, %c0_403, %c6_404, %c3_405, %c0_406] : memref<1x1x10x10x2xf32, #tpu.memory_space<vmem>>, vector<1x1x4x4x2xf32>
    %320 = vector.shape_cast %319 : vector<1x1x4x4x2xf32> to vector<4x4x2xf32>
    %c0_407 = arith.constant 0 : index
    %c6_408 = arith.constant 6 : index
    %c3_409 = arith.constant 3 : index
    %c0_410 = arith.constant 0 : index
    %321 = vector.load %arg4[%c0_407, %c6_408, %c3_409, %c0_410] : memref<1x7x7x2xf32, #tpu.memory_space<vmem>>, vector<1x1x1x2xf32>
    %322 = vector.shape_cast %321 : vector<1x1x1x2xf32> to vector<1x1x2xf32>
    %323 = vector.broadcast %322 : vector<1x1x2xf32> to vector<4x4x2xf32>
    %324 = arith.mulf %320, %323 : vector<4x4x2xf32>
    %325 = arith.addf %318, %324 : vector<4x4x2xf32>
    %c0_411 = arith.constant 0 : index
    %c0_412 = arith.constant 0 : index
    %c6_413 = arith.constant 6 : index
    %c4_414 = arith.constant 4 : index
    %c0_415 = arith.constant 0 : index
    %326 = vector.load %arg3[%c0_411, %c0_412, %c6_413, %c4_414, %c0_415] : memref<1x1x10x10x2xf32, #tpu.memory_space<vmem>>, vector<1x1x4x4x2xf32>
    %327 = vector.shape_cast %326 : vector<1x1x4x4x2xf32> to vector<4x4x2xf32>
    %c0_416 = arith.constant 0 : index
    %c6_417 = arith.constant 6 : index
    %c4_418 = arith.constant 4 : index
    %c0_419 = arith.constant 0 : index
    %328 = vector.load %arg4[%c0_416, %c6_417, %c4_418, %c0_419] : memref<1x7x7x2xf32, #tpu.memory_space<vmem>>, vector<1x1x1x2xf32>
    %329 = vector.shape_cast %328 : vector<1x1x1x2xf32> to vector<1x1x2xf32>
    %330 = vector.broadcast %329 : vector<1x1x2xf32> to vector<4x4x2xf32>
    %331 = arith.mulf %327, %330 : vector<4x4x2xf32>
    %332 = arith.addf %325, %331 : vector<4x4x2xf32>
    %c0_420 = arith.constant 0 : index
    %c0_421 = arith.constant 0 : index
    %c6_422 = arith.constant 6 : index
    %c5_423 = arith.constant 5 : index
    %c0_424 = arith.constant 0 : index
    %333 = vector.load %arg3[%c0_420, %c0_421, %c6_422, %c5_423, %c0_424] : memref<1x1x10x10x2xf32, #tpu.memory_space<vmem>>, vector<1x1x4x4x2xf32>
    %334 = vector.shape_cast %333 : vector<1x1x4x4x2xf32> to vector<4x4x2xf32>
    %c0_425 = arith.constant 0 : index
    %c6_426 = arith.constant 6 : index
    %c5_427 = arith.constant 5 : index
    %c0_428 = arith.constant 0 : index
    %335 = vector.load %arg4[%c0_425, %c6_426, %c5_427, %c0_428] : memref<1x7x7x2xf32, #tpu.memory_space<vmem>>, vector<1x1x1x2xf32>
    %336 = vector.shape_cast %335 : vector<1x1x1x2xf32> to vector<1x1x2xf32>
    %337 = vector.broadcast %336 : vector<1x1x2xf32> to vector<4x4x2xf32>
    %338 = arith.mulf %334, %337 : vector<4x4x2xf32>
    %339 = arith.addf %332, %338 : vector<4x4x2xf32>
    %c0_429 = arith.constant 0 : index
    %c0_430 = arith.constant 0 : index
    %c6_431 = arith.constant 6 : index
    %c6_432 = arith.constant 6 : index
    %c0_433 = arith.constant 0 : index
    %340 = vector.load %arg3[%c0_429, %c0_430, %c6_431, %c6_432, %c0_433] : memref<1x1x10x10x2xf32, #tpu.memory_space<vmem>>, vector<1x1x4x4x2xf32>
    %341 = vector.shape_cast %340 : vector<1x1x4x4x2xf32> to vector<4x4x2xf32>
    %c0_434 = arith.constant 0 : index
    %c6_435 = arith.constant 6 : index
    %c6_436 = arith.constant 6 : index
    %c0_437 = arith.constant 0 : index
    %342 = vector.load %arg4[%c0_434, %c6_435, %c6_436, %c0_437] : memref<1x7x7x2xf32, #tpu.memory_space<vmem>>, vector<1x1x1x2xf32>
    %343 = vector.shape_cast %342 : vector<1x1x1x2xf32> to vector<1x1x2xf32>
    %344 = vector.broadcast %343 : vector<1x1x2xf32> to vector<4x4x2xf32>
    %345 = arith.mulf %341, %344 : vector<4x4x2xf32>
    %346 = arith.addf %339, %345 : vector<4x4x2xf32>
    %c0_438 = arith.constant 0 : index
    %c0_439 = arith.constant 0 : index
    %c0_440 = arith.constant 0 : index
    %347 = vector.load %arg10[%c0_438, %c0_439, %c0_440] : memref<4x4x2xf32, #tpu.memory_space<vmem>>, vector<4x4x2xf32>
    tpu.vector_store %arg10[%c0_438, %c0_439, %c0_440], %346 {strides = array<i32>} : memref<4x4x2xf32, #tpu.memory_space<vmem>>, vector<4x4x2xf32>,
    %c6_i32 = arith.constant 6 : i32
    %348 = arith.cmpi eq, %arg2, %c6_i32 : i32
    %349 = arith.extui %348 : i1 to i32
    %c0_i32_441 = arith.constant 0 : i32
    %350 = arith.cmpi ne, %349, %c0_i32_441 : i32
    scf.if %350 {
      %c0_442 = arith.constant 0 : index
      %c0_443 = arith.constant 0 : index
      %c0_444 = arith.constant 0 : index
      %351 = vector.load %arg10[%c0_442, %c0_443, %c0_444] : memref<4x4x2xf32, #tpu.memory_space<vmem>>, vector<4x4x2xf32>
      %cst = arith.constant dense<0.000000e+00> : vector<4x4xf32>
      %352 = vector.multi_reduction <add>, %351, %cst [2] : vector<4x4x2xf32> to vector<4x4xf32>
      %353 = vector.shape_cast %352 : vector<4x4xf32> to vector<4x4x1xf32>
      %c0_445 = arith.constant 0 : index
      %c0_446 = arith.constant 0 : index
      %354 = vector.load %arg5[%c0_445, %c0_446] : memref<1x1xf32, #tpu.memory_space<vmem>>, vector<1x1xf32>
      %355 = vector.shape_cast %354 : vector<1x1xf32> to vector<1x1x1xf32>
      %356 = vector.broadcast %355 : vector<1x1x1xf32> to vector<4x4x1xf32>
      %357 = arith.addf %353, %356 : vector<4x4x1xf32>
      %358 = arith.negf %357 : vector<4x4x1xf32>
      %359 = math.exp %358 : vector<4x4x1xf32>
      %cst_447 = arith.constant 1.000000e+00 : f32
      %360 = vector.broadcast %cst_447 : f32 to vector<4x4x1xf32>
      %361 = arith.addf %360, %359 : vector<4x4x1xf32>
      %362 = arith.divf %360, %361 : vector<4x4x1xf32>
      %c0_448 = arith.constant 0 : index
      %c0_449 = arith.constant 0 : index
      %c0_450 = arith.constant 0 : index
      %c0_451 = arith.constant 0 : index
      %c0_452 = arith.constant 0 : index
      %363 = vector.load %arg6[%c0_448, %c0_449, %c0_450, %c0_451, %c0_452] : memref<1x1x4x4x16xf32, #tpu.memory_space<vmem>>, vector<1x1x4x4x16xf32>
      %364 = vector.shape_cast %363 : vector<1x1x4x4x16xf32> to vector<4x4x16xf32>
      %c0_453 = arith.constant 0 : index
      %c0_454 = arith.constant 0 : index
      %c0_455 = arith.constant 0 : index
      %365 = vector.load %arg7[%c0_453, %c0_454, %c0_455] : memref<1x1x16xf32, #tpu.memory_space<vmem>>, vector<1x1x16xf32>
      %366 = vector.broadcast %365 : vector<1x1x16xf32> to vector<4x4x16xf32>
      %367 = arith.mulf %364, %366 : vector<4x4x16xf32>
      %368 = vector.broadcast %362 : vector<4x4x1xf32> to vector<4x4x16xf32>
      %369 = arith.mulf %367, %368 : vector<4x4x16xf32>
      %c0_456 = arith.constant 0 : index
      %c0_457 = arith.constant 0 : index
      %c0_458 = arith.constant 0 : index
      %c0_459 = arith.constant 0 : index
      %c0_460 = arith.constant 0 : index
      %370 = vector.load %arg8[%c0_456, %c0_457, %c0_458, %c0_459, %c0_460] : memref<1x1x4x4x16xf32, #tpu.memory_space<vmem>>, vector<1x1x4x4x16xf32>
      %371 = vector.shape_cast %370 : vector<1x1x4x4x16xf32> to vector<4x4x16xf32>
      %372 = arith.addf %369, %371 : vector<4x4x16xf32>
      %c0_461 = arith.constant 0 : index
      %c0_462 = arith.constant 0 : index
      %c0_463 = arith.constant 0 : index
      %c0_464 = arith.constant 0 : index
      %c0_465 = arith.constant 0 : index
      %373 = vector.load %arg9[%c0_461, %c0_462, %c0_463, %c0_464, %c0_465] : memref<1x1x4x4x16xf32, #tpu.memory_space<vmem>>, vector<1x1x4x4x16xf32>
      %374 = vector.shape_cast %373 : vector<1x1x4x4x16xf32> to vector<4x4x16xf32>
      %375 = vector.shape_cast %372 : vector<4x4x16xf32> to vector<1x1x4x4x16xf32>
      tpu.vector_store %arg9[%c0_461, %c0_462, %c0_463, %c0_464, %c0_465], %375 {strides = array<i32>} : memref<1x1x4x4x16xf32, #tpu.memory_space<vmem>>, vector<1x1x4x4x16xf32>,
    } else {
    }
    return
  }
  func.func @transform_0(%arg0: i32, %arg1: i32, %arg2: i32) -> (i32, i32, i32, i32, i32) {
    %0 = arith.addi %arg1, %arg2 : i32
    %c0_i32 = arith.constant 0 : i32
    %c0_i32_0 = arith.constant 0 : i32
    %c0_i32_1 = arith.constant 0 : i32
    %c0_i32_2 = arith.constant 0 : i32
    return %arg0, %0, %c0_i32, %c0_i32_0, %c0_i32_1 : i32, i32, i32, i32, i32
  }
  func.func @transform_1(%arg0: i32, %arg1: i32, %arg2: i32) -> (i32, i32, i32, i32) {
    %c0_i32 = arith.constant 0 : i32
    %c0_i32_0 = arith.constant 0 : i32
    %c0_i32_1 = arith.constant 0 : i32
    %c0_i32_2 = arith.constant 0 : i32
    return %arg2, %c0_i32, %c0_i32_0, %c0_i32_1 : i32, i32, i32, i32
  }
  func.func @transform_2(%arg0: i32, %arg1: i32, %arg2: i32) -> (i32, i32) {
    %c0_i32 = arith.constant 0 : i32
    %c0_i32_0 = arith.constant 0 : i32
    %c0_i32_1 = arith.constant 0 : i32
    return %c0_i32, %c0_i32_0 : i32, i32
  }
  func.func @transform_3(%arg0: i32, %arg1: i32, %arg2: i32) -> (i32, i32, i32, i32, i32) {
    %c0_i32 = arith.constant 0 : i32
    %c0_i32_0 = arith.constant 0 : i32
    %c0_i32_1 = arith.constant 0 : i32
    %c0_i32_2 = arith.constant 0 : i32
    return %arg0, %arg1, %c0_i32, %c0_i32_0, %c0_i32_1 : i32, i32, i32, i32, i32
  }
  func.func @transform_4(%arg0: i32, %arg1: i32, %arg2: i32) -> (i32, i32, i32) {
    %c0_i32 = arith.constant 0 : i32
    %c0_i32_0 = arith.constant 0 : i32
    %c0_i32_1 = arith.constant 0 : i32
    return %arg0, %c0_i32, %c0_i32_0 : i32, i32, i32
  }
  func.func @transform_5(%arg0: i32, %arg1: i32, %arg2: i32) -> (i32, i32, i32, i32, i32) {
    %c0_i32 = arith.constant 0 : i32
    %c0_i32_0 = arith.constant 0 : i32
    %c0_i32_1 = arith.constant 0 : i32
    %c0_i32_2 = arith.constant 0 : i32
    return %arg0, %arg1, %c0_i32, %c0_i32_0, %c0_i32_1 : i32, i32, i32, i32, i32
  }
  func.func @transform_6(%arg0: i32, %arg1: i32, %arg2: i32) -> (i32, i32, i32, i32, i32) {
    %c0_i32 = arith.constant 0 : i32
    %c0_i32_0 = arith.constant 0 : i32
    %c0_i32_1 = arith.constant 0 : i32
    %c0_i32_2 = arith.constant 0 : i32
    return %arg0, %arg1, %c0_i32, %c0_i32_0, %c0_i32_1 : i32, i32, i32, i32, i32
  }
}

</mosaic_0001>

<bundles_post_ra>
// kernel: tile.13
= control target key start
LH: loop header
LB: loop body
LE: loop exit
PB: predicated region body
PF: predicated region fallthrough
CT: control target
= control target key end

     0   :  { %s64_s0 = inlined_call_operand.vmem [shape: f32[4], index: 0, kind: input, shape index: {}]   ;;  %s65_s1 = inlined_call_operand.vmem [shape: f32[64,4], index: 1, kind: output, shape index: {}]  }
   0x1   :  { %v4_v0 = vld [vmem:[%s64_s0] ss:$0 sm:$0xff] }
   0x2   :  { %5 = vst [vmem:[%s65_s1] sm:$0xff] %v4_v0  ;;  %20 = vst [vmem:[%s65_s1 + $0x8] sm:$0xff] %v4_v0 }
   0x3   :  { %21 = vst [vmem:[%s65_s1 + $0x10] sm:$0xff] %v4_v0  ;;  %22 = vst [vmem:[%s65_s1 + $0x18] sm:$0xff] %v4_v0 }
   0x4   :  { %23 = vst [vmem:[%s65_s1 + $0x20] sm:$0xff] %v4_v0  ;;  %24 = vst [vmem:[%s65_s1 + $0x28] sm:$0xff] %v4_v0 }
   0x5   :  { %25 = vst [vmem:[%s65_s1 + $0x30] sm:$0xff] %v4_v0  ;;  %26 = vst [vmem:[%s65_s1 + $0x38] sm:$0xff] %v4_v0 }

// kernel: tile.14
= control target key start
LH: loop header
LB: loop body
LE: loop exit
PB: predicated region body
PF: predicated region fallthrough
CT: control target
= control target key end

     0   :  { %vm5_vm0 = vcmask 1041409   ;;  %s428_s14 = smov 124   ;;  %s429_s21 = smov 116   ;;  %vm7_vm1 = vcmask 31744   ;;  %vm17_vm2 = vcmask 1048544   ;;  %vm27_vm3 = vcmask 1015744   ;;  %s699_s0 = inlined_call_operand.vmem [shape: f32[64,4], index: 0, kind: input, shape index: {}]   ;;  %s700_s1 = inlined_call_operand.vmem [shape: f32[1,256], index: 1, kind: output, shape index: {}]  }
   0x1   :  { %v334_v0 = vld [vmem:[%s699_s0 + $0x1f] sm:$0x1]   ;;  %v338_v3 = vld [vmem:[%s699_s0 + $0x1d] sm:$0x1]   ;;  %v336_v6 = vld [vmem:[%s699_s0 + $0x1e] sm:$0x1]  }
   0x2   :  { %v335_v1 = vld [vmem:[%s699_s0 + $0x3e] sm:$0x2]   ;;  %v339_v4 = vld [vmem:[%s699_s0 + $0x3c] sm:$0x2]   ;;  %v337_v7 = vld [vmem:[%s699_s0 + $0x3d] sm:$0x2]  }
   0x3   :  { %v14_v2 = vsel %vm5_vm0, %v335_v1, %v334_v0  ;;  %v34_v5 = vsel %vm5_vm0, %v339_v4, %v338_v3  ;;  %v340_v8 = vld [vmem:[%s699_s0 + $0x1c] sm:$0x1]   ;;  %v24_v9 = vsel %vm5_vm0, %v337_v7, %v336_v6  ;;  %v342_v12 = vld [vmem:[%s699_s0 + $0x1b] sm:$0x1]   ;;  %v344_v14 = vld [vmem:[%s699_s0 + $0x1a] sm:$0x1]  }
   0x4   :  { %15 = vrot.lane.b32.xlu0 %v14_v2, %s428_s14  ;;  %35 = vrot.lane.b32.xlu1 %v34_v5, %s429_s21  ;;  %v341_v10 = vld [vmem:[%s699_s0 + $0x3b] sm:$0x2]   ;;  %v343_v13 = vld [vmem:[%s699_s0 + $0x3a] sm:$0x2]   ;;  %s430_s3 = smov 120   ;;  %s431_s4 = smov 112  }
   0x5   :  { %v44_v11 = vsel %vm5_vm0, %v341_v10, %v340_v8  ;;  %v345_v15 = vld [vmem:[%s699_s0 + $0x39] sm:$0x2]   ;;  %v54_v16 = vsel %vm5_vm0, %v343_v13, %v342_v12  ;;  %v346_v18 = vld [vmem:[%s699_s0 + $0x19] sm:$0x1]   ;;  %v348_v20 = vld [vmem:[%s699_s0 + $0x18] sm:$0x1]  }
   0x6   :  { %v64_v17 = vsel %vm5_vm0, %v345_v15, %v344_v14  ;;  %v347_v19 = vld [vmem:[%s699_s0 + $0x38] sm:$0x2]   ;;  %v349_v21 = vld [vmem:[%s699_s0 + $0x37] sm:$0x2]   ;;  %s432_s13 = smov 108   ;;  %s433_s14 = smov 104  }
   0x7   :  { %v74_v22 = vsel %vm5_vm0, %v347_v19, %v346_v18  ;;  %v84_v23 = vsel %vm5_vm0, %v349_v21, %v348_v20  ;;  %v350_v24 = vld [vmem:[%s699_s0 + $0x17] sm:$0x1]   ;;  %v352_v26 = vld [vmem:[%s699_s0 + $0x16] sm:$0x1]   ;;  %s434_s23 = smov 100   ;;  %s435_s24 = smov 96  }
   0x8   :  { %25 = vrot.lane.b32.xlu0 %v24_v9, %s430_s3  ;;  %45 = vrot.lane.b32.xlu1 %v44_v11, %s431_s4  ;;  %v351_v25 = vld [vmem:[%s699_s0 + $0x36] sm:$0x2]   ;;  %v353_v27 = vld [vmem:[%s699_s0 + $0x35] sm:$0x2]   ;;  %s436_s4 = smov 92   ;;  %s437_s5 = smov 88  }
   0x9   :  { %v94_v28 = vsel %vm5_vm0, %v351_v25, %v350_v24  ;;  %v104_v29 = vsel %vm5_vm0, %v353_v27, %v352_v26  ;;  %v354_v30 = vld [vmem:[%s699_s0 + $0x15] sm:$0x1]   ;;  %v356_v32 = vld [vmem:[%s699_s0 + $0x14] sm:$0x1]   ;;  %v358_v36 = vld [vmem:[%s699_s0 + $0x13] sm:$0x1]  }
   0xa   :  { %v355_v31 = vld [vmem:[%s699_s0 + $0x34] sm:$0x2]   ;;  %v357_v33 = vld [vmem:[%s699_s0 + $0x33] sm:$0x2]   ;;  %v359_v37 = vld [vmem:[%s699_s0 + $0x32] sm:$0x2]  }
   0xb   :  { %v114_v34 = vsel %vm5_vm0, %v355_v31, %v354_v30  ;;  %v124_v35 = vsel %vm5_vm0, %v357_v33, %v356_v32  ;;  %v360_v38 = vld [vmem:[%s699_s0 + $0x12] sm:$0x1]   ;;  %s439_s15 = smov 80   ;;  %v134_v40 = vsel %vm5_vm0, %v359_v37, %v358_v36  ;;  %v362_v42 = vld [vmem:[%s699_s0 + $0x11] sm:$0x1]   ;;  %s441_s29 = smov 72  }
   0xc   :  { %55 = vrot.lane.b32.xlu0 %v54_v16, %s432_s13  ;;  %65 = vrot.lane.b32.xlu1 %v64_v17, %s433_s14  ;;  %v361_v39 = vld [vmem:[%s699_s0 + $0x31] sm:$0x2]   ;;  %s438_s14 = smov 84   ;;  %v363_v43 = vld [vmem:[%s699_s0 + $0x30] sm:$0x2]   ;;  %s442_s9 = smov 68  }
   0xd   :  { %v144_v41 = vsel %vm5_vm0, %v361_v39, %v360_v38  ;;  %v364_v44 = vld [vmem:[%s699_s0 + $0x10] sm:$0x1]   ;;  %v2_v46 = vld [vmem:[%s699_s0] sm:$0x1]   ;;  %v154_v48 = vsel %vm5_vm0, %v363_v43, %v362_v42  ;;  %v366_v51 = vld [vmem:[%s699_s0 + $0xf] sm:$0x1]  }
   0xe   :  { %v365_v45 = vld [vmem:[%s699_s0 + $0x2f] sm:$0x2]   ;;  %v333_v47 = vld [vmem:[%s699_s0 + $0x1f] sm:$0x2]   ;;  %v367_v52 = vld [vmem:[%s699_s0 + $0x2e] sm:$0x2]  }
   0xf   :  { %v6_v49 = vsel %vm5_vm0, %v333_v47, %v2_v46  ;;  %v164_v50 = vsel %vm5_vm0, %v365_v45, %v364_v44  ;;  %v368_v53 = vld [vmem:[%s699_s0 + $0xe] sm:$0x1]   ;;  %s443_s10 = smov 64   ;;  %v174_v55 = vsel %vm5_vm0, %v367_v52, %v366_v51  ;;  %v370_v57 = vld [vmem:[%s699_s0 + $0xd] sm:$0x1]   ;;  %s444_s19 = smov 60  }
  0x10   :  { %75 = vrot.lane.b32.xlu0 %v74_v22, %s434_s23  ;;  %85 = vrot.lane.b32.xlu1 %v84_v23, %s435_s24  ;;  %s440_s24 = smov 76   ;;  %8 = vst.msk [vmem:[#allocation0] ss:$8 sm:$0x3] %vm7_vm1, %v6_v49   ;;  %v369_v54 = vld [vmem:[%s699_s0 + $0x2d] sm:$0x2]  }
  0x11   :  { %v184_v56 = vsel %vm5_vm0, %v369_v54, %v368_v53  ;;  %v371_v58 = vld [vmem:[%s699_s0 + $0x2c] sm:$0x2]   ;;  %v372_v59 = vld [vmem:[%s699_s0 + $0xc] sm:$0x1]   ;;  %s445_s20 = smov 56   ;;  %s447_s30 = smov 48  }
  0x12   :  { %v373_v60 = vld [vmem:[%s699_s0 + $0x2b] sm:$0x2]   ;;  %v194_v61 = vsel %vm5_vm0, %v371_v58, %v370_v57  ;;  %v374_v63 = vld [vmem:[%s699_s0 + $0xb] sm:$0x1]   ;;  %v376_v1 = vld [vmem:[%s699_s0 + $0xa] sm:$0x1]  }
  0x13   :  { %v204_v62 = vsel %vm5_vm0, %v373_v60, %v372_v59  ;;  %v375_v0 = vld [vmem:[%s699_s0 + $0x2a] sm:$0x2]   ;;  %v377_v2 = vld [vmem:[%s699_s0 + $0x29] sm:$0x2]   ;;  %v378_v5 = vld [vmem:[%s699_s0 + $0x9] sm:$0x1]  }
  0x14   :  { %95 = vrot.lane.b32.xlu0 %v94_v28, %s436_s4  ;;  %105 = vrot.lane.b32.xlu1 %v104_v29, %s437_s5  ;;  %v214_v3 = vsel %vm5_vm0, %v375_v0, %v374_v63  ;;  %v224_v4 = vsel %vm5_vm0, %v377_v2, %v376_v1  ;;  %v379_v6 = vld [vmem:[%s699_s0 + $0x28] sm:$0x2]   ;;  %v380_v7 = vld [vmem:[%s699_s0 + $0x8] sm:$0x1]   ;;  %s449_s11 = smov 40   ;;  %s451_s21 = smov 32  }
  0x15   :  { %v381_v8 = vld [vmem:[%s699_s0 + $0x27] sm:$0x2]   ;;  %v234_v9 = vsel %vm5_vm0, %v379_v6, %v378_v5  ;;  %v382_v11 = vld [vmem:[%s699_s0 + $0x7] sm:$0x1]   ;;  %v384_v13 = vld [vmem:[%s699_s0 + $0x6] sm:$0x1]  }
  0x16   :  { %v244_v10 = vsel %vm5_vm0, %v381_v8, %v380_v7  ;;  %v383_v12 = vld [vmem:[%s699_s0 + $0x26] sm:$0x2]   ;;  %v385_v14 = vld [vmem:[%s699_s0 + $0x25] sm:$0x2]   ;;  %v386_v17 = vld [vmem:[%s699_s0 + $0x5] sm:$0x1]  }
  0x17   :  { %v254_v15 = vsel %vm5_vm0, %v383_v12, %v382_v11  ;;  %v264_v16 = vsel %vm5_vm0, %v385_v14, %v384_v13  ;;  %v387_v18 = vld [vmem:[%s699_s0 + $0x24] sm:$0x2]   ;;  %v388_v19 = vld [vmem:[%s699_s0 + $0x4] sm:$0x1]   ;;  %s453_s2 = smov 24   ;;  %s455_s12 = smov 16  }
  0x18   :  { %115 = vrot.lane.b32.xlu0 %v114_v34, %s438_s14  ;;  %125 = vrot.lane.b32.xlu1 %v124_v35, %s439_s15  ;;  %v389_v20 = vld [vmem:[%s699_s0 + $0x23] sm:$0x2]   ;;  %v274_v21 = vsel %vm5_vm0, %v387_v18, %v386_v17  ;;  %v390_v23 = vld [vmem:[%s699_s0 + $0x3] sm:$0x1]   ;;  %s457_s17 = smov 8   ;;  %s458_s18 = smov 4  }
  0x19   :  { %v284_v22 = vsel %vm5_vm0, %v389_v20, %v388_v19  ;;  %v391_v24 = vld [vmem:[%s699_s0 + $0x22] sm:$0x2]   ;;  %v392_v25 = vld [vmem:[%s699_s0 + $0x2] sm:$0x1]   ;;  %v394_v29 = vld [vmem:[%s699_s0 + $0x1] sm:$0x1]  }
  0x1a   :  { %v393_v26 = vld [vmem:[%s699_s0 + $0x21] sm:$0x2]   ;;  %v294_v27 = vsel %vm5_vm0, %v391_v24, %v390_v23  ;;  %v395_v30 = vld [vmem:[%s699_s0 + $0x20] sm:$0x2]   ;;  %s456_s0 = smov 12   ;;  %vm37_vm4 = vcmask 982944  }
  0x1b   :  { %v304_v28 = vsel %vm5_vm0, %v393_v26, %v392_v25  ;;  %v314_v31 = vsel %vm5_vm0, %v395_v30, %v394_v29  ;;  %vm47_vm5 = vcmask 950144   ;;  %vm57_vm6 = vcmask 917344  }
  0x1c   :  { %135 = vrot.lane.b32.xlu0 %v134_v40, %s440_s24  ;;  %145 = vrot.lane.b32.xlu1 %v144_v41, %s441_s29  ;;  %s446_s29 = smov 52   ;;  %vm67_vm7 = vcmask 884544   ;;  %vm77_vm8 = vcmask 851744   ;;  %vm87_vm9 = vcmask 818944   ;;  %vm97_vm10 = vcmask 786144  }
  0x1d   :  { %vm107_vm11 = vcmask 753344   ;;  %vm117_vm12 = vcmask 720544   ;;  %vm127_vm13 = vcmask 687744   ;;  %vm137_vm14 = vcmask 654944  }
  0x1e   :  { %vm147_vm15 = vcmask 622144   ;;  %vm157_vm0 = vcmask 589344   ;;  %vm167_vm1 = vcmask 556544  }
  0x20   :  { %155 = vrot.lane.b32.xlu0 %v154_v48, %s442_s9  ;;  %165 = vrot.lane.b32.xlu1 %v164_v50, %s443_s10  ;;  %s448_s10 = smov 44  }
  0x24   :  { %175 = vrot.lane.b32.xlu0 %v174_v55, %s444_s19  ;;  %185 = vrot.lane.b32.xlu1 %v184_v56, %s445_s20  ;;  %s450_s20 = smov 36  }
  0x28   :  { %195 = vrot.lane.b32.xlu0 %v194_v61, %s446_s29  ;;  %205 = vrot.lane.b32.xlu1 %v204_v62, %s447_s30  ;;  %s452_s30 = smov 28  }
  0x2c   :  { %215 = vrot.lane.b32.xlu0 %v214_v3, %s448_s10  ;;  %225 = vrot.lane.b32.xlu1 %v224_v4, %s449_s11  ;;  %s454_s11 = smov 20  }
  0x30   :  { %235 = vrot.lane.b32.xlu0 %v234_v9, %s450_s20  ;;  %245 = vrot.lane.b32.xlu1 %v244_v10, %s451_s21 }
  0x34   :  { %255 = vrot.lane.b32.xlu0 %v254_v15, %s452_s30  ;;  %265 = vrot.lane.b32.xlu1 %v264_v16, %s453_s2 }
  0x38   :  { %275 = vrot.lane.b32.xlu0 %v274_v21, %s454_s11  ;;  %285 = vrot.lane.b32.xlu1 %v284_v22, %s455_s12 }
  0x3c   :  { %295 = vrot.lane.b32.xlu0 %v294_v27, %s456_s0  ;;  %305 = vrot.lane.b32.xlu1 %v304_v28, %s457_s17 }
  0x40   :  { %315 = vrot.lane.b32.xlu0 %v314_v31, %s458_s18 }
  0x76   :  { %v16_v32 = vpop.permute.xlu0 %15   ;;  %v36_v33 = vpop.permute.xlu1 %35  }
  0x77   :  { %18 = vst.msk [vmem:[#allocation0] ss:$8 sm:$0x3] %vm17_vm2, %v16_v32   ;;  %vm177_vm2 = vcmask 523744  }
  0x7a   :  { %v26_v34 = vpop.permute.xlu0 %25   ;;  %v46_v35 = vpop.permute.xlu1 %45  }
  0x7b   :  { %28 = vst.msk [vmem:[#allocation0] ss:$8 sm:$0x3] %vm27_vm3, %v26_v34   ;;  %vm187_vm3 = vcmask 490944  }
  0x7c   :  { %38 = vst.msk [vmem:[#allocation0] ss:$8 sm:$0x3] %vm37_vm4, %v36_v33   ;;  %vm197_vm4 = vcmask 458144  }
  0x7d   :  { %48 = vst.msk [vmem:[#allocation0] ss:$8 sm:$0x3] %vm47_vm5, %v46_v35   ;;  %vm207_vm5 = vcmask 425344  }
  0x7e   :  { %v56_v36 = vpop.permute.xlu0 %55   ;;  %v66_v37 = vpop.permute.xlu1 %65  }
  0x7f   :  { %58 = vst.msk [vmem:[#allocation0] ss:$8 sm:$0x3] %vm57_vm6, %v56_v36   ;;  %vm217_vm6 = vcmask 392544  }
  0x80   :  { %68 = vst.msk [vmem:[#allocation0] ss:$8 sm:$0x3] %vm67_vm7, %v66_v37   ;;  %vm227_vm7 = vcmask 359744  }
  0x82   :  { %v76_v38 = vpop.permute.xlu0 %75   ;;  %v86_v39 = vpop.permute.xlu1 %85  }
  0x83   :  { %78 = vst.msk [vmem:[#allocation0] ss:$8 sm:$0x3] %vm77_vm8, %v76_v38   ;;  %vm237_vm8 = vcmask 326944  }
  0x84   :  { %88 = vst.msk [vmem:[#allocation0] ss:$8 sm:$0x3] %vm87_vm9, %v86_v39   ;;  %vm247_vm9 = vcmask 294144  }
  0x86   :  { %v96_v40 = vpop.permute.xlu0 %95   ;;  %v106_v41 = vpop.permute.xlu1 %105  }
  0x87   :  { %98 = vst.msk [vmem:[#allocation0] ss:$8 sm:$0x3] %vm97_vm10, %v96_v40   ;;  %vm257_vm10 = vcmask 261344  }
  0x88   :  { %108 = vst.msk [vmem:[#allocation0] ss:$8 sm:$0x3] %vm107_vm11, %v106_v41   ;;  %vm267_vm11 = vcmask 228544  }
  0x8a   :  { %v116_v42 = vpop.permute.xlu0 %115   ;;  %v126_v43 = vpop.permute.xlu1 %125  }
  0x8b   :  { %118 = vst.msk [vmem:[#allocation0] ss:$8 sm:$0x3] %vm117_vm12, %v116_v42   ;;  %vm277_vm12 = vcmask 195744  }
  0x8c   :  { %128 = vst.msk [vmem:[#allocation0] ss:$8 sm:$0x3] %vm127_vm13, %v126_v43   ;;  %vm287_vm13 = vcmask 162944  }
  0x8e   :  { %v136_v44 = vpop.permute.xlu0 %135   ;;  %v146_v45 = vpop.permute.xlu1 %145  }
  0x8f   :  { %138 = vst.msk [vmem:[#allocation0] ss:$8 sm:$0x3] %vm137_vm14, %v136_v44   ;;  %vm297_vm14 = vcmask 130144  }
  0x90   :  { %148 = vst.msk [vmem:[#allocation0] ss:$8 sm:$0x3] %vm147_vm15, %v146_v45   ;;  %vm307_vm15 = vcmask 97344  }
  0x92   :  { %v156_v46 = vpop.permute.xlu0 %155   ;;  %v166_v47 = vpop.permute.xlu1 %165  }
  0x93   :  { %158 = vst.msk [vmem:[#allocation0] ss:$8 sm:$0x3] %vm157_vm0, %v156_v46   ;;  %vm317_vm0 = vcmask 64544  }
  0x94   :  { %168 = vst.msk [vmem:[#allocation0] ss:$8 sm:$0x3] %vm167_vm1, %v166_v47  }
  0x96   :  { %v176_v48 = vpop.permute.xlu0 %175   ;;  %v186_v49 = vpop.permute.xlu1 %185  }
  0x97   :  { %178 = vst.msk [vmem:[#allocation0] ss:$8 sm:$0x3] %vm177_vm2, %v176_v48  }
  0x98   :  { %188 = vst.msk [vmem:[#allocation0] ss:$8 sm:$0x3] %vm187_vm3, %v186_v49  }
  0x9a   :  { %v196_v50 = vpop.permute.xlu0 %195   ;;  %v206_v51 = vpop.permute.xlu1 %205  }
  0x9b   :  { %198 = vst.msk [vmem:[#allocation0] ss:$8 sm:$0x3] %vm197_vm4, %v196_v50  }
  0x9c   :  { %208 = vst.msk [vmem:[#allocation0] ss:$8 sm:$0x3] %vm207_vm5, %v206_v51  }
  0x9e   :  { %v216_v52 = vpop.permute.xlu0 %215   ;;  %v226_v53 = vpop.permute.xlu1 %225  }
  0x9f   :  { %218 = vst.msk [vmem:[#allocation0] ss:$8 sm:$0x3] %vm217_vm6, %v216_v52  }
  0xa0   :  { %228 = vst.msk [vmem:[#allocation0] ss:$8 sm:$0x3] %vm227_vm7, %v226_v53  }
  0xa2   :  { %v236_v54 = vpop.permute.xlu0 %235   ;;  %v246_v55 = vpop.permute.xlu1 %245  }
  0xa3   :  { %238 = vst.msk [vmem:[#allocation0] ss:$8 sm:$0x3] %vm237_vm8, %v236_v54  }
  0xa4   :  { %248 = vst.msk [vmem:[#allocation0] ss:$8 sm:$0x3] %vm247_vm9, %v246_v55  }
  0xa6   :  { %v256_v56 = vpop.permute.xlu0 %255   ;;  %v266_v57 = vpop.permute.xlu1 %265  }
  0xa7   :  { %258 = vst.msk [vmem:[#allocation0] ss:$8 sm:$0x3] %vm257_vm10, %v256_v56  }
  0xa8   :  { %268 = vst.msk [vmem:[#allocation0] ss:$8 sm:$0x3] %vm267_vm11, %v266_v57  }
  0xaa   :  { %v276_v58 = vpop.permute.xlu0 %275   ;;  %v286_v59 = vpop.permute.xlu1 %285  }
  0xab   :  { %278 = vst.msk [vmem:[#allocation0] ss:$8 sm:$0x3] %vm277_vm12, %v276_v58  }
  0xac   :  { %288 = vst.msk [vmem:[#allocation0] ss:$8 sm:$0x3] %vm287_vm13, %v286_v59  }
  0xae   :  { %v296_v60 = vpop.permute.xlu0 %295   ;;  %v306_v61 = vpop.permute.xlu1 %305  }
  0xaf   :  { %298 = vst.msk [vmem:[#allocation0] ss:$8 sm:$0x3] %vm297_vm14, %v296_v60  }
  0xb0   :  { %308 = vst.msk [vmem:[#allocation0] ss:$8 sm:$0x3] %vm307_vm15, %v306_v61  }
  0xb2   :  { %v316_v62 = vpop.permute.xlu0 %315  }
  0xb3   :  { %318 = vst.msk [vmem:[#allocation0] ss:$8 sm:$0x3] %vm317_vm0, %v316_v62  }
  0xba   :  { %v323_v63 = vld [vmem:[#allocation0] sm:$0x1]  ;;  %v328_v0 = vld [vmem:[#allocation0 + $0x8] sm:$0x1] }
  0xbb   :  { %326 = vst [vmem:[%s700_s1] sm:$0x1] %v323_v63  ;;  %396 = vst [vmem:[%s700_s1 + $0x1] sm:$0x1] %v328_v0 }

// kernel: resblock_forward.8
= control target key start
LH: loop header
LB: loop body
LE: loop exit
PB: predicated region body
PF: predicated region fallthrough
CT: control target
= control target key end

     0   :  { %vm22_vm0 = vcmask 130048   ;;  %v497_v1 = vmov 0.0   ;;  %s709_s1 = inlined_call_operand.vmem [shape: bf16[128,16], index: 1, kind: input, shape index: {}]   ;;  %s710_s0 = inlined_call_operand.vmem [shape: bf16[128,128], index: 0, kind: input, shape index: {}]   ;;  %s711_s2 = inlined_call_operand.vmem [shape: f32[1,16], index: 2, kind: input, shape index: {}]   ;;  %s712_s3 = inlined_call_operand.vmem [shape: f32[1,16], index: 3, kind: input, shape index: {}]   ;;  %s713_s4 = inlined_call_operand.vmem [shape: f32[128,16], index: 4, kind: output, shape index: {}]  }
   0x1   :  { %v481_v0 = vld [vmem:[%s709_s1 + $0x38] sm:$0xff]   ;;  %25 = vst.msk [vmem:[#allocation2 + $0x10] sm:$0xff] %vm22_vm0, %v497_v1  ;;  %23 = vst.msk [vmem:[#allocation2] sm:$0xff] %vm22_vm0, %v497_v1  ;;  %v482_v2 = vld [vmem:[%s709_s1 + $0x30] sm:$0xff]  }
   0x2   :  { %24 = vst.msk [vmem:[#allocation2 + $0x8] sm:$0xff] %vm22_vm0, %v497_v1  ;;  %26 = vst.msk [vmem:[#allocation2 + $0x18] sm:$0xff] %vm22_vm0, %v497_v1  ;;  %432 = vmatprep.subr.bf16.mxu0 %v481_v0  ;;  %464 = vmatprep.subr.bf16.mxu1 %v481_v0  ;;  %v483_v3 = vld [vmem:[%s709_s1 + $0x28] sm:$0xff]   ;;  %v484_v4 = vld [vmem:[%s709_s1 + $0x20] sm:$0xff]  }
   0x3   :  { %27 = vst.msk [vmem:[#allocation2 + $0x20] sm:$0xff] %vm22_vm0, %v497_v1  ;;  %28 = vst.msk [vmem:[#allocation2 + $0x28] sm:$0xff] %vm22_vm0, %v497_v1  ;;  %433 = vmatpush3.bf16.msra.mxu0 %v481_v0  ;;  %472 = vmatpush3.bf16.msra.mxu1 %v481_v0  ;;  %v489_v5 = vld [vmem:[%s710_s0] sm:$0xff]   ;;  %v485_v7 = vld [vmem:[%s709_s1 + $0x18] sm:$0xff]  }
   0x4   :  { %29 = vst.msk [vmem:[#allocation2 + $0x30] sm:$0xff] %vm22_vm0, %v497_v1  ;;  %30 = vst.msk [vmem:[#allocation2 + $0x38] sm:$0xff] %vm22_vm0, %v497_v1  ;;  %434 = vmatprep.subr.bf16.mxu0 %v482_v2  ;;  %465 = vmatprep.subr.bf16.mxu1 %v482_v2  ;;  %v490_v6 = vld [vmem:[%s710_s0 + $0x20] sm:$0xff]   ;;  %v486_v8 = vld [vmem:[%s709_s1 + $0x10] sm:$0xff]  }
   0x5   :  { %31 = vst.msk [vmem:[#allocation2 + $0x40] sm:$0xff] %vm22_vm0, %v497_v1  ;;  %32 = vst.msk [vmem:[#allocation2 + $0x48] sm:$0xff] %vm22_vm0, %v497_v1  ;;  %448 = vmatprep.mubr.bf16.mxu0 %v489_v5  ;;  %456 = vmatprep.mubr.bf16.mxu1 %v490_v6  ;;  %v487_v9 = vld [vmem:[%s709_s1 + $0x8] sm:$0xff]   ;;  %v488_v10 = vld [vmem:[%s709_s1] sm:$0xff]  }
   0x6   :  { %33 = vst.msk [vmem:[#allocation2 + $0x50] sm:$0xff] %vm22_vm0, %v497_v1  ;;  %34 = vst.msk [vmem:[#allocation2 + $0x58] sm:$0xff] %vm22_vm0, %v497_v1  ;;  %v491_v11 = vld [vmem:[%s710_s0 + $0x8] sm:$0xff]   ;;  %v493_v13 = vld [vmem:[%s710_s0 + $0x10] sm:$0xff]  }
   0x7   :  { %35 = vst.msk [vmem:[#allocation2 + $0x60] sm:$0xff] %vm22_vm0, %v497_v1  ;;  %36 = vst.msk [vmem:[#allocation2 + $0x68] sm:$0xff] %vm22_vm0, %v497_v1  ;;  %435 = vmatpush3.bf16.msra.mxu0 %v482_v2  ;;  %473 = vmatpush3.bf16.msra.mxu1 %v482_v2  ;;  %v492_v12 = vld [vmem:[%s710_s0 + $0x28] sm:$0xff]   ;;  %v494_v14 = vld [vmem:[%s710_s0 + $0x30] sm:$0xff]  }
   0x8   :  { %37 = vst.msk [vmem:[#allocation2 + $0x70] sm:$0xff] %vm22_vm0, %v497_v1  ;;  %38 = vst.msk [vmem:[#allocation2 + $0x78] sm:$0xff] %vm22_vm0, %v497_v1  ;;  %436 = vmatprep.subr.bf16.mxu0 %v483_v3  ;;  %466 = vmatprep.subr.bf16.mxu1 %v483_v3  ;;  %v495_v15 = vld [vmem:[%s710_s0 + $0x18] sm:$0xff]   ;;  %v41_v17 = vld [vmem:[#allocation2 + $0x10] sm:$0xff] }
   0x9   :  { %v496_v16 = vld [vmem:[%s710_s0 + $0x38] sm:$0xff]   ;;  %v39_v21 = vld [vmem:[#allocation2] sm:$0xff]  ;;  %v40_v33 = vld [vmem:[#allocation2 + $0x8] sm:$0xff] }
   0xa   :  { %v42_v27 = vld [vmem:[#allocation2 + $0x18] sm:$0xff]  ;;  %v596_v43 = vld [vmem:[%s711_s2] ss:$0 sm:$0xff]  ;;  %v44_v5 = vld [vmem:[#allocation2 + $0x28] sm:$0xff] }
   0xb   :  { %437 = vmatpush3.bf16.msra.mxu0 %v483_v3  ;;  %474 = vmatpush3.bf16.msra.mxu1 %v483_v3  ;;  %v45_v39 = vld [vmem:[#allocation2 + $0x30] sm:$0xff]  ;;  %v43_v46 = vld [vmem:[#allocation2 + $0x20] sm:$0xff]  ;;  %v46_v59 = vld [vmem:[#allocation2 + $0x38] sm:$0xff] }
   0xc   :  { %438 = vmatprep.subr.bf16.mxu0 %v484_v4  ;;  %467 = vmatprep.subr.bf16.mxu1 %v484_v4  ;;  %v47_v22 = vld [vmem:[#allocation2 + $0x40] sm:$0xff]  ;;  %v48_v34 = vld [vmem:[#allocation2 + $0x48] sm:$0xff] }
   0xd   :  { %v49_v18 = vld [vmem:[#allocation2 + $0x50] sm:$0xff]  ;;  %v50_v28 = vld [vmem:[#allocation2 + $0x58] sm:$0xff]  ;;  %v603_v51 = vld [vmem:[%s712_s3] ss:$0 sm:$0xff] }
   0xe   :  { %v51_v47 = vld [vmem:[#allocation2 + $0x60] sm:$0xff]  ;;  %v52_v6 = vld [vmem:[#allocation2 + $0x68] sm:$0xff] }
   0xf   :  { %439 = vmatpush3.bf16.msra.mxu0 %v484_v4  ;;  %475 = vmatpush3.bf16.msra.mxu1 %v484_v4  ;;  %v53_v40 = vld [vmem:[#allocation2 + $0x70] sm:$0xff]  ;;  %v54_v60 = vld [vmem:[#allocation2 + $0x78] sm:$0xff] }
  0x10   :  { %440 = vmatprep.subr.bf16.mxu0 %v485_v7  ;;  %468 = vmatprep.subr.bf16.mxu1 %v485_v7 }
  0x13   :  { %441 = vmatpush3.bf16.msra.mxu0 %v485_v7  ;;  %476 = vmatpush3.bf16.msra.mxu1 %v485_v7 }
  0x14   :  { %442 = vmatprep.subr.bf16.mxu0 %v486_v8  ;;  %469 = vmatprep.subr.bf16.mxu1 %v486_v8 }
  0x17   :  { %443 = vmatpush3.bf16.msra.mxu0 %v486_v8  ;;  %477 = vmatpush3.bf16.msra.mxu1 %v486_v8 }
  0x18   :  { %444 = vmatprep.subr.bf16.mxu0 %v487_v9  ;;  %470 = vmatprep.subr.bf16.mxu1 %v487_v9 }
  0x1b   :  { %445 = vmatpush3.bf16.msra.mxu0 %v487_v9  ;;  %478 = vmatpush3.bf16.msra.mxu1 %v487_v9 }
  0x1c   :  { %446 = vmatprep.subr.bf16.mxu0 %v488_v10  ;;  %471 = vmatprep.subr.bf16.mxu1 %v488_v10 }
  0x1f   :  { %447 = vmatpush3.bf16.msra.mxu0 %v488_v10  ;;  %479 = vmatpush3.bf16.msra.mxu1 %v488_v10 }
  0x22   :  { %449 = vmatmul.mubr.bf16.vlgmr.msra.gmra.mxu0 %v491_v11  ;;  %457 = vmatmul.mubr.bf16.vlgmr.msra.gmra.mxu1 %v492_v12 }
  0x23   :  { %452 = vmatprep.mubr.bf16.mxu0 %v493_v13  ;;  %460 = vmatprep.mubr.bf16.mxu1 %v494_v14 }
  0x2a   :  { %453 = vmatmul.mubr.bf16.gmra.mxu0 %v495_v15  ;;  %461 = vmatmul.mubr.bf16.gmra.mxu1 %v496_v16 }
  0xe2   :  { %v450_v19 = vpop.f32.mrf.mxu0  ;;  %v458_v20 = vpop.f32.mrf.mxu1 }
  0xe3   :  { %v282_v23 = vadd.f32 %v450_v19, %v41_v17  ;;  %v290_v24 = vadd.f32 %v458_v20, %v49_v18 }
  0xe4   :  { %v217_v25 = vpop.f32.mrf.mxu0  ;;  %v249_v26 = vpop.f32.mrf.mxu1 }
  0xe5   :  { %299 = vst.msk [vmem:[#allocation2 + $0x10] sm:$0xff] %vm22_vm0, %v282_v23  ;;  %307 = vst.msk [vmem:[#allocation2 + $0x50] sm:$0xff] %vm22_vm0, %v290_v24  ;;  %v280_v29 = vadd.f32 %v217_v25, %v39_v21  ;;  %v288_v30 = vadd.f32 %v249_v26, %v47_v22 }
  0xe6   :  { %v451_v31 = vpop.f32.mrf.mxu0  ;;  %v459_v32 = vpop.f32.mrf.mxu1 }
  0xe7   :  { %297 = vst.msk [vmem:[#allocation2] sm:$0xff] %vm22_vm0, %v280_v29  ;;  %305 = vst.msk [vmem:[#allocation2 + $0x40] sm:$0xff] %vm22_vm0, %v288_v30  ;;  %v283_v35 = vadd.f32 %v451_v31, %v42_v27  ;;  %v291_v36 = vadd.f32 %v459_v32, %v50_v28 }
  0xe8   :  { %v220_v37 = vpop.f32.mrf.mxu0  ;;  %v252_v38 = vpop.f32.mrf.mxu1 }
  0xe9   :  { %300 = vst.msk [vmem:[#allocation2 + $0x18] sm:$0xff] %vm22_vm0, %v283_v35  ;;  %308 = vst.msk [vmem:[#allocation2 + $0x58] sm:$0xff] %vm22_vm0, %v291_v36  ;;  %v281_v41 = vadd.f32 %v220_v37, %v40_v33  ;;  %v289_v42 = vadd.f32 %v252_v38, %v48_v34 }
  0xea   :  { %v454_v44 = vpop.f32.mrf.mxu0  ;;  %v462_v45 = vpop.f32.mrf.mxu1 }
  0xeb   :  { %298 = vst.msk [vmem:[#allocation2 + $0x8] sm:$0xff] %vm22_vm0, %v281_v41  ;;  %306 = vst.msk [vmem:[#allocation2 + $0x48] sm:$0xff] %vm22_vm0, %v289_v42  ;;  %v286_v48 = vadd.f32 %v454_v44, %v45_v39  ;;  %v294_v49 = vadd.f32 %v462_v45, %v53_v40 }
  0xec   :  { %v318_v50 = vld [vmem:[#allocation2 + $0x10] sm:$0xff]  ;;  %v233_v53 = vpop.f32.mrf.mxu0  ;;  %v265_v54 = vpop.f32.mrf.mxu1 }
  0xed   :  { %v326_v52 = vld [vmem:[#allocation2 + $0x50] sm:$0xff]  ;;  %v341_v55 = vmul.f32 %v596_v43, %v318_v50  ;;  %303 = vst.msk [vmem:[#allocation2 + $0x30] sm:$0xff] %vm22_vm0, %v286_v48  ;;  %311 = vst.msk [vmem:[#allocation2 + $0x70] sm:$0xff] %vm22_vm0, %v294_v49  ;;  %v284_v57 = vadd.f32 %v233_v53, %v43_v46  ;;  %v292_v58 = vadd.f32 %v265_v54, %v51_v47 }
  0xee   :  { %v349_v56 = vmul.f32 %v596_v43, %v326_v52  ;;  %v316_v61 = vld [vmem:[#allocation2] sm:$0xff]  ;;  %v455_v63 = vpop.f32.mrf.mxu0  ;;  %v463_v0 = vpop.f32.mrf.mxu1 }
  0xef   :  { %v324_v62 = vld [vmem:[#allocation2 + $0x40] sm:$0xff]  ;;  %v364_v1 = vadd.f32 %v603_v51, %v341_v55  ;;  %v339_v3 = vmul.f32 %v596_v43, %v316_v61  ;;  %301 = vst.msk [vmem:[#allocation2 + $0x20] sm:$0xff] %vm22_vm0, %v284_v57  ;;  %309 = vst.msk [vmem:[#allocation2 + $0x60] sm:$0xff] %vm22_vm0, %v292_v58  ;;  %v287_v9 = vadd.f32 %v455_v63, %v46_v59 }
  0xf0   :  { %v372_v2 = vadd.f32 %v603_v51, %v349_v56  ;;  %v347_v4 = vmul.f32 %v596_v43, %v324_v62  ;;  %v319_v7 = vld [vmem:[#allocation2 + $0x18] sm:$0xff]  ;;  %v295_v10 = vadd.f32 %v463_v0, %v54_v60  ;;  %v236_v11 = vpop.f32.mrf.mxu0  ;;  %v268_v12 = vpop.f32.mrf.mxu1 }
  0xf1   :  { %v327_v8 = vld [vmem:[#allocation2 + $0x58] sm:$0xff]  ;;  %380 = vst.msk [vmem:[%s713_s4 + $0x10] sm:$0xff] %vm22_vm0, %v364_v1  ;;  %v362_v13 = vadd.f32 %v603_v51, %v339_v3  ;;  %v342_v15 = vmul.f32 %v596_v43, %v319_v7  ;;  %304 = vst.msk [vmem:[#allocation2 + $0x38] sm:$0xff] %vm22_vm0, %v287_v9  ;;  %v285_v19 = vadd.f32 %v236_v11, %v44_v5 }
  0xf2   :  { %388 = vst.msk [vmem:[%s713_s4 + $0x50] sm:$0xff] %vm22_vm0, %v372_v2  ;;  %v370_v14 = vadd.f32 %v603_v51, %v347_v4  ;;  %v350_v16 = vmul.f32 %v596_v43, %v327_v8  ;;  %v317_v17 = vld [vmem:[#allocation2 + $0x8] sm:$0xff]  ;;  %312 = vst.msk [vmem:[#allocation2 + $0x78] sm:$0xff] %vm22_vm0, %v295_v10  ;;  %v293_v20 = vadd.f32 %v268_v12, %v52_v6 }
  0xf3   :  { %v325_v18 = vld [vmem:[#allocation2 + $0x48] sm:$0xff]  ;;  %378 = vst.msk [vmem:[%s713_s4] sm:$0xff] %vm22_vm0, %v362_v13  ;;  %v365_v21 = vadd.f32 %v603_v51, %v342_v15  ;;  %v340_v23 = vmul.f32 %v596_v43, %v317_v17  ;;  %302 = vst.msk [vmem:[#allocation2 + $0x28] sm:$0xff] %vm22_vm0, %v285_v19 }
  0xf4   :  { %386 = vst.msk [vmem:[%s713_s4 + $0x40] sm:$0xff] %vm22_vm0, %v370_v14  ;;  %v373_v22 = vadd.f32 %v603_v51, %v350_v16  ;;  %v348_v24 = vmul.f32 %v596_v43, %v325_v18  ;;  %v322_v25 = vld [vmem:[#allocation2 + $0x30] sm:$0xff]  ;;  %310 = vst.msk [vmem:[#allocation2 + $0x68] sm:$0xff] %vm22_vm0, %v293_v20 }
  0xf5   :  { %v330_v26 = vld [vmem:[#allocation2 + $0x70] sm:$0xff]  ;;  %381 = vst.msk [vmem:[%s713_s4 + $0x18] sm:$0xff] %vm22_vm0, %v365_v21  ;;  %v363_v27 = vadd.f32 %v603_v51, %v340_v23  ;;  %v345_v29 = vmul.f32 %v596_v43, %v322_v25 }
  0xf6   :  { %389 = vst.msk [vmem:[%s713_s4 + $0x58] sm:$0xff] %vm22_vm0, %v373_v22  ;;  %v371_v28 = vadd.f32 %v603_v51, %v348_v24  ;;  %v353_v30 = vmul.f32 %v596_v43, %v330_v26  ;;  %v320_v31 = vld [vmem:[#allocation2 + $0x20] sm:$0xff] }
  0xf7   :  { %v328_v32 = vld [vmem:[#allocation2 + $0x60] sm:$0xff]  ;;  %379 = vst.msk [vmem:[%s713_s4 + $0x8] sm:$0xff] %vm22_vm0, %v363_v27  ;;  %v368_v33 = vadd.f32 %v603_v51, %v345_v29  ;;  %v343_v35 = vmul.f32 %v596_v43, %v320_v31 }
  0xf8   :  { %387 = vst.msk [vmem:[%s713_s4 + $0x48] sm:$0xff] %vm22_vm0, %v371_v28  ;;  %v376_v34 = vadd.f32 %v603_v51, %v353_v30  ;;  %v351_v36 = vmul.f32 %v596_v43, %v328_v32  ;;  %v323_v39 = vld [vmem:[#allocation2 + $0x38] sm:$0xff] }
  0xf9   :  { %384 = vst.msk [vmem:[%s713_s4 + $0x30] sm:$0xff] %vm22_vm0, %v368_v33  ;;  %v366_v37 = vadd.f32 %v603_v51, %v343_v35  ;;  %v331_v40 = vld [vmem:[#allocation2 + $0x78] sm:$0xff]  ;;  %v346_v41 = vmul.f32 %v596_v43, %v323_v39 }
  0xfa   :  { %392 = vst.msk [vmem:[%s713_s4 + $0x70] sm:$0xff] %vm22_vm0, %v376_v34  ;;  %v374_v38 = vadd.f32 %v603_v51, %v351_v36  ;;  %v354_v42 = vmul.f32 %v596_v43, %v331_v40  ;;  %v321_v44 = vld [vmem:[#allocation2 + $0x28] sm:$0xff] }
  0xfb   :  { %382 = vst.msk [vmem:[%s713_s4 + $0x20] sm:$0xff] %vm22_vm0, %v366_v37  ;;  %v329_v45 = vld [vmem:[#allocation2 + $0x68] sm:$0xff]  ;;  %v369_v46 = vadd.f32 %v603_v51, %v346_v41  ;;  %v344_v48 = vmul.f32 %v596_v43, %v321_v44 }
  0xfc   :  { %390 = vst.msk [vmem:[%s713_s4 + $0x60] sm:$0xff] %vm22_vm0, %v374_v38  ;;  %v377_v47 = vadd.f32 %v603_v51, %v354_v42  ;;  %v352_v49 = vmul.f32 %v596_v43, %v329_v45 }
  0xfd   :  { %385 = vst.msk [vmem:[%s713_s4 + $0x38] sm:$0xff] %vm22_vm0, %v369_v46  ;;  %v367_v50 = vadd.f32 %v603_v51, %v344_v48 }
  0xfe   :  { %393 = vst.msk [vmem:[%s713_s4 + $0x78] sm:$0xff] %vm22_vm0, %v377_v47  ;;  %v375_v52 = vadd.f32 %v603_v51, %v352_v49 }
  0xff   :  { %383 = vst.msk [vmem:[%s713_s4 + $0x28] sm:$0xff] %vm22_vm0, %v367_v50 }
 0x100   :  { %391 = vst.msk [vmem:[%s713_s4 + $0x68] sm:$0xff] %vm22_vm0, %v375_v52 }

// kernel: resblock_forward.6
= control target key start
LH: loop header
LB: loop body
LE: loop exit
PB: predicated region body
PF: predicated region fallthrough
CT: control target
= control target key end

     0   :  { %v20_v0 = vlaneseq  ;;  %s120_s1 = inlined_call_operand.vmem [shape: f32[1,256], index: 1, kind: input, shape index: {}]   ;;  %s121_s2 = inlined_call_operand.vmem [shape: f32[1,256], index: 2, kind: input, shape index: {}]   ;;  %s122_s0 = inlined_call_operand.vmem [shape: f32[16,256], index: 0, kind: input, shape index: {}]   ;;  %s123_s3 = inlined_call_operand.vmem [shape: bf16[16,256], index: 3, kind: output, shape index: {}]  }
   0x1   :  { %v18_v2 = vld [vmem:[%s120_s1] sm:$0x3]  ;;  %v15_v7 = vld [vmem:[%s122_s0 + $0x8] sm:$0xff]  ;;  %v16_v8 = vld [vmem:[%s122_s0 + $0x10] sm:$0xff] }
   0x2   :  { %v21_v1 = vshrl.u32 %v20_v0, 7  ;;  %v34_v3 = vld [vmem:[%s121_s2] sm:$0x3]  ;;  %v17_v9 = vld [vmem:[%s122_s0 + $0x18] sm:$0xff] }
   0x3   :  { %v14_v4 = vld [vmem:[%s122_s0] sm:$0xff] }
   0x4   :  { %v22_v5 = vsub.s32 0, %v21_v1  ;;  %v26_v6 = vsub.s32 1, %v21_v1 }
   0x6   :  { %v23_v10 = vrot.slane %v18_v2, %v22_v5  ;;  %v27_v11 = vrot.slane %v18_v2, %v26_v6  ;;  %v39_v12 = vrot.slane %v34_v3, %v22_v5  ;;  %v43_v13 = vrot.slane %v34_v3, %v26_v6 }
   0x8   :  { %v30_v14 = vmul.f32 %v23_v10, %v14_v4  ;;  %v31_v15 = vmul.f32 %v27_v11, %v15_v7  ;;  %v32_v16 = vmul.f32 %v23_v10, %v16_v8  ;;  %v33_v17 = vmul.f32 %v27_v11, %v17_v9 }
   0xa   :  { %v46_v18 = vadd.f32 %v39_v12, %v30_v14  ;;  %v47_v19 = vadd.f32 %v43_v13, %v31_v15  ;;  %v48_v20 = vadd.f32 %v39_v12, %v32_v16  ;;  %v49_v21 = vadd.f32 %v43_v13, %v33_v17 }
   0xc   :  { %v50_v22 = vmax.f32 %v46_v18, 0.0  ;;  %v51_v23 = vmax.f32 %v47_v19, 0.0  ;;  %v52_v24 = vmax.f32 %v48_v20, 0.0  ;;  %v53_v25 = vmax.f32 %v49_v21, 0.0 }
   0xe   :  { %v74_v26 = vpack.c.bf16 %v51_v23, %v50_v22  ;;  %v75_v27 = vpack.c.bf16 %v53_v25, %v52_v24 }
  0x10   :  { %66 = vst [vmem:[%s123_s3] sm:$0xff] %v74_v26  ;;  %67 = vst [vmem:[%s123_s3 + $0x8] sm:$0xff] %v75_v27 }

// kernel: resblock_forward.7
= control target key start
LH: loop header
LB: loop body
LE: loop exit
PB: predicated region body
PF: predicated region fallthrough
CT: control target
= control target key end

     0   :  { %vm22_vm0 = vcmask 130048   ;;  %v610_v1 = vmov 0.0   ;;  %vm458_vm1 = vcmask 125952   ;;  %s822_s1 = inlined_call_operand.vmem [shape: bf16[128,16], index: 1, kind: input, shape index: {}]   ;;  %s823_s0 = inlined_call_operand.vmem [shape: bf16[128,128], index: 0, kind: input, shape index: {}]   ;;  %s824_s2 = inlined_call_operand.vmem [shape: f32[1,16], index: 2, kind: input, shape index: {}]   ;;  %s825_s3 = inlined_call_operand.vmem [shape: f32[1,16], index: 3, kind: input, shape index: {}]   ;;  %s826_s4 = inlined_call_operand.vmem [shape: bf16[128,16], index: 4, kind: output, shape index: {}]  }
   0x1   :  { %v594_v0 = vld [vmem:[%s822_s1 + $0x38] sm:$0xff]   ;;  %25 = vst.msk [vmem:[#allocation2 + $0x10] sm:$0xff] %vm22_vm0, %v610_v1  ;;  %23 = vst.msk [vmem:[#allocation2] sm:$0xff] %vm22_vm0, %v610_v1  ;;  %v595_v2 = vld [vmem:[%s822_s1 + $0x30] sm:$0xff]  }
   0x2   :  { %24 = vst.msk [vmem:[#allocation2 + $0x8] sm:$0xff] %vm22_vm0, %v610_v1  ;;  %26 = vst.msk [vmem:[#allocation2 + $0x18] sm:$0xff] %vm22_vm0, %v610_v1  ;;  %545 = vmatprep.subr.bf16.mxu0 %v594_v0  ;;  %577 = vmatprep.subr.bf16.mxu1 %v594_v0  ;;  %v596_v3 = vld [vmem:[%s822_s1 + $0x28] sm:$0xff]   ;;  %v597_v4 = vld [vmem:[%s822_s1 + $0x20] sm:$0xff]  }
   0x3   :  { %27 = vst.msk [vmem:[#allocation2 + $0x20] sm:$0xff] %vm22_vm0, %v610_v1  ;;  %28 = vst.msk [vmem:[#allocation2 + $0x28] sm:$0xff] %vm22_vm0, %v610_v1  ;;  %546 = vmatpush3.bf16.msra.mxu0 %v594_v0  ;;  %585 = vmatpush3.bf16.msra.mxu1 %v594_v0  ;;  %v602_v5 = vld [vmem:[%s823_s0] sm:$0xff]   ;;  %v598_v7 = vld [vmem:[%s822_s1 + $0x18] sm:$0xff]  }
   0x4   :  { %29 = vst.msk [vmem:[#allocation2 + $0x30] sm:$0xff] %vm22_vm0, %v610_v1  ;;  %30 = vst.msk [vmem:[#allocation2 + $0x38] sm:$0xff] %vm22_vm0, %v610_v1  ;;  %547 = vmatprep.subr.bf16.mxu0 %v595_v2  ;;  %578 = vmatprep.subr.bf16.mxu1 %v595_v2  ;;  %v603_v6 = vld [vmem:[%s823_s0 + $0x20] sm:$0xff]   ;;  %v599_v8 = vld [vmem:[%s822_s1 + $0x10] sm:$0xff]  }
   0x5   :  { %31 = vst.msk [vmem:[#allocation2 + $0x40] sm:$0xff] %vm22_vm0, %v610_v1  ;;  %32 = vst.msk [vmem:[#allocation2 + $0x48] sm:$0xff] %vm22_vm0, %v610_v1  ;;  %561 = vmatprep.mubr.bf16.mxu0 %v602_v5  ;;  %569 = vmatprep.mubr.bf16.mxu1 %v603_v6  ;;  %v600_v9 = vld [vmem:[%s822_s1 + $0x8] sm:$0xff]   ;;  %v601_v10 = vld [vmem:[%s822_s1] sm:$0xff]  }
   0x6   :  { %33 = vst.msk [vmem:[#allocation2 + $0x50] sm:$0xff] %vm22_vm0, %v610_v1  ;;  %34 = vst.msk [vmem:[#allocation2 + $0x58] sm:$0xff] %vm22_vm0, %v610_v1  ;;  %v604_v11 = vld [vmem:[%s823_s0 + $0x8] sm:$0xff]   ;;  %v606_v13 = vld [vmem:[%s823_s0 + $0x10] sm:$0xff]  }
   0x7   :  { %35 = vst.msk [vmem:[#allocation2 + $0x60] sm:$0xff] %vm22_vm0, %v610_v1  ;;  %36 = vst.msk [vmem:[#allocation2 + $0x68] sm:$0xff] %vm22_vm0, %v610_v1  ;;  %548 = vmatpush3.bf16.msra.mxu0 %v595_v2  ;;  %586 = vmatpush3.bf16.msra.mxu1 %v595_v2  ;;  %v605_v12 = vld [vmem:[%s823_s0 + $0x28] sm:$0xff]   ;;  %v607_v14 = vld [vmem:[%s823_s0 + $0x30] sm:$0xff]  }
   0x8   :  { %37 = vst.msk [vmem:[#allocation2 + $0x70] sm:$0xff] %vm22_vm0, %v610_v1  ;;  %38 = vst.msk [vmem:[#allocation2 + $0x78] sm:$0xff] %vm22_vm0, %v610_v1  ;;  %549 = vmatprep.subr.bf16.mxu0 %v596_v3  ;;  %579 = vmatprep.subr.bf16.mxu1 %v596_v3  ;;  %v608_v15 = vld [vmem:[%s823_s0 + $0x18] sm:$0xff]   ;;  %v41_v17 = vld [vmem:[#allocation2 + $0x10] sm:$0xff] }
   0x9   :  { %v609_v16 = vld [vmem:[%s823_s0 + $0x38] sm:$0xff]   ;;  %v39_v21 = vld [vmem:[#allocation2] sm:$0xff]  ;;  %v40_v33 = vld [vmem:[#allocation2 + $0x8] sm:$0xff] }
   0xa   :  { %v42_v27 = vld [vmem:[#allocation2 + $0x18] sm:$0xff]  ;;  %v709_v43 = vld [vmem:[%s824_s2] ss:$0 sm:$0xff]  ;;  %v44_v5 = vld [vmem:[#allocation2 + $0x28] sm:$0xff] }
   0xb   :  { %550 = vmatpush3.bf16.msra.mxu0 %v596_v3  ;;  %587 = vmatpush3.bf16.msra.mxu1 %v596_v3  ;;  %v45_v39 = vld [vmem:[#allocation2 + $0x30] sm:$0xff]  ;;  %v43_v46 = vld [vmem:[#allocation2 + $0x20] sm:$0xff]  ;;  %v46_v59 = vld [vmem:[#allocation2 + $0x38] sm:$0xff] }
   0xc   :  { %551 = vmatprep.subr.bf16.mxu0 %v597_v4  ;;  %580 = vmatprep.subr.bf16.mxu1 %v597_v4  ;;  %v47_v22 = vld [vmem:[#allocation2 + $0x40] sm:$0xff]  ;;  %v48_v34 = vld [vmem:[#allocation2 + $0x48] sm:$0xff] }
   0xd   :  { %v49_v18 = vld [vmem:[#allocation2 + $0x50] sm:$0xff]  ;;  %v50_v28 = vld [vmem:[#allocation2 + $0x58] sm:$0xff]  ;;  %v716_v51 = vld [vmem:[%s825_s3] ss:$0 sm:$0xff] }
   0xe   :  { %v51_v47 = vld [vmem:[#allocation2 + $0x60] sm:$0xff]  ;;  %v52_v6 = vld [vmem:[#allocation2 + $0x68] sm:$0xff] }
   0xf   :  { %552 = vmatpush3.bf16.msra.mxu0 %v597_v4  ;;  %588 = vmatpush3.bf16.msra.mxu1 %v597_v4  ;;  %v53_v40 = vld [vmem:[#allocation2 + $0x70] sm:$0xff]  ;;  %v54_v60 = vld [vmem:[#allocation2 + $0x78] sm:$0xff] }
  0x10   :  { %553 = vmatprep.subr.bf16.mxu0 %v598_v7  ;;  %581 = vmatprep.subr.bf16.mxu1 %v598_v7 }
  0x13   :  { %554 = vmatpush3.bf16.msra.mxu0 %v598_v7  ;;  %589 = vmatpush3.bf16.msra.mxu1 %v598_v7 }
  0x14   :  { %555 = vmatprep.subr.bf16.mxu0 %v599_v8  ;;  %582 = vmatprep.subr.bf16.mxu1 %v599_v8 }
  0x17   :  { %556 = vmatpush3.bf16.msra.mxu0 %v599_v8  ;;  %590 = vmatpush3.bf16.msra.mxu1 %v599_v8 }
  0x18   :  { %557 = vmatprep.subr.bf16.mxu0 %v600_v9  ;;  %583 = vmatprep.subr.bf16.mxu1 %v600_v9 }
  0x1b   :  { %558 = vmatpush3.bf16.msra.mxu0 %v600_v9  ;;  %591 = vmatpush3.bf16.msra.mxu1 %v600_v9 }
  0x1c   :  { %559 = vmatprep.subr.bf16.mxu0 %v601_v10  ;;  %584 = vmatprep.subr.bf16.mxu1 %v601_v10 }
  0x1f   :  { %560 = vmatpush3.bf16.msra.mxu0 %v601_v10  ;;  %592 = vmatpush3.bf16.msra.mxu1 %v601_v10 }
  0x22   :  { %562 = vmatmul.mubr.bf16.vlgmr.msra.gmra.mxu0 %v604_v11  ;;  %570 = vmatmul.mubr.bf16.vlgmr.msra.gmra.mxu1 %v605_v12 }
  0x23   :  { %565 = vmatprep.mubr.bf16.mxu0 %v606_v13  ;;  %573 = vmatprep.mubr.bf16.mxu1 %v607_v14 }
  0x2a   :  { %566 = vmatmul.mubr.bf16.gmra.mxu0 %v608_v15  ;;  %574 = vmatmul.mubr.bf16.gmra.mxu1 %v609_v16 }
  0xe2   :  { %v563_v19 = vpop.f32.mrf.mxu0  ;;  %v571_v20 = vpop.f32.mrf.mxu1 }
  0xe3   :  { %v282_v23 = vadd.f32 %v563_v19, %v41_v17  ;;  %v290_v24 = vadd.f32 %v571_v20, %v49_v18 }
  0xe4   :  { %v217_v25 = vpop.f32.mrf.mxu0  ;;  %v249_v26 = vpop.f32.mrf.mxu1 }
  0xe5   :  { %299 = vst.msk [vmem:[#allocation2 + $0x10] sm:$0xff] %vm22_vm0, %v282_v23  ;;  %307 = vst.msk [vmem:[#allocation2 + $0x50] sm:$0xff] %vm22_vm0, %v290_v24  ;;  %v280_v29 = vadd.f32 %v217_v25, %v39_v21  ;;  %v288_v30 = vadd.f32 %v249_v26, %v47_v22 }
  0xe6   :  { %v564_v31 = vpop.f32.mrf.mxu0  ;;  %v572_v32 = vpop.f32.mrf.mxu1 }
  0xe7   :  { %297 = vst.msk [vmem:[#allocation2] sm:$0xff] %vm22_vm0, %v280_v29  ;;  %305 = vst.msk [vmem:[#allocation2 + $0x40] sm:$0xff] %vm22_vm0, %v288_v30  ;;  %v283_v35 = vadd.f32 %v564_v31, %v42_v27  ;;  %v291_v36 = vadd.f32 %v572_v32, %v50_v28 }
  0xe8   :  { %v220_v37 = vpop.f32.mrf.mxu0  ;;  %v252_v38 = vpop.f32.mrf.mxu1 }
  0xe9   :  { %300 = vst.msk [vmem:[#allocation2 + $0x18] sm:$0xff] %vm22_vm0, %v283_v35  ;;  %308 = vst.msk [vmem:[#allocation2 + $0x58] sm:$0xff] %vm22_vm0, %v291_v36  ;;  %v281_v41 = vadd.f32 %v220_v37, %v40_v33  ;;  %v289_v42 = vadd.f32 %v252_v38, %v48_v34 }
  0xea   :  { %v567_v44 = vpop.f32.mrf.mxu0  ;;  %v575_v45 = vpop.f32.mrf.mxu1 }
  0xeb   :  { %298 = vst.msk [vmem:[#allocation2 + $0x8] sm:$0xff] %vm22_vm0, %v281_v41  ;;  %306 = vst.msk [vmem:[#allocation2 + $0x48] sm:$0xff] %vm22_vm0, %v289_v42  ;;  %v286_v48 = vadd.f32 %v567_v44, %v45_v39  ;;  %v294_v49 = vadd.f32 %v575_v45, %v53_v40 }
  0xec   :  { %v318_v50 = vld [vmem:[#allocation2 + $0x10] sm:$0xff]  ;;  %v233_v53 = vpop.f32.mrf.mxu0  ;;  %v265_v54 = vpop.f32.mrf.mxu1 }
  0xed   :  { %v326_v52 = vld [vmem:[#allocation2 + $0x50] sm:$0xff]  ;;  %v341_v55 = vmul.f32 %v709_v43, %v318_v50  ;;  %303 = vst.msk [vmem:[#allocation2 + $0x30] sm:$0xff] %vm22_vm0, %v286_v48  ;;  %311 = vst.msk [vmem:[#allocation2 + $0x70] sm:$0xff] %vm22_vm0, %v294_v49  ;;  %v284_v57 = vadd.f32 %v233_v53, %v43_v46  ;;  %v292_v58 = vadd.f32 %v265_v54, %v51_v47 }
  0xee   :  { %v349_v56 = vmul.f32 %v709_v43, %v326_v52  ;;  %v316_v61 = vld [vmem:[#allocation2] sm:$0xff]  ;;  %v568_v63 = vpop.f32.mrf.mxu0  ;;  %v576_v0 = vpop.f32.mrf.mxu1 }
  0xef   :  { %v324_v62 = vld [vmem:[#allocation2 + $0x40] sm:$0xff]  ;;  %v364_v1 = vadd.f32 %v716_v51, %v341_v55  ;;  %v339_v3 = vmul.f32 %v709_v43, %v316_v61  ;;  %301 = vst.msk [vmem:[#allocation2 + $0x20] sm:$0xff] %vm22_vm0, %v284_v57  ;;  %309 = vst.msk [vmem:[#allocation2 + $0x60] sm:$0xff] %vm22_vm0, %v292_v58  ;;  %v287_v9 = vadd.f32 %v568_v63, %v46_v59 }
  0xf0   :  { %v372_v2 = vadd.f32 %v716_v51, %v349_v56  ;;  %v347_v4 = vmul.f32 %v709_v43, %v324_v62  ;;  %v319_v7 = vld [vmem:[#allocation2 + $0x18] sm:$0xff]  ;;  %v295_v10 = vadd.f32 %v576_v0, %v54_v60  ;;  %v236_v11 = vpop.f32.mrf.mxu0  ;;  %v268_v12 = vpop.f32.mrf.mxu1 }
  0xf1   :  { %v327_v8 = vld [vmem:[#allocation2 + $0x58] sm:$0xff]  ;;  %v380_v13 = vmax.f32 %v364_v1, 0.0  ;;  %v362_v15 = vadd.f32 %v716_v51, %v339_v3  ;;  %v342_v17 = vmul.f32 %v709_v43, %v319_v7  ;;  %304 = vst.msk [vmem:[#allocation2 + $0x38] sm:$0xff] %vm22_vm0, %v287_v9  ;;  %v285_v21 = vadd.f32 %v236_v11, %v44_v5 }
  0xf2   :  { %v388_v14 = vmax.f32 %v372_v2, 0.0  ;;  %v370_v16 = vadd.f32 %v716_v51, %v347_v4  ;;  %v350_v18 = vmul.f32 %v709_v43, %v327_v8  ;;  %v317_v19 = vld [vmem:[#allocation2 + $0x8] sm:$0xff]  ;;  %312 = vst.msk [vmem:[#allocation2 + $0x78] sm:$0xff] %vm22_vm0, %v295_v10  ;;  %v293_v22 = vadd.f32 %v268_v12, %v52_v6 }
  0xf3   :  { %v325_v20 = vld [vmem:[#allocation2 + $0x48] sm:$0xff]  ;;  %v515_v23 = vpack.c.bf16 %v380_v13, %v380_v13  ;;  %v378_v25 = vmax.f32 %v362_v15, 0.0  ;;  %v365_v27 = vadd.f32 %v716_v51, %v342_v17  ;;  %v340_v29 = vmul.f32 %v709_v43, %v317_v19  ;;  %302 = vst.msk [vmem:[#allocation2 + $0x28] sm:$0xff] %vm22_vm0, %v285_v21 }
  0xf4   :  { %v523_v24 = vpack.c.bf16 %v388_v14, %v388_v14  ;;  %v386_v26 = vmax.f32 %v370_v16, 0.0  ;;  %v373_v28 = vadd.f32 %v716_v51, %v350_v18  ;;  %v348_v30 = vmul.f32 %v709_v43, %v325_v20  ;;  %v322_v31 = vld [vmem:[#allocation2 + $0x30] sm:$0xff]  ;;  %310 = vst.msk [vmem:[#allocation2 + $0x68] sm:$0xff] %vm22_vm0, %v293_v22 }
  0xf5   :  { %v330_v32 = vld [vmem:[#allocation2 + $0x70] sm:$0xff]  ;;  %461 = vst.msk [vmem:[%s826_s4 + $0x8] sm:$0xf] %vm458_vm1, %v515_v23  ;;  %v513_v33 = vpack.c.bf16 %v378_v25, %v378_v25  ;;  %v345_v35 = vmul.f32 %v709_v43, %v322_v31  ;;  %v381_v37 = vmax.f32 %v365_v27, 0.0  ;;  %v363_v39 = vadd.f32 %v716_v51, %v340_v29 }
  0xf6   :  { %469 = vst.msk [vmem:[%s826_s4 + $0x28] sm:$0xf] %vm458_vm1, %v523_v24  ;;  %v521_v34 = vpack.c.bf16 %v386_v26, %v386_v26  ;;  %v353_v36 = vmul.f32 %v709_v43, %v330_v32  ;;  %v389_v38 = vmax.f32 %v373_v28, 0.0  ;;  %v371_v40 = vadd.f32 %v716_v51, %v348_v30  ;;  %v320_v41 = vld [vmem:[#allocation2 + $0x20] sm:$0xff] }
  0xf7   :  { %v328_v42 = vld [vmem:[#allocation2 + $0x60] sm:$0xff]  ;;  %459 = vst.msk [vmem:[%s826_s4] sm:$0xf] %vm458_vm1, %v513_v33  ;;  %v368_v44 = vadd.f32 %v716_v51, %v345_v35  ;;  %v343_v46 = vmul.f32 %v709_v43, %v320_v41  ;;  %v516_v48 = vpack.c.bf16 %v381_v37, %v381_v37  ;;  %v379_v50 = vmax.f32 %v363_v39, 0.0 }
  0xf8   :  { %467 = vst.msk [vmem:[%s826_s4 + $0x20] sm:$0xf] %vm458_vm1, %v521_v34  ;;  %v376_v45 = vadd.f32 %v716_v51, %v353_v36  ;;  %v351_v47 = vmul.f32 %v709_v43, %v328_v42  ;;  %v524_v49 = vpack.c.bf16 %v389_v38, %v389_v38  ;;  %v387_v52 = vmax.f32 %v371_v40, 0.0  ;;  %v323_v57 = vld [vmem:[#allocation2 + $0x38] sm:$0xff] }
  0xf9   :  { %v384_v53 = vmax.f32 %v368_v44, 0.0  ;;  %v366_v55 = vadd.f32 %v716_v51, %v343_v46  ;;  %v331_v58 = vld [vmem:[#allocation2 + $0x78] sm:$0xff]  ;;  %462 = vst.msk [vmem:[%s826_s4 + $0xc] sm:$0xf] %vm458_vm1, %v516_v48  ;;  %v514_v59 = vpack.c.bf16 %v379_v50, %v379_v50  ;;  %v346_v61 = vmul.f32 %v709_v43, %v323_v57 }
  0xfa   :  { %v392_v54 = vmax.f32 %v376_v45, 0.0  ;;  %v374_v56 = vadd.f32 %v716_v51, %v351_v47  ;;  %470 = vst.msk [vmem:[%s826_s4 + $0x2c] sm:$0xf] %vm458_vm1, %v524_v49  ;;  %v522_v60 = vpack.c.bf16 %v387_v52, %v387_v52  ;;  %v354_v62 = vmul.f32 %v709_v43, %v331_v58  ;;  %v321_v3 = vld [vmem:[#allocation2 + $0x28] sm:$0xff] }
  0xfb   :  { %v519_v63 = vpack.c.bf16 %v384_v53, %v384_v53  ;;  %v382_v1 = vmax.f32 %v366_v55, 0.0  ;;  %v329_v4 = vld [vmem:[#allocation2 + $0x68] sm:$0xff]  ;;  %460 = vst.msk [vmem:[%s826_s4 + $0x4] sm:$0xf] %vm458_vm1, %v514_v59  ;;  %v369_v5 = vadd.f32 %v716_v51, %v346_v61  ;;  %v344_v7 = vmul.f32 %v709_v43, %v321_v3 }
  0xfc   :  { %v527_v0 = vpack.c.bf16 %v392_v54, %v392_v54  ;;  %v390_v2 = vmax.f32 %v374_v56, 0.0  ;;  %468 = vst.msk [vmem:[%s826_s4 + $0x24] sm:$0xf] %vm458_vm1, %v522_v60  ;;  %v377_v6 = vadd.f32 %v716_v51, %v354_v62  ;;  %v352_v8 = vmul.f32 %v709_v43, %v329_v4 }
  0xfd   :  { %465 = vst.msk [vmem:[%s826_s4 + $0x18] sm:$0xf] %vm458_vm1, %v519_v63  ;;  %v517_v9 = vpack.c.bf16 %v382_v1, %v382_v1  ;;  %v385_v11 = vmax.f32 %v369_v5, 0.0  ;;  %v367_v13 = vadd.f32 %v716_v51, %v344_v7 }
  0xfe   :  { %473 = vst.msk [vmem:[%s826_s4 + $0x38] sm:$0xf] %vm458_vm1, %v527_v0  ;;  %v525_v10 = vpack.c.bf16 %v390_v2, %v390_v2  ;;  %v393_v12 = vmax.f32 %v377_v6, 0.0  ;;  %v375_v14 = vadd.f32 %v716_v51, %v352_v8 }
  0xff   :  { %463 = vst.msk [vmem:[%s826_s4 + $0x10] sm:$0xf] %vm458_vm1, %v517_v9  ;;  %v520_v43 = vpack.c.bf16 %v385_v11, %v385_v11  ;;  %v383_v16 = vmax.f32 %v367_v13, 0.0 }
 0x100   :  { %471 = vst.msk [vmem:[%s826_s4 + $0x30] sm:$0xf] %vm458_vm1, %v525_v10  ;;  %v528_v15 = vpack.c.bf16 %v393_v12, %v393_v12  ;;  %v391_v17 = vmax.f32 %v375_v14, 0.0 }
 0x101   :  { %466 = vst.msk [vmem:[%s826_s4 + $0x1c] sm:$0xf] %vm458_vm1, %v520_v43  ;;  %v518_v51 = vpack.c.bf16 %v383_v16, %v383_v16 }
 0x102   :  { %474 = vst.msk [vmem:[%s826_s4 + $0x3c] sm:$0xf] %vm458_vm1, %v528_v15  ;;  %v526_v18 = vpack.c.bf16 %v391_v17, %v391_v17 }
 0x103   :  { %464 = vst.msk [vmem:[%s826_s4 + $0x14] sm:$0xf] %vm458_vm1, %v518_v51 }
 0x104   :  { %472 = vst.msk [vmem:[%s826_s4 + $0x34] sm:$0xf] %vm458_vm1, %v526_v18 }

// kernel: resblock_forward.10
= control target key start
LH: loop header
LB: loop body
LE: loop exit
PB: predicated region body
PF: predicated region fallthrough
CT: control target
= control target key end

     0   :  { %s462_s9 = smov 0   ;;  %s464_s10 = smov 0   ;;  %s535_s0 = inlined_call_operand.vmem [shape: f32[2,4,4,4,16], index: 0, kind: input, shape index: {}]   ;;  %s536_s1 = inlined_call_operand.vmem [shape: f32[2,1,16], index: 1, kind: input, shape index: {}]   ;;  %s537_s2 = inlined_call_operand.vmem [shape: f32[2,4,4,4,2], index: 2, kind: output, shape index: {}]  }
   0x1   :  { %s466_s11 = smov 0   ;;  %s468_s12 = smov 0  }
   0x2   :  { %s470_s13 = smov 0  }
   0x3 LB: > { %s21_s14 = sadd.s32 1, %s437_s11  ;;  %s24_s15 = sadd.s32 1, %s441_s12  ;;  %s445_s13 = sphi %s470_s13, %s12_s13   ;;  %s441_s12 = sphi %s468_s12, %s541_s12   ;;  %s437_s11 = sphi %s466_s11, %s540_s11   ;;  %s433_s10 = sphi %s464_s10, %s539_s10   ;;  %s429_s9 = sphi %s462_s9, %s538_s9  }
   0x4   : > { %p22_p0 = scmp.ge.s32.totalorder %s21_s14, 4  ;;  %p357_p1 = scmp.ge.s32.totalorder %s445_s13, 1 }
   0x5   : > { %p140_p2 = scmp.lt.s32.totalorder %s445_s13, 9 }
   0x6   : > { %s543_s14 = smov (%p22_p0, %s21_s14), 0  ;;  %s545_s15 = smov (!%p22_p0, %s24_s15), %s441_s12 }
   0x7   : > { %p141_p3 = pnand %p357_p1, %p140_p2  ;;  %p26_p4 = scmp.ge.s32.totalorder %s545_s15, 2 }
   0x8   : > { %p173_p5 = scmp.lt.s32.totalorder (!%p141_p3), %s433_s10, 1  ;;  %p175_p6 = scmp.lt.s32.totalorder (!%p141_p3), %s429_s9, 3 }
   0x9   : > { %s547_s15 = smov (%p26_p4, %s545_s15), 0  ;;  %144 = sbr.rel (%p141_p3) target bundleno = 176 (0xb0), region = 28 }
   0xe   : > { %s549_s10 = smov (!%p173_p5, %s433_s10), 1  ;;  %s551_s9 = smov (!%p175_p6, %s429_s9), 3  ;;  %vm209_vm0 = vcmask 125952   ;;  %vm239_vm1 = vcmask 7168   ;;  %vm244_vm2 = vcmask 11264  }
   0xf   : > { %s359_s16 = sshll.u32 %s549_s10, 4  ;;  %s184_s19 = scalar_lea.vmem %s536_s1, %s549_s10 }
  0x10   : > { %s358_s20 = sshll.u32 %s551_s9, 2  ;;  %v364_v0 = vld [vmem:[%s184_s19] ss:$0 sm:$0xff] }
  0x11   : > { %s495_s21 = sadd.s32 %s359_s16, %s358_s20 }
  0x12   : > { %s360_s22 = sshll.u32 %s495_s21, 2 }
  0x13   : > { %s181_s25 = scalar_lea.vmem %s535_s0, %s360_s22  ;;  %s193_s28 = scalar_lea.vmem %s537_s2, %s360_s22 }
  0x14   : > { %v196_v1 = vld [vmem:[%s181_s25 + $0x8] sm:$0xf]  ;;  %v194_v2 = vld [vmem:[%s181_s25] sm:$0xf]  ;;  %v197_v3 = vld [vmem:[%s181_s25 + $0xc] sm:$0xf] }
  0x15   : > { %v207_v4 = vmul.f32 %v364_v0, %v196_v1  ;;  %v205_v5 = vmul.f32 %v364_v0, %v194_v2  ;;  %v208_v6 = vmul.f32 %v364_v0, %v197_v3  ;;  %v195_v7 = vld [vmem:[%s181_s25 + $0x4] sm:$0xf] }
  0x16   : > { %v206_v8 = vmul.f32 %v364_v0, %v195_v7 }
  0x17   : > { %v228_v9 = vsel %vm209_vm0, %v207_v4, 0.0  ;;  %v222_v10 = vsel %vm209_vm0, %v205_v5, 0.0  ;;  %v231_v11 = vsel %vm209_vm0, %v208_v6, 0.0  ;;  %v210_v14 = vsel %vm209_vm0, %v205_v5, -inf }
  0x18   : > { %229 = vadd.xlane.f32.xlu1 %v228_v9  ;;  %223 = vadd.xlane.f32.xlu0 %v222_v10  ;;  %v225_v12 = vsel %vm209_vm0, %v206_v8, 0.0  ;;  %v213_v13 = vsel %vm209_vm0, %v206_v8, -inf  ;;  %v219_v15 = vsel %vm209_vm0, %v208_v6, -inf  ;;  %v216_v16 = vsel %vm209_vm0, %v207_v4, -inf }
  0x1c   : > { %232 = vadd.xlane.f32.xlu1 %v231_v11  ;;  %226 = vadd.xlane.f32.xlu0 %v225_v12 }
  0x20   : > { %214 = vmax.xlane.f32.xlu1 %v213_v13  ;;  %211 = vmax.xlane.f32.xlu0 %v210_v14 }
  0x24   : > { %220 = vmax.xlane.f32.xlu1 %v219_v15  ;;  %217 = vmax.xlane.f32.xlu0 %v216_v16 }
  0xa1   : > { %v230_v17 = vpop.xlane.xlu1 %229  ;;  %v224_v18 = vpop.xlane.xlu0 %223 }
  0xa2   : > { %v235_v21 = vmul.f32 0.0625, %v224_v18  ;;  %v237_v27 = vmul.f32 0.0625, %v230_v17 }
  0xa5   : > { %v233_v19 = vpop.xlane.xlu1 %232  ;;  %v227_v20 = vpop.xlane.xlu0 %226 }
  0xa6   : > { %v236_v22 = vmul.f32 0.0625, %v227_v20  ;;  %v238_v28 = vmul.f32 0.0625, %v233_v19 }
  0xa9   : > { %v215_v23 = vpop.xlane.xlu1 %214  ;;  %v212_v24 = vpop.xlane.xlu0 %211 }
  0xaa   : > { %v241_v25 = vsel %vm239_vm1, %v215_v23, %v236_v22  ;;  %v240_v26 = vsel %vm239_vm1, %v212_v24, %v235_v21 }
  0xab   : > { %246 = vst.msk [vmem:[%s193_s28 + $0x4] sm:$0xf] %vm244_vm2, %v241_v25  ;;  %245 = vst.msk [vmem:[%s193_s28] sm:$0xf] %vm244_vm2, %v240_v26 }
  0xad   : > { %v221_v29 = vpop.xlane.xlu1 %220  ;;  %v218_v30 = vpop.xlane.xlu0 %217 }
  0xae   : > { %v243_v31 = vsel %vm239_vm1, %v221_v29, %v238_v28  ;;  %v242_v32 = vsel %vm239_vm1, %v218_v30, %v237_v27 }
  0xaf   : > { %248 = vst.msk [vmem:[%s193_s28 + $0xc] sm:$0xf] %vm244_vm2, %v243_v31  ;;  %247 = vst.msk [vmem:[%s193_s28 + $0x8] sm:$0xf] %vm244_vm2, %v242_v32 }
  0xb0 PF: > { %s12_s13 = sadd.s32 1, %s445_s13   ;;  %s538_s9 = smov %s437_s11 }
  0xb1   : > { %p9_p7 = scmp.ge.s32.totalorder %s12_s13, 10   ;;  %s539_s10 = smov %s441_s12 }
  0xb2   : > { %s540_s11 = smov %s543_s14  ;;  %s541_s12 = smov %s547_s15 }
  0xb3   :  { %11 = sbr.rel (!%p9_p7) target bundleno = 3 (0x3), region = 61 }

// kernel: resblock_forward.9
= control target key start
LH: loop header
LB: loop body
LE: loop exit
PB: predicated region body
PF: predicated region fallthrough
CT: control target
= control target key end

     0   :  { %s3442_s21 = smov 0   ;;  %s3444_s22 = smov 0   ;;  %s3796_s0 = inlined_call_operand.vmem [shape: bf16[2,6,6,6,16], index: 0, kind: input, shape index: {}]   ;;  %s3797_s1 = inlined_call_operand.vmem [shape: bf16[3,3,3,16,16], index: 1, kind: input, shape index: {}]   ;;  %s3798_s2 = inlined_call_operand.vmem [shape: f32[1,16], index: 2, kind: input, shape index: {}]   ;;  %s3799_s3 = inlined_call_operand.vmem [shape: f32[1,16], index: 3, kind: input, shape index: {}]   ;;  %s3800_s4 = inlined_call_operand.vmem [shape: f32[2,4,4,4,16], index: 4, kind: output, shape index: {0}]   ;;  %s3801_s5 = inlined_call_operand.vmem [shape: f32[2,4,1,16], index: 5, kind: output, shape index: {1}]   ;;  %s3802_s6 = inlined_call_operand.vmem [shape: f32[2,4,1,16], index: 6, kind: output, shape index: {2}]  }
   0x1   :  { %3803 = sst [smem:[#allocation5_spill]] %s3796_s0  ;;  %s3446_s23 = smov 0  }
   0x2   :  { %s3448_s24 = smov 0   ;;  %s3450_s25 = smov 0  }
   0x3   :  { %s3452_s26 = smov 0   ;;  %s3454_s27 = smov 0  }
   0x4 LB: > { %s29_s28 = sadd.s32 1, %s3390_s24  ;;  %s32_s29 = sadd.s32 1, %s3394_s25  ;;  %s3402_s27 = sphi %s3454_s27, %s17_s27   ;;  %s3398_s26 = sphi %s3452_s26, %s3814_s26   ;;  %s3394_s25 = sphi %s3450_s25, %s3813_s25   ;;  %s3390_s24 = sphi %s3448_s24, %s3812_s24   ;;  %s3386_s23 = sphi %s3446_s23, %s3811_s23   ;;  %s3382_s22 = sphi %s3444_s22, %s3810_s22   ;;  %s3378_s21 = sphi %s3442_s21, %s3809_s21  }
   0x5   : > { %p30_p0 = scmp.ge.s32.totalorder %s29_s28, 3  ;;  %p2731_p1 = scmp.ge.s32.totalorder %s3402_s27, 1 }
   0x6   : > { %p262_p2 = scmp.lt.s32.totalorder %s3402_s27, 25  ;;  %s36_s30 = sadd.s32 1, %s3398_s26 }
   0x7   : > { %s3816_s28 = smov (%p30_p0, %s29_s28), 0  ;;  %s3818_s29 = smov (!%p30_p0, %s32_s29), %s3394_s25 }
   0x8   : > { %p263_p3 = pnand %p2731_p1, %p262_p2  ;;  %p34_p4 = scmp.ge.s32.totalorder %s3818_s29, 4 }
   0x9   : > { %s320_s7 = sadd.s32 (!%p263_p3), %s3378_s21, %s3382_s22  ;;  %p321_p6 = scmp.lt.s32.totalorder (!%p263_p3), %s3386_s23, 1 }
   0xa   : > { %s3820_s29 = smov (%p34_p4, %s3818_s29), 0  ;;  %s3822_s30 = smov (!%p34_p4, %s36_s30), %s3398_s26 }
   0xb   : > { %3804 = sst [smem:[#allocation3_spill]] %s3820_s29  ;;  %p38_p5 = scmp.ge.s32.totalorder %s3822_s30, 2 }
   0xc   : > { %266 = sbr.rel (%p263_p3) target bundleno = 410 (0x19a), region = 36  ;;  %p323_p7 = scmp.lt.s32.totalorder (!%p263_p3), %s320_s7, 5 }
   0xd   : > { %s3824_s30 = smov (%p38_p5, %s3822_s30), 0  ;;  %p331_p8 = scmp.lt.s32.totalorder (!%p263_p3), %s3378_s21, 2 }
   0xe   : > { %3805 = sst [smem:[#allocation4_spill]] %s3824_s30  ;;  %p338_p9 = scmp.lt.s32.totalorder (!%p263_p3), %s3382_s22, 3 }
   0xf   : > { %s3806_s0 = sld [smem:[#allocation5_spill]] (!%p263_p3)  ;;  %p2739_p10 = scmp.ne.s32.totalorder (!%p263_p3), %s3378_s21, 0 }
  0x11   : > { %s3826_s23 = smov (!%p321_p6, %s3386_s23), 1  ;;  %s3828_s7 = smov (!%p323_p7, %s320_s7), 5 }
  0x12   : > { %s3227_s8 = smul.u32 36, %s3826_s23  ;;  %s2735_s17 = sshll.u32 %s3826_s23, 4 }
  0x13   : > { %s3226_s9 = smul.u32 6, %s3828_s7  ;;  %s2737_s30 = sshll.u32 %s3826_s23, 2 }
  0x14   : > { %s332_s10 = scalar_select %p331_p8, %s3378_s21, 2 }
  0x15   : > { %s327_s11 = sadd.s32 %s3227_s8, %s3226_s9  ;;  %s3830_s22 = smov (!%p338_p9, %s3382_s22), 3 }
  0x16   : > { %s2732_s12 = sshll.u32 %s327_s11, 2  ;;  %s3228_s13 = smul.u32 72, %s332_s10 }
  0x17   : > { %s3496_s16 = scalar_lea.vmem %s3806_s0, %s2732_s12  ;;  %s2734_s29 = sshll.u32 %s3830_s22, 2 }
  0x18   : > { %s3501_s20 = scalar_lea.vmem %s3797_s1, %s3228_s13  ;;  %s3504_s7 = sadd.s32 %s2737_s30, %s3830_s22 }
  0x19   : > { %s342_s8 = sadd.s32 %s2735_s17, %s2734_s29  ;;  %s351_s11 = scalar_lea.vmem %s3801_s5, %s3504_s7 }
  0x1a   : > { %s2736_s12 = sshll.u32 %s342_s8, 2  ;;  %s358_s0 = scalar_lea.vmem %s3802_s6, %s3504_s7 }
  0x1b   : > { %s3517_s23 = scalar_lea.vmem %s3800_s4, %s2736_s12  ;;  %363 = sbr.rel (%p2739_p10) target bundleno = 35 (0x23), region = 40 }
  0x20   : > { %vm364_vm0 = vcmask 125952   ;;  %v3404_v0 = vmov 0.0  }
  0x21   : > { %365 = vst.msk [vmem:[#allocation2] sm:$0xf] %vm364_vm0, %v3404_v0  ;;  %366 = vst.msk [vmem:[#allocation2 + $0x4] sm:$0xf] %vm364_vm0, %v3404_v0 }
  0x22   : > { %367 = vst.msk [vmem:[#allocation2 + $0x8] sm:$0xf] %vm364_vm0, %v3404_v0  ;;  %368 = vst.msk [vmem:[#allocation2 + $0xc] sm:$0xf] %vm364_vm0, %v3404_v0 }
  0x23 PF: > { %v3288_v1 = vld [vmem:[%s3501_s20] sm:$0xff]   ;;  %v3405_v2 = vmov 0.0   ;;  %v3289_v3 = vld [vmem:[%s3501_s20 + $0x8] sm:$0xff]   ;;  %vm3406_vm1 = vmmov 0   ;;  %vm392_vm2 = vcmask 130048   ;;  %v3292_v6 = vld [vmem:[%s3501_s20 + $0x18] sm:$0xff]  }
  0x24   : > { %3016 = vmatprep.subr.bf16.mxu1 %v3405_v2  ;;  %3010 = vmatprep.subr.bf16.mxu0 %v3405_v2  ;;  %v369_v4 = vld [vmem:[%s3496_s16] sm:$0x3]  ;;  %v3291_v10 = vld [vmem:[%s3501_s20 + $0x10] sm:$0xff]   ;;  %v2752_v11 = vld [vmem:[%s3496_s16 + $0x4] sm:$0x3]  ;;  %vm899_vm3 = vcmask 125952  }
  0x25   : > { %3017 = vmatpush3.bf16.msra.mxu1 %v3288_v1  ;;  %3018 = vmatprep.mubr.msk.bf16.mxu1 %vm3406_vm1, %v3405_v2  ;;  %v3290_v5 = vld [vmem:[%s3496_s16] ss:$0 sps:$4 sm:$0x77]   ;;  %v3295_v14 = vld [vmem:[%s3501_s20 + $0x28] sm:$0xff]   ;;  %v3299_v23 = vld [vmem:[%s3501_s20 + $0x38] sm:$0xff]   ;;  %p2933_p11 = scmp.ne.s32.totalorder %s3378_s21, 2 }
  0x26   : > { %3011 = vmatpush3.bf16.msra.mxu0 %v3289_v3  ;;  %3012 = vmatprep.mubr.msk.bf16.mxu0 %vm3406_vm1, %v3405_v2  ;;  %v380_v7 = vshrl.u32 %v3290_v5, 16  ;;  %v382_v8 = vshll.u32 %v3290_v5, 16  ;;  %v3293_v13 = vld [vmem:[%s3496_s16] ss:$0 sps:$4 sm:$0x66]   ;;  %v3298_v30 = vld [vmem:[%s3501_s20 + $0x30] sm:$0xff]  }
  0x27   : > { %3022 = vmatprep.subr.bf16.mxu0 %v3405_v2  ;;  %3028 = vmatprep.subr.bf16.mxu1 %v3405_v2  ;;  %v3297_v15 = vld [vmem:[%s3496_s16 + $0x4] ss:$0 sps:$4 sm:$0x77]   ;;  %v3300_v17 = vld [vmem:[%s3496_s16 + $0x8] ss:$0 sps:$4 sm:$0x77]  }
  0x28   : > { %3019 = vmatmul.mubr.msk.bf16.vlgmr.msra.gmra.mxu1 %vm392_vm2, %v369_v4  ;;  %v384_v9 = vrot.slane %v382_v8, 1  ;;  %v3296_v16 = vld [vmem:[%s3496_s16 + $0x4] ss:$0 sps:$4 sm:$0x66]   ;;  %v492_v18 = vrot.slane %v3293_v13, 1  ;;  %v608_v19 = vshll.u32 %v3297_v15, 16 }
  0x29   : > { %3029 = vmatpush3.bf16.msra.mxu1 %v3292_v6  ;;  %3030 = vmatprep.mubr.msk.bf16.mxu1 %vm3406_vm1, %v3405_v2  ;;  %v3294_v20 = vld [vmem:[%s3501_s20 + $0x20] sm:$0xff]   ;;  %v669_v21 = vrot.slane %v3296_v16, 1  ;;  %v785_v22 = vshll.u32 %v3300_v17, 16  ;;  %v606_v24 = vshrl.u32 %v3297_v15, 16  ;;  %v783_v27 = vshrl.u32 %v3300_v17, 16  ;;  %v3302_v33 = vld [vmem:[%s3501_s20 + $0x8] sm:$0xff]  }
  0x2a   : > { %3040 = vmatprep.subr.bf16.mxu1 %v3405_v2  ;;  %v385_v12 = vor.u32 %v384_v9, %v380_v7  ;;  %v610_v25 = vrot.slane %v608_v19, 1  ;;  %v3303_v26 = vld [vmem:[%s3496_s16 + $0x4] ss:$0 sps:$4 sm:$0x77]   ;;  %v2769_v36 = vld [vmem:[%s3496_s16 + $0x8] sm:$0x3] }
  0x2b   : > { %v787_v28 = vrot.slane %v785_v22, 1  ;;  %v913_v32 = vshll.u32 %v3303_v26, 16  ;;  %v911_v34 = vshrl.u32 %v3303_v26, 16  ;;  %v3301_v37 = vld [vmem:[%s3501_s20 + $0x40] sm:$0xff]   ;;  %v3306_v40 = vld [vmem:[%s3501_s20 + $0x10] sm:$0xff]   ;;  %v3308_v51 = vld [vmem:[%s3501_s20 + $0x18] sm:$0xff]  }
  0x2c   : > { %3013 = vmatmul.mubr.msk.bf16.vlgmr.msra.gmra.mxu0 %vm392_vm2, %v385_v12  ;;  %v611_v29 = vor.u32 %v610_v25, %v606_v24  ;;  %v3304_v39 = vld [vmem:[%s3496_s16 + $0x8] ss:$0 sps:$4 sm:$0x66]   ;;  %v3307_v41 = vld [vmem:[%s3496_s16 + $0x4] ss:$0 sps:$4 sm:$0x66]  }
  0x2d   : > { %3023 = vmatpush3.bf16.msra.mxu0 %v3291_v10  ;;  %3024 = vmatprep.mubr.msk.bf16.mxu0 %vm3406_vm1, %v3405_v2  ;;  %v788_v31 = vor.u32 %v787_v28, %v783_v27  ;;  %v915_v35 = vrot.slane %v913_v32, 1  ;;  %v3310_v42 = vld [vmem:[%s3496_s16 + $0x8] ss:$0 sps:$4 sm:$0x77]   ;;  %v846_v43 = vrot.slane %v3304_v39, 1  ;;  %v3305_v44 = vld [vmem:[%s3501_s20] sm:$0xff]  }
  0x2e   : > { %3034 = vmatprep.subr.bf16.mxu0 %v3405_v2  ;;  %v1021_v45 = vrot.slane %v3307_v41, 1  ;;  %v1134_v46 = vshll.u32 %v3310_v42, 16  ;;  %v3309_v47 = vld [vmem:[%s3501_s20 + $0x20] sm:$0xff]   ;;  %v1132_v48 = vshrl.u32 %v3310_v42, 16  ;;  %v3312_v53 = vld [vmem:[%s3501_s20 + $0x30] sm:$0xff]   ;;  %v3311_v55 = vld [vmem:[%s3501_s20 + $0x28] sm:$0xff]  }
  0x2f   : > { %v916_v38 = vor.u32 %v915_v35, %v911_v34  ;;  %v2786_v50 = vld [vmem:[%s3496_s16 + $0x4] sm:$0x3]  ;;  %v2801_v54 = vld [vmem:[%s3496_s16 + $0x8] sm:$0x3]  ;;  %v2818_v56 = vld [vmem:[%s3496_s16 + $0xc] sm:$0x3] }
  0x30   : > { %3031 = vmatmul.mubr.msk.bf16.vlgmr.msra.gmra.mxu1 %vm392_vm2, %v2752_v11  ;;  %v1136_v49 = vrot.slane %v1134_v46, 1  ;;  %v3313_v57 = vld [vmem:[%s3496_s16 + $0x8] ss:$0 sps:$4 sm:$0x66]   ;;  %v3315_v58 = vld [vmem:[%s3501_s20 + $0x40] sm:$0xff]   ;;  %v3314_v63 = vld [vmem:[%s3501_s20 + $0x38] sm:$0xff]  }
  0x31   : > { %3041 = vmatpush3.bf16.msra.mxu1 %v3295_v14  ;;  %3042 = vmatprep.mubr.msk.bf16.mxu1 %vm3406_vm1, %v3405_v2  ;;  %v3317_v59 = vld [vmem:[%s3496_s16 + $0xc] ss:$0 sps:$4 sm:$0x77]   ;;  %v1194_v61 = vrot.slane %v3313_v57, 1  ;;  %v3319_v1 = vld [vmem:[%s3501_s20] sm:$0xff]   ;;  %v3322_v10 = vld [vmem:[%s3501_s20 + $0x18] sm:$0xff]  }
  0x32   : > { %3052 = vmatprep.subr.bf16.mxu1 %v3405_v2  ;;  %v1137_v52 = vor.u32 %v1136_v49, %v1132_v48  ;;  %v3316_v60 = vld [vmem:[%s3496_s16 + $0xc] ss:$0 sps:$4 sm:$0x66]   ;;  %v1308_v62 = vshll.u32 %v3317_v59, 16  ;;  %v1306_v3 = vshrl.u32 %v3317_v59, 16  ;;  %v3321_v14 = vld [vmem:[%s3501_s20 + $0x10] sm:$0xff]  }
  0x33   : > { %v1368_v0 = vrot.slane %v3316_v60, 1  ;;  %v3320_v5 = vld [vmem:[%s3496_s16 + $0x8] ss:$0 sps:$4 sm:$0x77]   ;;  %v2850_v15 = vld [vmem:[%s3496_s16 + $0xc] sm:$0x3] }
  0x34   : > { %3025 = vmatmul.mubr.msk.bf16.vlgmr.msra.gmra.mxu0 %vm392_vm2, %v492_v18  ;;  %v1310_v4 = vrot.slane %v1308_v62, 1  ;;  %v1435_v7 = vshll.u32 %v3320_v5, 16  ;;  %v3318_v8 = vld [vmem:[%s3501_s20 + $0x8] sm:$0xff]   ;;  %v1433_v11 = vshrl.u32 %v3320_v5, 16  ;;  %v3329_v26 = vld [vmem:[%s3501_s20 + $0x38] sm:$0xff]   ;;  %v3336_v42 = vld [vmem:[%s3501_s20 + $0x10] sm:$0xff]  }
  0x35   : > { %3035 = vmatpush3.bf16.msra.mxu0 %v3294_v20  ;;  %3036 = vmatprep.mubr.msk.bf16.mxu0 %vm3406_vm1, %v3405_v2  ;;  %v2835_v9 = vld [vmem:[%s3496_s16 + $0x8] sm:$0x3]  ;;  %v3327_v18 = vld [vmem:[%s3496_s16 + $0xc] ss:$0 sps:$4 sm:$0x77]   ;;  %v3345_v60 = vld [vmem:[%s3501_s20 + $0x40] sm:$0xff]  }
  0x36   : > { %3046 = vmatprep.subr.bf16.mxu0 %v3405_v2  ;;  %v1311_v6 = vor.u32 %v1310_v4, %v1306_v3  ;;  %v1437_v12 = vrot.slane %v1435_v7, 1  ;;  %v3325_v16 = vld [vmem:[%s3501_s20 + $0x28] sm:$0xff]   ;;  %v3330_v20 = vld [vmem:[%s3496_s16 + $0x10] ss:$0 sps:$4 sm:$0x77]   ;;  %v1656_v22 = vshll.u32 %v3327_v18, 16 }
  0x37   : > { %v3323_v17 = vld [vmem:[%s3496_s16 + $0x8] ss:$0 sps:$4 sm:$0x66]   ;;  %v3326_v19 = vld [vmem:[%s3496_s16 + $0xc] ss:$0 sps:$4 sm:$0x66]  }
  0x38   : > { %3043 = vmatmul.mubr.msk.bf16.vlgmr.msra.gmra.mxu1 %vm392_vm2, %v669_v21  ;;  %v1438_v13 = vor.u32 %v1437_v12, %v1433_v11  ;;  %v1543_v21 = vrot.slane %v3323_v17, 1  ;;  %v1716_v24 = vrot.slane %v3326_v19, 1  ;;  %v1830_v25 = vshll.u32 %v3330_v20, 16  ;;  %v2867_v39 = vld [vmem:[%s3496_s16 + $0x10] sm:$0x3]  ;;  %v3344_v3 = vld [vmem:[%s3501_s20 + $0x38] sm:$0xff]  }
  0x39   : > { %3053 = vmatpush3.bf16.msra.mxu1 %v3299_v23  ;;  %3054 = vmatprep.mubr.msk.bf16.mxu1 %vm3406_vm1, %v3405_v2  ;;  %v3324_v23 = vld [vmem:[%s3501_s20 + $0x20] sm:$0xff]   ;;  %v1654_v27 = vshrl.u32 %v3327_v18, 16  ;;  %v1658_v28 = vrot.slane %v1656_v22, 1  ;;  %v2899_v57 = vld [vmem:[%s3496_s16 + $0x10] sm:$0x3] }
  0x3a   : > { %3064 = vmatprep.subr.bf16.mxu1 %v3405_v2  ;;  %v2916_v59 = vld [vmem:[%s3496_s16 + $0x14] sm:$0x3] }
  0x3b   : > { %v1659_v32 = vor.u32 %v1658_v28, %v1654_v27  ;;  %v3347_v62 = vld [vmem:[%s3496_s16 + $0x14] ss:$0 sps:$4 sm:$0x77]  }
  0x3c   : > { %3037 = vmatmul.mubr.msk.bf16.vlgmr.msra.gmra.mxu0 %vm392_vm2, %v611_v29  ;;  %v1828_v29 = vshrl.u32 %v3330_v20, 16  ;;  %v2350_v5 = vshrl.u32 %v3347_v62, 16 }
  0x3d   : > { %3047 = vmatpush3.bf16.msra.mxu0 %v3298_v30  ;;  %3048 = vmatprep.mubr.msk.bf16.mxu0 %vm3406_vm1, %v3405_v2  ;;  %v1832_v30 = vrot.slane %v1830_v25, 1 }
  0x3e   : > { %3058 = vmatprep.subr.bf16.mxu0 %v3405_v2 }
  0x3f   : > { %v1833_v34 = vor.u32 %v1832_v30, %v1828_v29 }
  0x40   : > { %3055 = vmatmul.mubr.msk.bf16.vlgmr.msra.gmra.mxu1 %vm392_vm2, %v788_v31  ;;  %v3333_v31 = vld [vmem:[%s3496_s16 + $0xc] ss:$0 sps:$4 sm:$0x77]  }
  0x41   : > { %3065 = vmatpush3.bf16.msra.mxu1 %v3302_v33  ;;  %3066 = vmatprep.mubr.msk.bf16.mxu1 %vm3406_vm1, %v3405_v2  ;;  %v3328_v33 = vld [vmem:[%s3501_s20 + $0x30] sm:$0xff]   ;;  %v1957_v35 = vshll.u32 %v3333_v31, 16 }
  0x42   : > { %3076 = vmatprep.subr.bf16.mxu1 %v3405_v2 }
  0x44   : > { %3049 = vmatmul.mubr.msk.bf16.vlgmr.msra.gmra.mxu0 %vm392_vm2, %v2769_v36  ;;  %v3332_v36 = vld [vmem:[%s3501_s20 + $0x8] sm:$0xff]  }
  0x45   : > { %3059 = vmatpush3.bf16.msra.mxu0 %v3301_v37  ;;  %3060 = vmatprep.mubr.msk.bf16.mxu0 %vm3406_vm1, %v3405_v2  ;;  %v1955_v37 = vshrl.u32 %v3333_v31, 16 }
  0x46   : > { %3070 = vmatprep.subr.bf16.mxu0 %v3405_v2 }
  0x48   : > { %3067 = vmatmul.mubr.msk.bf16.vlgmr.msra.gmra.mxu1 %vm392_vm2, %v916_v38  ;;  %v1959_v38 = vrot.slane %v1957_v35, 1 }
  0x49   : > { %3077 = vmatpush3.bf16.msra.mxu1 %v3306_v40  ;;  %3078 = vmatprep.mubr.msk.bf16.mxu1 %vm3406_vm1, %v3405_v2  ;;  %v3331_v40 = vld [vmem:[%s3501_s20 + $0x40] sm:$0xff]  }
  0x4a   : > { %3088 = vmatprep.subr.bf16.mxu1 %v3405_v2  ;;  %v1960_v41 = vor.u32 %v1959_v38, %v1955_v37 }
  0x4c   : > { %3061 = vmatmul.mubr.msk.bf16.vlgmr.msra.gmra.mxu0 %vm392_vm2, %v846_v43  ;;  %v3334_v43 = vld [vmem:[%s3496_s16 + $0x10] ss:$0 sps:$4 sm:$0x66]  }
  0x4d   : > { %3071 = vmatpush3.bf16.msra.mxu0 %v3305_v44  ;;  %3072 = vmatprep.mubr.msk.bf16.mxu0 %vm3406_vm1, %v3405_v2  ;;  %v3337_v44 = vld [vmem:[%s3496_s16 + $0xc] ss:$0 sps:$4 sm:$0x66]   ;;  %v1890_v46 = vrot.slane %v3334_v43, 1 }
  0x4e   : > { %3082 = vmatprep.subr.bf16.mxu0 %v3405_v2  ;;  %v2065_v48 = vrot.slane %v3337_v44, 1 }
  0x50   : > { %3079 = vmatmul.mubr.msk.bf16.vlgmr.msra.gmra.mxu1 %vm392_vm2, %v1021_v45  ;;  %v3340_v45 = vld [vmem:[%s3496_s16 + $0x10] ss:$0 sps:$4 sm:$0x77]  }
  0x51   : > { %3089 = vmatpush3.bf16.msra.mxu1 %v3309_v47  ;;  %3090 = vmatprep.mubr.msk.bf16.mxu1 %vm3406_vm1, %v3405_v2  ;;  %v3335_v47 = vld [vmem:[%s3501_s20] sm:$0xff]   ;;  %v2178_v49 = vshll.u32 %v3340_v45, 16 }
  0x52   : > { %3100 = vmatprep.subr.bf16.mxu1 %v3405_v2 }
  0x54   : > { %3073 = vmatmul.mubr.msk.bf16.vlgmr.msra.gmra.mxu0 %vm392_vm2, %v2786_v50  ;;  %v3339_v50 = vld [vmem:[%s3501_s20 + $0x20] sm:$0xff]  }
  0x55   : > { %3083 = vmatpush3.bf16.msra.mxu0 %v3308_v51  ;;  %3084 = vmatprep.mubr.msk.bf16.mxu0 %vm3406_vm1, %v3405_v2  ;;  %v2176_v51 = vshrl.u32 %v3340_v45, 16 }
  0x56   : > { %3094 = vmatprep.subr.bf16.mxu0 %v3405_v2 }
  0x58   : > { %3091 = vmatmul.mubr.msk.bf16.vlgmr.msra.gmra.mxu1 %vm392_vm2, %v1137_v52  ;;  %v2180_v52 = vrot.slane %v2178_v49, 1 }
  0x59   : > { %3101 = vmatpush3.bf16.msra.mxu1 %v3312_v53  ;;  %3102 = vmatprep.mubr.msk.bf16.mxu1 %vm3406_vm1, %v3405_v2  ;;  %v2884_v53 = vld [vmem:[%s3496_s16 + $0xc] sm:$0x3] }
  0x5a   : > { %3112 = vmatprep.subr.bf16.mxu1 %v3405_v2 }
  0x5c   : > { %3085 = vmatmul.mubr.msk.bf16.vlgmr.msra.gmra.mxu0 %vm392_vm2, %v2801_v54  ;;  %v3338_v54 = vld [vmem:[%s3501_s20 + $0x18] sm:$0xff]  }
  0x5d   : > { %3095 = vmatpush3.bf16.msra.mxu0 %v3311_v55  ;;  %3096 = vmatprep.mubr.msk.bf16.mxu0 %vm3406_vm1, %v3405_v2  ;;  %v2181_v55 = vor.u32 %v2180_v52, %v2176_v51 }
  0x5e   : > { %3106 = vmatprep.subr.bf16.mxu0 %v3405_v2 }
  0x60   : > { %3103 = vmatmul.mubr.msk.bf16.vlgmr.msra.gmra.mxu1 %vm392_vm2, %v2818_v56  ;;  %v3342_v56 = vld [vmem:[%s3501_s20 + $0x30] sm:$0xff]  }
  0x61   : > { %3113 = vmatpush3.bf16.msra.mxu1 %v3315_v58  ;;  %3114 = vmatprep.mubr.msk.bf16.mxu1 %vm3406_vm1, %v3405_v2  ;;  %v3341_v58 = vld [vmem:[%s3501_s20 + $0x28] sm:$0xff]  }
  0x62   : > { %3124 = vmatprep.subr.bf16.mxu1 %v3405_v2 }
  0x64   : > { %3097 = vmatmul.mubr.msk.bf16.vlgmr.msra.gmra.mxu0 %vm392_vm2, %v1194_v61  ;;  %v3343_v61 = vld [vmem:[%s3496_s16 + $0x10] ss:$0 sps:$4 sm:$0x66]  }
  0x65   : > { %3107 = vmatpush3.bf16.msra.mxu0 %v3314_v63  ;;  %3108 = vmatprep.mubr.msk.bf16.mxu0 %vm3406_vm1, %v3405_v2  ;;  %v3346_v63 = vld [vmem:[%s3496_s16 + $0x14] ss:$0 sps:$4 sm:$0x66]  }
  0x66   : > { %3118 = vmatprep.subr.bf16.mxu0 %v3405_v2  ;;  %v2412_v4 = vrot.slane %v3346_v63, 1 }
  0x68   : > { %3115 = vmatmul.mubr.msk.bf16.vlgmr.msra.gmra.mxu1 %vm392_vm2, %v1368_v0  ;;  %v2238_v0 = vrot.slane %v3343_v61, 1 }
  0x69   : > { %3125 = vmatpush3.bf16.msra.mxu1 %v3319_v1  ;;  %3126 = vmatprep.mubr.msk.bf16.mxu1 %vm3406_vm1, %v3405_v2  ;;  %v2352_v1 = vshll.u32 %v3347_v62, 16 }
  0x6a   : > { %3136 = vmatprep.subr.bf16.mxu1 %v3405_v2 }
  0x6c   : > { %3109 = vmatmul.mubr.msk.bf16.vlgmr.msra.gmra.mxu0 %vm392_vm2, %v1311_v6  ;;  %v2354_v6 = vrot.slane %v2352_v1, 1 }
  0x6d   : > { %3119 = vmatpush3.bf16.msra.mxu0 %v3318_v8  ;;  %3120 = vmatprep.mubr.msk.bf16.mxu0 %vm3406_vm1, %v3405_v2 }
  0x6e   : > { %3130 = vmatprep.subr.bf16.mxu0 %v3405_v2  ;;  %v2355_v7 = vor.u32 %v2354_v6, %v2350_v5 }
  0x70   : > { %3127 = vmatmul.mubr.msk.bf16.vlgmr.msra.gmra.mxu1 %vm392_vm2, %v2835_v9 }
  0x71   : > { %3137 = vmatpush3.bf16.msra.mxu1 %v3322_v10  ;;  %3138 = vmatprep.mubr.msk.bf16.mxu1 %vm3406_vm1, %v3405_v2 }
  0x72   : > { %3148 = vmatprep.subr.bf16.mxu1 %v3405_v2 }
  0x74   : > { %3121 = vmatmul.mubr.msk.bf16.vlgmr.msra.gmra.mxu0 %vm392_vm2, %v1438_v13 }
  0x75   : > { %3131 = vmatpush3.bf16.msra.mxu0 %v3321_v14  ;;  %3132 = vmatprep.mubr.msk.bf16.mxu0 %vm3406_vm1, %v3405_v2 }
  0x76   : > { %3142 = vmatprep.subr.bf16.mxu0 %v3405_v2 }
  0x78   : > { %3139 = vmatmul.mubr.msk.bf16.vlgmr.msra.gmra.mxu1 %vm392_vm2, %v2850_v15 }
  0x79   : > { %3149 = vmatpush3.bf16.msra.mxu1 %v3325_v16  ;;  %3150 = vmatprep.mubr.msk.bf16.mxu1 %vm3406_vm1, %v3405_v2 }
  0x7a   : > { %3160 = vmatprep.subr.bf16.mxu1 %v3405_v2 }
  0x7c   : > { %3133 = vmatmul.mubr.msk.bf16.vlgmr.msra.gmra.mxu0 %vm392_vm2, %v1543_v21 }
  0x7d   : > { %3143 = vmatpush3.bf16.msra.mxu0 %v3324_v23  ;;  %3144 = vmatprep.mubr.msk.bf16.mxu0 %vm3406_vm1, %v3405_v2 }
  0x7e   : > { %3154 = vmatprep.subr.bf16.mxu0 %v3405_v2 }
  0x80   : > { %3151 = vmatmul.mubr.msk.bf16.vlgmr.msra.gmra.mxu1 %vm392_vm2, %v1716_v24 }
  0x81   : > { %3161 = vmatpush3.bf16.msra.mxu1 %v3329_v26  ;;  %3162 = vmatprep.mubr.msk.bf16.mxu1 %vm3406_vm1, %v3405_v2 }
  0x82   : > { %3172 = vmatprep.subr.bf16.mxu1 %v3405_v2 }
  0x84   : > { %3145 = vmatmul.mubr.msk.bf16.vlgmr.msra.gmra.mxu0 %vm392_vm2, %v1659_v32 }
  0x85   : > { %3155 = vmatpush3.bf16.msra.mxu0 %v3328_v33  ;;  %3156 = vmatprep.mubr.msk.bf16.mxu0 %vm3406_vm1, %v3405_v2 }
  0x86   : > { %3166 = vmatprep.subr.bf16.mxu0 %v3405_v2 }
  0x88   : > { %3163 = vmatmul.mubr.msk.bf16.vlgmr.msra.gmra.mxu1 %vm392_vm2, %v1833_v34 }
  0x89   : > { %3173 = vmatpush3.bf16.msra.mxu1 %v3332_v36  ;;  %3174 = vmatprep.mubr.msk.bf16.mxu1 %vm3406_vm1, %v3405_v2 }
  0x8a   : > { %3184 = vmatprep.subr.bf16.mxu1 %v3405_v2 }
  0x8c   : > { %3157 = vmatmul.mubr.msk.bf16.vlgmr.msra.gmra.mxu0 %vm392_vm2, %v2867_v39 }
  0x8d   : > { %3167 = vmatpush3.bf16.msra.mxu0 %v3331_v40  ;;  %3168 = vmatprep.mubr.msk.bf16.mxu0 %vm3406_vm1, %v3405_v2 }
  0x8e   : > { %3178 = vmatprep.subr.bf16.mxu0 %v3405_v2 }
  0x90   : > { %3175 = vmatmul.mubr.msk.bf16.vlgmr.msra.gmra.mxu1 %vm392_vm2, %v1960_v41 }
  0x91   : > { %3185 = vmatpush3.bf16.msra.mxu1 %v3336_v42  ;;  %3186 = vmatprep.mubr.msk.bf16.mxu1 %vm3406_vm1, %v3405_v2 }
  0x92   : > { %3196 = vmatprep.subr.bf16.mxu1 %v3405_v2 }
  0x94   : > { %3169 = vmatmul.mubr.msk.bf16.vlgmr.msra.gmra.mxu0 %vm392_vm2, %v1890_v46 }
  0x95   : > { %3179 = vmatpush3.bf16.msra.mxu0 %v3335_v47  ;;  %3180 = vmatprep.mubr.msk.bf16.mxu0 %vm3406_vm1, %v3405_v2 }
  0x96   : > { %3190 = vmatprep.subr.bf16.mxu0 %v3405_v2 }
  0x98   : > { %3187 = vmatmul.mubr.msk.bf16.vlgmr.msra.gmra.mxu1 %vm392_vm2, %v2065_v48 }
  0x99   : > { %3197 = vmatpush3.bf16.msra.mxu1 %v3339_v50  ;;  %3198 = vmatprep.mubr.msk.bf16.mxu1 %vm3406_vm1, %v3405_v2  ;;  %v897_v50 = vld [vmem:[#allocation2] sm:$0xf] }
  0x9a   : > { %3208 = vmatprep.subr.bf16.mxu1 %v3405_v2 }
  0x9c   : > { %3181 = vmatmul.mubr.msk.bf16.vlgmr.msra.gmra.mxu0 %vm392_vm2, %v2884_v53 }
  0x9d   : > { %3191 = vmatpush3.bf16.msra.mxu0 %v3338_v54  ;;  %3192 = vmatprep.mubr.msk.bf16.mxu0 %vm3406_vm1, %v3405_v2 }
  0x9e   : > { %3202 = vmatprep.subr.bf16.mxu0 %v3405_v2 }
  0xa0   : > { %3199 = vmatmul.mubr.msk.bf16.vlgmr.msra.gmra.mxu1 %vm392_vm2, %v2181_v55 }
  0xa1   : > { %3209 = vmatpush3.bf16.msra.mxu1 %v3342_v56  ;;  %3210 = vmatprep.mubr.msk.bf16.mxu1 %vm3406_vm1, %v3405_v2 }
  0xa2   : > { %3220 = vmatprep.subr.bf16.mxu1 %v3405_v2 }
  0xa4   : > { %3193 = vmatmul.mubr.msk.bf16.vlgmr.msra.gmra.mxu0 %vm392_vm2, %v2899_v57 }
  0xa5   : > { %3203 = vmatpush3.bf16.msra.mxu0 %v3341_v58  ;;  %3204 = vmatprep.mubr.msk.bf16.mxu0 %vm3406_vm1, %v3405_v2 }
  0xa6   : > { %3214 = vmatprep.subr.bf16.mxu0 %v3405_v2 }
  0xa8   : > { %3211 = vmatmul.mubr.msk.bf16.vlgmr.msra.gmra.mxu1 %vm392_vm2, %v2916_v59 }
  0xa9   : > { %3221 = vmatpush3.bf16.msra.mxu1 %v3345_v60  ;;  %3222 = vmatprep.mubr.msk.bf16.mxu1 %vm3406_vm1, %v3405_v2 }
  0xac   : > { %3205 = vmatmul.mubr.msk.bf16.vlgmr.msra.gmra.mxu0 %vm392_vm2, %v2238_v0 }
  0xad   : > { %3215 = vmatpush3.bf16.msra.mxu0 %v3344_v3  ;;  %3216 = vmatprep.mubr.msk.bf16.mxu0 %vm3406_vm1, %v3405_v2 }
  0xb0   : > { %3223 = vmatmul.mubr.msk.bf16.vlgmr.msra.gmra.mxu1 %vm392_vm2, %v2412_v4 }
  0xb4   : > { %3217 = vmatmul.mubr.msk.bf16.vlgmr.msra.gmra.mxu0 %vm392_vm2, %v2355_v7 }
  0xe8   : > { %v479_v8 = vpop.f32.mrf.mxu1 }
  0xea   : > { %v3020_v9 = vpop.f32.mrf.mxu1 }
  0xec   : > { %v482_v10 = vpop.f32.mrf.mxu1  ;;  %v430_v11 = vpop.f32.mrf.mxu0 }
  0xed   : > { %v480_v24 = vadd.f32 %v479_v8, %v430_v11 }
  0xee   : > { %v3021_v12 = vpop.f32.mrf.mxu1  ;;  %v3014_v13 = vpop.f32.mrf.mxu0 }
  0xf0   : > { %v591_v14 = vpop.f32.mrf.mxu1  ;;  %v433_v15 = vpop.f32.mrf.mxu0 }
  0xf2   : > { %v3032_v16 = vpop.f32.mrf.mxu1  ;;  %v3015_v17 = vpop.f32.mrf.mxu0 }
  0xf4   : > { %v594_v18 = vpop.f32.mrf.mxu1  ;;  %v536_v19 = vpop.f32.mrf.mxu0 }
  0xf5   : > { %v542_v27 = vadd.f32 %v536_v19, %v480_v24 }
  0xf6   : > { %v3033_v20 = vpop.f32.mrf.mxu1  ;;  %v3026_v21 = vpop.f32.mrf.mxu0 }
  0xf7   : > { %v597_v32 = vadd.f32 %v591_v14, %v542_v27 }
  0xf8   : > { %v713_v2 = vpop.f32.mrf.mxu1  ;;  %v539_v22 = vpop.f32.mrf.mxu0 }
  0xfa   : > { %v3044_v23 = vpop.f32.mrf.mxu1  ;;  %v3027_v25 = vpop.f32.mrf.mxu0 }
  0xfc   : > { %v716_v26 = vpop.f32.mrf.mxu1  ;;  %v655_v28 = vpop.f32.mrf.mxu0 }
  0xfd   : > { %v661_v35 = vadd.f32 %v655_v28, %v597_v32 }
  0xfe   : > { %v3045_v29 = vpop.f32.mrf.mxu1  ;;  %v3038_v30 = vpop.f32.mrf.mxu0 }
  0xff   : > { %v719_v40 = vadd.f32 %v713_v2, %v661_v35  ;;  %v1420_v29 = vld [vmem:[#allocation2 + $0x4] sm:$0xf] }
 0x100   : > { %v832_v31 = vpop.f32.mrf.mxu1  ;;  %v658_v33 = vpop.f32.mrf.mxu0 }
 0x102   : > { %v3056_v34 = vpop.f32.mrf.mxu1  ;;  %v3039_v36 = vpop.f32.mrf.mxu0 }
 0x104   : > { %v835_v37 = vpop.f32.mrf.mxu1  ;;  %v768_v38 = vpop.f32.mrf.mxu0 }
 0x105   : > { %v774_v43 = vadd.f32 %v768_v38, %v719_v40 }
 0x106   : > { %v3057_v39 = vpop.f32.mrf.mxu1  ;;  %v3050_v41 = vpop.f32.mrf.mxu0 }
 0x107   : > { %v838_v48 = vadd.f32 %v832_v31, %v774_v43 }
 0x108   : > { %v960_v42 = vpop.f32.mrf.mxu1  ;;  %v771_v44 = vpop.f32.mrf.mxu0 }
 0x10a   : > { %v3068_v45 = vpop.f32.mrf.mxu1  ;;  %v3051_v46 = vpop.f32.mrf.mxu0 }
 0x10c   : > { %v963_v47 = vpop.f32.mrf.mxu1  ;;  %v890_v49 = vpop.f32.mrf.mxu0 }
 0x10d   : > { %v896_v52 = vadd.f32 %v890_v49, %v838_v48 }
 0x10e   : > { %v3069_v51 = vpop.f32.mrf.mxu1  ;;  %v3062_v53 = vpop.f32.mrf.mxu0 }
 0x10f   : > { %v898_v55 = vadd.f32 %v897_v50, %v896_v52 }
 0x110   : > { %v1065_v54 = vpop.f32.mrf.mxu1  ;;  %v893_v56 = vpop.f32.mrf.mxu0 }
 0x111   : > { %900 = vst.msk [vmem:[#allocation2] sm:$0xf] %vm899_vm3, %v898_v55 }
 0x112   : > { %v3080_v57 = vpop.f32.mrf.mxu1  ;;  %v3063_v58 = vpop.f32.mrf.mxu0 }
 0x114   : > { %v1068_v59 = vpop.f32.mrf.mxu1  ;;  %v1009_v60 = vpop.f32.mrf.mxu0 }
 0x115   : > { %v1010_v5 = vadd.f32 %v1009_v60, %v960_v42 }
 0x116   : > { %v3081_v61 = vpop.f32.mrf.mxu1  ;;  %v3074_v62 = vpop.f32.mrf.mxu0 }
 0x117   : > { %v1071_v10 = vadd.f32 %v1065_v54, %v1010_v5 }
 0x118   : > { %v1181_v63 = vpop.f32.mrf.mxu1  ;;  %v1012_v0 = vpop.f32.mrf.mxu0 }
 0x11a   : > { %v3092_v1 = vpop.f32.mrf.mxu1  ;;  %v3075_v3 = vpop.f32.mrf.mxu0 }
 0x11c   : > { %v1184_v4 = vpop.f32.mrf.mxu1  ;;  %v1118_v6 = vpop.f32.mrf.mxu0 }
 0x11d   : > { %v1124_v13 = vadd.f32 %v1118_v6, %v1071_v10 }
 0x11e   : > { %v3093_v7 = vpop.f32.mrf.mxu1  ;;  %v3086_v8 = vpop.f32.mrf.mxu0 }
 0x11f   : > { %v1187_v18 = vadd.f32 %v1181_v63, %v1124_v13 }
 0x120   : > { %v1292_v9 = vpop.f32.mrf.mxu1  ;;  %v1121_v11 = vpop.f32.mrf.mxu0 }
 0x122   : > { %v3104_v12 = vpop.f32.mrf.mxu1  ;;  %v3087_v14 = vpop.f32.mrf.mxu0 }
 0x124   : > { %v1295_v15 = vpop.f32.mrf.mxu1  ;;  %v1238_v16 = vpop.f32.mrf.mxu0 }
 0x125   : > { %v1244_v21 = vadd.f32 %v1238_v16, %v1187_v18  ;;  %v1942_v15 = vld [vmem:[#allocation2 + $0x8] sm:$0xf] }
 0x126   : > { %v3105_v17 = vpop.f32.mrf.mxu1  ;;  %v3098_v19 = vpop.f32.mrf.mxu0 }
 0x127   : > { %v1298_v25 = vadd.f32 %v1292_v9, %v1244_v21 }
 0x128   : > { %v1412_v20 = vpop.f32.mrf.mxu1  ;;  %v1241_v2 = vpop.f32.mrf.mxu0 }
 0x12a   : > { %v3116_v22 = vpop.f32.mrf.mxu1  ;;  %v3099_v23 = vpop.f32.mrf.mxu0 }
 0x12c   : > { %v1415_v24 = vpop.f32.mrf.mxu1  ;;  %v1355_v26 = vpop.f32.mrf.mxu0 }
 0x12d   : > { %v1361_v28 = vadd.f32 %v1355_v26, %v1298_v25 }
 0x12e   : > { %v3117_v27 = vpop.f32.mrf.mxu1  ;;  %v3110_v30 = vpop.f32.mrf.mxu0 }
 0x12f   : > { %v1418_v32 = vadd.f32 %v1412_v20, %v1361_v28 }
 0x130   : > { %v1531_v31 = vpop.f32.mrf.mxu1  ;;  %v1358_v33 = vpop.f32.mrf.mxu0 }
 0x131   : > { %v1421_v35 = vadd.f32 %v1420_v29, %v1418_v32 }
 0x132   : > { %v3128_v34 = vpop.f32.mrf.mxu1  ;;  %v3111_v36 = vpop.f32.mrf.mxu0 }
 0x133   : > { %1422 = vst.msk [vmem:[#allocation2 + $0x4] sm:$0xf] %vm899_vm3, %v1421_v35 }
 0x134   : > { %v1534_v37 = vpop.f32.mrf.mxu1  ;;  %v1482_v38 = vpop.f32.mrf.mxu0 }
 0x135   : > { %v1532_v52 = vadd.f32 %v1531_v31, %v1482_v38 }
 0x136   : > { %v3129_v39 = vpop.f32.mrf.mxu1  ;;  %v3122_v40 = vpop.f32.mrf.mxu0 }
 0x138   : > { %v1640_v41 = vpop.f32.mrf.mxu1  ;;  %v1485_v42 = vpop.f32.mrf.mxu0 }
 0x13a   : > { %v3140_v43 = vpop.f32.mrf.mxu1  ;;  %v3123_v44 = vpop.f32.mrf.mxu0 }
 0x13c   : > { %v1643_v45 = vpop.f32.mrf.mxu1  ;;  %v1587_v46 = vpop.f32.mrf.mxu0 }
 0x13d   : > { %v1593_v55 = vadd.f32 %v1587_v46, %v1532_v52 }
 0x13e   : > { %v3141_v47 = vpop.f32.mrf.mxu1  ;;  %v3134_v48 = vpop.f32.mrf.mxu0 }
 0x13f   : > { %v1646_v60 = vadd.f32 %v1640_v41, %v1593_v55 }
 0x140   : > { %v1760_v49 = vpop.f32.mrf.mxu1  ;;  %v1590_v50 = vpop.f32.mrf.mxu0 }
 0x142   : > { %v3152_v51 = vpop.f32.mrf.mxu1  ;;  %v3135_v53 = vpop.f32.mrf.mxu0 }
 0x144   : > { %v1763_v54 = vpop.f32.mrf.mxu1  ;;  %v1703_v56 = vpop.f32.mrf.mxu0 }
 0x145   : > { %v1709_v63 = vadd.f32 %v1703_v56, %v1646_v60 }
 0x146   : > { %v3153_v57 = vpop.f32.mrf.mxu1  ;;  %v3146_v58 = vpop.f32.mrf.mxu0 }
 0x147   : > { %v1766_v5 = vadd.f32 %v1760_v49, %v1709_v63  ;;  %v2464_v57 = vld [vmem:[#allocation2 + $0xc] sm:$0xf] }
 0x148   : > { %v1877_v59 = vpop.f32.mrf.mxu1  ;;  %v1706_v61 = vpop.f32.mrf.mxu0 }
 0x14a   : > { %v3164_v62 = vpop.f32.mrf.mxu1  ;;  %v3147_v0 = vpop.f32.mrf.mxu0 }
 0x14c   : > { %v1880_v1 = vpop.f32.mrf.mxu1  ;;  %v1814_v3 = vpop.f32.mrf.mxu0 }
 0x14d   : > { %v1820_v8 = vadd.f32 %v1814_v3, %v1766_v5 }
 0x14e   : > { %v3165_v4 = vpop.f32.mrf.mxu1  ;;  %v3158_v6 = vpop.f32.mrf.mxu0 }
 0x14f   : > { %v1883_v13 = vadd.f32 %v1877_v59, %v1820_v8 }
 0x150   : > { %v2004_v7 = vpop.f32.mrf.mxu1  ;;  %v1817_v9 = vpop.f32.mrf.mxu0 }
 0x152   : > { %v3176_v10 = vpop.f32.mrf.mxu1  ;;  %v3159_v11 = vpop.f32.mrf.mxu0 }
 0x154   : > { %v2007_v12 = vpop.f32.mrf.mxu1  ;;  %v1934_v14 = vpop.f32.mrf.mxu0 }
 0x155   : > { %v1940_v17 = vadd.f32 %v1934_v14, %v1883_v13 }
 0x156   : > { %v3177_v16 = vpop.f32.mrf.mxu1  ;;  %v3170_v18 = vpop.f32.mrf.mxu0 }
 0x157   : > { %v1943_v20 = vadd.f32 %v1942_v15, %v1940_v17 }
 0x158   : > { %v2109_v19 = vpop.f32.mrf.mxu1  ;;  %v1937_v21 = vpop.f32.mrf.mxu0 }
 0x159   : > { %1944 = vst.msk [vmem:[#allocation2 + $0x8] sm:$0xf] %vm899_vm3, %v1943_v20 }
 0x15a   : > { %v3188_v2 = vpop.f32.mrf.mxu1  ;;  %v3171_v22 = vpop.f32.mrf.mxu0 }
 0x15c   : > { %v2112_v23 = vpop.f32.mrf.mxu1  ;;  %v2053_v24 = vpop.f32.mrf.mxu0 }
 0x15d   : > { %v2054_v32 = vadd.f32 %v2053_v24, %v2004_v7 }
 0x15e   : > { %v3189_v25 = vpop.f32.mrf.mxu1  ;;  %v3182_v26 = vpop.f32.mrf.mxu0 }
 0x15f   : > { %v2115_v37 = vadd.f32 %v2109_v19, %v2054_v32 }
 0x160   : > { %v2225_v27 = vpop.f32.mrf.mxu1  ;;  %v2056_v28 = vpop.f32.mrf.mxu0 }
 0x162   : > { %v3200_v29 = vpop.f32.mrf.mxu1  ;;  %v3183_v30 = vpop.f32.mrf.mxu0 }
 0x164   : > { %v2228_v31 = vpop.f32.mrf.mxu1  ;;  %v2162_v33 = vpop.f32.mrf.mxu0 }
 0x165   : > { %v2168_v40 = vadd.f32 %v2162_v33, %v2115_v37 }
 0x166   : > { %v3201_v34 = vpop.f32.mrf.mxu1  ;;  %v3194_v35 = vpop.f32.mrf.mxu0 }
 0x167   : > { %v2231_v45 = vadd.f32 %v2225_v27, %v2168_v40 }
 0x168   : > { %v2336_v36 = vpop.f32.mrf.mxu1  ;;  %v2165_v38 = vpop.f32.mrf.mxu0 }
 0x16a   : > { %v3212_v39 = vpop.f32.mrf.mxu1  ;;  %v3195_v41 = vpop.f32.mrf.mxu0 }
 0x16c   : > { %v2339_v42 = vpop.f32.mrf.mxu1  ;;  %v2282_v43 = vpop.f32.mrf.mxu0 }
 0x16d   : > { %v2288_v48 = vadd.f32 %v2282_v43, %v2231_v45 }
 0x16e   : > { %v3213_v44 = vpop.f32.mrf.mxu1  ;;  %v3206_v46 = vpop.f32.mrf.mxu0 }
 0x16f   : > { %v2342_v53 = vadd.f32 %v2336_v36, %v2288_v48 }
 0x170   : > { %v2456_v47 = vpop.f32.mrf.mxu1  ;;  %v2285_v49 = vpop.f32.mrf.mxu0 }
 0x172   : > { %v3224_v50 = vpop.f32.mrf.mxu1  ;;  %v3207_v51 = vpop.f32.mrf.mxu0 }
 0x174   : > { %v2459_v52 = vpop.f32.mrf.mxu1  ;;  %v2399_v54 = vpop.f32.mrf.mxu0 }
 0x175   : > { %v2405_v56 = vadd.f32 %v2399_v54, %v2342_v53 }
 0x176   : > { %v3225_v55 = vpop.f32.mrf.mxu1  ;;  %v3218_v58 = vpop.f32.mrf.mxu0 }
 0x177   : > { %v2462_v59 = vadd.f32 %v2456_v47, %v2405_v56  ;;  %2470 = sbr.rel (%p2933_p11) target bundleno = 410 (0x19a), region = 44 }
 0x178   : > { %v2402_v60 = vpop.f32.mrf.mxu0 }
 0x179   : > { %v2465_v61 = vadd.f32 %v2464_v57, %v2462_v59 }
 0x17a   : > { %v3219_v62 = vpop.f32.mrf.mxu0 }
 0x17b   : > { %2466 = vst.msk [vmem:[#allocation2 + $0xc] sm:$0xf] %vm899_vm3, %v2465_v61 }
 0x17c   : > { %v2471_v63 = vld [vmem:[#allocation2] sm:$0xf]  ;;  %v2472_v4 = vld [vmem:[#allocation2 + $0x4] sm:$0xf]  ;;  %v2473_v5 = vld [vmem:[#allocation2 + $0x8] sm:$0xf] }
 0x17d   : > { %v2934_v0 = vld [vmem:[%s3798_s2] ss:$0 sm:$0xff]  ;;  %vm2529_vm4 = vcmask 122880  }
 0x17e   : > { %v2935_v1 = vld [vmem:[%s3799_s3] ss:$0 sm:$0xff]  ;;  %v2482_v3 = vmul.f32 %v2934_v0, %v2471_v63  ;;  %v2483_v7 = vmul.f32 %v2934_v0, %v2472_v4  ;;  %v2484_v8 = vmul.f32 %v2934_v0, %v2473_v5 }
 0x180   : > { %v2493_v10 = vadd.f32 %v2935_v1, %v2482_v3  ;;  %v2494_v11 = vadd.f32 %v2935_v1, %v2483_v7  ;;  %v2495_v12 = vadd.f32 %v2935_v1, %v2484_v8 }
 0x182   : > { %v2474_v6 = vld [vmem:[#allocation2 + $0xc] sm:$0xf]  ;;  %2497 = vst.msk [vmem:[%s3517_s23] sm:$0xf] %vm899_vm3, %v2493_v10  ;;  %v2501_v14 = vsel %vm899_vm3, %v2493_v10, 0.0  ;;  %v2515_v15 = vsel %vm899_vm3, %v2493_v10, -inf }
 0x183   : > { %v2485_v9 = vmul.f32 %v2934_v0, %v2474_v6  ;;  %2498 = vst.msk [vmem:[%s3517_s23 + $0x4] sm:$0xf] %vm899_vm3, %v2494_v11  ;;  %v2502_v16 = vsel %vm899_vm3, %v2494_v11, 0.0  ;;  %v2516_v17 = vsel %vm899_vm3, %v2494_v11, -inf  ;;  %2499 = vst.msk [vmem:[%s3517_s23 + $0x8] sm:$0xf] %vm899_vm3, %v2495_v12 }
 0x184   : > { %v2504_v18 = vsel %vm899_vm3, %v2495_v12, 0.0  ;;  %v2517_v19 = vsel %vm899_vm3, %v2495_v12, -inf  ;;  %v2503_v20 = vadd.f32 %v2502_v16, %v2501_v14  ;;  %v2519_v2 = vmax.f32 %v2515_v15, %v2516_v17 }
 0x185   : > { %v2496_v13 = vadd.f32 %v2935_v1, %v2485_v9 }
 0x186   : > { %v2505_v24 = vadd.f32 %v2504_v18, %v2503_v20 }
 0x187   : > { %2500 = vst.msk [vmem:[%s3517_s23 + $0xc] sm:$0xf] %vm899_vm3, %v2496_v13  ;;  %v2518_v21 = vsel %vm899_vm3, %v2496_v13, -inf  ;;  %v2506_v22 = vsel %vm899_vm3, %v2496_v13, 0.0 }
 0x188   : > { %v2520_v23 = vmax.f32 %v2517_v19, %v2518_v21  ;;  %v2507_v26 = vadd.f32 %v2506_v22, %v2505_v24 }
 0x18a   : > { %v2521_v25 = vmax.f32 %v2519_v2, %v2520_v23  ;;  %v2508_v28 = vsel %vm899_vm3, %v2507_v26, 0.0 }
 0x18b   : > { %v2509_v30 = vrot.slane %v2508_v28, 4 }
 0x18c   : > { %v2522_v27 = vsel %vm899_vm3, %v2521_v25, -inf }
 0x18d   : > { %v2523_v29 = vrot.slane %v2522_v27, 4  ;;  %v2510_v32 = vadd.f32 %v2509_v30, %v2508_v28 }
 0x18f   : > { %v2524_v31 = vmax.f32 %v2522_v27, %v2523_v29  ;;  %v2511_v34 = vrot.slane %v2510_v32, 2 }
 0x191   : > { %v2525_v33 = vrot.slane %v2524_v31, 2  ;;  %v2512_v36 = vadd.f32 %v2511_v34, %v2510_v32 }
 0x193   : > { %v2526_v35 = vmax.f32 %v2524_v31, %v2525_v33  ;;  %v2513_v38 = vrot.slane %v2512_v36, 1 }
 0x195   : > { %v2527_v37 = vrot.slane %v2526_v35, 1  ;;  %v2514_v40 = vadd.f32 %v2513_v38, %v2512_v36 }
 0x197   : > { %v2528_v39 = vmax.f32 %v2526_v35, %v2527_v37  ;;  %2530 = vst.msk [vmem:[%s351_s11] sm:$0x1] %vm2529_vm4, %v2514_v40 }
 0x199   : > { %2531 = vst.msk [vmem:[%s358_s0] sm:$0x1] %vm2529_vm4, %v2528_v39 }
 0x19a PF: > { %s17_s27 = sadd.s32 1, %s3402_s27   ;;  %s3807_s8 = sld [smem:[#allocation3_spill]] }
 0x19b   : > { %p14_p12 = scmp.ge.s32.totalorder %s17_s27, 26   ;;  %s3808_s9 = sld [smem:[#allocation4_spill]] }
 0x19c   : > { %s3809_s21 = smov %s3390_s24  ;;  %s3810_s22 = smov %s3394_s25 }
 0x19d   : > { %s3811_s23 = smov %s3398_s26  ;;  %s3812_s24 = smov %s3816_s28 }
 0x19e   :  { %16 = sbr.rel (!%p14_p12) target bundleno = 4 (0x4), region = 117 }
 0x1a0   : > { %s3813_s25 = smov %s3807_s8 }
 0x1a1   : > { %s3814_s26 = smov %s3808_s9 }

// kernel: resblock_forward.11
= control target key start
LH: loop header
LB: loop body
LE: loop exit
PB: predicated region body
PF: predicated region fallthrough
CT: control target
= control target key end

     0   :  { %s2559_s0 = inlined_call_operand.vmem [shape: f32[2,10,10,10,2], index: 0, kind: input, shape index: {}]   ;;  %s2560_s1 = inlined_call_operand.vmem [shape: f32[7,7,7,2], index: 1, kind: input, shape index: {}]   ;;  %s2561_s2 = inlined_call_operand.<no memory space> [shape: f32[1,1], index: 2, kind: input, shape index: {}]   ;;  %s2562_s3 = inlined_call_operand.vmem [shape: f32[2,4,4,4,16], index: 3, kind: input, shape index: {}]   ;;  %s2563_s4 = inlined_call_operand.vmem [shape: f32[2,1,16], index: 4, kind: input, shape index: {}]   ;;  %s2564_s5 = inlined_call_operand.vmem [shape: f32[2,4,4,4,16], index: 5, kind: input, shape index: {}]   ;;  %s2565_s6 = inlined_call_operand.hbm [shape: f32[2,4,4,4,16], index: 6, kind: output, shape index: {}]  }
   0x1   :  { %v11_v0 = vstv %s2561_s2 }
   0x2   :  { %12 = vst [vmem:[#allocation3] sm:$0x1] %v11_v0 }
   0x3   :  { %13 = vsyncpa [#allocation5], 0 }
   0x4   :  { %15 = vsyncpa [#allocation5 + $0x1], 0  ;;  %s2088_s23 = smov 0   ;;  %s2090_s24 = smov 0  }
   0x5   :  { %s2092_s25 = smov 0   ;;  %s2094_s26 = smov 0  }
   0x6   :  { %s2096_s27 = smov 0   ;;  %s2098_s28 = smov 0  }
   0x7   :  { %s2100_s29 = smov 0   ;;  %s2102_s30 = smov 0  }
   0x8   :  { %s2104_s2 = smov 0   ;;  %s2106_s7 = smov 0  }
   0x9 LB: > { %2577 = sst [smem:[#allocation7_spill]] %s2007_s23  ;;  %s1536_s8 = sadd.s32 4294967295, %s2043_s7   ;;  %s2043_s7 = sphi %s2106_s7, %s21_s7   ;;  %s2039_s2 = sphi %s2104_s2, %s2601_s2   ;;  %s2035_s30 = sphi %s2102_s30, %s2600_s30   ;;  %s2031_s29 = sphi %s2100_s29, %s2599_s29   ;;  %s2027_s28 = sphi %s2098_s28, %s2598_s28   ;;  %s2023_s27 = sphi %s2096_s27, %s2597_s27   ;;  %s2019_s26 = sphi %s2094_s26, %s2596_s26   ;;  %s2015_s25 = sphi %s2092_s25, %s2595_s25   ;;  %s2011_s24 = sphi %s2090_s24, %s2603_s24   ;;  %s2007_s23 = sphi %s2088_s23, %s2602_s23  }
   0xa   : > { %2578 = sst [smem:[#allocation8_spill]] %s2015_s25  ;;  %s1537_s9 = sadd.s32 4294967294, %s2043_s7  }
   0xb   : > { %2579 = sst [smem:[#allocation9_spill]] %s2031_s29  ;;  %s33_s10 = sadd.s32 1, %s2031_s29 }
   0xc   : > { %2580 = sst [smem:[#allocation10_spill]] %s2035_s30  ;;  %p34_p0 = scmp.ge.s32.totalorder %s33_s10, 7 }
   0xd   : > { %2581 = sst [smem:[#allocation11_spill]] %s2039_s2  ;;  %s36_s11 = sadd.s32 1, %s2035_s30 }
   0xe   : > { %2582 = sst [smem:[#allocation12_spill]] %s2043_s7  ;;  %s40_s12 = sadd.s32 1, %s2039_s2 }
   0xf   : > { %p218_p1 = scmp.ne.s32.totalorder %s2015_s25, %s2011_s24  ;;  %s2605_s10 = smov (%p34_p0, %s33_s10), 0 }
  0x10   : > { %2583 = sst [smem:[#allocation13_spill]] %s2605_s10  ;;  %s2607_s11 = smov (!%p34_p0, %s36_s11), %s2035_s30 }
  0x11   : > { %p219_p2 = scmp.eq.s32.totalorder %s1536_s8, 55  ;;  %p224_p3 = scmp.ne.s32.totalorder %s2011_s24, %s2007_s23 }
  0x12   : > { %p38_p4 = scmp.ge.s32.totalorder %s2607_s11, 4  ;;  %p225_p5 = scmp.eq.s32.totalorder %s1537_s9, 55 }
  0x13   : > { %p2150_p6 = por %p219_p2, %p218_p1  ;;  %p1540_p8 = scmp.ge.s32.totalorder %s2043_s7, 1 }
  0x14   : > { %s2609_s11 = smov (%p38_p4, %s2607_s11), 0  ;;  %s2611_s12 = smov (!%p38_p4, %s40_s12), %s2039_s2 }
  0x15   : > { %2585 = sst [smem:[#allocation14_spill]] %s2609_s11  ;;  %p2157_p7 = por %p225_p5, %p224_p3 }
  0x16   : > { %p42_p9 = scmp.ge.s32.totalorder %s2611_s12, 2  ;;  %p298_p10 = scmp.lt.s32.totalorder %s2043_s7, 57 }
  0x17   : > { %s2586_s14 = scalar_select %p2157_p7, 1, 0 }
  0x18   : > { %s204_s15 = ssub.s32 %s2035_s30, %s2609_s11  ;;  %s2613_s12 = smov (%p42_p9, %s2611_s12), 0 }
  0x19   : > { %2587 = sst [smem:[#allocation15_spill]] %s2586_s14  ;;  %p299_p11 = pnand %p1540_p8, %p298_p10 }
  0x1a   : > { %2588 = sst [smem:[#allocation16_spill]] %s2613_s12  ;;  %s203_s16 = ssub.s32 %s2039_s2, %s2613_s12 }
  0x1b   : > { %s205_s17 = sor.u32 %s204_s15, %s203_s16  ;;  %s208_s18 = sadd.s32 1, %s2015_s25 }
  0x1c   : > { %p206_p12 = scmp.eq.s32.totalorder %s205_s17, 0  ;;  %302 = sbr.rel (%p299_p11) target bundleno = 504 (0x1f8), region = 44 }
  0x1d   : > { %s2568_s20 = sand.u32 (!%p299_p11), 1, %s2011_s24   ;;  %s359_s21 = sadd.s32 (!%p299_p11), %s2019_s26, %s2023_s27 }
  0x1e   : > { %s2171_s19 = scalar_select %p206_p12, %s2015_s25, %s208_s18  }
  0x1f   : > { %s1541_s22 = sshll.u32 (!%p299_p11), %s2568_s20, 4  ;;  %p360_p13 = scmp.lt.s32.totalorder (!%p299_p11), %s2027_s28, 1 }
  0x20   : > { %2589 = sst [smem:[#allocation17_spill]] %s2171_s19  ;;  %p362_p0 = scmp.lt.s32.totalorder (!%p299_p11), %s359_s21, 9 }
  0x21   : > { %s2180_s8 = scalar_select %p360_p13, %s2027_s28, 1 }
  0x22   : > { %s2615_s21 = smov (!%p362_p0, %s359_s21), 9  ;;  %p370_p1 = scmp.lt.s32.totalorder %s2019_s26, 6 }
  0x23   : > { %s1824_s9 = smul.u32 200, %s2180_s8  ;;  %p377_p2 = scmp.lt.s32.totalorder %s2023_s27, 3 }
  0x24   : > { %s1823_s15 = smul.u32 20, %s2615_s21  ;;  %s386_s29 = scalar_lea.vmem %s2563_s4, %s2180_s8 }
  0x25   : > { %s371_s16 = scalar_select %p370_p1, %s2019_s26, 6 }
  0x26   : > { %s366_s17 = sadd.s32 %s1824_s9, %s1823_s15  ;;  %s1545_s21 = sshll.u32 %s2180_s8, 4 }
  0x27   : > { %s1542_s18 = sshll.u32 %s366_s17, 3  ;;  %s1825_s12 = smul.u32 56, %s371_s16 }
  0x28   : > { %s2189_s20 = scalar_lea.vmem %s2559_s0, %s1542_s18  ;;  %s2212_s2 = scalar_lea.vmem [#allocation4], %s1541_s22 }
  0x29   : > { %s2198_s14 = scalar_lea.vmem %s2560_s1, %s1825_s12  ;;  %p1550_p3 = scmp.ne.s32.totalorder %s2019_s26, 0 }
  0x2a   : > { %s378_s23 = scalar_select %p377_p2, %s2023_s27, 3 }
  0x2b   : > { %399 = sbr.rel (%p1550_p3) target bundleno = 51 (0x33), region = 48 }
  0x2c   : > { %s1544_s9 = sshll.u32 %s378_s23, 2 }
  0x2d   : > { %s381_s15 = sadd.s32 %s1545_s21, %s1544_s9 }
  0x2e   : > { %s1546_s17 = sshll.u32 %s381_s15, 2 }
  0x2f   : > { %s2205_s10 = scalar_lea.vmem %s2562_s3, %s1546_s17  ;;  %s2210_s30 = scalar_lea.vmem %s2564_s5, %s1546_s17 }
  0x30   : > { %vm400_vm0 = vcmask 11264   ;;  %v2045_v1 = vmov 0.0  }
  0x31   : > { %401 = vst.msk [vmem:[#allocation2] sm:$0xf] %vm400_vm0, %v2045_v1  ;;  %402 = vst.msk [vmem:[#allocation2 + $0x4] sm:$0xf] %vm400_vm0, %v2045_v1 }
  0x32   : > { %403 = vst.msk [vmem:[#allocation2 + $0x8] sm:$0xf] %vm400_vm0, %v2045_v1  ;;  %404 = vst.msk [vmem:[#allocation2 + $0xc] sm:$0xf] %vm400_vm0, %v2045_v1 }
  0x33 PF: > { %v409_v6 = vld [vmem:[%s2189_s20] sm:$0xf]  ;;  %v410_v7 = vld [vmem:[%s2189_s20 + $0x10] sm:$0xf]  ;;  %v477_v46 = vld [vmem:[%s2189_s20 + $0x4] sm:$0xf] }
  0x34   : > { %v411_v8 = vld [vmem:[%s2189_s20 + $0x20] sm:$0xf]  ;;  %v412_v9 = vld [vmem:[%s2189_s20 + $0x30] sm:$0xf]  ;;  %v478_v47 = vld [vmem:[%s2189_s20 + $0x14] sm:$0xf] }
  0x35   : > { %v1551_v10 = vld [vmem:[%s2198_s14] ss:$0 sm:$0xff]  ;;  %v426_v15 = vld [vmem:[%s2189_s20 + $0x1] sm:$0xf]  ;;  %v427_v16 = vld [vmem:[%s2189_s20 + $0x11] sm:$0xf] }
  0x36   : > { %v418_v11 = vmul.f32 %v1551_v10, %v409_v6  ;;  %v419_v12 = vmul.f32 %v1551_v10, %v410_v7  ;;  %v420_v13 = vmul.f32 %v1551_v10, %v411_v8  ;;  %v421_v14 = vmul.f32 %v1551_v10, %v412_v9  ;;  %v428_v17 = vld [vmem:[%s2189_s20 + $0x21] sm:$0xf]  ;;  %v429_v18 = vld [vmem:[%s2189_s20 + $0x31] sm:$0xf]  ;;  %v494_v55 = vld [vmem:[%s2189_s20 + $0x5] sm:$0xf] }
  0x37   : > { %v1552_v19 = vld [vmem:[%s2198_s14 + $0x1] ss:$0 sm:$0xff]  ;;  %v443_v20 = vld [vmem:[%s2189_s20 + $0x2] sm:$0xf]  ;;  %v444_v25 = vld [vmem:[%s2189_s20 + $0x12] sm:$0xf] }
  0x38   : > { %v405_v2 = vld [vmem:[#allocation2] sm:$0xf]  ;;  %v406_v3 = vld [vmem:[#allocation2 + $0x4] sm:$0xf]  ;;  %v446_v27 = vld [vmem:[%s2189_s20 + $0x32] sm:$0xf]  ;;  %v435_v28 = vmul.f32 %v1552_v19, %v426_v15  ;;  %v436_v29 = vmul.f32 %v1552_v19, %v427_v16  ;;  %v437_v30 = vmul.f32 %v1552_v19, %v428_v17  ;;  %v438_v31 = vmul.f32 %v1552_v19, %v429_v18 }
  0x39   : > { %v407_v4 = vld [vmem:[#allocation2 + $0x8] sm:$0xf]  ;;  %v408_v5 = vld [vmem:[#allocation2 + $0xc] sm:$0xf]  ;;  %v422_v21 = vadd.f32 %v418_v11, %v405_v2  ;;  %v423_v22 = vadd.f32 %v419_v12, %v406_v3  ;;  %v445_v26 = vld [vmem:[%s2189_s20 + $0x22] sm:$0xf] }
  0x3a   : > { %v424_v23 = vadd.f32 %v420_v13, %v407_v4  ;;  %v425_v24 = vadd.f32 %v421_v14, %v408_v5  ;;  %v1553_v32 = vld [vmem:[%s2198_s14 + $0x2] ss:$0 sm:$0xff]  ;;  %v460_v33 = vld [vmem:[%s2189_s20 + $0x3] sm:$0xf]  ;;  %v461_v34 = vld [vmem:[%s2189_s20 + $0x13] sm:$0xf] }
  0x3b   : > { %v452_v35 = vmul.f32 %v1553_v32, %v443_v20  ;;  %v453_v36 = vmul.f32 %v1553_v32, %v444_v25  ;;  %v454_v37 = vmul.f32 %v1553_v32, %v445_v26  ;;  %v455_v38 = vmul.f32 %v1553_v32, %v446_v27  ;;  %v462_v39 = vld [vmem:[%s2189_s20 + $0x23] sm:$0xf]  ;;  %v463_v40 = vld [vmem:[%s2189_s20 + $0x33] sm:$0xf]  ;;  %v1563_v25 = vld [vmem:[%s2198_s14 + $0x8] ss:$0 sm:$0xff] }
  0x3c   : > { %v1554_v41 = vld [vmem:[%s2198_s14 + $0x3] ss:$0 sm:$0xff]  ;;  %v439_v42 = vadd.f32 %v435_v28, %v422_v21  ;;  %v440_v43 = vadd.f32 %v436_v29, %v423_v22  ;;  %v441_v44 = vadd.f32 %v437_v30, %v424_v23  ;;  %v442_v45 = vadd.f32 %v438_v31, %v425_v24  ;;  %v479_v48 = vld [vmem:[%s2189_s20 + $0x24] sm:$0xf]  ;;  %v480_v53 = vld [vmem:[%s2189_s20 + $0x34] sm:$0xf] }
  0x3d   : > { %v469_v49 = vmul.f32 %v1554_v41, %v460_v33  ;;  %v470_v50 = vmul.f32 %v1554_v41, %v461_v34  ;;  %v471_v51 = vmul.f32 %v1554_v41, %v462_v39  ;;  %v472_v52 = vmul.f32 %v1554_v41, %v463_v40  ;;  %v1555_v54 = vld [vmem:[%s2198_s14 + $0x4] ss:$0 sm:$0xff]  ;;  %v495_v60 = vld [vmem:[%s2189_s20 + $0x15] sm:$0xf]  ;;  %v496_v61 = vld [vmem:[%s2189_s20 + $0x25] sm:$0xf] }
  0x3e   : > { %v456_v56 = vadd.f32 %v452_v35, %v439_v42  ;;  %v457_v57 = vadd.f32 %v453_v36, %v440_v43  ;;  %v458_v58 = vadd.f32 %v454_v37, %v441_v44  ;;  %v459_v59 = vadd.f32 %v455_v38, %v442_v45  ;;  %v497_v62 = vld [vmem:[%s2189_s20 + $0x35] sm:$0xf]  ;;  %v1556_v3 = vld [vmem:[%s2198_s14 + $0x5] ss:$0 sm:$0xff]  ;;  %v511_v4 = vld [vmem:[%s2189_s20 + $0x6] sm:$0xf] }
  0x3f   : > { %v486_v63 = vmul.f32 %v1555_v54, %v477_v46  ;;  %v487_v0 = vmul.f32 %v1555_v54, %v478_v47  ;;  %v488_v1 = vmul.f32 %v1555_v54, %v479_v48  ;;  %v489_v2 = vmul.f32 %v1555_v54, %v480_v53  ;;  %v512_v5 = vld [vmem:[%s2189_s20 + $0x16] sm:$0xf]  ;;  %v513_v10 = vld [vmem:[%s2189_s20 + $0x26] sm:$0xf]  ;;  %v1558_v17 = vld [vmem:[%s2189_s20 + $0x10] sm:$0xf] }
  0x40   : > { %v473_v6 = vadd.f32 %v469_v49, %v456_v56  ;;  %v474_v7 = vadd.f32 %v470_v50, %v457_v57  ;;  %v475_v8 = vadd.f32 %v471_v51, %v458_v58  ;;  %v476_v9 = vadd.f32 %v472_v52, %v459_v59  ;;  %v514_v11 = vld [vmem:[%s2189_s20 + $0x36] sm:$0xf]  ;;  %v1557_v12 = vld [vmem:[%s2198_s14 + $0x6] ss:$0 sm:$0xff]  ;;  %v1559_v18 = vld [vmem:[%s2189_s20 + $0x20] sm:$0xf] }
  0x41   : > { %v503_v13 = vmul.f32 %v1556_v3, %v494_v55  ;;  %v504_v14 = vmul.f32 %v1556_v3, %v495_v60  ;;  %v505_v15 = vmul.f32 %v1556_v3, %v496_v61  ;;  %v506_v16 = vmul.f32 %v1556_v3, %v497_v62  ;;  %v1560_v23 = vld [vmem:[%s2189_s20 + $0x30] sm:$0xf]  ;;  %v1561_v24 = vld [vmem:[%s2189_s20 + $0x40] sm:$0xf]  ;;  %v1569_v38 = vld [vmem:[%s2198_s14 + $0x9] ss:$0 sm:$0xff] }
  0x42   : > { %v490_v19 = vadd.f32 %v486_v63, %v473_v6  ;;  %v491_v20 = vadd.f32 %v487_v0, %v474_v7  ;;  %v492_v21 = vadd.f32 %v488_v1, %v475_v8  ;;  %v493_v22 = vadd.f32 %v489_v2, %v476_v9  ;;  %v1564_v30 = vld [vmem:[%s2189_s20 + $0x11] sm:$0xf]  ;;  %v1565_v31 = vld [vmem:[%s2189_s20 + $0x21] sm:$0xf]  ;;  %v1575_v51 = vld [vmem:[%s2198_s14 + $0xa] ss:$0 sm:$0xff] }
  0x43   : > { %v520_v26 = vmul.f32 %v1557_v12, %v511_v4  ;;  %v521_v27 = vmul.f32 %v1557_v12, %v512_v5  ;;  %v522_v28 = vmul.f32 %v1557_v12, %v513_v10  ;;  %v523_v29 = vmul.f32 %v1557_v12, %v514_v11  ;;  %v1566_v36 = vld [vmem:[%s2189_s20 + $0x31] sm:$0xf]  ;;  %v1567_v37 = vld [vmem:[%s2189_s20 + $0x41] sm:$0xf]  ;;  %v1581_v0 = vld [vmem:[%s2198_s14 + $0xb] ss:$0 sm:$0xff] }
  0x44   : > { %v507_v32 = vadd.f32 %v503_v13, %v490_v19  ;;  %v508_v33 = vadd.f32 %v504_v14, %v491_v20  ;;  %v509_v34 = vadd.f32 %v505_v15, %v492_v21  ;;  %v510_v35 = vadd.f32 %v506_v16, %v493_v22  ;;  %v1570_v43 = vld [vmem:[%s2189_s20 + $0x12] sm:$0xf]  ;;  %v1571_v44 = vld [vmem:[%s2189_s20 + $0x22] sm:$0xf]  ;;  %v1587_v13 = vld [vmem:[%s2198_s14 + $0xc] ss:$0 sm:$0xff] }
  0x45   : > { %v539_v39 = vmul.f32 %v1563_v25, %v1558_v17  ;;  %v540_v40 = vmul.f32 %v1563_v25, %v1559_v18  ;;  %v541_v41 = vmul.f32 %v1563_v25, %v1560_v23  ;;  %v542_v42 = vmul.f32 %v1563_v25, %v1561_v24  ;;  %v1572_v49 = vld [vmem:[%s2189_s20 + $0x32] sm:$0xf]  ;;  %v1573_v50 = vld [vmem:[%s2189_s20 + $0x42] sm:$0xf]  ;;  %p1810_p4 = scmp.ne.s32.totalorder %s2019_s26, 6 }
  0x46   : > { %v524_v45 = vadd.f32 %v520_v26, %v507_v32  ;;  %v525_v46 = vadd.f32 %v521_v27, %v508_v33  ;;  %v526_v47 = vadd.f32 %v522_v28, %v509_v34  ;;  %v527_v48 = vadd.f32 %v523_v29, %v510_v35  ;;  %v1576_v56 = vld [vmem:[%s2189_s20 + $0x13] sm:$0xf]  ;;  %v1577_v57 = vld [vmem:[%s2189_s20 + $0x23] sm:$0xf]  ;;  %v1593_v26 = vld [vmem:[%s2198_s14 + $0xd] ss:$0 sm:$0xff] }
  0x47   : > { %v556_v52 = vmul.f32 %v1569_v38, %v1564_v30  ;;  %v557_v53 = vmul.f32 %v1569_v38, %v1565_v31  ;;  %v558_v54 = vmul.f32 %v1569_v38, %v1566_v36  ;;  %v559_v55 = vmul.f32 %v1569_v38, %v1567_v37  ;;  %v1578_v62 = vld [vmem:[%s2189_s20 + $0x33] sm:$0xf]  ;;  %v1579_v63 = vld [vmem:[%s2189_s20 + $0x43] sm:$0xf] }
  0x48   : > { %v543_v58 = vadd.f32 %v539_v39, %v524_v45  ;;  %v544_v59 = vadd.f32 %v540_v40, %v525_v46  ;;  %v545_v60 = vadd.f32 %v541_v41, %v526_v47  ;;  %v546_v61 = vadd.f32 %v542_v42, %v527_v48  ;;  %v1582_v5 = vld [vmem:[%s2189_s20 + $0x14] sm:$0xf]  ;;  %v1583_v6 = vld [vmem:[%s2189_s20 + $0x24] sm:$0xf]  ;;  %v1599_v39 = vld [vmem:[%s2198_s14 + $0xe] ss:$0 sm:$0xff] }
  0x49   : > { %v573_v1 = vmul.f32 %v1575_v51, %v1570_v43  ;;  %v574_v2 = vmul.f32 %v1575_v51, %v1571_v44  ;;  %v575_v3 = vmul.f32 %v1575_v51, %v1572_v49  ;;  %v576_v4 = vmul.f32 %v1575_v51, %v1573_v50  ;;  %v1584_v11 = vld [vmem:[%s2189_s20 + $0x34] sm:$0xf]  ;;  %v1585_v12 = vld [vmem:[%s2189_s20 + $0x44] sm:$0xf]  ;;  %v1600_v44 = vld [vmem:[%s2189_s20 + $0x20] sm:$0xf] }
  0x4a   : > { %v560_v7 = vadd.f32 %v556_v52, %v543_v58  ;;  %v561_v8 = vadd.f32 %v557_v53, %v544_v59  ;;  %v562_v9 = vadd.f32 %v558_v54, %v545_v60  ;;  %v563_v10 = vadd.f32 %v559_v55, %v546_v61  ;;  %v1588_v18 = vld [vmem:[%s2189_s20 + $0x15] sm:$0xf]  ;;  %v1589_v19 = vld [vmem:[%s2189_s20 + $0x25] sm:$0xf]  ;;  %v1601_v45 = vld [vmem:[%s2189_s20 + $0x30] sm:$0xf] }
  0x4b   : > { %v590_v14 = vmul.f32 %v1581_v0, %v1576_v56  ;;  %v591_v15 = vmul.f32 %v1581_v0, %v1577_v57  ;;  %v592_v16 = vmul.f32 %v1581_v0, %v1578_v62  ;;  %v593_v17 = vmul.f32 %v1581_v0, %v1579_v63  ;;  %v1590_v24 = vld [vmem:[%s2189_s20 + $0x35] sm:$0xf]  ;;  %v1591_v25 = vld [vmem:[%s2189_s20 + $0x45] sm:$0xf]  ;;  %v1602_v50 = vld [vmem:[%s2189_s20 + $0x40] sm:$0xf] }
  0x4c   : > { %v577_v20 = vadd.f32 %v573_v1, %v560_v7  ;;  %v578_v21 = vadd.f32 %v574_v2, %v561_v8  ;;  %v579_v22 = vadd.f32 %v575_v3, %v562_v9  ;;  %v580_v23 = vadd.f32 %v576_v4, %v563_v10  ;;  %v1594_v31 = vld [vmem:[%s2189_s20 + $0x16] sm:$0xf]  ;;  %v1595_v32 = vld [vmem:[%s2189_s20 + $0x26] sm:$0xf]  ;;  %v1603_v51 = vld [vmem:[%s2189_s20 + $0x50] sm:$0xf] }
  0x4d   : > { %v607_v27 = vmul.f32 %v1587_v13, %v1582_v5  ;;  %v608_v28 = vmul.f32 %v1587_v13, %v1583_v6  ;;  %v609_v29 = vmul.f32 %v1587_v13, %v1584_v11  ;;  %v610_v30 = vmul.f32 %v1587_v13, %v1585_v12  ;;  %v1596_v37 = vld [vmem:[%s2189_s20 + $0x36] sm:$0xf]  ;;  %v1597_v38 = vld [vmem:[%s2189_s20 + $0x46] sm:$0xf]  ;;  %v1605_v52 = vld [vmem:[%s2198_s14 + $0x10] ss:$0 sm:$0xff] }
  0x4e   : > { %v594_v33 = vadd.f32 %v590_v14, %v577_v20  ;;  %v595_v34 = vadd.f32 %v591_v15, %v578_v21  ;;  %v596_v35 = vadd.f32 %v592_v16, %v579_v22  ;;  %v597_v36 = vadd.f32 %v593_v17, %v580_v23  ;;  %v1606_v57 = vld [vmem:[%s2189_s20 + $0x21] sm:$0xf]  ;;  %v1607_v58 = vld [vmem:[%s2189_s20 + $0x31] sm:$0xf] }
  0x4f   : > { %v624_v40 = vmul.f32 %v1593_v26, %v1588_v18  ;;  %v625_v41 = vmul.f32 %v1593_v26, %v1589_v19  ;;  %v626_v42 = vmul.f32 %v1593_v26, %v1590_v24  ;;  %v627_v43 = vmul.f32 %v1593_v26, %v1591_v25  ;;  %v1608_v63 = vld [vmem:[%s2189_s20 + $0x41] sm:$0xf]  ;;  %v1609_v0 = vld [vmem:[%s2189_s20 + $0x51] sm:$0xf] }
  0x50   : > { %v611_v46 = vadd.f32 %v607_v27, %v594_v33  ;;  %v612_v47 = vadd.f32 %v608_v28, %v595_v34  ;;  %v613_v48 = vadd.f32 %v609_v29, %v596_v35  ;;  %v614_v49 = vadd.f32 %v610_v30, %v597_v36  ;;  %v1611_v1 = vld [vmem:[%s2198_s14 + $0x11] ss:$0 sm:$0xff]  ;;  %v1612_v6 = vld [vmem:[%s2189_s20 + $0x22] sm:$0xf]  ;;  %v1613_v7 = vld [vmem:[%s2189_s20 + $0x32] sm:$0xf] }
  0x51   : > { %v641_v53 = vmul.f32 %v1599_v39, %v1594_v31  ;;  %v642_v54 = vmul.f32 %v1599_v39, %v1595_v32  ;;  %v643_v55 = vmul.f32 %v1599_v39, %v1596_v37  ;;  %v644_v56 = vmul.f32 %v1599_v39, %v1597_v38  ;;  %v1614_v12 = vld [vmem:[%s2189_s20 + $0x42] sm:$0xf]  ;;  %v1615_v13 = vld [vmem:[%s2189_s20 + $0x52] sm:$0xf] }
  0x52   : > { %v628_v59 = vadd.f32 %v624_v40, %v611_v46  ;;  %v629_v60 = vadd.f32 %v625_v41, %v612_v47  ;;  %v630_v61 = vadd.f32 %v626_v42, %v613_v48  ;;  %v631_v62 = vadd.f32 %v627_v43, %v614_v49  ;;  %v1617_v14 = vld [vmem:[%s2198_s14 + $0x12] ss:$0 sm:$0xff]  ;;  %v1618_v19 = vld [vmem:[%s2189_s20 + $0x23] sm:$0xf]  ;;  %v1619_v20 = vld [vmem:[%s2189_s20 + $0x33] sm:$0xf] }
  0x53   : > { %v660_v2 = vmul.f32 %v1605_v52, %v1600_v44  ;;  %v661_v3 = vmul.f32 %v1605_v52, %v1601_v45  ;;  %v662_v4 = vmul.f32 %v1605_v52, %v1602_v50  ;;  %v663_v5 = vmul.f32 %v1605_v52, %v1603_v51  ;;  %v1620_v25 = vld [vmem:[%s2189_s20 + $0x43] sm:$0xf]  ;;  %v1621_v26 = vld [vmem:[%s2189_s20 + $0x53] sm:$0xf] }
  0x54   : > { %v645_v8 = vadd.f32 %v641_v53, %v628_v59  ;;  %v646_v9 = vadd.f32 %v642_v54, %v629_v60  ;;  %v647_v10 = vadd.f32 %v643_v55, %v630_v61  ;;  %v648_v11 = vadd.f32 %v644_v56, %v631_v62  ;;  %v1623_v27 = vld [vmem:[%s2198_s14 + $0x13] ss:$0 sm:$0xff]  ;;  %v1624_v32 = vld [vmem:[%s2189_s20 + $0x24] sm:$0xf]  ;;  %v1625_v33 = vld [vmem:[%s2189_s20 + $0x34] sm:$0xf] }
  0x55   : > { %v677_v15 = vmul.f32 %v1611_v1, %v1606_v57  ;;  %v678_v16 = vmul.f32 %v1611_v1, %v1607_v58  ;;  %v679_v17 = vmul.f32 %v1611_v1, %v1608_v63  ;;  %v680_v18 = vmul.f32 %v1611_v1, %v1609_v0  ;;  %v1626_v38 = vld [vmem:[%s2189_s20 + $0x44] sm:$0xf]  ;;  %v1627_v39 = vld [vmem:[%s2189_s20 + $0x54] sm:$0xf] }
  0x56   : > { %v664_v21 = vadd.f32 %v660_v2, %v645_v8  ;;  %v665_v22 = vadd.f32 %v661_v3, %v646_v9  ;;  %v666_v23 = vadd.f32 %v662_v4, %v647_v10  ;;  %v667_v24 = vadd.f32 %v663_v5, %v648_v11  ;;  %v1629_v40 = vld [vmem:[%s2198_s14 + $0x14] ss:$0 sm:$0xff]  ;;  %v1630_v45 = vld [vmem:[%s2189_s20 + $0x25] sm:$0xf]  ;;  %v1631_v46 = vld [vmem:[%s2189_s20 + $0x35] sm:$0xf] }
  0x57   : > { %v694_v28 = vmul.f32 %v1617_v14, %v1612_v6  ;;  %v695_v29 = vmul.f32 %v1617_v14, %v1613_v7  ;;  %v696_v30 = vmul.f32 %v1617_v14, %v1614_v12  ;;  %v697_v31 = vmul.f32 %v1617_v14, %v1615_v13  ;;  %v1632_v51 = vld [vmem:[%s2189_s20 + $0x45] sm:$0xf]  ;;  %v1633_v52 = vld [vmem:[%s2189_s20 + $0x55] sm:$0xf]  ;;  %v1642_v7 = vld [vmem:[%s2189_s20 + $0x30] sm:$0xf] }
  0x58   : > { %v681_v34 = vadd.f32 %v677_v15, %v664_v21  ;;  %v682_v35 = vadd.f32 %v678_v16, %v665_v22  ;;  %v683_v36 = vadd.f32 %v679_v17, %v666_v23  ;;  %v684_v37 = vadd.f32 %v680_v18, %v667_v24  ;;  %v1635_v53 = vld [vmem:[%s2198_s14 + $0x15] ss:$0 sm:$0xff]  ;;  %v1636_v58 = vld [vmem:[%s2189_s20 + $0x26] sm:$0xf]  ;;  %v1637_v59 = vld [vmem:[%s2189_s20 + $0x36] sm:$0xf] }
  0x59   : > { %v711_v41 = vmul.f32 %v1623_v27, %v1618_v19  ;;  %v712_v42 = vmul.f32 %v1623_v27, %v1619_v20  ;;  %v713_v43 = vmul.f32 %v1623_v27, %v1620_v25  ;;  %v714_v44 = vmul.f32 %v1623_v27, %v1621_v26  ;;  %v1638_v0 = vld [vmem:[%s2189_s20 + $0x46] sm:$0xf]  ;;  %v1639_v1 = vld [vmem:[%s2189_s20 + $0x56] sm:$0xf]  ;;  %v1643_v8 = vld [vmem:[%s2189_s20 + $0x40] sm:$0xf] }
  0x5a   : > { %v698_v47 = vadd.f32 %v694_v28, %v681_v34  ;;  %v699_v48 = vadd.f32 %v695_v29, %v682_v35  ;;  %v700_v49 = vadd.f32 %v696_v30, %v683_v36  ;;  %v701_v50 = vadd.f32 %v697_v31, %v684_v37  ;;  %v1641_v2 = vld [vmem:[%s2198_s14 + $0x16] ss:$0 sm:$0xff]  ;;  %v1644_v13 = vld [vmem:[%s2189_s20 + $0x50] sm:$0xf]  ;;  %v1645_v14 = vld [vmem:[%s2189_s20 + $0x60] sm:$0xf] }
  0x5b   : > { %v728_v54 = vmul.f32 %v1629_v40, %v1624_v32  ;;  %v729_v55 = vmul.f32 %v1629_v40, %v1625_v33  ;;  %v730_v56 = vmul.f32 %v1629_v40, %v1626_v38  ;;  %v731_v57 = vmul.f32 %v1629_v40, %v1627_v39  ;;  %v1647_v15 = vld [vmem:[%s2198_s14 + $0x18] ss:$0 sm:$0xff]  ;;  %v1648_v20 = vld [vmem:[%s2189_s20 + $0x31] sm:$0xf]  ;;  %v1649_v21 = vld [vmem:[%s2189_s20 + $0x41] sm:$0xf] }
  0x5c   : > { %v715_v60 = vadd.f32 %v711_v41, %v698_v47  ;;  %v716_v61 = vadd.f32 %v712_v42, %v699_v48  ;;  %v717_v62 = vadd.f32 %v713_v43, %v700_v49  ;;  %v718_v63 = vadd.f32 %v714_v44, %v701_v50  ;;  %v1650_v26 = vld [vmem:[%s2189_s20 + $0x51] sm:$0xf]  ;;  %v1651_v27 = vld [vmem:[%s2189_s20 + $0x61] sm:$0xf]  ;;  %v1653_v28 = vld [vmem:[%s2198_s14 + $0x19] ss:$0 sm:$0xff] }
  0x5d   : > { %v745_v3 = vmul.f32 %v1635_v53, %v1630_v45  ;;  %v746_v4 = vmul.f32 %v1635_v53, %v1631_v46  ;;  %v747_v5 = vmul.f32 %v1635_v53, %v1632_v51  ;;  %v748_v6 = vmul.f32 %v1635_v53, %v1633_v52  ;;  %v1654_v33 = vld [vmem:[%s2189_s20 + $0x32] sm:$0xf]  ;;  %v1655_v34 = vld [vmem:[%s2189_s20 + $0x42] sm:$0xf]  ;;  %v1659_v41 = vld [vmem:[%s2198_s14 + $0x1a] ss:$0 sm:$0xff] }
  0x5e   : > { %v732_v9 = vadd.f32 %v728_v54, %v715_v60  ;;  %v733_v10 = vadd.f32 %v729_v55, %v716_v61  ;;  %v734_v11 = vadd.f32 %v730_v56, %v717_v62  ;;  %v735_v12 = vadd.f32 %v731_v57, %v718_v63  ;;  %v1656_v39 = vld [vmem:[%s2189_s20 + $0x52] sm:$0xf]  ;;  %v1657_v40 = vld [vmem:[%s2189_s20 + $0x62] sm:$0xf]  ;;  %v1665_v54 = vld [vmem:[%s2198_s14 + $0x1b] ss:$0 sm:$0xff] }
  0x5f   : > { %v762_v16 = vmul.f32 %v1641_v2, %v1636_v58  ;;  %v763_v17 = vmul.f32 %v1641_v2, %v1637_v59  ;;  %v764_v18 = vmul.f32 %v1641_v2, %v1638_v0  ;;  %v765_v19 = vmul.f32 %v1641_v2, %v1639_v1  ;;  %v1660_v46 = vld [vmem:[%s2189_s20 + $0x33] sm:$0xf]  ;;  %v1661_v47 = vld [vmem:[%s2189_s20 + $0x43] sm:$0xf] }
  0x60   : > { %v749_v22 = vadd.f32 %v745_v3, %v732_v9  ;;  %v750_v23 = vadd.f32 %v746_v4, %v733_v10  ;;  %v751_v24 = vadd.f32 %v747_v5, %v734_v11  ;;  %v752_v25 = vadd.f32 %v748_v6, %v735_v12  ;;  %v1662_v52 = vld [vmem:[%s2189_s20 + $0x53] sm:$0xf]  ;;  %v1663_v53 = vld [vmem:[%s2189_s20 + $0x63] sm:$0xf]  ;;  %v1671_v3 = vld [vmem:[%s2198_s14 + $0x1c] ss:$0 sm:$0xff] }
  0x61   : > { %v781_v29 = vmul.f32 %v1647_v15, %v1642_v7  ;;  %v782_v30 = vmul.f32 %v1647_v15, %v1643_v8  ;;  %v783_v31 = vmul.f32 %v1647_v15, %v1644_v13  ;;  %v784_v32 = vmul.f32 %v1647_v15, %v1645_v14  ;;  %v1666_v59 = vld [vmem:[%s2189_s20 + $0x34] sm:$0xf]  ;;  %v1667_v60 = vld [vmem:[%s2189_s20 + $0x44] sm:$0xf] }
  0x62   : > { %v766_v35 = vadd.f32 %v762_v16, %v749_v22  ;;  %v767_v36 = vadd.f32 %v763_v17, %v750_v23  ;;  %v768_v37 = vadd.f32 %v764_v18, %v751_v24  ;;  %v769_v38 = vadd.f32 %v765_v19, %v752_v25  ;;  %v1668_v1 = vld [vmem:[%s2189_s20 + $0x54] sm:$0xf]  ;;  %v1669_v2 = vld [vmem:[%s2189_s20 + $0x64] sm:$0xf]  ;;  %v1677_v16 = vld [vmem:[%s2198_s14 + $0x1d] ss:$0 sm:$0xff] }
  0x63   : > { %v798_v42 = vmul.f32 %v1653_v28, %v1648_v20  ;;  %v799_v43 = vmul.f32 %v1653_v28, %v1649_v21  ;;  %v800_v44 = vmul.f32 %v1653_v28, %v1650_v26  ;;  %v801_v45 = vmul.f32 %v1653_v28, %v1651_v27  ;;  %v1672_v8 = vld [vmem:[%s2189_s20 + $0x35] sm:$0xf]  ;;  %v1673_v9 = vld [vmem:[%s2189_s20 + $0x45] sm:$0xf] }
  0x64   : > { %v785_v48 = vadd.f32 %v781_v29, %v766_v35  ;;  %v786_v49 = vadd.f32 %v782_v30, %v767_v36  ;;  %v787_v50 = vadd.f32 %v783_v31, %v768_v37  ;;  %v788_v51 = vadd.f32 %v784_v32, %v769_v38  ;;  %v1674_v14 = vld [vmem:[%s2189_s20 + $0x55] sm:$0xf]  ;;  %v1675_v15 = vld [vmem:[%s2189_s20 + $0x65] sm:$0xf]  ;;  %v1683_v29 = vld [vmem:[%s2198_s14 + $0x1e] ss:$0 sm:$0xff] }
  0x65   : > { %v815_v55 = vmul.f32 %v1659_v41, %v1654_v33  ;;  %v816_v56 = vmul.f32 %v1659_v41, %v1655_v34  ;;  %v817_v57 = vmul.f32 %v1659_v41, %v1656_v39  ;;  %v818_v58 = vmul.f32 %v1659_v41, %v1657_v40  ;;  %v1678_v21 = vld [vmem:[%s2189_s20 + $0x36] sm:$0xf]  ;;  %v1679_v22 = vld [vmem:[%s2189_s20 + $0x46] sm:$0xf]  ;;  %v1684_v34 = vld [vmem:[%s2189_s20 + $0x40] sm:$0xf] }
  0x66   : > { %v802_v61 = vadd.f32 %v798_v42, %v785_v48  ;;  %v803_v62 = vadd.f32 %v799_v43, %v786_v49  ;;  %v804_v63 = vadd.f32 %v800_v44, %v787_v50  ;;  %v805_v0 = vadd.f32 %v801_v45, %v788_v51  ;;  %v1680_v27 = vld [vmem:[%s2189_s20 + $0x56] sm:$0xf]  ;;  %v1681_v28 = vld [vmem:[%s2189_s20 + $0x66] sm:$0xf]  ;;  %v1685_v35 = vld [vmem:[%s2189_s20 + $0x50] sm:$0xf] }
  0x67   : > { %v832_v4 = vmul.f32 %v1665_v54, %v1660_v46  ;;  %v833_v5 = vmul.f32 %v1665_v54, %v1661_v47  ;;  %v834_v6 = vmul.f32 %v1665_v54, %v1662_v52  ;;  %v835_v7 = vmul.f32 %v1665_v54, %v1663_v53  ;;  %v1686_v40 = vld [vmem:[%s2189_s20 + $0x60] sm:$0xf]  ;;  %v1687_v41 = vld [vmem:[%s2189_s20 + $0x70] sm:$0xf] }
  0x68   : > { %v819_v10 = vadd.f32 %v815_v55, %v802_v61  ;;  %v820_v11 = vadd.f32 %v816_v56, %v803_v62  ;;  %v821_v12 = vadd.f32 %v817_v57, %v804_v63  ;;  %v822_v13 = vadd.f32 %v818_v58, %v805_v0  ;;  %v1689_v42 = vld [vmem:[%s2198_s14 + $0x20] ss:$0 sm:$0xff]  ;;  %v1690_v47 = vld [vmem:[%s2189_s20 + $0x41] sm:$0xf]  ;;  %v1691_v48 = vld [vmem:[%s2189_s20 + $0x51] sm:$0xf] }
  0x69   : > { %v849_v17 = vmul.f32 %v1671_v3, %v1666_v59  ;;  %v850_v18 = vmul.f32 %v1671_v3, %v1667_v60  ;;  %v851_v19 = vmul.f32 %v1671_v3, %v1668_v1  ;;  %v852_v20 = vmul.f32 %v1671_v3, %v1669_v2  ;;  %v1692_v53 = vld [vmem:[%s2189_s20 + $0x61] sm:$0xf]  ;;  %v1693_v54 = vld [vmem:[%s2189_s20 + $0x71] sm:$0xf] }
  0x6a   : > { %v836_v23 = vadd.f32 %v832_v4, %v819_v10  ;;  %v837_v24 = vadd.f32 %v833_v5, %v820_v11  ;;  %v838_v25 = vadd.f32 %v834_v6, %v821_v12  ;;  %v839_v26 = vadd.f32 %v835_v7, %v822_v13  ;;  %v1695_v55 = vld [vmem:[%s2198_s14 + $0x21] ss:$0 sm:$0xff]  ;;  %v1696_v60 = vld [vmem:[%s2189_s20 + $0x42] sm:$0xf]  ;;  %v1697_v61 = vld [vmem:[%s2189_s20 + $0x52] sm:$0xf] }
  0x6b   : > { %v866_v30 = vmul.f32 %v1677_v16, %v1672_v8  ;;  %v867_v31 = vmul.f32 %v1677_v16, %v1673_v9  ;;  %v868_v32 = vmul.f32 %v1677_v16, %v1674_v14  ;;  %v869_v33 = vmul.f32 %v1677_v16, %v1675_v15  ;;  %v1698_v2 = vld [vmem:[%s2189_s20 + $0x62] sm:$0xf]  ;;  %v1699_v3 = vld [vmem:[%s2189_s20 + $0x72] sm:$0xf] }
  0x6c   : > { %v853_v36 = vadd.f32 %v849_v17, %v836_v23  ;;  %v854_v37 = vadd.f32 %v850_v18, %v837_v24  ;;  %v855_v38 = vadd.f32 %v851_v19, %v838_v25  ;;  %v856_v39 = vadd.f32 %v852_v20, %v839_v26  ;;  %v1701_v4 = vld [vmem:[%s2198_s14 + $0x22] ss:$0 sm:$0xff]  ;;  %v1702_v9 = vld [vmem:[%s2189_s20 + $0x43] sm:$0xf]  ;;  %v1703_v10 = vld [vmem:[%s2189_s20 + $0x53] sm:$0xf] }
  0x6d   : > { %v883_v43 = vmul.f32 %v1683_v29, %v1678_v21  ;;  %v884_v44 = vmul.f32 %v1683_v29, %v1679_v22  ;;  %v885_v45 = vmul.f32 %v1683_v29, %v1680_v27  ;;  %v886_v46 = vmul.f32 %v1683_v29, %v1681_v28  ;;  %v1704_v15 = vld [vmem:[%s2189_s20 + $0x63] sm:$0xf]  ;;  %v1705_v16 = vld [vmem:[%s2189_s20 + $0x73] sm:$0xf] }
  0x6e   : > { %v870_v49 = vadd.f32 %v866_v30, %v853_v36  ;;  %v871_v50 = vadd.f32 %v867_v31, %v854_v37  ;;  %v872_v51 = vadd.f32 %v868_v32, %v855_v38  ;;  %v873_v52 = vadd.f32 %v869_v33, %v856_v39  ;;  %v1707_v17 = vld [vmem:[%s2198_s14 + $0x23] ss:$0 sm:$0xff]  ;;  %v1708_v22 = vld [vmem:[%s2189_s20 + $0x44] sm:$0xf]  ;;  %v1709_v23 = vld [vmem:[%s2189_s20 + $0x54] sm:$0xf] }
  0x6f   : > { %v902_v56 = vmul.f32 %v1689_v42, %v1684_v34  ;;  %v903_v57 = vmul.f32 %v1689_v42, %v1685_v35  ;;  %v904_v58 = vmul.f32 %v1689_v42, %v1686_v40  ;;  %v905_v59 = vmul.f32 %v1689_v42, %v1687_v41  ;;  %v1710_v28 = vld [vmem:[%s2189_s20 + $0x64] sm:$0xf]  ;;  %v1711_v29 = vld [vmem:[%s2189_s20 + $0x74] sm:$0xf] }
  0x70   : > { %v887_v62 = vadd.f32 %v883_v43, %v870_v49  ;;  %v888_v63 = vadd.f32 %v884_v44, %v871_v50  ;;  %v889_v0 = vadd.f32 %v885_v45, %v872_v51  ;;  %v890_v1 = vadd.f32 %v886_v46, %v873_v52  ;;  %v1713_v30 = vld [vmem:[%s2198_s14 + $0x24] ss:$0 sm:$0xff]  ;;  %v1714_v35 = vld [vmem:[%s2189_s20 + $0x45] sm:$0xf]  ;;  %v1715_v36 = vld [vmem:[%s2189_s20 + $0x55] sm:$0xf] }
  0x71   : > { %v919_v5 = vmul.f32 %v1695_v55, %v1690_v47  ;;  %v920_v6 = vmul.f32 %v1695_v55, %v1691_v48  ;;  %v921_v7 = vmul.f32 %v1695_v55, %v1692_v53  ;;  %v922_v8 = vmul.f32 %v1695_v55, %v1693_v54  ;;  %v1716_v41 = vld [vmem:[%s2189_s20 + $0x65] sm:$0xf]  ;;  %v1717_v42 = vld [vmem:[%s2189_s20 + $0x75] sm:$0xf] }
  0x72   : > { %v906_v11 = vadd.f32 %v902_v56, %v887_v62  ;;  %v907_v12 = vadd.f32 %v903_v57, %v888_v63  ;;  %v908_v13 = vadd.f32 %v904_v58, %v889_v0  ;;  %v909_v14 = vadd.f32 %v905_v59, %v890_v1  ;;  %v1719_v43 = vld [vmem:[%s2198_s14 + $0x25] ss:$0 sm:$0xff]  ;;  %v1720_v48 = vld [vmem:[%s2189_s20 + $0x46] sm:$0xf]  ;;  %v1721_v49 = vld [vmem:[%s2189_s20 + $0x56] sm:$0xf] }
  0x73   : > { %v936_v18 = vmul.f32 %v1701_v4, %v1696_v60  ;;  %v937_v19 = vmul.f32 %v1701_v4, %v1697_v61  ;;  %v938_v20 = vmul.f32 %v1701_v4, %v1698_v2  ;;  %v939_v21 = vmul.f32 %v1701_v4, %v1699_v3  ;;  %v1722_v54 = vld [vmem:[%s2189_s20 + $0x66] sm:$0xf]  ;;  %v1723_v55 = vld [vmem:[%s2189_s20 + $0x76] sm:$0xf]  ;;  %v1726_v61 = vld [vmem:[%s2189_s20 + $0x50] sm:$0xf] }
  0x74   : > { %v923_v24 = vadd.f32 %v919_v5, %v906_v11  ;;  %v924_v25 = vadd.f32 %v920_v6, %v907_v12  ;;  %v925_v26 = vadd.f32 %v921_v7, %v908_v13  ;;  %v926_v27 = vadd.f32 %v922_v8, %v909_v14  ;;  %v1725_v56 = vld [vmem:[%s2198_s14 + $0x26] ss:$0 sm:$0xff]  ;;  %v1727_v62 = vld [vmem:[%s2189_s20 + $0x60] sm:$0xf]  ;;  %v1728_v3 = vld [vmem:[%s2189_s20 + $0x70] sm:$0xf] }
  0x75   : > { %v953_v31 = vmul.f32 %v1707_v17, %v1702_v9  ;;  %v954_v32 = vmul.f32 %v1707_v17, %v1703_v10  ;;  %v955_v33 = vmul.f32 %v1707_v17, %v1704_v15  ;;  %v956_v34 = vmul.f32 %v1707_v17, %v1705_v16  ;;  %v1729_v4 = vld [vmem:[%s2189_s20 + $0x80] sm:$0xf]  ;;  %v1731_v5 = vld [vmem:[%s2198_s14 + $0x28] ss:$0 sm:$0xff]  ;;  %v1732_v10 = vld [vmem:[%s2189_s20 + $0x51] sm:$0xf] }
  0x76   : > { %v940_v37 = vadd.f32 %v936_v18, %v923_v24  ;;  %v941_v38 = vadd.f32 %v937_v19, %v924_v25  ;;  %v942_v39 = vadd.f32 %v938_v20, %v925_v26  ;;  %v943_v40 = vadd.f32 %v939_v21, %v926_v27  ;;  %v1733_v11 = vld [vmem:[%s2189_s20 + $0x61] sm:$0xf]  ;;  %v1734_v16 = vld [vmem:[%s2189_s20 + $0x71] sm:$0xf]  ;;  %v1737_v18 = vld [vmem:[%s2198_s14 + $0x29] ss:$0 sm:$0xff] }
  0x77   : > { %v970_v44 = vmul.f32 %v1713_v30, %v1708_v22  ;;  %v971_v45 = vmul.f32 %v1713_v30, %v1709_v23  ;;  %v972_v46 = vmul.f32 %v1713_v30, %v1710_v28  ;;  %v973_v47 = vmul.f32 %v1713_v30, %v1711_v29  ;;  %v1735_v17 = vld [vmem:[%s2189_s20 + $0x81] sm:$0xf]  ;;  %v1738_v23 = vld [vmem:[%s2189_s20 + $0x52] sm:$0xf] }
  0x78   : > { %v957_v50 = vadd.f32 %v953_v31, %v940_v37  ;;  %v958_v51 = vadd.f32 %v954_v32, %v941_v38  ;;  %v959_v52 = vadd.f32 %v955_v33, %v942_v39  ;;  %v960_v53 = vadd.f32 %v956_v34, %v943_v40  ;;  %v1739_v24 = vld [vmem:[%s2189_s20 + $0x62] sm:$0xf]  ;;  %v1740_v29 = vld [vmem:[%s2189_s20 + $0x72] sm:$0xf]  ;;  %v1743_v31 = vld [vmem:[%s2198_s14 + $0x2a] ss:$0 sm:$0xff] }
  0x79   : > { %v987_v57 = vmul.f32 %v1719_v43, %v1714_v35  ;;  %v988_v58 = vmul.f32 %v1719_v43, %v1715_v36  ;;  %v989_v59 = vmul.f32 %v1719_v43, %v1716_v41  ;;  %v990_v60 = vmul.f32 %v1719_v43, %v1717_v42  ;;  %v1741_v30 = vld [vmem:[%s2189_s20 + $0x82] sm:$0xf]  ;;  %v1744_v36 = vld [vmem:[%s2189_s20 + $0x53] sm:$0xf] }
  0x7a   : > { %v974_v63 = vadd.f32 %v970_v44, %v957_v50  ;;  %v975_v0 = vadd.f32 %v971_v45, %v958_v51  ;;  %v976_v1 = vadd.f32 %v972_v46, %v959_v52  ;;  %v977_v2 = vadd.f32 %v973_v47, %v960_v53  ;;  %v1745_v37 = vld [vmem:[%s2189_s20 + $0x63] sm:$0xf]  ;;  %v1746_v42 = vld [vmem:[%s2189_s20 + $0x73] sm:$0xf]  ;;  %v1749_v44 = vld [vmem:[%s2198_s14 + $0x2b] ss:$0 sm:$0xff] }
  0x7b   : > { %v1004_v6 = vmul.f32 %v1725_v56, %v1720_v48  ;;  %v1005_v7 = vmul.f32 %v1725_v56, %v1721_v49  ;;  %v1006_v8 = vmul.f32 %v1725_v56, %v1722_v54  ;;  %v1007_v9 = vmul.f32 %v1725_v56, %v1723_v55  ;;  %v1747_v43 = vld [vmem:[%s2189_s20 + $0x83] sm:$0xf]  ;;  %v1750_v49 = vld [vmem:[%s2189_s20 + $0x54] sm:$0xf] }
  0x7c   : > { %v991_v12 = vadd.f32 %v987_v57, %v974_v63  ;;  %v992_v13 = vadd.f32 %v988_v58, %v975_v0  ;;  %v993_v14 = vadd.f32 %v989_v59, %v976_v1  ;;  %v994_v15 = vadd.f32 %v990_v60, %v977_v2  ;;  %v1751_v50 = vld [vmem:[%s2189_s20 + $0x64] sm:$0xf]  ;;  %v1752_v55 = vld [vmem:[%s2189_s20 + $0x74] sm:$0xf]  ;;  %v1755_v57 = vld [vmem:[%s2198_s14 + $0x2c] ss:$0 sm:$0xff] }
  0x7d   : > { %v1023_v19 = vmul.f32 %v1731_v5, %v1726_v61  ;;  %v1024_v20 = vmul.f32 %v1731_v5, %v1727_v62  ;;  %v1025_v21 = vmul.f32 %v1731_v5, %v1728_v3  ;;  %v1026_v22 = vmul.f32 %v1731_v5, %v1729_v4  ;;  %v1753_v56 = vld [vmem:[%s2189_s20 + $0x84] sm:$0xf]  ;;  %v1756_v62 = vld [vmem:[%s2189_s20 + $0x55] sm:$0xf] }
  0x7e   : > { %v1008_v25 = vadd.f32 %v1004_v6, %v991_v12  ;;  %v1009_v26 = vadd.f32 %v1005_v7, %v992_v13  ;;  %v1010_v27 = vadd.f32 %v1006_v8, %v993_v14  ;;  %v1011_v28 = vadd.f32 %v1007_v9, %v994_v15  ;;  %v1757_v63 = vld [vmem:[%s2189_s20 + $0x65] sm:$0xf]  ;;  %v1758_v4 = vld [vmem:[%s2189_s20 + $0x75] sm:$0xf]  ;;  %v1761_v6 = vld [vmem:[%s2198_s14 + $0x2d] ss:$0 sm:$0xff] }
  0x7f   : > { %v1040_v32 = vmul.f32 %v1737_v18, %v1732_v10  ;;  %v1041_v33 = vmul.f32 %v1737_v18, %v1733_v11  ;;  %v1042_v34 = vmul.f32 %v1737_v18, %v1734_v16  ;;  %v1043_v35 = vmul.f32 %v1737_v18, %v1735_v17  ;;  %v1759_v5 = vld [vmem:[%s2189_s20 + $0x85] sm:$0xf]  ;;  %v1762_v11 = vld [vmem:[%s2189_s20 + $0x56] sm:$0xf] }
  0x80   : > { %v1027_v38 = vadd.f32 %v1023_v19, %v1008_v25  ;;  %v1028_v39 = vadd.f32 %v1024_v20, %v1009_v26  ;;  %v1029_v40 = vadd.f32 %v1025_v21, %v1010_v27  ;;  %v1030_v41 = vadd.f32 %v1026_v22, %v1011_v28  ;;  %v1763_v12 = vld [vmem:[%s2189_s20 + $0x66] sm:$0xf]  ;;  %v1764_v17 = vld [vmem:[%s2189_s20 + $0x76] sm:$0xf]  ;;  %v1767_v19 = vld [vmem:[%s2198_s14 + $0x2e] ss:$0 sm:$0xff] }
  0x81   : > { %v1057_v45 = vmul.f32 %v1743_v31, %v1738_v23  ;;  %v1058_v46 = vmul.f32 %v1743_v31, %v1739_v24  ;;  %v1059_v47 = vmul.f32 %v1743_v31, %v1740_v29  ;;  %v1060_v48 = vmul.f32 %v1743_v31, %v1741_v30  ;;  %v1765_v18 = vld [vmem:[%s2189_s20 + $0x86] sm:$0xf]  ;;  %v1768_v24 = vld [vmem:[%s2189_s20 + $0x60] sm:$0xf]  ;;  %v1769_v25 = vld [vmem:[%s2189_s20 + $0x70] sm:$0xf] }
  0x82   : > { %v1044_v51 = vadd.f32 %v1040_v32, %v1027_v38  ;;  %v1045_v52 = vadd.f32 %v1041_v33, %v1028_v39  ;;  %v1046_v53 = vadd.f32 %v1042_v34, %v1029_v40  ;;  %v1047_v54 = vadd.f32 %v1043_v35, %v1030_v41  ;;  %v1770_v30 = vld [vmem:[%s2189_s20 + $0x80] sm:$0xf]  ;;  %v1771_v31 = vld [vmem:[%s2189_s20 + $0x90] sm:$0xf] }
  0x83   : > { %v1074_v58 = vmul.f32 %v1749_v44, %v1744_v36  ;;  %v1075_v59 = vmul.f32 %v1749_v44, %v1745_v37  ;;  %v1076_v60 = vmul.f32 %v1749_v44, %v1746_v42  ;;  %v1077_v61 = vmul.f32 %v1749_v44, %v1747_v43  ;;  %v1773_v32 = vld [vmem:[%s2198_s14 + $0x30] ss:$0 sm:$0xff]  ;;  %v1774_v37 = vld [vmem:[%s2189_s20 + $0x61] sm:$0xf]  ;;  %v1775_v38 = vld [vmem:[%s2189_s20 + $0x71] sm:$0xf] }
  0x84   : > { %v1061_v0 = vadd.f32 %v1057_v45, %v1044_v51  ;;  %v1062_v1 = vadd.f32 %v1058_v46, %v1045_v52  ;;  %v1063_v2 = vadd.f32 %v1059_v47, %v1046_v53  ;;  %v1064_v3 = vadd.f32 %v1060_v48, %v1047_v54  ;;  %v1776_v43 = vld [vmem:[%s2189_s20 + $0x81] sm:$0xf]  ;;  %v1777_v44 = vld [vmem:[%s2189_s20 + $0x91] sm:$0xf] }
  0x85   : > { %v1091_v7 = vmul.f32 %v1755_v57, %v1750_v49  ;;  %v1092_v8 = vmul.f32 %v1755_v57, %v1751_v50  ;;  %v1093_v9 = vmul.f32 %v1755_v57, %v1752_v55  ;;  %v1094_v10 = vmul.f32 %v1755_v57, %v1753_v56  ;;  %v1779_v45 = vld [vmem:[%s2198_s14 + $0x31] ss:$0 sm:$0xff]  ;;  %v1780_v50 = vld [vmem:[%s2189_s20 + $0x62] sm:$0xf]  ;;  %v1781_v51 = vld [vmem:[%s2189_s20 + $0x72] sm:$0xf] }
  0x86   : > { %v1078_v13 = vadd.f32 %v1074_v58, %v1061_v0  ;;  %v1079_v14 = vadd.f32 %v1075_v59, %v1062_v1  ;;  %v1080_v15 = vadd.f32 %v1076_v60, %v1063_v2  ;;  %v1081_v16 = vadd.f32 %v1077_v61, %v1064_v3  ;;  %v1782_v56 = vld [vmem:[%s2189_s20 + $0x82] sm:$0xf]  ;;  %v1783_v57 = vld [vmem:[%s2189_s20 + $0x92] sm:$0xf] }
  0x87   : > { %v1108_v20 = vmul.f32 %v1761_v6, %v1756_v62  ;;  %v1109_v21 = vmul.f32 %v1761_v6, %v1757_v63  ;;  %v1110_v22 = vmul.f32 %v1761_v6, %v1758_v4  ;;  %v1111_v23 = vmul.f32 %v1761_v6, %v1759_v5  ;;  %v1785_v58 = vld [vmem:[%s2198_s14 + $0x32] ss:$0 sm:$0xff]  ;;  %v1786_v63 = vld [vmem:[%s2189_s20 + $0x63] sm:$0xf]  ;;  %v1787_v0 = vld [vmem:[%s2189_s20 + $0x73] sm:$0xf] }
  0x88   : > { %v1095_v26 = vadd.f32 %v1091_v7, %v1078_v13  ;;  %v1096_v27 = vadd.f32 %v1092_v8, %v1079_v14  ;;  %v1097_v28 = vadd.f32 %v1093_v9, %v1080_v15  ;;  %v1098_v29 = vadd.f32 %v1094_v10, %v1081_v16  ;;  %v1788_v5 = vld [vmem:[%s2189_s20 + $0x83] sm:$0xf]  ;;  %v1789_v6 = vld [vmem:[%s2189_s20 + $0x93] sm:$0xf] }
  0x89   : > { %v1125_v33 = vmul.f32 %v1767_v19, %v1762_v11  ;;  %v1126_v34 = vmul.f32 %v1767_v19, %v1763_v12  ;;  %v1127_v35 = vmul.f32 %v1767_v19, %v1764_v17  ;;  %v1128_v36 = vmul.f32 %v1767_v19, %v1765_v18  ;;  %v1791_v7 = vld [vmem:[%s2198_s14 + $0x33] ss:$0 sm:$0xff]  ;;  %v1792_v12 = vld [vmem:[%s2189_s20 + $0x64] sm:$0xf]  ;;  %v1793_v13 = vld [vmem:[%s2189_s20 + $0x74] sm:$0xf] }
  0x8a   : > { %v1112_v39 = vadd.f32 %v1108_v20, %v1095_v26  ;;  %v1113_v40 = vadd.f32 %v1109_v21, %v1096_v27  ;;  %v1114_v41 = vadd.f32 %v1110_v22, %v1097_v28  ;;  %v1115_v42 = vadd.f32 %v1111_v23, %v1098_v29  ;;  %v1794_v18 = vld [vmem:[%s2189_s20 + $0x84] sm:$0xf]  ;;  %v1795_v19 = vld [vmem:[%s2189_s20 + $0x94] sm:$0xf] }
  0x8b   : > { %v1144_v46 = vmul.f32 %v1773_v32, %v1768_v24  ;;  %v1145_v47 = vmul.f32 %v1773_v32, %v1769_v25  ;;  %v1146_v48 = vmul.f32 %v1773_v32, %v1770_v30  ;;  %v1147_v49 = vmul.f32 %v1773_v32, %v1771_v31  ;;  %v1797_v20 = vld [vmem:[%s2198_s14 + $0x34] ss:$0 sm:$0xff]  ;;  %v1798_v25 = vld [vmem:[%s2189_s20 + $0x65] sm:$0xf]  ;;  %v1799_v26 = vld [vmem:[%s2189_s20 + $0x75] sm:$0xf] }
  0x8c   : > { %v1129_v52 = vadd.f32 %v1125_v33, %v1112_v39  ;;  %v1130_v53 = vadd.f32 %v1126_v34, %v1113_v40  ;;  %v1131_v54 = vadd.f32 %v1127_v35, %v1114_v41  ;;  %v1132_v55 = vadd.f32 %v1128_v36, %v1115_v42  ;;  %v1800_v31 = vld [vmem:[%s2189_s20 + $0x85] sm:$0xf]  ;;  %v1801_v32 = vld [vmem:[%s2189_s20 + $0x95] sm:$0xf] }
  0x8d   : > { %v1161_v59 = vmul.f32 %v1779_v45, %v1774_v37  ;;  %v1162_v60 = vmul.f32 %v1779_v45, %v1775_v38  ;;  %v1163_v61 = vmul.f32 %v1779_v45, %v1776_v43  ;;  %v1164_v62 = vmul.f32 %v1779_v45, %v1777_v44  ;;  %v1803_v33 = vld [vmem:[%s2198_s14 + $0x35] ss:$0 sm:$0xff]  ;;  %v1804_v38 = vld [vmem:[%s2189_s20 + $0x66] sm:$0xf]  ;;  %v1805_v39 = vld [vmem:[%s2189_s20 + $0x76] sm:$0xf] }
  0x8e   : > { %v1148_v1 = vadd.f32 %v1144_v46, %v1129_v52  ;;  %v1149_v2 = vadd.f32 %v1145_v47, %v1130_v53  ;;  %v1150_v3 = vadd.f32 %v1146_v48, %v1131_v54  ;;  %v1151_v4 = vadd.f32 %v1147_v49, %v1132_v55  ;;  %v1806_v44 = vld [vmem:[%s2189_s20 + $0x86] sm:$0xf]  ;;  %v1807_v45 = vld [vmem:[%s2189_s20 + $0x96] sm:$0xf] }
  0x8f   : > { %v1178_v8 = vmul.f32 %v1785_v58, %v1780_v50  ;;  %v1179_v9 = vmul.f32 %v1785_v58, %v1781_v51  ;;  %v1180_v10 = vmul.f32 %v1785_v58, %v1782_v56  ;;  %v1181_v11 = vmul.f32 %v1785_v58, %v1783_v57  ;;  %v1809_v46 = vld [vmem:[%s2198_s14 + $0x36] ss:$0 sm:$0xff] }
  0x90   : > { %v1165_v14 = vadd.f32 %v1161_v59, %v1148_v1  ;;  %v1166_v15 = vadd.f32 %v1162_v60, %v1149_v2  ;;  %v1167_v16 = vadd.f32 %v1163_v61, %v1150_v3  ;;  %v1168_v17 = vadd.f32 %v1164_v62, %v1151_v4 }
  0x91   : > { %v1195_v21 = vmul.f32 %v1791_v7, %v1786_v63  ;;  %v1196_v22 = vmul.f32 %v1791_v7, %v1787_v0  ;;  %v1197_v23 = vmul.f32 %v1791_v7, %v1788_v5  ;;  %v1198_v24 = vmul.f32 %v1791_v7, %v1789_v6 }
  0x92   : > { %v1182_v27 = vadd.f32 %v1178_v8, %v1165_v14  ;;  %v1183_v28 = vadd.f32 %v1179_v9, %v1166_v15  ;;  %v1184_v29 = vadd.f32 %v1180_v10, %v1167_v16  ;;  %v1185_v30 = vadd.f32 %v1181_v11, %v1168_v17 }
  0x93   : > { %v1212_v34 = vmul.f32 %v1797_v20, %v1792_v12  ;;  %v1213_v35 = vmul.f32 %v1797_v20, %v1793_v13  ;;  %v1214_v36 = vmul.f32 %v1797_v20, %v1794_v18  ;;  %v1215_v37 = vmul.f32 %v1797_v20, %v1795_v19 }
  0x94   : > { %v1199_v40 = vadd.f32 %v1195_v21, %v1182_v27  ;;  %v1200_v41 = vadd.f32 %v1196_v22, %v1183_v28  ;;  %v1201_v42 = vadd.f32 %v1197_v23, %v1184_v29  ;;  %v1202_v43 = vadd.f32 %v1198_v24, %v1185_v30 }
  0x95   : > { %v1229_v47 = vmul.f32 %v1803_v33, %v1798_v25  ;;  %v1230_v48 = vmul.f32 %v1803_v33, %v1799_v26  ;;  %v1231_v49 = vmul.f32 %v1803_v33, %v1800_v31  ;;  %v1232_v50 = vmul.f32 %v1803_v33, %v1801_v32 }
  0x96   : > { %v1216_v51 = vadd.f32 %v1212_v34, %v1199_v40  ;;  %v1217_v52 = vadd.f32 %v1213_v35, %v1200_v41  ;;  %v1218_v53 = vadd.f32 %v1214_v36, %v1201_v42  ;;  %v1219_v54 = vadd.f32 %v1215_v37, %v1202_v43 }
  0x97   : > { %v1246_v55 = vmul.f32 %v1809_v46, %v1804_v38  ;;  %v1247_v56 = vmul.f32 %v1809_v46, %v1805_v39  ;;  %v1248_v57 = vmul.f32 %v1809_v46, %v1806_v44  ;;  %v1249_v58 = vmul.f32 %v1809_v46, %v1807_v45 }
  0x98   : > { %v1233_v59 = vadd.f32 %v1229_v47, %v1216_v51  ;;  %v1234_v60 = vadd.f32 %v1230_v48, %v1217_v52  ;;  %v1235_v61 = vadd.f32 %v1231_v49, %v1218_v53  ;;  %v1236_v62 = vadd.f32 %v1232_v50, %v1219_v54 }
  0x99   : > { %vm1254_vm1 = vcmask 11264   ;;  %1262 = sbr.rel (%p1810_p4) target bundleno = 478 (0x1de), region = 52 }
  0x9a   : > { %v1250_v63 = vadd.f32 %v1246_v55, %v1233_v59  ;;  %v1251_v0 = vadd.f32 %v1247_v56, %v1234_v60  ;;  %v1252_v1 = vadd.f32 %v1248_v57, %v1235_v61  ;;  %v1253_v2 = vadd.f32 %v1249_v58, %v1236_v62 }
  0x9c   : > { %1255 = vst.msk [vmem:[#allocation2] sm:$0xf] %vm1254_vm1, %v1250_v63  ;;  %1256 = vst.msk [vmem:[#allocation2 + $0x4] sm:$0xf] %vm1254_vm1, %v1251_v0 }
  0x9d   : > { %1257 = vst.msk [vmem:[#allocation2 + $0x8] sm:$0xf] %vm1254_vm1, %v1252_v1  ;;  %1258 = vst.msk [vmem:[#allocation2 + $0xc] sm:$0xf] %vm1254_vm1, %v1253_v2 }
  0x9e   : > { %v2046_v11 = vmov 0   ;;  %v1811_v12 = vld [vmem:[#allocation3] ss:$0 sm:$0xff]  ;;  %v1314_v37 = vld [vmem:[%s2205_s10] sm:$0xf]  ;;  %vm1361_vm2 = vcmask 125952  }
  0x9f   : > { %1917 = vset.pattern.permute.xlu0 %v2046_v11  ;;  %1918 = vset.pattern.permute.xlu1 %v2046_v11  ;;  %v1816_v38 = vld [vmem:[%s386_s29] ss:$0 sm:$0xff]  ;;  %v1315_v40 = vld [vmem:[%s2205_s10 + $0x4] sm:$0xf]  ;;  %v1316_v45 = vld [vmem:[%s2205_s10 + $0x8] sm:$0xf] }
  0xa0   : > { %v1325_v39 = vmul.f32 %v1816_v38, %v1314_v37  ;;  %v1353_v41 = vld [vmem:[%s2210_s30] sm:$0xf]  ;;  %v1326_v44 = vmul.f32 %v1816_v38, %v1315_v40  ;;  %v1354_v47 = vld [vmem:[%s2210_s30 + $0x4] sm:$0xf]  ;;  %v1327_v50 = vmul.f32 %v1816_v38, %v1316_v45  ;;  %v1317_v51 = vld [vmem:[%s2205_s10 + $0xc] sm:$0xf] }
  0xa1   : > { %v1355_v53 = vld [vmem:[%s2210_s30 + $0x8] sm:$0xf]  ;;  %v1328_v56 = vmul.f32 %v1816_v38, %v1317_v51  ;;  %v1356_v58 = vld [vmem:[%s2210_s30 + $0xc] sm:$0xf] }
  0xa3   : > { %v1263_v3 = vld [vmem:[#allocation2] sm:$0xf]  ;;  %v1264_v4 = vld [vmem:[#allocation2 + $0x4] sm:$0xf] }
  0xa4   : > { %v1265_v5 = vld [vmem:[#allocation2 + $0x8] sm:$0xf]  ;;  %v1267_v6 = vsel %vm1254_vm1, %v1263_v3, 0.0  ;;  %v1266_v8 = vld [vmem:[#allocation2 + $0xc] sm:$0xf]  ;;  %v1270_v9 = vsel %vm1254_vm1, %v1264_v4, 0.0 }
  0xa5   : > { %v1273_v7 = vsel %vm1254_vm1, %v1265_v5, 0.0  ;;  %1268 = vadd.xlane.f32.xlu0 %v1267_v6  ;;  %v1276_v10 = vsel %vm1254_vm1, %v1266_v8, 0.0 }
  0xa6   : > { %1274 = vadd.xlane.f32.xlu1 %v1273_v7 }
  0xa9   : > { %1271 = vadd.xlane.f32.xlu0 %v1270_v9 }
  0xaa   : > { %1277 = vadd.xlane.f32.xlu1 %v1276_v10 }
 0x12e   : > { %v1269_v13 = vpop.xlane.xlu0 %1268 }
 0x12f   : > { %v1275_v14 = vpop.xlane.xlu1 %1274  ;;  %v1286_v15 = vadd.f32 %v1811_v12, %v1269_v13 }
 0x130   : > { %v1288_v16 = vadd.f32 %v1811_v12, %v1275_v14 }
 0x131   : > { %v1812_v17 = vmul.f32 -1.442695, %v1286_v15 }
 0x132   : > { %v1814_v18 = vmul.f32 -1.442695, %v1288_v16  ;;  %v1272_v19 = vpop.xlane.xlu0 %1271 }
 0x133   : > { %v1278_v20 = vpop.xlane.xlu1 %1277  ;;  %1919 = vpow2.f32 %v1812_v17  ;;  %v1287_v21 = vadd.f32 %v1811_v12, %v1272_v19 }
 0x134   : > { %v1289_v22 = vadd.f32 %v1811_v12, %v1278_v20  ;;  %1921 = vpow2.f32 %v1814_v18 }
 0x135   : > { %v1813_v23 = vmul.f32 -1.442695, %v1287_v21 }
 0x136   : > { %v1815_v24 = vmul.f32 -1.442695, %v1289_v22 }
 0x137   : > { %1923 = vpow2.f32 %v1813_v23 }
 0x138   : > { %1925 = vpow2.f32 %v1815_v24 }
 0x140   : > { %v1920_v25 = vpop.eup %1919 }
 0x141   : > { %v1302_v26 = vadd.f32 1.0, %v1920_v25  ;;  %v1922_v27 = vpop.eup %1921 }
 0x142   : > { %v1304_v30 = vadd.f32 1.0, %v1922_v27 }
 0x143   : > { %1927 = vrcp.f32 %v1302_v26 }
 0x144   : > { %v1924_v28 = vpop.eup %1923 }
 0x145   : > { %v1303_v29 = vadd.f32 1.0, %v1924_v28  ;;  %v1926_v31 = vpop.eup %1925 }
 0x146   : > { %v1305_v32 = vadd.f32 1.0, %v1926_v31 }
 0x147   : > { %1929 = vrcp.f32 %v1303_v29 }
 0x148   : > { %1931 = vrcp.f32 %v1304_v30 }
 0x149   : > { %1933 = vrcp.f32 %v1305_v32 }
 0x150   : > { %v1928_v33 = vpop.eup %1927 }
 0x151   : > { %1331 = vperm.xlu0 %1917, %v1928_v33  }
 0x154   : > { %v1930_v34 = vpop.eup %1929 }
 0x155   : > { %1336 = vperm.xlu1 %1918, %v1930_v34   ;;  %v1932_v35 = vpop.eup %1931 }
 0x156   : > { %v1934_v36 = vpop.eup %1933 }
 0x159   : > { %1341 = vperm.xlu1 %1918, %v1932_v35  }
 0x15d   : > { %1346 = vperm.xlu1 %1918, %v1934_v36  }
 0x1cc   : > { %v1332_v42 = vpop.permute.xlu0 %1331 }
 0x1cd   : > { %v1349_v43 = vmul.f32 %v1332_v42, %v1325_v39 }
 0x1cf   : > { %v1357_v46 = vadd.f32 %v1353_v41, %v1349_v43 }
 0x1d0   : > { %v1337_v48 = vpop.permute.xlu1 %1336 }
 0x1d1   : > { %1362 = vst.msk [vmem:[%s2212_s2] sm:$0xf] %vm1361_vm2, %v1357_v46  ;;  %v1350_v49 = vmul.f32 %v1337_v48, %v1326_v44 }
 0x1d3   : > { %v1358_v52 = vadd.f32 %v1354_v47, %v1350_v49 }
 0x1d4   : > { %v1342_v54 = vpop.permute.xlu1 %1341 }
 0x1d5   : > { %1363 = vst.msk [vmem:[%s2212_s2 + $0x4] sm:$0xf] %vm1361_vm2, %v1358_v52  ;;  %v1351_v55 = vmul.f32 %v1342_v54, %v1327_v50 }
 0x1d7   : > { %v1359_v57 = vadd.f32 %v1355_v53, %v1351_v55 }
 0x1d8   : > { %v1347_v59 = vpop.permute.xlu1 %1346 }
 0x1d9   : > { %1364 = vst.msk [vmem:[%s2212_s2 + $0x8] sm:$0xf] %vm1361_vm2, %v1359_v57  ;;  %v1352_v60 = vmul.f32 %v1347_v59, %v1328_v56 }
 0x1db   : > { %v1360_v61 = vadd.f32 %v1356_v58, %v1352_v60 }
 0x1dd   : > { %1365 = vst.msk [vmem:[%s2212_s2 + $0xc] sm:$0xf] %vm1361_vm2, %v1360_v61 }
 0x1de PF: > { %s1818_s26 = sshll.u32 %s2023_s27, 2  ;;  %s1819_s29 = sshll.u32 %s2027_s28, 4 }
 0x1df   : > { %s1382_s7 = sshll.u32 %s2212_s2, 4  ;;  %s1379_s12 = sadd.s32 %s1819_s29, %s1818_s26  ;;  %s2493_s7 = int_to_ptr.vmem [resolvable:$true] %s1382_s7 }
 0x1e0   : > { %s1820_s14 = sshll.u32 %s1379_s12, 6  ;;  %s2590_s8 = sand.u32 1, %s2011_s24  }
 0x1e1   : > { %s2498_s22 = scalar_lea.hbm %s2565_s6, %s1820_s14  ;;  %s2502_s21 = scalar_lea.sflag [#allocation5], %s2590_s8 }
 0x1e2   : > { %s1935_s9 = scalar_lea.vmem %s2493_s7, 256  ;;  %s2047_s27 = smov [#allocation4]  }
 0x1e3   : > { %p1936_p5 = scmp.ne.s32.totalorder %s2493_s7, %s1935_s9  ;;  %s1939_s28 = sshll.u32 %s2047_s27, 4  ;;  %s1940_s28 = int_to_ptr.vmem [resolvable:$false] %s1939_s28 }
 0x1e4   : > { %s1941_s15 = scalar_lea.vmem %s1940_s28, 512  ;;  %p1942_p10 = scmp.lt.s32.totalorder %s2493_s7, %s1940_s28 }
 0x1e5   : > { %p1937_p8 = pnand %p1936_p5, %p2150_p6  ;;  %p1943_p11 = scmp.lt.s32.totalorder %s1941_s15, %s1935_s9 }
 0x1e7   : > { %p1938_p9 = pneg %p1937_p8  ;;  %p1944_p12 = por %p1943_p11, %p1942_p10 }
 0x1e9   : > { %p1945_p13 = pnand %p1944_p12, %p1938_p9 }
 0x1eb   : > { %1948 = shalt.err (!%p1945_p13)
}
 0x1ec   : > { %s1949_s17 = scalar_lea.hbm %s2498_s22, 256  ;;  %s1953_s11 = scalar_lea.hbm %s2565_s6, 2048 }
 0x1ed   : > { %p1950_p0 = scmp.ne.s32.totalorder %s2498_s22, %s1949_s17  ;;  %p1954_p3 = scmp.lt.s32.totalorder %s2498_s22, %s2565_s6 }
 0x1ee   : > { %p1955_p4 = scmp.lt.s32.totalorder %s1953_s11, %s1949_s17 }
 0x1ef   : > { %p1951_p1 = pnand %p1950_p0, %p2150_p6 }
 0x1f0   : > { %p1956_p5 = por %p1955_p4, %p1954_p3 }
 0x1f1   : > { %p1952_p2 = pneg %p1951_p1 }
 0x1f3   : > { %p1957_p8 = pnand %p1956_p5, %p1952_p2 }
 0x1f5   : > { %1960 = shalt.err (!%p1957_p8)
}
 0x1f6   : > { %s2048_s2 = smov 64   ;;  %s2049_s23 = smov 4  }
 0x1f7   : > { %1826 = dma.vmem_to_hbm [thread:$0]  (%p2150_p6), %s2493_s7, 256, %s2498_s22, %s2502_s21, %s2048_s2, %s2048_s2, %s2049_s23  }
 0x1f8 PF: > { %s2591_s25 = sld [smem:[#allocation12_spill]] }
 0x1f9   : > { %s2592_s26 = sld [smem:[#allocation7_spill]] }
 0x1fe   : > { %p1832_p9 = scmp.ge.s32.totalorder %s2591_s25, 2 }
 0x1ff   : > { %s1397_s12 = sand.u32 1, %s2592_s26  }
 0x200   : > { %p1829_p10 = pnand %p1832_p9, %p2157_p7  ;;  %s1398_s14 = scalar_lea.sflag [#allocation5], %s1397_s12 }
 0x202   : > { %p1830_p11 = pneg %p1829_p10 }
 0x204   : > { %2002 = dma.done.wait (%p1830_p11), %s1398_s14, 256  }
 0x205   : > { %2004 = vsyncadd (%p1830_p11), %s1398_s14, 4294967040  ;;  %s21_s7 = sadd.s32 1, %s2591_s25   ;;  %s2594_s19 = sld [smem:[#allocation8_spill]] }
 0x206   : > { %p18_p12 = scmp.ge.s32.totalorder %s21_s7, 58   ;;  %s2595_s25 = sld [smem:[#allocation17_spill]] }
 0x207   : > { %s2596_s26 = sld [smem:[#allocation9_spill]]  ;;  %s2602_s23 = smov %s2011_s24 }
 0x208   : > { %s2597_s27 = sld [smem:[#allocation10_spill]]  ;;  %20 = sbr.rel (!%p18_p12) target bundleno = 9 (0x9), region = 111 }
 0x209   : > { %s2598_s28 = sld [smem:[#allocation11_spill]] }
 0x20a   : > { %s2599_s29 = sld [smem:[#allocation13_spill]] }
 0x20b   : > { %s2600_s30 = sld [smem:[#allocation14_spill]]  ;;  %s2603_s24 = smov %s2594_s19 }
 0x20c   : > { %s2601_s2 = sld [smem:[#allocation16_spill]] }
 0x20d   :  { %1403 = vsyncpa [#allocation5], 1 }
 0x20e   :  { %1405 = vsyncpa [#allocation5 + $0x1], 1 }

</bundles_post_ra>
